<compile_context>
chip_gen: v7x
topology: tpu7x:2x2x1
jax: 0.10.0
libtpu: 0.0.40
codegen_flags: <defaults>
</compile_context>

<pallas_src>
import jax
import jax.numpy as jnp
from jax import lax
from jax.experimental import pallas as pl
from jax.experimental.pallas import tpu as pltpu


# ----------------------------------------------------------------------------
# Fused encoder kernel: TB samples per grid step, intermediates stay in VMEM.
# ----------------------------------------------------------------------------
def _encoder_kernel(p_ref, w1_ref, b1_ref, w2_ref, b2_ref, w3_ref, b3_ref,
                    o_ref, k2_ref, y2r_ref):
    f32, bf16 = jnp.float32, jnp.bfloat16
    TB = y2r_ref.shape[1]          # samples per grid step (lane-aligned, %128)
    W = 7 * TB                     # lanes of one 7-position row chunk

    w1 = w1_ref[...]               # (16, 9)   f32
    b1 = b1_ref[...]               # (16, 1)   f32
    w2 = w2_ref[...]               # (32, 144) bf16
    b2 = b2_ref[...]               # (32, 1)   f32

    # -- conv2 top/left zero padding: the never-written lane prefixes --------
    for t, sh in ((0, 8), (1, 7), (2, 7), (3, 1), (6, 1)):
        k2_ref[16 * t:16 * (t + 1), 0:sh * TB] = jnp.zeros((16, sh * TB), bf16)

    # Lane mask that zeroes quadrant column v == 6 inside a 7-position chunk;
    # feeds conv2's j == 0 left padding for the kw == 0 taps.
    m7 = lax.broadcasted_iota(jnp.int32, (1, W), 1) < 6 * TB

    # tap table: quadrant (rh*2+rw) -> [(tap, shift_in_positions, left_mask)]
    taps_of = (
        ((4, 0, False),),
        ((3, 1, True), (5, 0, False)),
        ((1, 7, False), (7, 0, False)),
        ((0, 8, True), (2, 7, False), (6, 1, True), (8, 0, False)),
    )

    # -- conv1 (1->16, MXU) + ReLU, scattered into the conv2 im2col slab -----
    for q in range(4):                       # output-parity quadrant
        need_mask = any(m for _, _, m in taps_of[q])
        for u in range(7):                   # quadrant row (7 positions/chunk)
            patch = p_ref[q, :, u * W:(u + 1) * W]                # (9, 7*TB)
            acc = jnp.dot(w1, patch, preferred_element_type=f32) + b1
            vb = jnp.maximum(acc, 0.0).astype(bf16)               # (16, 7*TB)
            vm = (jnp.where(m7, vb, jnp.zeros_like(vb))
                  if need_mask else None)
            for t, sh, msk in taps_of[q]:
                d0 = 7 * u + sh              # first conv2 position written
                nw = min(7, 49 - d0)         # number of positions written
                if nw <= 0:
                    continue
                src = vm if msk else vb
                k2_ref[16 * t:16 * (t + 1), d0 * TB:(d0 + nw) * TB] = \
                    src[:, 0:nw * TB]

    # -- conv2 (16->32, taps folded to K=144) + ReLU, fill the linear slab ---
    for i in range(7):                       # conv2 output row
        blk = k2_ref[:, i * W:(i + 1) * W]                        # (144, 7*TB)
        y = jnp.dot(w2, blk, preferred_element_type=f32) + b2
        yb = jnp.maximum(y, 0.0).astype(bf16)                     # (32, 7*TB)
        for j in range(7):
            s = i * 7 + j
            y2r_ref[32 * s:32 * (s + 1), :] = yb[:, j * TB:(j + 1) * TB]

    # -- flatten + Linear: single (LP,1568)x(1568,TB) MXU matmul -------------
    out = jnp.dot(w3_ref[...], y2r_ref[...], preferred_element_type=f32)
    o_ref[...] = out + b3_ref[...]


# ----------------------------------------------------------------------------
# Wrapper: parameter prep + lane-dense conv1 im2col + fused pallas_call.
# ----------------------------------------------------------------------------
def _encoder_forward_impl(x, w1, b1, w2, b2, w3, b3):
    f32, bf16 = jnp.float32, jnp.bfloat16
    B = x.shape[0]
    L = w3.shape[0]
    assert x.shape[1] == 1 and x.shape[2] == 28 and x.shape[3] == 28
    assert w3.shape[1] == 32 * 7 * 7

    TB = 256 if B >= 256 else 128          # samples per grid step
    assert TB % 128 == 0
    G = pl.cdiv(B, TB)
    Bp = G * TB
    NPB = 49 * TB
    LP = max(8, ((L + 7) // 8) * 8)        # latent padded to sublane multiple

    # ---- parameter prep (hoisted, folded once by XLA under jit) ------------
    w1t = w1.reshape(16, 9).astype(f32)                        # (16, 9)
    b1c = b1.reshape(16, 1).astype(f32)
    w2f = jnp.transpose(w2, (0, 2, 3, 1)).reshape(32, 144).astype(bf16)
    b2c = b2.reshape(32, 1).astype(f32)
    # linear K index = s*32 + c  (kernel's y2r row order); fold CHW flatten
    w3r = jnp.transpose(w3.reshape(L, 32, 49), (0, 2, 1)).reshape(L, 1568)
    w3r = jnp.pad(w3r, ((0, LP - L), (0, 0))).astype(bf16)     # (LP, 1568)
    b3c = jnp.pad(b3, (0, LP - L)).reshape(LP, 1).astype(f32)

    # ---- conv1 im2col, layout (grid, quadrant, tap, position*TB + batch) ---
    xb = jnp.pad(x[:, 0].astype(f32), ((0, Bp - B), (0, 0), (0, 0)))
    xp = jnp.pad(xb, ((0, 0), (1, 1), (1, 1)))                 # (Bp, 30, 30)
    cols = [xp[:, k1:k1 + 28:2, k2:k2 + 28:2]
            for k1 in range(3) for k2 in range(3)]
    pat = jnp.stack(cols, axis=1)                              # (Bp, 9, 14, 14)
    pat = pat.reshape(Bp, 9, 7, 2, 7, 2).transpose(3, 5, 1, 2, 4, 0)
    pat = pat.reshape(4, 9, 49, G, TB).transpose(3, 0, 1, 2, 4)
    p = pat.reshape(G, 4, 9, NPB)                              # (G, 4, 9, 49*TB)

    flops = 2 * Bp * (196 * 9 * 16 + 49 * 144 * 32 + 1568 * LP)
    bytes_accessed = (p.size * 4 + (w2f.size + w3r.size) * 2
                      + Bp * LP * 4 + 512)

    grid_spec = pltpu.PrefetchScalarGridSpec(
        num_scalar_prefetch=0,
        grid=(G,),
        in_specs=[
            pl.BlockSpec((None, 4, 9, NPB), lambda g: (g, 0, 0, 0)),
            pl.BlockSpec((16, 9), lambda g: (0, 0)),
            pl.BlockSpec((16, 1), lambda g: (0, 0)),
            pl.BlockSpec((32, 144), lambda g: (0, 0)),
            pl.BlockSpec((32, 1), lambda g: (0, 0)),
            pl.BlockSpec((LP, 1568), lambda g: (0, 0)),
            pl.BlockSpec((LP, 1), lambda g: (0, 0)),
        ],
        out_specs=pl.BlockSpec((None, LP, TB), lambda g: (g, 0, 0)),
        scratch_shapes=[
            pltpu.VMEM((144, NPB), bf16),      # conv2 im2col slab (K folded)
            pltpu.VMEM((1568, TB), bf16),      # flatten+Linear K slab
        ],
    )
    out = pl.pallas_call(
        _encoder_kernel,
        out_shape=jax.ShapeDtypeStruct((G, LP, TB), f32),
        grid_spec=grid_spec,
        compiler_params=pltpu.CompilerParams(
            dimension_semantics=("parallel",),
            vmem_limit_bytes=32 * 1024 * 1024),
        cost_estimate=pl.CostEstimate(
            flops=flops, transcendentals=0, bytes_accessed=bytes_accessed),
    )(p, w1t, b1c, w2f, b2c, w3r, b3c)

    out = out.transpose(0, 2, 1).reshape(Bp, LP)               # (Bp, LP)
    return out[:B, :L]


encoder_forward = jax.jit(_encoder_forward_impl)


# ----------------------------------------------------------------------------
# Pure-JAX reference (for the correctness check)
# ----------------------------------------------------------------------------
def ref_forward(x, w1, b1, w2, b2, w3, b3):
    dn = ("NCHW", "OIHW", "NCHW")
    y = lax.conv_general_dilated(x, w1, (2, 2), ((1, 1), (1, 1)),
                                 dimension_numbers=dn) + b1[None, :, None, None]
    y = jnp.maximum(y, 0.0)
    y = lax.conv_general_dilated(y, w2, (2, 2), ((1, 1), (1, 1)),
                                 dimension_numbers=dn) + b2[None, :, None, None]
    y = jnp.maximum(y, 0.0)
    y = y.reshape(y.shape[0], -1)
    return y @ w3.T + b3


if __name__ == "__main__":
    latent_dim = 8
    image_size = 28          # required by the 32*7*7 Linear layer
    batch = 2                # small demo batch; kernel pads it up to one tile

    key = jax.random.PRNGKey(0)
    ks = jax.random.split(key, 7)

    x = jax.random.normal(ks[0], (batch, 1, image_size, image_size), jnp.float32)

    # PyTorch-shaped parameters: Conv2d OIHW, Linear (out, in)
    w1 = jax.random.normal(ks[1], (16, 1, 3, 3), jnp.float32) * 0.3
    b1 = jax.random.normal(ks[2], (16,), jnp.float32) * 0.1
    w2 = jax.random.normal(ks[3], (32, 16, 3, 3), jnp.float32) * 0.1
    b2 = jax.random.normal(ks[4], (32,), jnp.float32) * 0.1
    w3 = jax.random.normal(ks[5], (latent_dim, 32 * 7 * 7), jnp.float32) * 0.02
    b3 = jax.random.normal(ks[6], (latent_dim,), jnp.float32) * 0.1

    out = encoder_forward(x, w1, b1, w2, b2, w3, b3)
    out = jax.block_until_ready(out)
    assert out.shape == (batch, latent_dim), out.shape

    ref = ref_forward(x, w1, b1, w2, b2, w3, b3)
    max_err = float(jnp.max(jnp.abs(out - ref)))
    # conv2 / Linear use bf16 MXU operands (f32 accumulation) -> loosened tol.
    assert jnp.allclose(out, ref, atol=5e-2, rtol=5e-2), max_err

    print("KERNEL_OK")
</pallas_src>

<mosaic_0001>
module attributes {stable_mosaic.version = 11 : i64} {
  func.func @_encoder_kernel(%arg0: i32, %arg1: memref<1x4x9x6272xf32, #tpu.memory_space<vmem>>, %arg2: memref<16x9xf32, #tpu.memory_space<vmem>>, %arg3: memref<16x1xf32, #tpu.memory_space<vmem>>, %arg4: memref<32x144xbf16, #tpu.memory_space<vmem>>, %arg5: memref<32x1xf32, #tpu.memory_space<vmem>>, %arg6: memref<8x1568xbf16, #tpu.memory_space<vmem>>, %arg7: memref<8x1xf32, #tpu.memory_space<vmem>>, %arg8: memref<1x8x128xf32, #tpu.memory_space<vmem>>, %arg9: memref<144x6272xbf16, #tpu.memory_space<vmem>>, %arg10: memref<1568x128xbf16, #tpu.memory_space<vmem>>) attributes {dimension_semantics = [#tpu.dimension_semantics<parallel>], iteration_bounds = array<i64: 1>, scalar_prefetch = 0 : i64, scratch_operands = 2 : i64, tpu.core_type = #tpu.core_type<tc>, window_params = [{transform_indices = @transform_0, window_bounds = array<i64: 1, 4, 9, 6272>}, {pipeline_mode = #tpu.pipeline_mode<synchronous>, transform_indices = @transform_1, window_bounds = array<i64: 16, 9>}, {pipeline_mode = #tpu.pipeline_mode<synchronous>, transform_indices = @transform_2, window_bounds = array<i64: 16, 1>}, {pipeline_mode = #tpu.pipeline_mode<synchronous>, transform_indices = @transform_3, window_bounds = array<i64: 32, 144>}, {pipeline_mode = #tpu.pipeline_mode<synchronous>, transform_indices = @transform_4, window_bounds = array<i64: 32, 1>}, {pipeline_mode = #tpu.pipeline_mode<synchronous>, transform_indices = @transform_5, window_bounds = array<i64: 8, 1568>}, {pipeline_mode = #tpu.pipeline_mode<synchronous>, transform_indices = @transform_6, window_bounds = array<i64: 8, 1>}, {transform_indices = @transform_7, window_bounds = array<i64: 1, 8, 128>}]} {
    %c0 = arith.constant 0 : index
    %c0_0 = arith.constant 0 : index
    %0 = vector.load %arg2[%c0, %c0_0] : memref<16x9xf32, #tpu.memory_space<vmem>>, vector<16x9xf32>
    %c0_1 = arith.constant 0 : index
    %c0_2 = arith.constant 0 : index
    %1 = vector.load %arg3[%c0_1, %c0_2] : memref<16x1xf32, #tpu.memory_space<vmem>>, vector<16x1xf32>
    %c0_3 = arith.constant 0 : index
    %c0_4 = arith.constant 0 : index
    %2 = vector.load %arg4[%c0_3, %c0_4] : memref<32x144xbf16, #tpu.memory_space<vmem>>, vector<32x144xbf16>
    %c0_5 = arith.constant 0 : index
    %c0_6 = arith.constant 0 : index
    %3 = vector.load %arg5[%c0_5, %c0_6] : memref<32x1xf32, #tpu.memory_space<vmem>>, vector<32x1xf32>
    %cst = arith.constant 0.000000e+00 : bf16
    %4 = vector.broadcast %cst : bf16 to vector<16x1024xbf16>
    %c0_7 = arith.constant 0 : index
    %c0_8 = arith.constant 0 : index
    %5 = vector.load %arg9[%c0_7, %c0_8] : memref<144x6272xbf16, #tpu.memory_space<vmem>>, vector<16x1024xbf16>
    tpu.vector_store %arg9[%c0_7, %c0_8], %4 {strides = array<i32>} : memref<144x6272xbf16, #tpu.memory_space<vmem>>, vector<16x1024xbf16>,
    %cst_9 = arith.constant 0.000000e+00 : bf16
    %6 = vector.broadcast %cst_9 : bf16 to vector<16x896xbf16>
    %c16 = arith.constant 16 : index
    %c0_10 = arith.constant 0 : index
    %7 = vector.load %arg9[%c16, %c0_10] : memref<144x6272xbf16, #tpu.memory_space<vmem>>, vector<16x896xbf16>
    tpu.vector_store %arg9[%c16, %c0_10], %6 {strides = array<i32>} : memref<144x6272xbf16, #tpu.memory_space<vmem>>, vector<16x896xbf16>,
    %cst_11 = arith.constant 0.000000e+00 : bf16
    %8 = vector.broadcast %cst_11 : bf16 to vector<16x896xbf16>
    %c32 = arith.constant 32 : index
    %c0_12 = arith.constant 0 : index
    %9 = vector.load %arg9[%c32, %c0_12] : memref<144x6272xbf16, #tpu.memory_space<vmem>>, vector<16x896xbf16>
    tpu.vector_store %arg9[%c32, %c0_12], %8 {strides = array<i32>} : memref<144x6272xbf16, #tpu.memory_space<vmem>>, vector<16x896xbf16>,
    %cst_13 = arith.constant 0.000000e+00 : bf16
    %10 = vector.broadcast %cst_13 : bf16 to vector<16x128xbf16>
    %c48 = arith.constant 48 : index
    %c0_14 = arith.constant 0 : index
    %11 = vector.load %arg9[%c48, %c0_14] : memref<144x6272xbf16, #tpu.memory_space<vmem>>, vector<16x128xbf16>
    tpu.vector_store %arg9[%c48, %c0_14], %10 {strides = array<i32>} : memref<144x6272xbf16, #tpu.memory_space<vmem>>, vector<16x128xbf16>,
    %cst_15 = arith.constant 0.000000e+00 : bf16
    %12 = vector.broadcast %cst_15 : bf16 to vector<16x128xbf16>
    %c96 = arith.constant 96 : index
    %c0_16 = arith.constant 0 : index
    %13 = vector.load %arg9[%c96, %c0_16] : memref<144x6272xbf16, #tpu.memory_space<vmem>>, vector<16x128xbf16>
    tpu.vector_store %arg9[%c96, %c0_16], %12 {strides = array<i32>} : memref<144x6272xbf16, #tpu.memory_space<vmem>>, vector<16x128xbf16>,
    %14 = tpu.iota {dimensions = array<i32: 1>} : vector<1x896xi32>
    %c768_i32 = arith.constant 768 : i32
    %15 = vector.broadcast %c768_i32 : i32 to vector<1x896xi32>
    %16 = arith.cmpi slt, %14, %15 : vector<1x896xi32>
    %c0_17 = arith.constant 0 : index
    %c0_18 = arith.constant 0 : index
    %c0_19 = arith.constant 0 : index
    %c0_20 = arith.constant 0 : index
    %17 = vector.load %arg1[%c0_17, %c0_18, %c0_19, %c0_20] : memref<1x4x9x6272xf32, #tpu.memory_space<vmem>>, vector<1x1x9x896xf32>
    %18 = vector.shape_cast %17 : vector<1x1x9x896xf32> to vector<9x896xf32>
    %cst_21 = arith.constant dense<0.000000e+00> : vector<16x896xf32>
    %19 = tpu.matmul %0, %18, %cst_21 {dimension_numbers = #tpu.dot_dimension_numbers<[1], [0], [0], [1], [0, 0, 1, 1], [], []>} : vector<16x9xf32>, vector<9x896xf32>, vector<16x896xf32> -> vector<16x896xf32>
    %20 = vector.broadcast %1 : vector<16x1xf32> to vector<16x896xf32>
    %21 = arith.addf %19, %20 : vector<16x896xf32>
    %cst_22 = arith.constant 0.000000e+00 : f32
    %22 = vector.broadcast %cst_22 : f32 to vector<16x896xf32>
    %23 = arith.maximumf %21, %22 : vector<16x896xf32>
    %24 = arith.truncf %23 : vector<16x896xf32> to vector<16x896xbf16>
    %c64 = arith.constant 64 : index
    %c0_23 = arith.constant 0 : index
    %25 = vector.load %arg9[%c64, %c0_23] : memref<144x6272xbf16, #tpu.memory_space<vmem>>, vector<16x896xbf16>
    tpu.vector_store %arg9[%c64, %c0_23], %24 {strides = array<i32>} : memref<144x6272xbf16, #tpu.memory_space<vmem>>, vector<16x896xbf16>,
    %c0_24 = arith.constant 0 : index
    %c0_25 = arith.constant 0 : index
    %c0_26 = arith.constant 0 : index
    %c896 = arith.constant 896 : index
    %26 = vector.load %arg1[%c0_24, %c0_25, %c0_26, %c896] : memref<1x4x9x6272xf32, #tpu.memory_space<vmem>>, vector<1x1x9x896xf32>
    %27 = vector.shape_cast %26 : vector<1x1x9x896xf32> to vector<9x896xf32>
    %cst_27 = arith.constant dense<0.000000e+00> : vector<16x896xf32>
    %28 = tpu.matmul %0, %27, %cst_27 {dimension_numbers = #tpu.dot_dimension_numbers<[1], [0], [0], [1], [0, 0, 1, 1], [], []>} : vector<16x9xf32>, vector<9x896xf32>, vector<16x896xf32> -> vector<16x896xf32>
    %29 = vector.broadcast %1 : vector<16x1xf32> to vector<16x896xf32>
    %30 = arith.addf %28, %29 : vector<16x896xf32>
    %cst_28 = arith.constant 0.000000e+00 : f32
    %31 = vector.broadcast %cst_28 : f32 to vector<16x896xf32>
    %32 = arith.maximumf %30, %31 : vector<16x896xf32>
    %33 = arith.truncf %32 : vector<16x896xf32> to vector<16x896xbf16>
    %c64_29 = arith.constant 64 : index
    %c896_30 = arith.constant 896 : index
    %34 = vector.load %arg9[%c64_29, %c896_30] : memref<144x6272xbf16, #tpu.memory_space<vmem>>, vector<16x896xbf16>
    tpu.vector_store %arg9[%c64_29, %c896_30], %33 {strides = array<i32>} : memref<144x6272xbf16, #tpu.memory_space<vmem>>, vector<16x896xbf16>,
    %c0_31 = arith.constant 0 : index
    %c0_32 = arith.constant 0 : index
    %c0_33 = arith.constant 0 : index
    %c1792 = arith.constant 1792 : index
    %35 = vector.load %arg1[%c0_31, %c0_32, %c0_33, %c1792] : memref<1x4x9x6272xf32, #tpu.memory_space<vmem>>, vector<1x1x9x896xf32>
    %36 = vector.shape_cast %35 : vector<1x1x9x896xf32> to vector<9x896xf32>
    %cst_34 = arith.constant dense<0.000000e+00> : vector<16x896xf32>
    %37 = tpu.matmul %0, %36, %cst_34 {dimension_numbers = #tpu.dot_dimension_numbers<[1], [0], [0], [1], [0, 0, 1, 1], [], []>} : vector<16x9xf32>, vector<9x896xf32>, vector<16x896xf32> -> vector<16x896xf32>
    %38 = vector.broadcast %1 : vector<16x1xf32> to vector<16x896xf32>
    %39 = arith.addf %37, %38 : vector<16x896xf32>
    %cst_35 = arith.constant 0.000000e+00 : f32
    %40 = vector.broadcast %cst_35 : f32 to vector<16x896xf32>
    %41 = arith.maximumf %39, %40 : vector<16x896xf32>
    %42 = arith.truncf %41 : vector<16x896xf32> to vector<16x896xbf16>
    %c64_36 = arith.constant 64 : index
    %c1792_37 = arith.constant 1792 : index
    %43 = vector.load %arg9[%c64_36, %c1792_37] : memref<144x6272xbf16, #tpu.memory_space<vmem>>, vector<16x896xbf16>
    tpu.vector_store %arg9[%c64_36, %c1792_37], %42 {strides = array<i32>} : memref<144x6272xbf16, #tpu.memory_space<vmem>>, vector<16x896xbf16>,
    %c0_38 = arith.constant 0 : index
    %c0_39 = arith.constant 0 : index
    %c0_40 = arith.constant 0 : index
    %c2688 = arith.constant 2688 : index
    %44 = vector.load %arg1[%c0_38, %c0_39, %c0_40, %c2688] : memref<1x4x9x6272xf32, #tpu.memory_space<vmem>>, vector<1x1x9x896xf32>
    %45 = vector.shape_cast %44 : vector<1x1x9x896xf32> to vector<9x896xf32>
    %cst_41 = arith.constant dense<0.000000e+00> : vector<16x896xf32>
    %46 = tpu.matmul %0, %45, %cst_41 {dimension_numbers = #tpu.dot_dimension_numbers<[1], [0], [0], [1], [0, 0, 1, 1], [], []>} : vector<16x9xf32>, vector<9x896xf32>, vector<16x896xf32> -> vector<16x896xf32>
    %47 = vector.broadcast %1 : vector<16x1xf32> to vector<16x896xf32>
    %48 = arith.addf %46, %47 : vector<16x896xf32>
    %cst_42 = arith.constant 0.000000e+00 : f32
    %49 = vector.broadcast %cst_42 : f32 to vector<16x896xf32>
    %50 = arith.maximumf %48, %49 : vector<16x896xf32>
    %51 = arith.truncf %50 : vector<16x896xf32> to vector<16x896xbf16>
    %c64_43 = arith.constant 64 : index
    %c2688_44 = arith.constant 2688 : index
    %52 = vector.load %arg9[%c64_43, %c2688_44] : memref<144x6272xbf16, #tpu.memory_space<vmem>>, vector<16x896xbf16>
    tpu.vector_store %arg9[%c64_43, %c2688_44], %51 {strides = array<i32>} : memref<144x6272xbf16, #tpu.memory_space<vmem>>, vector<16x896xbf16>,
    %c0_45 = arith.constant 0 : index
    %c0_46 = arith.constant 0 : index
    %c0_47 = arith.constant 0 : index
    %c3584 = arith.constant 3584 : index
    %53 = vector.load %arg1[%c0_45, %c0_46, %c0_47, %c3584] : memref<1x4x9x6272xf32, #tpu.memory_space<vmem>>, vector<1x1x9x896xf32>
    %54 = vector.shape_cast %53 : vector<1x1x9x896xf32> to vector<9x896xf32>
    %cst_48 = arith.constant dense<0.000000e+00> : vector<16x896xf32>
    %55 = tpu.matmul %0, %54, %cst_48 {dimension_numbers = #tpu.dot_dimension_numbers<[1], [0], [0], [1], [0, 0, 1, 1], [], []>} : vector<16x9xf32>, vector<9x896xf32>, vector<16x896xf32> -> vector<16x896xf32>
    %56 = vector.broadcast %1 : vector<16x1xf32> to vector<16x896xf32>
    %57 = arith.addf %55, %56 : vector<16x896xf32>
    %cst_49 = arith.constant 0.000000e+00 : f32
    %58 = vector.broadcast %cst_49 : f32 to vector<16x896xf32>
    %59 = arith.maximumf %57, %58 : vector<16x896xf32>
    %60 = arith.truncf %59 : vector<16x896xf32> to vector<16x896xbf16>
    %c64_50 = arith.constant 64 : index
    %c3584_51 = arith.constant 3584 : index
    %61 = vector.load %arg9[%c64_50, %c3584_51] : memref<144x6272xbf16, #tpu.memory_space<vmem>>, vector<16x896xbf16>
    tpu.vector_store %arg9[%c64_50, %c3584_51], %60 {strides = array<i32>} : memref<144x6272xbf16, #tpu.memory_space<vmem>>, vector<16x896xbf16>,
    %c0_52 = arith.constant 0 : index
    %c0_53 = arith.constant 0 : index
    %c0_54 = arith.constant 0 : index
    %c4480 = arith.constant 4480 : index
    %62 = vector.load %arg1[%c0_52, %c0_53, %c0_54, %c4480] : memref<1x4x9x6272xf32, #tpu.memory_space<vmem>>, vector<1x1x9x896xf32>
    %63 = vector.shape_cast %62 : vector<1x1x9x896xf32> to vector<9x896xf32>
    %cst_55 = arith.constant dense<0.000000e+00> : vector<16x896xf32>
    %64 = tpu.matmul %0, %63, %cst_55 {dimension_numbers = #tpu.dot_dimension_numbers<[1], [0], [0], [1], [0, 0, 1, 1], [], []>} : vector<16x9xf32>, vector<9x896xf32>, vector<16x896xf32> -> vector<16x896xf32>
    %65 = vector.broadcast %1 : vector<16x1xf32> to vector<16x896xf32>
    %66 = arith.addf %64, %65 : vector<16x896xf32>
    %cst_56 = arith.constant 0.000000e+00 : f32
    %67 = vector.broadcast %cst_56 : f32 to vector<16x896xf32>
    %68 = arith.maximumf %66, %67 : vector<16x896xf32>
    %69 = arith.truncf %68 : vector<16x896xf32> to vector<16x896xbf16>
    %c64_57 = arith.constant 64 : index
    %c4480_58 = arith.constant 4480 : index
    %70 = vector.load %arg9[%c64_57, %c4480_58] : memref<144x6272xbf16, #tpu.memory_space<vmem>>, vector<16x896xbf16>
    tpu.vector_store %arg9[%c64_57, %c4480_58], %69 {strides = array<i32>} : memref<144x6272xbf16, #tpu.memory_space<vmem>>, vector<16x896xbf16>,
    %c0_59 = arith.constant 0 : index
    %c0_60 = arith.constant 0 : index
    %c0_61 = arith.constant 0 : index
    %c5376 = arith.constant 5376 : index
    %71 = vector.load %arg1[%c0_59, %c0_60, %c0_61, %c5376] : memref<1x4x9x6272xf32, #tpu.memory_space<vmem>>, vector<1x1x9x896xf32>
    %72 = vector.shape_cast %71 : vector<1x1x9x896xf32> to vector<9x896xf32>
    %cst_62 = arith.constant dense<0.000000e+00> : vector<16x896xf32>
    %73 = tpu.matmul %0, %72, %cst_62 {dimension_numbers = #tpu.dot_dimension_numbers<[1], [0], [0], [1], [0, 0, 1, 1], [], []>} : vector<16x9xf32>, vector<9x896xf32>, vector<16x896xf32> -> vector<16x896xf32>
    %74 = vector.broadcast %1 : vector<16x1xf32> to vector<16x896xf32>
    %75 = arith.addf %73, %74 : vector<16x896xf32>
    %cst_63 = arith.constant 0.000000e+00 : f32
    %76 = vector.broadcast %cst_63 : f32 to vector<16x896xf32>
    %77 = arith.maximumf %75, %76 : vector<16x896xf32>
    %78 = arith.truncf %77 : vector<16x896xf32> to vector<16x896xbf16>
    %c64_64 = arith.constant 64 : index
    %c5376_65 = arith.constant 5376 : index
    %79 = vector.load %arg9[%c64_64, %c5376_65] : memref<144x6272xbf16, #tpu.memory_space<vmem>>, vector<16x896xbf16>
    tpu.vector_store %arg9[%c64_64, %c5376_65], %78 {strides = array<i32>} : memref<144x6272xbf16, #tpu.memory_space<vmem>>, vector<16x896xbf16>,
    %c0_66 = arith.constant 0 : index
    %c1 = arith.constant 1 : index
    %c0_67 = arith.constant 0 : index
    %c0_68 = arith.constant 0 : index
    %80 = vector.load %arg1[%c0_66, %c1, %c0_67, %c0_68] : memref<1x4x9x6272xf32, #tpu.memory_space<vmem>>, vector<1x1x9x896xf32>
    %81 = vector.shape_cast %80 : vector<1x1x9x896xf32> to vector<9x896xf32>
    %cst_69 = arith.constant dense<0.000000e+00> : vector<16x896xf32>
    %82 = tpu.matmul %0, %81, %cst_69 {dimension_numbers = #tpu.dot_dimension_numbers<[1], [0], [0], [1], [0, 0, 1, 1], [], []>} : vector<16x9xf32>, vector<9x896xf32>, vector<16x896xf32> -> vector<16x896xf32>
    %83 = vector.broadcast %1 : vector<16x1xf32> to vector<16x896xf32>
    %84 = arith.addf %82, %83 : vector<16x896xf32>
    %cst_70 = arith.constant 0.000000e+00 : f32
    %85 = vector.broadcast %cst_70 : f32 to vector<16x896xf32>
    %86 = arith.maximumf %84, %85 : vector<16x896xf32>
    %87 = arith.truncf %86 : vector<16x896xf32> to vector<16x896xbf16>
    %cst_71 = arith.constant 0.000000e+00 : bf16
    %88 = vector.broadcast %cst_71 : bf16 to vector<16x896xbf16>
    %89 = vector.shape_cast %16 : vector<1x896xi1> to vector<1x896xi1>
    %90 = vector.broadcast %89 : vector<1x896xi1> to vector<16x896xi1>
    %91 = arith.select %90, %87, %88 : vector<16x896xi1>, vector<16x896xbf16>
    %c48_72 = arith.constant 48 : index
    %c128 = arith.constant 128 : index
    %92 = vector.load %arg9[%c48_72, %c128] : memref<144x6272xbf16, #tpu.memory_space<vmem>>, vector<16x896xbf16>
    tpu.vector_store %arg9[%c48_72, %c128], %91 {strides = array<i32>} : memref<144x6272xbf16, #tpu.memory_space<vmem>>, vector<16x896xbf16>,
    %c80 = arith.constant 80 : index
    %c0_73 = arith.constant 0 : index
    %93 = vector.load %arg9[%c80, %c0_73] : memref<144x6272xbf16, #tpu.memory_space<vmem>>, vector<16x896xbf16>
    tpu.vector_store %arg9[%c80, %c0_73], %87 {strides = array<i32>} : memref<144x6272xbf16, #tpu.memory_space<vmem>>, vector<16x896xbf16>,
    %c0_74 = arith.constant 0 : index
    %c1_75 = arith.constant 1 : index
    %c0_76 = arith.constant 0 : index
    %c896_77 = arith.constant 896 : index
    %94 = vector.load %arg1[%c0_74, %c1_75, %c0_76, %c896_77] : memref<1x4x9x6272xf32, #tpu.memory_space<vmem>>, vector<1x1x9x896xf32>
    %95 = vector.shape_cast %94 : vector<1x1x9x896xf32> to vector<9x896xf32>
    %cst_78 = arith.constant dense<0.000000e+00> : vector<16x896xf32>
    %96 = tpu.matmul %0, %95, %cst_78 {dimension_numbers = #tpu.dot_dimension_numbers<[1], [0], [0], [1], [0, 0, 1, 1], [], []>} : vector<16x9xf32>, vector<9x896xf32>, vector<16x896xf32> -> vector<16x896xf32>
    %97 = vector.broadcast %1 : vector<16x1xf32> to vector<16x896xf32>
    %98 = arith.addf %96, %97 : vector<16x896xf32>
    %cst_79 = arith.constant 0.000000e+00 : f32
    %99 = vector.broadcast %cst_79 : f32 to vector<16x896xf32>
    %100 = arith.maximumf %98, %99 : vector<16x896xf32>
    %101 = arith.truncf %100 : vector<16x896xf32> to vector<16x896xbf16>
    %cst_80 = arith.constant 0.000000e+00 : bf16
    %102 = vector.broadcast %cst_80 : bf16 to vector<16x896xbf16>
    %103 = vector.shape_cast %16 : vector<1x896xi1> to vector<1x896xi1>
    %104 = vector.broadcast %103 : vector<1x896xi1> to vector<16x896xi1>
    %105 = arith.select %104, %101, %102 : vector<16x896xi1>, vector<16x896xbf16>
    %c48_81 = arith.constant 48 : index
    %c1024 = arith.constant 1024 : index
    %106 = vector.load %arg9[%c48_81, %c1024] : memref<144x6272xbf16, #tpu.memory_space<vmem>>, vector<16x896xbf16>
    tpu.vector_store %arg9[%c48_81, %c1024], %105 {strides = array<i32>} : memref<144x6272xbf16, #tpu.memory_space<vmem>>, vector<16x896xbf16>,
    %c80_82 = arith.constant 80 : index
    %c896_83 = arith.constant 896 : index
    %107 = vector.load %arg9[%c80_82, %c896_83] : memref<144x6272xbf16, #tpu.memory_space<vmem>>, vector<16x896xbf16>
    tpu.vector_store %arg9[%c80_82, %c896_83], %101 {strides = array<i32>} : memref<144x6272xbf16, #tpu.memory_space<vmem>>, vector<16x896xbf16>,
    %c0_84 = arith.constant 0 : index
    %c1_85 = arith.constant 1 : index
    %c0_86 = arith.constant 0 : index
    %c1792_87 = arith.constant 1792 : index
    %108 = vector.load %arg1[%c0_84, %c1_85, %c0_86, %c1792_87] : memref<1x4x9x6272xf32, #tpu.memory_space<vmem>>, vector<1x1x9x896xf32>
    %109 = vector.shape_cast %108 : vector<1x1x9x896xf32> to vector<9x896xf32>
    %cst_88 = arith.constant dense<0.000000e+00> : vector<16x896xf32>
    %110 = tpu.matmul %0, %109, %cst_88 {dimension_numbers = #tpu.dot_dimension_numbers<[1], [0], [0], [1], [0, 0, 1, 1], [], []>} : vector<16x9xf32>, vector<9x896xf32>, vector<16x896xf32> -> vector<16x896xf32>
    %111 = vector.broadcast %1 : vector<16x1xf32> to vector<16x896xf32>
    %112 = arith.addf %110, %111 : vector<16x896xf32>
    %cst_89 = arith.constant 0.000000e+00 : f32
    %113 = vector.broadcast %cst_89 : f32 to vector<16x896xf32>
    %114 = arith.maximumf %112, %113 : vector<16x896xf32>
    %115 = arith.truncf %114 : vector<16x896xf32> to vector<16x896xbf16>
    %cst_90 = arith.constant 0.000000e+00 : bf16
    %116 = vector.broadcast %cst_90 : bf16 to vector<16x896xbf16>
    %117 = vector.shape_cast %16 : vector<1x896xi1> to vector<1x896xi1>
    %118 = vector.broadcast %117 : vector<1x896xi1> to vector<16x896xi1>
    %119 = arith.select %118, %115, %116 : vector<16x896xi1>, vector<16x896xbf16>
    %c48_91 = arith.constant 48 : index
    %c1920 = arith.constant 1920 : index
    %120 = vector.load %arg9[%c48_91, %c1920] : memref<144x6272xbf16, #tpu.memory_space<vmem>>, vector<16x896xbf16>
    tpu.vector_store %arg9[%c48_91, %c1920], %119 {strides = array<i32>} : memref<144x6272xbf16, #tpu.memory_space<vmem>>, vector<16x896xbf16>,
    %c80_92 = arith.constant 80 : index
    %c1792_93 = arith.constant 1792 : index
    %121 = vector.load %arg9[%c80_92, %c1792_93] : memref<144x6272xbf16, #tpu.memory_space<vmem>>, vector<16x896xbf16>
    tpu.vector_store %arg9[%c80_92, %c1792_93], %115 {strides = array<i32>} : memref<144x6272xbf16, #tpu.memory_space<vmem>>, vector<16x896xbf16>,
    %c0_94 = arith.constant 0 : index
    %c1_95 = arith.constant 1 : index
    %c0_96 = arith.constant 0 : index
    %c2688_97 = arith.constant 2688 : index
    %122 = vector.load %arg1[%c0_94, %c1_95, %c0_96, %c2688_97] : memref<1x4x9x6272xf32, #tpu.memory_space<vmem>>, vector<1x1x9x896xf32>
    %123 = vector.shape_cast %122 : vector<1x1x9x896xf32> to vector<9x896xf32>
    %cst_98 = arith.constant dense<0.000000e+00> : vector<16x896xf32>
    %124 = tpu.matmul %0, %123, %cst_98 {dimension_numbers = #tpu.dot_dimension_numbers<[1], [0], [0], [1], [0, 0, 1, 1], [], []>} : vector<16x9xf32>, vector<9x896xf32>, vector<16x896xf32> -> vector<16x896xf32>
    %125 = vector.broadcast %1 : vector<16x1xf32> to vector<16x896xf32>
    %126 = arith.addf %124, %125 : vector<16x896xf32>
    %cst_99 = arith.constant 0.000000e+00 : f32
    %127 = vector.broadcast %cst_99 : f32 to vector<16x896xf32>
    %128 = arith.maximumf %126, %127 : vector<16x896xf32>
    %129 = arith.truncf %128 : vector<16x896xf32> to vector<16x896xbf16>
    %cst_100 = arith.constant 0.000000e+00 : bf16
    %130 = vector.broadcast %cst_100 : bf16 to vector<16x896xbf16>
    %131 = vector.shape_cast %16 : vector<1x896xi1> to vector<1x896xi1>
    %132 = vector.broadcast %131 : vector<1x896xi1> to vector<16x896xi1>
    %133 = arith.select %132, %129, %130 : vector<16x896xi1>, vector<16x896xbf16>
    %c48_101 = arith.constant 48 : index
    %c2816 = arith.constant 2816 : index
    %134 = vector.load %arg9[%c48_101, %c2816] : memref<144x6272xbf16, #tpu.memory_space<vmem>>, vector<16x896xbf16>
    tpu.vector_store %arg9[%c48_101, %c2816], %133 {strides = array<i32>} : memref<144x6272xbf16, #tpu.memory_space<vmem>>, vector<16x896xbf16>,
    %c80_102 = arith.constant 80 : index
    %c2688_103 = arith.constant 2688 : index
    %135 = vector.load %arg9[%c80_102, %c2688_103] : memref<144x6272xbf16, #tpu.memory_space<vmem>>, vector<16x896xbf16>
    tpu.vector_store %arg9[%c80_102, %c2688_103], %129 {strides = array<i32>} : memref<144x6272xbf16, #tpu.memory_space<vmem>>, vector<16x896xbf16>,
    %c0_104 = arith.constant 0 : index
    %c1_105 = arith.constant 1 : index
    %c0_106 = arith.constant 0 : index
    %c3584_107 = arith.constant 3584 : index
    %136 = vector.load %arg1[%c0_104, %c1_105, %c0_106, %c3584_107] : memref<1x4x9x6272xf32, #tpu.memory_space<vmem>>, vector<1x1x9x896xf32>
    %137 = vector.shape_cast %136 : vector<1x1x9x896xf32> to vector<9x896xf32>
    %cst_108 = arith.constant dense<0.000000e+00> : vector<16x896xf32>
    %138 = tpu.matmul %0, %137, %cst_108 {dimension_numbers = #tpu.dot_dimension_numbers<[1], [0], [0], [1], [0, 0, 1, 1], [], []>} : vector<16x9xf32>, vector<9x896xf32>, vector<16x896xf32> -> vector<16x896xf32>
    %139 = vector.broadcast %1 : vector<16x1xf32> to vector<16x896xf32>
    %140 = arith.addf %138, %139 : vector<16x896xf32>
    %cst_109 = arith.constant 0.000000e+00 : f32
    %141 = vector.broadcast %cst_109 : f32 to vector<16x896xf32>
    %142 = arith.maximumf %140, %141 : vector<16x896xf32>
    %143 = arith.truncf %142 : vector<16x896xf32> to vector<16x896xbf16>
    %cst_110 = arith.constant 0.000000e+00 : bf16
    %144 = vector.broadcast %cst_110 : bf16 to vector<16x896xbf16>
    %145 = vector.shape_cast %16 : vector<1x896xi1> to vector<1x896xi1>
    %146 = vector.broadcast %145 : vector<1x896xi1> to vector<16x896xi1>
    %147 = arith.select %146, %143, %144 : vector<16x896xi1>, vector<16x896xbf16>
    %c48_111 = arith.constant 48 : index
    %c3712 = arith.constant 3712 : index
    %148 = vector.load %arg9[%c48_111, %c3712] : memref<144x6272xbf16, #tpu.memory_space<vmem>>, vector<16x896xbf16>
    tpu.vector_store %arg9[%c48_111, %c3712], %147 {strides = array<i32>} : memref<144x6272xbf16, #tpu.memory_space<vmem>>, vector<16x896xbf16>,
    %c80_112 = arith.constant 80 : index
    %c3584_113 = arith.constant 3584 : index
    %149 = vector.load %arg9[%c80_112, %c3584_113] : memref<144x6272xbf16, #tpu.memory_space<vmem>>, vector<16x896xbf16>
    tpu.vector_store %arg9[%c80_112, %c3584_113], %143 {strides = array<i32>} : memref<144x6272xbf16, #tpu.memory_space<vmem>>, vector<16x896xbf16>,
    %c0_114 = arith.constant 0 : index
    %c1_115 = arith.constant 1 : index
    %c0_116 = arith.constant 0 : index
    %c4480_117 = arith.constant 4480 : index
    %150 = vector.load %arg1[%c0_114, %c1_115, %c0_116, %c4480_117] : memref<1x4x9x6272xf32, #tpu.memory_space<vmem>>, vector<1x1x9x896xf32>
    %151 = vector.shape_cast %150 : vector<1x1x9x896xf32> to vector<9x896xf32>
    %cst_118 = arith.constant dense<0.000000e+00> : vector<16x896xf32>
    %152 = tpu.matmul %0, %151, %cst_118 {dimension_numbers = #tpu.dot_dimension_numbers<[1], [0], [0], [1], [0, 0, 1, 1], [], []>} : vector<16x9xf32>, vector<9x896xf32>, vector<16x896xf32> -> vector<16x896xf32>
    %153 = vector.broadcast %1 : vector<16x1xf32> to vector<16x896xf32>
    %154 = arith.addf %152, %153 : vector<16x896xf32>
    %cst_119 = arith.constant 0.000000e+00 : f32
    %155 = vector.broadcast %cst_119 : f32 to vector<16x896xf32>
    %156 = arith.maximumf %154, %155 : vector<16x896xf32>
    %157 = arith.truncf %156 : vector<16x896xf32> to vector<16x896xbf16>
    %cst_120 = arith.constant 0.000000e+00 : bf16
    %158 = vector.broadcast %cst_120 : bf16 to vector<16x896xbf16>
    %159 = vector.shape_cast %16 : vector<1x896xi1> to vector<1x896xi1>
    %160 = vector.broadcast %159 : vector<1x896xi1> to vector<16x896xi1>
    %161 = arith.select %160, %157, %158 : vector<16x896xi1>, vector<16x896xbf16>
    %c48_121 = arith.constant 48 : index
    %c4608 = arith.constant 4608 : index
    %162 = vector.load %arg9[%c48_121, %c4608] : memref<144x6272xbf16, #tpu.memory_space<vmem>>, vector<16x896xbf16>
    tpu.vector_store %arg9[%c48_121, %c4608], %161 {strides = array<i32>} : memref<144x6272xbf16, #tpu.memory_space<vmem>>, vector<16x896xbf16>,
    %c80_122 = arith.constant 80 : index
    %c4480_123 = arith.constant 4480 : index
    %163 = vector.load %arg9[%c80_122, %c4480_123] : memref<144x6272xbf16, #tpu.memory_space<vmem>>, vector<16x896xbf16>
    tpu.vector_store %arg9[%c80_122, %c4480_123], %157 {strides = array<i32>} : memref<144x6272xbf16, #tpu.memory_space<vmem>>, vector<16x896xbf16>,
    %c0_124 = arith.constant 0 : index
    %c1_125 = arith.constant 1 : index
    %c0_126 = arith.constant 0 : index
    %c5376_127 = arith.constant 5376 : index
    %164 = vector.load %arg1[%c0_124, %c1_125, %c0_126, %c5376_127] : memref<1x4x9x6272xf32, #tpu.memory_space<vmem>>, vector<1x1x9x896xf32>
    %165 = vector.shape_cast %164 : vector<1x1x9x896xf32> to vector<9x896xf32>
    %cst_128 = arith.constant dense<0.000000e+00> : vector<16x896xf32>
    %166 = tpu.matmul %0, %165, %cst_128 {dimension_numbers = #tpu.dot_dimension_numbers<[1], [0], [0], [1], [0, 0, 1, 1], [], []>} : vector<16x9xf32>, vector<9x896xf32>, vector<16x896xf32> -> vector<16x896xf32>
    %167 = vector.broadcast %1 : vector<16x1xf32> to vector<16x896xf32>
    %168 = arith.addf %166, %167 : vector<16x896xf32>
    %cst_129 = arith.constant 0.000000e+00 : f32
    %169 = vector.broadcast %cst_129 : f32 to vector<16x896xf32>
    %170 = arith.maximumf %168, %169 : vector<16x896xf32>
    %171 = arith.truncf %170 : vector<16x896xf32> to vector<16x896xbf16>
    %cst_130 = arith.constant 0.000000e+00 : bf16
    %172 = vector.broadcast %cst_130 : bf16 to vector<16x896xbf16>
    %173 = vector.shape_cast %16 : vector<1x896xi1> to vector<1x896xi1>
    %174 = vector.broadcast %173 : vector<1x896xi1> to vector<16x896xi1>
    %175 = arith.select %174, %171, %172 : vector<16x896xi1>, vector<16x896xbf16>
    %176 = vector.extract_strided_slice %175 {offsets = [0, 0], sizes = [16, 768], strides = [1, 1]} : vector<16x896xbf16> to vector<16x768xbf16>
    %c48_131 = arith.constant 48 : index
    %c5504 = arith.constant 5504 : index
    %177 = vector.load %arg9[%c48_131, %c5504] : memref<144x6272xbf16, #tpu.memory_space<vmem>>, vector<16x768xbf16>
    tpu.vector_store %arg9[%c48_131, %c5504], %176 {strides = array<i32>} : memref<144x6272xbf16, #tpu.memory_space<vmem>>, vector<16x768xbf16>,
    %c80_132 = arith.constant 80 : index
    %c5376_133 = arith.constant 5376 : index
    %178 = vector.load %arg9[%c80_132, %c5376_133] : memref<144x6272xbf16, #tpu.memory_space<vmem>>, vector<16x896xbf16>
    tpu.vector_store %arg9[%c80_132, %c5376_133], %171 {strides = array<i32>} : memref<144x6272xbf16, #tpu.memory_space<vmem>>, vector<16x896xbf16>,
    %c0_134 = arith.constant 0 : index
    %c2 = arith.constant 2 : index
    %c0_135 = arith.constant 0 : index
    %c0_136 = arith.constant 0 : index
    %179 = vector.load %arg1[%c0_134, %c2, %c0_135, %c0_136] : memref<1x4x9x6272xf32, #tpu.memory_space<vmem>>, vector<1x1x9x896xf32>
    %180 = vector.shape_cast %179 : vector<1x1x9x896xf32> to vector<9x896xf32>
    %cst_137 = arith.constant dense<0.000000e+00> : vector<16x896xf32>
    %181 = tpu.matmul %0, %180, %cst_137 {dimension_numbers = #tpu.dot_dimension_numbers<[1], [0], [0], [1], [0, 0, 1, 1], [], []>} : vector<16x9xf32>, vector<9x896xf32>, vector<16x896xf32> -> vector<16x896xf32>
    %182 = vector.broadcast %1 : vector<16x1xf32> to vector<16x896xf32>
    %183 = arith.addf %181, %182 : vector<16x896xf32>
    %cst_138 = arith.constant 0.000000e+00 : f32
    %184 = vector.broadcast %cst_138 : f32 to vector<16x896xf32>
    %185 = arith.maximumf %183, %184 : vector<16x896xf32>
    %186 = arith.truncf %185 : vector<16x896xf32> to vector<16x896xbf16>
    %c16_139 = arith.constant 16 : index
    %c896_140 = arith.constant 896 : index
    %187 = vector.load %arg9[%c16_139, %c896_140] : memref<144x6272xbf16, #tpu.memory_space<vmem>>, vector<16x896xbf16>
    tpu.vector_store %arg9[%c16_139, %c896_140], %186 {strides = array<i32>} : memref<144x6272xbf16, #tpu.memory_space<vmem>>, vector<16x896xbf16>,
    %c112 = arith.constant 112 : index
    %c0_141 = arith.constant 0 : index
    %188 = vector.load %arg9[%c112, %c0_141] : memref<144x6272xbf16, #tpu.memory_space<vmem>>, vector<16x896xbf16>
    tpu.vector_store %arg9[%c112, %c0_141], %186 {strides = array<i32>} : memref<144x6272xbf16, #tpu.memory_space<vmem>>, vector<16x896xbf16>,
    %c0_142 = arith.constant 0 : index
    %c2_143 = arith.constant 2 : index
    %c0_144 = arith.constant 0 : index
    %c896_145 = arith.constant 896 : index
    %189 = vector.load %arg1[%c0_142, %c2_143, %c0_144, %c896_145] : memref<1x4x9x6272xf32, #tpu.memory_space<vmem>>, vector<1x1x9x896xf32>
    %190 = vector.shape_cast %189 : vector<1x1x9x896xf32> to vector<9x896xf32>
    %cst_146 = arith.constant dense<0.000000e+00> : vector<16x896xf32>
    %191 = tpu.matmul %0, %190, %cst_146 {dimension_numbers = #tpu.dot_dimension_numbers<[1], [0], [0], [1], [0, 0, 1, 1], [], []>} : vector<16x9xf32>, vector<9x896xf32>, vector<16x896xf32> -> vector<16x896xf32>
    %192 = vector.broadcast %1 : vector<16x1xf32> to vector<16x896xf32>
    %193 = arith.addf %191, %192 : vector<16x896xf32>
    %cst_147 = arith.constant 0.000000e+00 : f32
    %194 = vector.broadcast %cst_147 : f32 to vector<16x896xf32>
    %195 = arith.maximumf %193, %194 : vector<16x896xf32>
    %196 = arith.truncf %195 : vector<16x896xf32> to vector<16x896xbf16>
    %c16_148 = arith.constant 16 : index
    %c1792_149 = arith.constant 1792 : index
    %197 = vector.load %arg9[%c16_148, %c1792_149] : memref<144x6272xbf16, #tpu.memory_space<vmem>>, vector<16x896xbf16>
    tpu.vector_store %arg9[%c16_148, %c1792_149], %196 {strides = array<i32>} : memref<144x6272xbf16, #tpu.memory_space<vmem>>, vector<16x896xbf16>,
    %c112_150 = arith.constant 112 : index
    %c896_151 = arith.constant 896 : index
    %198 = vector.load %arg9[%c112_150, %c896_151] : memref<144x6272xbf16, #tpu.memory_space<vmem>>, vector<16x896xbf16>
    tpu.vector_store %arg9[%c112_150, %c896_151], %196 {strides = array<i32>} : memref<144x6272xbf16, #tpu.memory_space<vmem>>, vector<16x896xbf16>,
    %c0_152 = arith.constant 0 : index
    %c2_153 = arith.constant 2 : index
    %c0_154 = arith.constant 0 : index
    %c1792_155 = arith.constant 1792 : index
    %199 = vector.load %arg1[%c0_152, %c2_153, %c0_154, %c1792_155] : memref<1x4x9x6272xf32, #tpu.memory_space<vmem>>, vector<1x1x9x896xf32>
    %200 = vector.shape_cast %199 : vector<1x1x9x896xf32> to vector<9x896xf32>
    %cst_156 = arith.constant dense<0.000000e+00> : vector<16x896xf32>
    %201 = tpu.matmul %0, %200, %cst_156 {dimension_numbers = #tpu.dot_dimension_numbers<[1], [0], [0], [1], [0, 0, 1, 1], [], []>} : vector<16x9xf32>, vector<9x896xf32>, vector<16x896xf32> -> vector<16x896xf32>
    %202 = vector.broadcast %1 : vector<16x1xf32> to vector<16x896xf32>
    %203 = arith.addf %201, %202 : vector<16x896xf32>
    %cst_157 = arith.constant 0.000000e+00 : f32
    %204 = vector.broadcast %cst_157 : f32 to vector<16x896xf32>
    %205 = arith.maximumf %203, %204 : vector<16x896xf32>
    %206 = arith.truncf %205 : vector<16x896xf32> to vector<16x896xbf16>
    %c16_158 = arith.constant 16 : index
    %c2688_159 = arith.constant 2688 : index
    %207 = vector.load %arg9[%c16_158, %c2688_159] : memref<144x6272xbf16, #tpu.memory_space<vmem>>, vector<16x896xbf16>
    tpu.vector_store %arg9[%c16_158, %c2688_159], %206 {strides = array<i32>} : memref<144x6272xbf16, #tpu.memory_space<vmem>>, vector<16x896xbf16>,
    %c112_160 = arith.constant 112 : index
    %c1792_161 = arith.constant 1792 : index
    %208 = vector.load %arg9[%c112_160, %c1792_161] : memref<144x6272xbf16, #tpu.memory_space<vmem>>, vector<16x896xbf16>
    tpu.vector_store %arg9[%c112_160, %c1792_161], %206 {strides = array<i32>} : memref<144x6272xbf16, #tpu.memory_space<vmem>>, vector<16x896xbf16>,
    %c0_162 = arith.constant 0 : index
    %c2_163 = arith.constant 2 : index
    %c0_164 = arith.constant 0 : index
    %c2688_165 = arith.constant 2688 : index
    %209 = vector.load %arg1[%c0_162, %c2_163, %c0_164, %c2688_165] : memref<1x4x9x6272xf32, #tpu.memory_space<vmem>>, vector<1x1x9x896xf32>
    %210 = vector.shape_cast %209 : vector<1x1x9x896xf32> to vector<9x896xf32>
    %cst_166 = arith.constant dense<0.000000e+00> : vector<16x896xf32>
    %211 = tpu.matmul %0, %210, %cst_166 {dimension_numbers = #tpu.dot_dimension_numbers<[1], [0], [0], [1], [0, 0, 1, 1], [], []>} : vector<16x9xf32>, vector<9x896xf32>, vector<16x896xf32> -> vector<16x896xf32>
    %212 = vector.broadcast %1 : vector<16x1xf32> to vector<16x896xf32>
    %213 = arith.addf %211, %212 : vector<16x896xf32>
    %cst_167 = arith.constant 0.000000e+00 : f32
    %214 = vector.broadcast %cst_167 : f32 to vector<16x896xf32>
    %215 = arith.maximumf %213, %214 : vector<16x896xf32>
    %216 = arith.truncf %215 : vector<16x896xf32> to vector<16x896xbf16>
    %c16_168 = arith.constant 16 : index
    %c3584_169 = arith.constant 3584 : index
    %217 = vector.load %arg9[%c16_168, %c3584_169] : memref<144x6272xbf16, #tpu.memory_space<vmem>>, vector<16x896xbf16>
    tpu.vector_store %arg9[%c16_168, %c3584_169], %216 {strides = array<i32>} : memref<144x6272xbf16, #tpu.memory_space<vmem>>, vector<16x896xbf16>,
    %c112_170 = arith.constant 112 : index
    %c2688_171 = arith.constant 2688 : index
    %218 = vector.load %arg9[%c112_170, %c2688_171] : memref<144x6272xbf16, #tpu.memory_space<vmem>>, vector<16x896xbf16>
    tpu.vector_store %arg9[%c112_170, %c2688_171], %216 {strides = array<i32>} : memref<144x6272xbf16, #tpu.memory_space<vmem>>, vector<16x896xbf16>,
    %c0_172 = arith.constant 0 : index
    %c2_173 = arith.constant 2 : index
    %c0_174 = arith.constant 0 : index
    %c3584_175 = arith.constant 3584 : index
    %219 = vector.load %arg1[%c0_172, %c2_173, %c0_174, %c3584_175] : memref<1x4x9x6272xf32, #tpu.memory_space<vmem>>, vector<1x1x9x896xf32>
    %220 = vector.shape_cast %219 : vector<1x1x9x896xf32> to vector<9x896xf32>
    %cst_176 = arith.constant dense<0.000000e+00> : vector<16x896xf32>
    %221 = tpu.matmul %0, %220, %cst_176 {dimension_numbers = #tpu.dot_dimension_numbers<[1], [0], [0], [1], [0, 0, 1, 1], [], []>} : vector<16x9xf32>, vector<9x896xf32>, vector<16x896xf32> -> vector<16x896xf32>
    %222 = vector.broadcast %1 : vector<16x1xf32> to vector<16x896xf32>
    %223 = arith.addf %221, %222 : vector<16x896xf32>
    %cst_177 = arith.constant 0.000000e+00 : f32
    %224 = vector.broadcast %cst_177 : f32 to vector<16x896xf32>
    %225 = arith.maximumf %223, %224 : vector<16x896xf32>
    %226 = arith.truncf %225 : vector<16x896xf32> to vector<16x896xbf16>
    %c16_178 = arith.constant 16 : index
    %c4480_179 = arith.constant 4480 : index
    %227 = vector.load %arg9[%c16_178, %c4480_179] : memref<144x6272xbf16, #tpu.memory_space<vmem>>, vector<16x896xbf16>
    tpu.vector_store %arg9[%c16_178, %c4480_179], %226 {strides = array<i32>} : memref<144x6272xbf16, #tpu.memory_space<vmem>>, vector<16x896xbf16>,
    %c112_180 = arith.constant 112 : index
    %c3584_181 = arith.constant 3584 : index
    %228 = vector.load %arg9[%c112_180, %c3584_181] : memref<144x6272xbf16, #tpu.memory_space<vmem>>, vector<16x896xbf16>
    tpu.vector_store %arg9[%c112_180, %c3584_181], %226 {strides = array<i32>} : memref<144x6272xbf16, #tpu.memory_space<vmem>>, vector<16x896xbf16>,
    %c0_182 = arith.constant 0 : index
    %c2_183 = arith.constant 2 : index
    %c0_184 = arith.constant 0 : index
    %c4480_185 = arith.constant 4480 : index
    %229 = vector.load %arg1[%c0_182, %c2_183, %c0_184, %c4480_185] : memref<1x4x9x6272xf32, #tpu.memory_space<vmem>>, vector<1x1x9x896xf32>
    %230 = vector.shape_cast %229 : vector<1x1x9x896xf32> to vector<9x896xf32>
    %cst_186 = arith.constant dense<0.000000e+00> : vector<16x896xf32>
    %231 = tpu.matmul %0, %230, %cst_186 {dimension_numbers = #tpu.dot_dimension_numbers<[1], [0], [0], [1], [0, 0, 1, 1], [], []>} : vector<16x9xf32>, vector<9x896xf32>, vector<16x896xf32> -> vector<16x896xf32>
    %232 = vector.broadcast %1 : vector<16x1xf32> to vector<16x896xf32>
    %233 = arith.addf %231, %232 : vector<16x896xf32>
    %cst_187 = arith.constant 0.000000e+00 : f32
    %234 = vector.broadcast %cst_187 : f32 to vector<16x896xf32>
    %235 = arith.maximumf %233, %234 : vector<16x896xf32>
    %236 = arith.truncf %235 : vector<16x896xf32> to vector<16x896xbf16>
    %c16_188 = arith.constant 16 : index
    %c5376_189 = arith.constant 5376 : index
    %237 = vector.load %arg9[%c16_188, %c5376_189] : memref<144x6272xbf16, #tpu.memory_space<vmem>>, vector<16x896xbf16>
    tpu.vector_store %arg9[%c16_188, %c5376_189], %236 {strides = array<i32>} : memref<144x6272xbf16, #tpu.memory_space<vmem>>, vector<16x896xbf16>,
    %c112_190 = arith.constant 112 : index
    %c4480_191 = arith.constant 4480 : index
    %238 = vector.load %arg9[%c112_190, %c4480_191] : memref<144x6272xbf16, #tpu.memory_space<vmem>>, vector<16x896xbf16>
    tpu.vector_store %arg9[%c112_190, %c4480_191], %236 {strides = array<i32>} : memref<144x6272xbf16, #tpu.memory_space<vmem>>, vector<16x896xbf16>,
    %c0_192 = arith.constant 0 : index
    %c2_193 = arith.constant 2 : index
    %c0_194 = arith.constant 0 : index
    %c5376_195 = arith.constant 5376 : index
    %239 = vector.load %arg1[%c0_192, %c2_193, %c0_194, %c5376_195] : memref<1x4x9x6272xf32, #tpu.memory_space<vmem>>, vector<1x1x9x896xf32>
    %240 = vector.shape_cast %239 : vector<1x1x9x896xf32> to vector<9x896xf32>
    %cst_196 = arith.constant dense<0.000000e+00> : vector<16x896xf32>
    %241 = tpu.matmul %0, %240, %cst_196 {dimension_numbers = #tpu.dot_dimension_numbers<[1], [0], [0], [1], [0, 0, 1, 1], [], []>} : vector<16x9xf32>, vector<9x896xf32>, vector<16x896xf32> -> vector<16x896xf32>
    %242 = vector.broadcast %1 : vector<16x1xf32> to vector<16x896xf32>
    %243 = arith.addf %241, %242 : vector<16x896xf32>
    %cst_197 = arith.constant 0.000000e+00 : f32
    %244 = vector.broadcast %cst_197 : f32 to vector<16x896xf32>
    %245 = arith.maximumf %243, %244 : vector<16x896xf32>
    %246 = arith.truncf %245 : vector<16x896xf32> to vector<16x896xbf16>
    %c112_198 = arith.constant 112 : index
    %c5376_199 = arith.constant 5376 : index
    %247 = vector.load %arg9[%c112_198, %c5376_199] : memref<144x6272xbf16, #tpu.memory_space<vmem>>, vector<16x896xbf16>
    tpu.vector_store %arg9[%c112_198, %c5376_199], %246 {strides = array<i32>} : memref<144x6272xbf16, #tpu.memory_space<vmem>>, vector<16x896xbf16>,
    %c0_200 = arith.constant 0 : index
    %c3 = arith.constant 3 : index
    %c0_201 = arith.constant 0 : index
    %c0_202 = arith.constant 0 : index
    %248 = vector.load %arg1[%c0_200, %c3, %c0_201, %c0_202] : memref<1x4x9x6272xf32, #tpu.memory_space<vmem>>, vector<1x1x9x896xf32>
    %249 = vector.shape_cast %248 : vector<1x1x9x896xf32> to vector<9x896xf32>
    %cst_203 = arith.constant dense<0.000000e+00> : vector<16x896xf32>
    %250 = tpu.matmul %0, %249, %cst_203 {dimension_numbers = #tpu.dot_dimension_numbers<[1], [0], [0], [1], [0, 0, 1, 1], [], []>} : vector<16x9xf32>, vector<9x896xf32>, vector<16x896xf32> -> vector<16x896xf32>
    %251 = vector.broadcast %1 : vector<16x1xf32> to vector<16x896xf32>
    %252 = arith.addf %250, %251 : vector<16x896xf32>
    %cst_204 = arith.constant 0.000000e+00 : f32
    %253 = vector.broadcast %cst_204 : f32 to vector<16x896xf32>
    %254 = arith.maximumf %252, %253 : vector<16x896xf32>
    %255 = arith.truncf %254 : vector<16x896xf32> to vector<16x896xbf16>
    %cst_205 = arith.constant 0.000000e+00 : bf16
    %256 = vector.broadcast %cst_205 : bf16 to vector<16x896xbf16>
    %257 = vector.shape_cast %16 : vector<1x896xi1> to vector<1x896xi1>
    %258 = vector.broadcast %257 : vector<1x896xi1> to vector<16x896xi1>
    %259 = arith.select %258, %255, %256 : vector<16x896xi1>, vector<16x896xbf16>
    %c0_206 = arith.constant 0 : index
    %c1024_207 = arith.constant 1024 : index
    %260 = vector.load %arg9[%c0_206, %c1024_207] : memref<144x6272xbf16, #tpu.memory_space<vmem>>, vector<16x896xbf16>
    tpu.vector_store %arg9[%c0_206, %c1024_207], %259 {strides = array<i32>} : memref<144x6272xbf16, #tpu.memory_space<vmem>>, vector<16x896xbf16>,
    %c32_208 = arith.constant 32 : index
    %c896_209 = arith.constant 896 : index
    %261 = vector.load %arg9[%c32_208, %c896_209] : memref<144x6272xbf16, #tpu.memory_space<vmem>>, vector<16x896xbf16>
    tpu.vector_store %arg9[%c32_208, %c896_209], %255 {strides = array<i32>} : memref<144x6272xbf16, #tpu.memory_space<vmem>>, vector<16x896xbf16>,
    %c96_210 = arith.constant 96 : index
    %c128_211 = arith.constant 128 : index
    %262 = vector.load %arg9[%c96_210, %c128_211] : memref<144x6272xbf16, #tpu.memory_space<vmem>>, vector<16x896xbf16>
    tpu.vector_store %arg9[%c96_210, %c128_211], %259 {strides = array<i32>} : memref<144x6272xbf16, #tpu.memory_space<vmem>>, vector<16x896xbf16>,
    %c128_212 = arith.constant 128 : index
    %c0_213 = arith.constant 0 : index
    %263 = vector.load %arg9[%c128_212, %c0_213] : memref<144x6272xbf16, #tpu.memory_space<vmem>>, vector<16x896xbf16>
    tpu.vector_store %arg9[%c128_212, %c0_213], %255 {strides = array<i32>} : memref<144x6272xbf16, #tpu.memory_space<vmem>>, vector<16x896xbf16>,
    %c0_214 = arith.constant 0 : index
    %c3_215 = arith.constant 3 : index
    %c0_216 = arith.constant 0 : index
    %c896_217 = arith.constant 896 : index
    %264 = vector.load %arg1[%c0_214, %c3_215, %c0_216, %c896_217] : memref<1x4x9x6272xf32, #tpu.memory_space<vmem>>, vector<1x1x9x896xf32>
    %265 = vector.shape_cast %264 : vector<1x1x9x896xf32> to vector<9x896xf32>
    %cst_218 = arith.constant dense<0.000000e+00> : vector<16x896xf32>
    %266 = tpu.matmul %0, %265, %cst_218 {dimension_numbers = #tpu.dot_dimension_numbers<[1], [0], [0], [1], [0, 0, 1, 1], [], []>} : vector<16x9xf32>, vector<9x896xf32>, vector<16x896xf32> -> vector<16x896xf32>
    %267 = vector.broadcast %1 : vector<16x1xf32> to vector<16x896xf32>
    %268 = arith.addf %266, %267 : vector<16x896xf32>
    %cst_219 = arith.constant 0.000000e+00 : f32
    %269 = vector.broadcast %cst_219 : f32 to vector<16x896xf32>
    %270 = arith.maximumf %268, %269 : vector<16x896xf32>
    %271 = arith.truncf %270 : vector<16x896xf32> to vector<16x896xbf16>
    %cst_220 = arith.constant 0.000000e+00 : bf16
    %272 = vector.broadcast %cst_220 : bf16 to vector<16x896xbf16>
    %273 = vector.shape_cast %16 : vector<1x896xi1> to vector<1x896xi1>
    %274 = vector.broadcast %273 : vector<1x896xi1> to vector<16x896xi1>
    %275 = arith.select %274, %271, %272 : vector<16x896xi1>, vector<16x896xbf16>
    %c0_221 = arith.constant 0 : index
    %c1920_222 = arith.constant 1920 : index
    %276 = vector.load %arg9[%c0_221, %c1920_222] : memref<144x6272xbf16, #tpu.memory_space<vmem>>, vector<16x896xbf16>
    tpu.vector_store %arg9[%c0_221, %c1920_222], %275 {strides = array<i32>} : memref<144x6272xbf16, #tpu.memory_space<vmem>>, vector<16x896xbf16>,
    %c32_223 = arith.constant 32 : index
    %c1792_224 = arith.constant 1792 : index
    %277 = vector.load %arg9[%c32_223, %c1792_224] : memref<144x6272xbf16, #tpu.memory_space<vmem>>, vector<16x896xbf16>
    tpu.vector_store %arg9[%c32_223, %c1792_224], %271 {strides = array<i32>} : memref<144x6272xbf16, #tpu.memory_space<vmem>>, vector<16x896xbf16>,
    %c96_225 = arith.constant 96 : index
    %c1024_226 = arith.constant 1024 : index
    %278 = vector.load %arg9[%c96_225, %c1024_226] : memref<144x6272xbf16, #tpu.memory_space<vmem>>, vector<16x896xbf16>
    tpu.vector_store %arg9[%c96_225, %c1024_226], %275 {strides = array<i32>} : memref<144x6272xbf16, #tpu.memory_space<vmem>>, vector<16x896xbf16>,
    %c128_227 = arith.constant 128 : index
    %c896_228 = arith.constant 896 : index
    %279 = vector.load %arg9[%c128_227, %c896_228] : memref<144x6272xbf16, #tpu.memory_space<vmem>>, vector<16x896xbf16>
    tpu.vector_store %arg9[%c128_227, %c896_228], %271 {strides = array<i32>} : memref<144x6272xbf16, #tpu.memory_space<vmem>>, vector<16x896xbf16>,
    %c0_229 = arith.constant 0 : index
    %c3_230 = arith.constant 3 : index
    %c0_231 = arith.constant 0 : index
    %c1792_232 = arith.constant 1792 : index
    %280 = vector.load %arg1[%c0_229, %c3_230, %c0_231, %c1792_232] : memref<1x4x9x6272xf32, #tpu.memory_space<vmem>>, vector<1x1x9x896xf32>
    %281 = vector.shape_cast %280 : vector<1x1x9x896xf32> to vector<9x896xf32>
    %cst_233 = arith.constant dense<0.000000e+00> : vector<16x896xf32>
    %282 = tpu.matmul %0, %281, %cst_233 {dimension_numbers = #tpu.dot_dimension_numbers<[1], [0], [0], [1], [0, 0, 1, 1], [], []>} : vector<16x9xf32>, vector<9x896xf32>, vector<16x896xf32> -> vector<16x896xf32>
    %283 = vector.broadcast %1 : vector<16x1xf32> to vector<16x896xf32>
    %284 = arith.addf %282, %283 : vector<16x896xf32>
    %cst_234 = arith.constant 0.000000e+00 : f32
    %285 = vector.broadcast %cst_234 : f32 to vector<16x896xf32>
    %286 = arith.maximumf %284, %285 : vector<16x896xf32>
    %287 = arith.truncf %286 : vector<16x896xf32> to vector<16x896xbf16>
    %cst_235 = arith.constant 0.000000e+00 : bf16
    %288 = vector.broadcast %cst_235 : bf16 to vector<16x896xbf16>
    %289 = vector.shape_cast %16 : vector<1x896xi1> to vector<1x896xi1>
    %290 = vector.broadcast %289 : vector<1x896xi1> to vector<16x896xi1>
    %291 = arith.select %290, %287, %288 : vector<16x896xi1>, vector<16x896xbf16>
    %c0_236 = arith.constant 0 : index
    %c2816_237 = arith.constant 2816 : index
    %292 = vector.load %arg9[%c0_236, %c2816_237] : memref<144x6272xbf16, #tpu.memory_space<vmem>>, vector<16x896xbf16>
    tpu.vector_store %arg9[%c0_236, %c2816_237], %291 {strides = array<i32>} : memref<144x6272xbf16, #tpu.memory_space<vmem>>, vector<16x896xbf16>,
    %c32_238 = arith.constant 32 : index
    %c2688_239 = arith.constant 2688 : index
    %293 = vector.load %arg9[%c32_238, %c2688_239] : memref<144x6272xbf16, #tpu.memory_space<vmem>>, vector<16x896xbf16>
    tpu.vector_store %arg9[%c32_238, %c2688_239], %287 {strides = array<i32>} : memref<144x6272xbf16, #tpu.memory_space<vmem>>, vector<16x896xbf16>,
    %c96_240 = arith.constant 96 : index
    %c1920_241 = arith.constant 1920 : index
    %294 = vector.load %arg9[%c96_240, %c1920_241] : memref<144x6272xbf16, #tpu.memory_space<vmem>>, vector<16x896xbf16>
    tpu.vector_store %arg9[%c96_240, %c1920_241], %291 {strides = array<i32>} : memref<144x6272xbf16, #tpu.memory_space<vmem>>, vector<16x896xbf16>,
    %c128_242 = arith.constant 128 : index
    %c1792_243 = arith.constant 1792 : index
    %295 = vector.load %arg9[%c128_242, %c1792_243] : memref<144x6272xbf16, #tpu.memory_space<vmem>>, vector<16x896xbf16>
    tpu.vector_store %arg9[%c128_242, %c1792_243], %287 {strides = array<i32>} : memref<144x6272xbf16, #tpu.memory_space<vmem>>, vector<16x896xbf16>,
    %c0_244 = arith.constant 0 : index
    %c3_245 = arith.constant 3 : index
    %c0_246 = arith.constant 0 : index
    %c2688_247 = arith.constant 2688 : index
    %296 = vector.load %arg1[%c0_244, %c3_245, %c0_246, %c2688_247] : memref<1x4x9x6272xf32, #tpu.memory_space<vmem>>, vector<1x1x9x896xf32>
    %297 = vector.shape_cast %296 : vector<1x1x9x896xf32> to vector<9x896xf32>
    %cst_248 = arith.constant dense<0.000000e+00> : vector<16x896xf32>
    %298 = tpu.matmul %0, %297, %cst_248 {dimension_numbers = #tpu.dot_dimension_numbers<[1], [0], [0], [1], [0, 0, 1, 1], [], []>} : vector<16x9xf32>, vector<9x896xf32>, vector<16x896xf32> -> vector<16x896xf32>
    %299 = vector.broadcast %1 : vector<16x1xf32> to vector<16x896xf32>
    %300 = arith.addf %298, %299 : vector<16x896xf32>
    %cst_249 = arith.constant 0.000000e+00 : f32
    %301 = vector.broadcast %cst_249 : f32 to vector<16x896xf32>
    %302 = arith.maximumf %300, %301 : vector<16x896xf32>
    %303 = arith.truncf %302 : vector<16x896xf32> to vector<16x896xbf16>
    %cst_250 = arith.constant 0.000000e+00 : bf16
    %304 = vector.broadcast %cst_250 : bf16 to vector<16x896xbf16>
    %305 = vector.shape_cast %16 : vector<1x896xi1> to vector<1x896xi1>
    %306 = vector.broadcast %305 : vector<1x896xi1> to vector<16x896xi1>
    %307 = arith.select %306, %303, %304 : vector<16x896xi1>, vector<16x896xbf16>
    %c0_251 = arith.constant 0 : index
    %c3712_252 = arith.constant 3712 : index
    %308 = vector.load %arg9[%c0_251, %c3712_252] : memref<144x6272xbf16, #tpu.memory_space<vmem>>, vector<16x896xbf16>
    tpu.vector_store %arg9[%c0_251, %c3712_252], %307 {strides = array<i32>} : memref<144x6272xbf16, #tpu.memory_space<vmem>>, vector<16x896xbf16>,
    %c32_253 = arith.constant 32 : index
    %c3584_254 = arith.constant 3584 : index
    %309 = vector.load %arg9[%c32_253, %c3584_254] : memref<144x6272xbf16, #tpu.memory_space<vmem>>, vector<16x896xbf16>
    tpu.vector_store %arg9[%c32_253, %c3584_254], %303 {strides = array<i32>} : memref<144x6272xbf16, #tpu.memory_space<vmem>>, vector<16x896xbf16>,
    %c96_255 = arith.constant 96 : index
    %c2816_256 = arith.constant 2816 : index
    %310 = vector.load %arg9[%c96_255, %c2816_256] : memref<144x6272xbf16, #tpu.memory_space<vmem>>, vector<16x896xbf16>
    tpu.vector_store %arg9[%c96_255, %c2816_256], %307 {strides = array<i32>} : memref<144x6272xbf16, #tpu.memory_space<vmem>>, vector<16x896xbf16>,
    %c128_257 = arith.constant 128 : index
    %c2688_258 = arith.constant 2688 : index
    %311 = vector.load %arg9[%c128_257, %c2688_258] : memref<144x6272xbf16, #tpu.memory_space<vmem>>, vector<16x896xbf16>
    tpu.vector_store %arg9[%c128_257, %c2688_258], %303 {strides = array<i32>} : memref<144x6272xbf16, #tpu.memory_space<vmem>>, vector<16x896xbf16>,
    %c0_259 = arith.constant 0 : index
    %c3_260 = arith.constant 3 : index
    %c0_261 = arith.constant 0 : index
    %c3584_262 = arith.constant 3584 : index
    %312 = vector.load %arg1[%c0_259, %c3_260, %c0_261, %c3584_262] : memref<1x4x9x6272xf32, #tpu.memory_space<vmem>>, vector<1x1x9x896xf32>
    %313 = vector.shape_cast %312 : vector<1x1x9x896xf32> to vector<9x896xf32>
    %cst_263 = arith.constant dense<0.000000e+00> : vector<16x896xf32>
    %314 = tpu.matmul %0, %313, %cst_263 {dimension_numbers = #tpu.dot_dimension_numbers<[1], [0], [0], [1], [0, 0, 1, 1], [], []>} : vector<16x9xf32>, vector<9x896xf32>, vector<16x896xf32> -> vector<16x896xf32>
    %315 = vector.broadcast %1 : vector<16x1xf32> to vector<16x896xf32>
    %316 = arith.addf %314, %315 : vector<16x896xf32>
    %cst_264 = arith.constant 0.000000e+00 : f32
    %317 = vector.broadcast %cst_264 : f32 to vector<16x896xf32>
    %318 = arith.maximumf %316, %317 : vector<16x896xf32>
    %319 = arith.truncf %318 : vector<16x896xf32> to vector<16x896xbf16>
    %cst_265 = arith.constant 0.000000e+00 : bf16
    %320 = vector.broadcast %cst_265 : bf16 to vector<16x896xbf16>
    %321 = vector.shape_cast %16 : vector<1x896xi1> to vector<1x896xi1>
    %322 = vector.broadcast %321 : vector<1x896xi1> to vector<16x896xi1>
    %323 = arith.select %322, %319, %320 : vector<16x896xi1>, vector<16x896xbf16>
    %c0_266 = arith.constant 0 : index
    %c4608_267 = arith.constant 4608 : index
    %324 = vector.load %arg9[%c0_266, %c4608_267] : memref<144x6272xbf16, #tpu.memory_space<vmem>>, vector<16x896xbf16>
    tpu.vector_store %arg9[%c0_266, %c4608_267], %323 {strides = array<i32>} : memref<144x6272xbf16, #tpu.memory_space<vmem>>, vector<16x896xbf16>,
    %c32_268 = arith.constant 32 : index
    %c4480_269 = arith.constant 4480 : index
    %325 = vector.load %arg9[%c32_268, %c4480_269] : memref<144x6272xbf16, #tpu.memory_space<vmem>>, vector<16x896xbf16>
    tpu.vector_store %arg9[%c32_268, %c4480_269], %319 {strides = array<i32>} : memref<144x6272xbf16, #tpu.memory_space<vmem>>, vector<16x896xbf16>,
    %c96_270 = arith.constant 96 : index
    %c3712_271 = arith.constant 3712 : index
    %326 = vector.load %arg9[%c96_270, %c3712_271] : memref<144x6272xbf16, #tpu.memory_space<vmem>>, vector<16x896xbf16>
    tpu.vector_store %arg9[%c96_270, %c3712_271], %323 {strides = array<i32>} : memref<144x6272xbf16, #tpu.memory_space<vmem>>, vector<16x896xbf16>,
    %c128_272 = arith.constant 128 : index
    %c3584_273 = arith.constant 3584 : index
    %327 = vector.load %arg9[%c128_272, %c3584_273] : memref<144x6272xbf16, #tpu.memory_space<vmem>>, vector<16x896xbf16>
    tpu.vector_store %arg9[%c128_272, %c3584_273], %319 {strides = array<i32>} : memref<144x6272xbf16, #tpu.memory_space<vmem>>, vector<16x896xbf16>,
    %c0_274 = arith.constant 0 : index
    %c3_275 = arith.constant 3 : index
    %c0_276 = arith.constant 0 : index
    %c4480_277 = arith.constant 4480 : index
    %328 = vector.load %arg1[%c0_274, %c3_275, %c0_276, %c4480_277] : memref<1x4x9x6272xf32, #tpu.memory_space<vmem>>, vector<1x1x9x896xf32>
    %329 = vector.shape_cast %328 : vector<1x1x9x896xf32> to vector<9x896xf32>
    %cst_278 = arith.constant dense<0.000000e+00> : vector<16x896xf32>
    %330 = tpu.matmul %0, %329, %cst_278 {dimension_numbers = #tpu.dot_dimension_numbers<[1], [0], [0], [1], [0, 0, 1, 1], [], []>} : vector<16x9xf32>, vector<9x896xf32>, vector<16x896xf32> -> vector<16x896xf32>
    %331 = vector.broadcast %1 : vector<16x1xf32> to vector<16x896xf32>
    %332 = arith.addf %330, %331 : vector<16x896xf32>
    %cst_279 = arith.constant 0.000000e+00 : f32
    %333 = vector.broadcast %cst_279 : f32 to vector<16x896xf32>
    %334 = arith.maximumf %332, %333 : vector<16x896xf32>
    %335 = arith.truncf %334 : vector<16x896xf32> to vector<16x896xbf16>
    %cst_280 = arith.constant 0.000000e+00 : bf16
    %336 = vector.broadcast %cst_280 : bf16 to vector<16x896xbf16>
    %337 = vector.shape_cast %16 : vector<1x896xi1> to vector<1x896xi1>
    %338 = vector.broadcast %337 : vector<1x896xi1> to vector<16x896xi1>
    %339 = arith.select %338, %335, %336 : vector<16x896xi1>, vector<16x896xbf16>
    %340 = vector.extract_strided_slice %339 {offsets = [0, 0], sizes = [16, 768], strides = [1, 1]} : vector<16x896xbf16> to vector<16x768xbf16>
    %c0_281 = arith.constant 0 : index
    %c5504_282 = arith.constant 5504 : index
    %341 = vector.load %arg9[%c0_281, %c5504_282] : memref<144x6272xbf16, #tpu.memory_space<vmem>>, vector<16x768xbf16>
    tpu.vector_store %arg9[%c0_281, %c5504_282], %340 {strides = array<i32>} : memref<144x6272xbf16, #tpu.memory_space<vmem>>, vector<16x768xbf16>,
    %c32_283 = arith.constant 32 : index
    %c5376_284 = arith.constant 5376 : index
    %342 = vector.load %arg9[%c32_283, %c5376_284] : memref<144x6272xbf16, #tpu.memory_space<vmem>>, vector<16x896xbf16>
    tpu.vector_store %arg9[%c32_283, %c5376_284], %335 {strides = array<i32>} : memref<144x6272xbf16, #tpu.memory_space<vmem>>, vector<16x896xbf16>,
    %c96_285 = arith.constant 96 : index
    %c4608_286 = arith.constant 4608 : index
    %343 = vector.load %arg9[%c96_285, %c4608_286] : memref<144x6272xbf16, #tpu.memory_space<vmem>>, vector<16x896xbf16>
    tpu.vector_store %arg9[%c96_285, %c4608_286], %339 {strides = array<i32>} : memref<144x6272xbf16, #tpu.memory_space<vmem>>, vector<16x896xbf16>,
    %c128_287 = arith.constant 128 : index
    %c4480_288 = arith.constant 4480 : index
    %344 = vector.load %arg9[%c128_287, %c4480_288] : memref<144x6272xbf16, #tpu.memory_space<vmem>>, vector<16x896xbf16>
    tpu.vector_store %arg9[%c128_287, %c4480_288], %335 {strides = array<i32>} : memref<144x6272xbf16, #tpu.memory_space<vmem>>, vector<16x896xbf16>,
    %c0_289 = arith.constant 0 : index
    %c3_290 = arith.constant 3 : index
    %c0_291 = arith.constant 0 : index
    %c5376_292 = arith.constant 5376 : index
    %345 = vector.load %arg1[%c0_289, %c3_290, %c0_291, %c5376_292] : memref<1x4x9x6272xf32, #tpu.memory_space<vmem>>, vector<1x1x9x896xf32>
    %346 = vector.shape_cast %345 : vector<1x1x9x896xf32> to vector<9x896xf32>
    %cst_293 = arith.constant dense<0.000000e+00> : vector<16x896xf32>
    %347 = tpu.matmul %0, %346, %cst_293 {dimension_numbers = #tpu.dot_dimension_numbers<[1], [0], [0], [1], [0, 0, 1, 1], [], []>} : vector<16x9xf32>, vector<9x896xf32>, vector<16x896xf32> -> vector<16x896xf32>
    %348 = vector.broadcast %1 : vector<16x1xf32> to vector<16x896xf32>
    %349 = arith.addf %347, %348 : vector<16x896xf32>
    %cst_294 = arith.constant 0.000000e+00 : f32
    %350 = vector.broadcast %cst_294 : f32 to vector<16x896xf32>
    %351 = arith.maximumf %349, %350 : vector<16x896xf32>
    %352 = arith.truncf %351 : vector<16x896xf32> to vector<16x896xbf16>
    %cst_295 = arith.constant 0.000000e+00 : bf16
    %353 = vector.broadcast %cst_295 : bf16 to vector<16x896xbf16>
    %354 = vector.shape_cast %16 : vector<1x896xi1> to vector<1x896xi1>
    %355 = vector.broadcast %354 : vector<1x896xi1> to vector<16x896xi1>
    %356 = arith.select %355, %352, %353 : vector<16x896xi1>, vector<16x896xbf16>
    %357 = vector.extract_strided_slice %356 {offsets = [0, 0], sizes = [16, 768], strides = [1, 1]} : vector<16x896xbf16> to vector<16x768xbf16>
    %c96_296 = arith.constant 96 : index
    %c5504_297 = arith.constant 5504 : index
    %358 = vector.load %arg9[%c96_296, %c5504_297] : memref<144x6272xbf16, #tpu.memory_space<vmem>>, vector<16x768xbf16>
    tpu.vector_store %arg9[%c96_296, %c5504_297], %357 {strides = array<i32>} : memref<144x6272xbf16, #tpu.memory_space<vmem>>, vector<16x768xbf16>,
    %c128_298 = arith.constant 128 : index
    %c5376_299 = arith.constant 5376 : index
    %359 = vector.load %arg9[%c128_298, %c5376_299] : memref<144x6272xbf16, #tpu.memory_space<vmem>>, vector<16x896xbf16>
    tpu.vector_store %arg9[%c128_298, %c5376_299], %352 {strides = array<i32>} : memref<144x6272xbf16, #tpu.memory_space<vmem>>, vector<16x896xbf16>,
    %c0_300 = arith.constant 0 : index
    %c0_301 = arith.constant 0 : index
    %360 = vector.load %arg9[%c0_300, %c0_301] : memref<144x6272xbf16, #tpu.memory_space<vmem>>, vector<144x896xbf16>
    %cst_302 = arith.constant dense<0.000000e+00> : vector<32x896xf32>
    %361 = tpu.matmul %2, %360, %cst_302 {dimension_numbers = #tpu.dot_dimension_numbers<[1], [0], [0], [1], [0, 0, 1, 1], [], []>} : vector<32x144xbf16>, vector<144x896xbf16>, vector<32x896xf32> -> vector<32x896xf32>
    %362 = vector.broadcast %3 : vector<32x1xf32> to vector<32x896xf32>
    %363 = arith.addf %361, %362 : vector<32x896xf32>
    %cst_303 = arith.constant 0.000000e+00 : f32
    %364 = vector.broadcast %cst_303 : f32 to vector<32x896xf32>
    %365 = arith.maximumf %363, %364 : vector<32x896xf32>
    %366 = arith.truncf %365 : vector<32x896xf32> to vector<32x896xbf16>
    %367 = vector.extract_strided_slice %366 {offsets = [0, 0], sizes = [32, 128], strides = [1, 1]} : vector<32x896xbf16> to vector<32x128xbf16>
    %c0_304 = arith.constant 0 : index
    %c0_305 = arith.constant 0 : index
    %368 = vector.load %arg10[%c0_304, %c0_305] : memref<1568x128xbf16, #tpu.memory_space<vmem>>, vector<32x128xbf16>
    tpu.vector_store %arg10[%c0_304, %c0_305], %367 {strides = array<i32>} : memref<1568x128xbf16, #tpu.memory_space<vmem>>, vector<32x128xbf16>,
    %369 = vector.extract_strided_slice %366 {offsets = [0, 128], sizes = [32, 128], strides = [1, 1]} : vector<32x896xbf16> to vector<32x128xbf16>
    %c32_306 = arith.constant 32 : index
    %c0_307 = arith.constant 0 : index
    %370 = vector.load %arg10[%c32_306, %c0_307] : memref<1568x128xbf16, #tpu.memory_space<vmem>>, vector<32x128xbf16>
    tpu.vector_store %arg10[%c32_306, %c0_307], %369 {strides = array<i32>} : memref<1568x128xbf16, #tpu.memory_space<vmem>>, vector<32x128xbf16>,
    %371 = vector.extract_strided_slice %366 {offsets = [0, 256], sizes = [32, 128], strides = [1, 1]} : vector<32x896xbf16> to vector<32x128xbf16>
    %c64_308 = arith.constant 64 : index
    %c0_309 = arith.constant 0 : index
    %372 = vector.load %arg10[%c64_308, %c0_309] : memref<1568x128xbf16, #tpu.memory_space<vmem>>, vector<32x128xbf16>
    tpu.vector_store %arg10[%c64_308, %c0_309], %371 {strides = array<i32>} : memref<1568x128xbf16, #tpu.memory_space<vmem>>, vector<32x128xbf16>,
    %373 = vector.extract_strided_slice %366 {offsets = [0, 384], sizes = [32, 128], strides = [1, 1]} : vector<32x896xbf16> to vector<32x128xbf16>
    %c96_310 = arith.constant 96 : index
    %c0_311 = arith.constant 0 : index
    %374 = vector.load %arg10[%c96_310, %c0_311] : memref<1568x128xbf16, #tpu.memory_space<vmem>>, vector<32x128xbf16>
    tpu.vector_store %arg10[%c96_310, %c0_311], %373 {strides = array<i32>} : memref<1568x128xbf16, #tpu.memory_space<vmem>>, vector<32x128xbf16>,
    %375 = vector.extract_strided_slice %366 {offsets = [0, 512], sizes = [32, 128], strides = [1, 1]} : vector<32x896xbf16> to vector<32x128xbf16>
    %c128_312 = arith.constant 128 : index
    %c0_313 = arith.constant 0 : index
    %376 = vector.load %arg10[%c128_312, %c0_313] : memref<1568x128xbf16, #tpu.memory_space<vmem>>, vector<32x128xbf16>
    tpu.vector_store %arg10[%c128_312, %c0_313], %375 {strides = array<i32>} : memref<1568x128xbf16, #tpu.memory_space<vmem>>, vector<32x128xbf16>,
    %377 = vector.extract_strided_slice %366 {offsets = [0, 640], sizes = [32, 128], strides = [1, 1]} : vector<32x896xbf16> to vector<32x128xbf16>
    %c160 = arith.constant 160 : index
    %c0_314 = arith.constant 0 : index
    %378 = vector.load %arg10[%c160, %c0_314] : memref<1568x128xbf16, #tpu.memory_space<vmem>>, vector<32x128xbf16>
    tpu.vector_store %arg10[%c160, %c0_314], %377 {strides = array<i32>} : memref<1568x128xbf16, #tpu.memory_space<vmem>>, vector<32x128xbf16>,
    %379 = vector.extract_strided_slice %366 {offsets = [0, 768], sizes = [32, 128], strides = [1, 1]} : vector<32x896xbf16> to vector<32x128xbf16>
    %c192 = arith.constant 192 : index
    %c0_315 = arith.constant 0 : index
    %380 = vector.load %arg10[%c192, %c0_315] : memref<1568x128xbf16, #tpu.memory_space<vmem>>, vector<32x128xbf16>
    tpu.vector_store %arg10[%c192, %c0_315], %379 {strides = array<i32>} : memref<1568x128xbf16, #tpu.memory_space<vmem>>, vector<32x128xbf16>,
    %c0_316 = arith.constant 0 : index
    %c896_317 = arith.constant 896 : index
    %381 = vector.load %arg9[%c0_316, %c896_317] : memref<144x6272xbf16, #tpu.memory_space<vmem>>, vector<144x896xbf16>
    %cst_318 = arith.constant dense<0.000000e+00> : vector<32x896xf32>
    %382 = tpu.matmul %2, %381, %cst_318 {dimension_numbers = #tpu.dot_dimension_numbers<[1], [0], [0], [1], [0, 0, 1, 1], [], []>} : vector<32x144xbf16>, vector<144x896xbf16>, vector<32x896xf32> -> vector<32x896xf32>
    %383 = vector.broadcast %3 : vector<32x1xf32> to vector<32x896xf32>
    %384 = arith.addf %382, %383 : vector<32x896xf32>
    %cst_319 = arith.constant 0.000000e+00 : f32
    %385 = vector.broadcast %cst_319 : f32 to vector<32x896xf32>
    %386 = arith.maximumf %384, %385 : vector<32x896xf32>
    %387 = arith.truncf %386 : vector<32x896xf32> to vector<32x896xbf16>
    %388 = vector.extract_strided_slice %387 {offsets = [0, 0], sizes = [32, 128], strides = [1, 1]} : vector<32x896xbf16> to vector<32x128xbf16>
    %c224 = arith.constant 224 : index
    %c0_320 = arith.constant 0 : index
    %389 = vector.load %arg10[%c224, %c0_320] : memref<1568x128xbf16, #tpu.memory_space<vmem>>, vector<32x128xbf16>
    tpu.vector_store %arg10[%c224, %c0_320], %388 {strides = array<i32>} : memref<1568x128xbf16, #tpu.memory_space<vmem>>, vector<32x128xbf16>,
    %390 = vector.extract_strided_slice %387 {offsets = [0, 128], sizes = [32, 128], strides = [1, 1]} : vector<32x896xbf16> to vector<32x128xbf16>
    %c256 = arith.constant 256 : index
    %c0_321 = arith.constant 0 : index
    %391 = vector.load %arg10[%c256, %c0_321] : memref<1568x128xbf16, #tpu.memory_space<vmem>>, vector<32x128xbf16>
    tpu.vector_store %arg10[%c256, %c0_321], %390 {strides = array<i32>} : memref<1568x128xbf16, #tpu.memory_space<vmem>>, vector<32x128xbf16>,
    %392 = vector.extract_strided_slice %387 {offsets = [0, 256], sizes = [32, 128], strides = [1, 1]} : vector<32x896xbf16> to vector<32x128xbf16>
    %c288 = arith.constant 288 : index
    %c0_322 = arith.constant 0 : index
    %393 = vector.load %arg10[%c288, %c0_322] : memref<1568x128xbf16, #tpu.memory_space<vmem>>, vector<32x128xbf16>
    tpu.vector_store %arg10[%c288, %c0_322], %392 {strides = array<i32>} : memref<1568x128xbf16, #tpu.memory_space<vmem>>, vector<32x128xbf16>,
    %394 = vector.extract_strided_slice %387 {offsets = [0, 384], sizes = [32, 128], strides = [1, 1]} : vector<32x896xbf16> to vector<32x128xbf16>
    %c320 = arith.constant 320 : index
    %c0_323 = arith.constant 0 : index
    %395 = vector.load %arg10[%c320, %c0_323] : memref<1568x128xbf16, #tpu.memory_space<vmem>>, vector<32x128xbf16>
    tpu.vector_store %arg10[%c320, %c0_323], %394 {strides = array<i32>} : memref<1568x128xbf16, #tpu.memory_space<vmem>>, vector<32x128xbf16>,
    %396 = vector.extract_strided_slice %387 {offsets = [0, 512], sizes = [32, 128], strides = [1, 1]} : vector<32x896xbf16> to vector<32x128xbf16>
    %c352 = arith.constant 352 : index
    %c0_324 = arith.constant 0 : index
    %397 = vector.load %arg10[%c352, %c0_324] : memref<1568x128xbf16, #tpu.memory_space<vmem>>, vector<32x128xbf16>
    tpu.vector_store %arg10[%c352, %c0_324], %396 {strides = array<i32>} : memref<1568x128xbf16, #tpu.memory_space<vmem>>, vector<32x128xbf16>,
    %398 = vector.extract_strided_slice %387 {offsets = [0, 640], sizes = [32, 128], strides = [1, 1]} : vector<32x896xbf16> to vector<32x128xbf16>
    %c384 = arith.constant 384 : index
    %c0_325 = arith.constant 0 : index
    %399 = vector.load %arg10[%c384, %c0_325] : memref<1568x128xbf16, #tpu.memory_space<vmem>>, vector<32x128xbf16>
    tpu.vector_store %arg10[%c384, %c0_325], %398 {strides = array<i32>} : memref<1568x128xbf16, #tpu.memory_space<vmem>>, vector<32x128xbf16>,
    %400 = vector.extract_strided_slice %387 {offsets = [0, 768], sizes = [32, 128], strides = [1, 1]} : vector<32x896xbf16> to vector<32x128xbf16>
    %c416 = arith.constant 416 : index
    %c0_326 = arith.constant 0 : index
    %401 = vector.load %arg10[%c416, %c0_326] : memref<1568x128xbf16, #tpu.memory_space<vmem>>, vector<32x128xbf16>
    tpu.vector_store %arg10[%c416, %c0_326], %400 {strides = array<i32>} : memref<1568x128xbf16, #tpu.memory_space<vmem>>, vector<32x128xbf16>,
    %c0_327 = arith.constant 0 : index
    %c1792_328 = arith.constant 1792 : index
    %402 = vector.load %arg9[%c0_327, %c1792_328] : memref<144x6272xbf16, #tpu.memory_space<vmem>>, vector<144x896xbf16>
    %cst_329 = arith.constant dense<0.000000e+00> : vector<32x896xf32>
    %403 = tpu.matmul %2, %402, %cst_329 {dimension_numbers = #tpu.dot_dimension_numbers<[1], [0], [0], [1], [0, 0, 1, 1], [], []>} : vector<32x144xbf16>, vector<144x896xbf16>, vector<32x896xf32> -> vector<32x896xf32>
    %404 = vector.broadcast %3 : vector<32x1xf32> to vector<32x896xf32>
    %405 = arith.addf %403, %404 : vector<32x896xf32>
    %cst_330 = arith.constant 0.000000e+00 : f32
    %406 = vector.broadcast %cst_330 : f32 to vector<32x896xf32>
    %407 = arith.maximumf %405, %406 : vector<32x896xf32>
    %408 = arith.truncf %407 : vector<32x896xf32> to vector<32x896xbf16>
    %409 = vector.extract_strided_slice %408 {offsets = [0, 0], sizes = [32, 128], strides = [1, 1]} : vector<32x896xbf16> to vector<32x128xbf16>
    %c448 = arith.constant 448 : index
    %c0_331 = arith.constant 0 : index
    %410 = vector.load %arg10[%c448, %c0_331] : memref<1568x128xbf16, #tpu.memory_space<vmem>>, vector<32x128xbf16>
    tpu.vector_store %arg10[%c448, %c0_331], %409 {strides = array<i32>} : memref<1568x128xbf16, #tpu.memory_space<vmem>>, vector<32x128xbf16>,
    %411 = vector.extract_strided_slice %408 {offsets = [0, 128], sizes = [32, 128], strides = [1, 1]} : vector<32x896xbf16> to vector<32x128xbf16>
    %c480 = arith.constant 480 : index
    %c0_332 = arith.constant 0 : index
    %412 = vector.load %arg10[%c480, %c0_332] : memref<1568x128xbf16, #tpu.memory_space<vmem>>, vector<32x128xbf16>
    tpu.vector_store %arg10[%c480, %c0_332], %411 {strides = array<i32>} : memref<1568x128xbf16, #tpu.memory_space<vmem>>, vector<32x128xbf16>,
    %413 = vector.extract_strided_slice %408 {offsets = [0, 256], sizes = [32, 128], strides = [1, 1]} : vector<32x896xbf16> to vector<32x128xbf16>
    %c512 = arith.constant 512 : index
    %c0_333 = arith.constant 0 : index
    %414 = vector.load %arg10[%c512, %c0_333] : memref<1568x128xbf16, #tpu.memory_space<vmem>>, vector<32x128xbf16>
    tpu.vector_store %arg10[%c512, %c0_333], %413 {strides = array<i32>} : memref<1568x128xbf16, #tpu.memory_space<vmem>>, vector<32x128xbf16>,
    %415 = vector.extract_strided_slice %408 {offsets = [0, 384], sizes = [32, 128], strides = [1, 1]} : vector<32x896xbf16> to vector<32x128xbf16>
    %c544 = arith.constant 544 : index
    %c0_334 = arith.constant 0 : index
    %416 = vector.load %arg10[%c544, %c0_334] : memref<1568x128xbf16, #tpu.memory_space<vmem>>, vector<32x128xbf16>
    tpu.vector_store %arg10[%c544, %c0_334], %415 {strides = array<i32>} : memref<1568x128xbf16, #tpu.memory_space<vmem>>, vector<32x128xbf16>,
    %417 = vector.extract_strided_slice %408 {offsets = [0, 512], sizes = [32, 128], strides = [1, 1]} : vector<32x896xbf16> to vector<32x128xbf16>
    %c576 = arith.constant 576 : index
    %c0_335 = arith.constant 0 : index
    %418 = vector.load %arg10[%c576, %c0_335] : memref<1568x128xbf16, #tpu.memory_space<vmem>>, vector<32x128xbf16>
    tpu.vector_store %arg10[%c576, %c0_335], %417 {strides = array<i32>} : memref<1568x128xbf16, #tpu.memory_space<vmem>>, vector<32x128xbf16>,
    %419 = vector.extract_strided_slice %408 {offsets = [0, 640], sizes = [32, 128], strides = [1, 1]} : vector<32x896xbf16> to vector<32x128xbf16>
    %c608 = arith.constant 608 : index
    %c0_336 = arith.constant 0 : index
    %420 = vector.load %arg10[%c608, %c0_336] : memref<1568x128xbf16, #tpu.memory_space<vmem>>, vector<32x128xbf16>
    tpu.vector_store %arg10[%c608, %c0_336], %419 {strides = array<i32>} : memref<1568x128xbf16, #tpu.memory_space<vmem>>, vector<32x128xbf16>,
    %421 = vector.extract_strided_slice %408 {offsets = [0, 768], sizes = [32, 128], strides = [1, 1]} : vector<32x896xbf16> to vector<32x128xbf16>
    %c640 = arith.constant 640 : index
    %c0_337 = arith.constant 0 : index
    %422 = vector.load %arg10[%c640, %c0_337] : memref<1568x128xbf16, #tpu.memory_space<vmem>>, vector<32x128xbf16>
    tpu.vector_store %arg10[%c640, %c0_337], %421 {strides = array<i32>} : memref<1568x128xbf16, #tpu.memory_space<vmem>>, vector<32x128xbf16>,
    %c0_338 = arith.constant 0 : index
    %c2688_339 = arith.constant 2688 : index
    %423 = vector.load %arg9[%c0_338, %c2688_339] : memref<144x6272xbf16, #tpu.memory_space<vmem>>, vector<144x896xbf16>
    %cst_340 = arith.constant dense<0.000000e+00> : vector<32x896xf32>
    %424 = tpu.matmul %2, %423, %cst_340 {dimension_numbers = #tpu.dot_dimension_numbers<[1], [0], [0], [1], [0, 0, 1, 1], [], []>} : vector<32x144xbf16>, vector<144x896xbf16>, vector<32x896xf32> -> vector<32x896xf32>
    %425 = vector.broadcast %3 : vector<32x1xf32> to vector<32x896xf32>
    %426 = arith.addf %424, %425 : vector<32x896xf32>
    %cst_341 = arith.constant 0.000000e+00 : f32
    %427 = vector.broadcast %cst_341 : f32 to vector<32x896xf32>
    %428 = arith.maximumf %426, %427 : vector<32x896xf32>
    %429 = arith.truncf %428 : vector<32x896xf32> to vector<32x896xbf16>
    %430 = vector.extract_strided_slice %429 {offsets = [0, 0], sizes = [32, 128], strides = [1, 1]} : vector<32x896xbf16> to vector<32x128xbf16>
    %c672 = arith.constant 672 : index
    %c0_342 = arith.constant 0 : index
    %431 = vector.load %arg10[%c672, %c0_342] : memref<1568x128xbf16, #tpu.memory_space<vmem>>, vector<32x128xbf16>
    tpu.vector_store %arg10[%c672, %c0_342], %430 {strides = array<i32>} : memref<1568x128xbf16, #tpu.memory_space<vmem>>, vector<32x128xbf16>,
    %432 = vector.extract_strided_slice %429 {offsets = [0, 128], sizes = [32, 128], strides = [1, 1]} : vector<32x896xbf16> to vector<32x128xbf16>
    %c704 = arith.constant 704 : index
    %c0_343 = arith.constant 0 : index
    %433 = vector.load %arg10[%c704, %c0_343] : memref<1568x128xbf16, #tpu.memory_space<vmem>>, vector<32x128xbf16>
    tpu.vector_store %arg10[%c704, %c0_343], %432 {strides = array<i32>} : memref<1568x128xbf16, #tpu.memory_space<vmem>>, vector<32x128xbf16>,
    %434 = vector.extract_strided_slice %429 {offsets = [0, 256], sizes = [32, 128], strides = [1, 1]} : vector<32x896xbf16> to vector<32x128xbf16>
    %c736 = arith.constant 736 : index
    %c0_344 = arith.constant 0 : index
    %435 = vector.load %arg10[%c736, %c0_344] : memref<1568x128xbf16, #tpu.memory_space<vmem>>, vector<32x128xbf16>
    tpu.vector_store %arg10[%c736, %c0_344], %434 {strides = array<i32>} : memref<1568x128xbf16, #tpu.memory_space<vmem>>, vector<32x128xbf16>,
    %436 = vector.extract_strided_slice %429 {offsets = [0, 384], sizes = [32, 128], strides = [1, 1]} : vector<32x896xbf16> to vector<32x128xbf16>
    %c768 = arith.constant 768 : index
    %c0_345 = arith.constant 0 : index
    %437 = vector.load %arg10[%c768, %c0_345] : memref<1568x128xbf16, #tpu.memory_space<vmem>>, vector<32x128xbf16>
    tpu.vector_store %arg10[%c768, %c0_345], %436 {strides = array<i32>} : memref<1568x128xbf16, #tpu.memory_space<vmem>>, vector<32x128xbf16>,
    %438 = vector.extract_strided_slice %429 {offsets = [0, 512], sizes = [32, 128], strides = [1, 1]} : vector<32x896xbf16> to vector<32x128xbf16>
    %c800 = arith.constant 800 : index
    %c0_346 = arith.constant 0 : index
    %439 = vector.load %arg10[%c800, %c0_346] : memref<1568x128xbf16, #tpu.memory_space<vmem>>, vector<32x128xbf16>
    tpu.vector_store %arg10[%c800, %c0_346], %438 {strides = array<i32>} : memref<1568x128xbf16, #tpu.memory_space<vmem>>, vector<32x128xbf16>,
    %440 = vector.extract_strided_slice %429 {offsets = [0, 640], sizes = [32, 128], strides = [1, 1]} : vector<32x896xbf16> to vector<32x128xbf16>
    %c832 = arith.constant 832 : index
    %c0_347 = arith.constant 0 : index
    %441 = vector.load %arg10[%c832, %c0_347] : memref<1568x128xbf16, #tpu.memory_space<vmem>>, vector<32x128xbf16>
    tpu.vector_store %arg10[%c832, %c0_347], %440 {strides = array<i32>} : memref<1568x128xbf16, #tpu.memory_space<vmem>>, vector<32x128xbf16>,
    %442 = vector.extract_strided_slice %429 {offsets = [0, 768], sizes = [32, 128], strides = [1, 1]} : vector<32x896xbf16> to vector<32x128xbf16>
    %c864 = arith.constant 864 : index
    %c0_348 = arith.constant 0 : index
    %443 = vector.load %arg10[%c864, %c0_348] : memref<1568x128xbf16, #tpu.memory_space<vmem>>, vector<32x128xbf16>
    tpu.vector_store %arg10[%c864, %c0_348], %442 {strides = array<i32>} : memref<1568x128xbf16, #tpu.memory_space<vmem>>, vector<32x128xbf16>,
    %c0_349 = arith.constant 0 : index
    %c3584_350 = arith.constant 3584 : index
    %444 = vector.load %arg9[%c0_349, %c3584_350] : memref<144x6272xbf16, #tpu.memory_space<vmem>>, vector<144x896xbf16>
    %cst_351 = arith.constant dense<0.000000e+00> : vector<32x896xf32>
    %445 = tpu.matmul %2, %444, %cst_351 {dimension_numbers = #tpu.dot_dimension_numbers<[1], [0], [0], [1], [0, 0, 1, 1], [], []>} : vector<32x144xbf16>, vector<144x896xbf16>, vector<32x896xf32> -> vector<32x896xf32>
    %446 = vector.broadcast %3 : vector<32x1xf32> to vector<32x896xf32>
    %447 = arith.addf %445, %446 : vector<32x896xf32>
    %cst_352 = arith.constant 0.000000e+00 : f32
    %448 = vector.broadcast %cst_352 : f32 to vector<32x896xf32>
    %449 = arith.maximumf %447, %448 : vector<32x896xf32>
    %450 = arith.truncf %449 : vector<32x896xf32> to vector<32x896xbf16>
    %451 = vector.extract_strided_slice %450 {offsets = [0, 0], sizes = [32, 128], strides = [1, 1]} : vector<32x896xbf16> to vector<32x128xbf16>
    %c896_353 = arith.constant 896 : index
    %c0_354 = arith.constant 0 : index
    %452 = vector.load %arg10[%c896_353, %c0_354] : memref<1568x128xbf16, #tpu.memory_space<vmem>>, vector<32x128xbf16>
    tpu.vector_store %arg10[%c896_353, %c0_354], %451 {strides = array<i32>} : memref<1568x128xbf16, #tpu.memory_space<vmem>>, vector<32x128xbf16>,
    %453 = vector.extract_strided_slice %450 {offsets = [0, 128], sizes = [32, 128], strides = [1, 1]} : vector<32x896xbf16> to vector<32x128xbf16>
    %c928 = arith.constant 928 : index
    %c0_355 = arith.constant 0 : index
    %454 = vector.load %arg10[%c928, %c0_355] : memref<1568x128xbf16, #tpu.memory_space<vmem>>, vector<32x128xbf16>
    tpu.vector_store %arg10[%c928, %c0_355], %453 {strides = array<i32>} : memref<1568x128xbf16, #tpu.memory_space<vmem>>, vector<32x128xbf16>,
    %455 = vector.extract_strided_slice %450 {offsets = [0, 256], sizes = [32, 128], strides = [1, 1]} : vector<32x896xbf16> to vector<32x128xbf16>
    %c960 = arith.constant 960 : index
    %c0_356 = arith.constant 0 : index
    %456 = vector.load %arg10[%c960, %c0_356] : memref<1568x128xbf16, #tpu.memory_space<vmem>>, vector<32x128xbf16>
    tpu.vector_store %arg10[%c960, %c0_356], %455 {strides = array<i32>} : memref<1568x128xbf16, #tpu.memory_space<vmem>>, vector<32x128xbf16>,
    %457 = vector.extract_strided_slice %450 {offsets = [0, 384], sizes = [32, 128], strides = [1, 1]} : vector<32x896xbf16> to vector<32x128xbf16>
    %c992 = arith.constant 992 : index
    %c0_357 = arith.constant 0 : index
    %458 = vector.load %arg10[%c992, %c0_357] : memref<1568x128xbf16, #tpu.memory_space<vmem>>, vector<32x128xbf16>
    tpu.vector_store %arg10[%c992, %c0_357], %457 {strides = array<i32>} : memref<1568x128xbf16, #tpu.memory_space<vmem>>, vector<32x128xbf16>,
    %459 = vector.extract_strided_slice %450 {offsets = [0, 512], sizes = [32, 128], strides = [1, 1]} : vector<32x896xbf16> to vector<32x128xbf16>
    %c1024_358 = arith.constant 1024 : index
    %c0_359 = arith.constant 0 : index
    %460 = vector.load %arg10[%c1024_358, %c0_359] : memref<1568x128xbf16, #tpu.memory_space<vmem>>, vector<32x128xbf16>
    tpu.vector_store %arg10[%c1024_358, %c0_359], %459 {strides = array<i32>} : memref<1568x128xbf16, #tpu.memory_space<vmem>>, vector<32x128xbf16>,
    %461 = vector.extract_strided_slice %450 {offsets = [0, 640], sizes = [32, 128], strides = [1, 1]} : vector<32x896xbf16> to vector<32x128xbf16>
    %c1056 = arith.constant 1056 : index
    %c0_360 = arith.constant 0 : index
    %462 = vector.load %arg10[%c1056, %c0_360] : memref<1568x128xbf16, #tpu.memory_space<vmem>>, vector<32x128xbf16>
    tpu.vector_store %arg10[%c1056, %c0_360], %461 {strides = array<i32>} : memref<1568x128xbf16, #tpu.memory_space<vmem>>, vector<32x128xbf16>,
    %463 = vector.extract_strided_slice %450 {offsets = [0, 768], sizes = [32, 128], strides = [1, 1]} : vector<32x896xbf16> to vector<32x128xbf16>
    %c1088 = arith.constant 1088 : index
    %c0_361 = arith.constant 0 : index
    %464 = vector.load %arg10[%c1088, %c0_361] : memref<1568x128xbf16, #tpu.memory_space<vmem>>, vector<32x128xbf16>
    tpu.vector_store %arg10[%c1088, %c0_361], %463 {strides = array<i32>} : memref<1568x128xbf16, #tpu.memory_space<vmem>>, vector<32x128xbf16>,
    %c0_362 = arith.constant 0 : index
    %c4480_363 = arith.constant 4480 : index
    %465 = vector.load %arg9[%c0_362, %c4480_363] : memref<144x6272xbf16, #tpu.memory_space<vmem>>, vector<144x896xbf16>
    %cst_364 = arith.constant dense<0.000000e+00> : vector<32x896xf32>
    %466 = tpu.matmul %2, %465, %cst_364 {dimension_numbers = #tpu.dot_dimension_numbers<[1], [0], [0], [1], [0, 0, 1, 1], [], []>} : vector<32x144xbf16>, vector<144x896xbf16>, vector<32x896xf32> -> vector<32x896xf32>
    %467 = vector.broadcast %3 : vector<32x1xf32> to vector<32x896xf32>
    %468 = arith.addf %466, %467 : vector<32x896xf32>
    %cst_365 = arith.constant 0.000000e+00 : f32
    %469 = vector.broadcast %cst_365 : f32 to vector<32x896xf32>
    %470 = arith.maximumf %468, %469 : vector<32x896xf32>
    %471 = arith.truncf %470 : vector<32x896xf32> to vector<32x896xbf16>
    %472 = vector.extract_strided_slice %471 {offsets = [0, 0], sizes = [32, 128], strides = [1, 1]} : vector<32x896xbf16> to vector<32x128xbf16>
    %c1120 = arith.constant 1120 : index
    %c0_366 = arith.constant 0 : index
    %473 = vector.load %arg10[%c1120, %c0_366] : memref<1568x128xbf16, #tpu.memory_space<vmem>>, vector<32x128xbf16>
    tpu.vector_store %arg10[%c1120, %c0_366], %472 {strides = array<i32>} : memref<1568x128xbf16, #tpu.memory_space<vmem>>, vector<32x128xbf16>,
    %474 = vector.extract_strided_slice %471 {offsets = [0, 128], sizes = [32, 128], strides = [1, 1]} : vector<32x896xbf16> to vector<32x128xbf16>
    %c1152 = arith.constant 1152 : index
    %c0_367 = arith.constant 0 : index
    %475 = vector.load %arg10[%c1152, %c0_367] : memref<1568x128xbf16, #tpu.memory_space<vmem>>, vector<32x128xbf16>
    tpu.vector_store %arg10[%c1152, %c0_367], %474 {strides = array<i32>} : memref<1568x128xbf16, #tpu.memory_space<vmem>>, vector<32x128xbf16>,
    %476 = vector.extract_strided_slice %471 {offsets = [0, 256], sizes = [32, 128], strides = [1, 1]} : vector<32x896xbf16> to vector<32x128xbf16>
    %c1184 = arith.constant 1184 : index
    %c0_368 = arith.constant 0 : index
    %477 = vector.load %arg10[%c1184, %c0_368] : memref<1568x128xbf16, #tpu.memory_space<vmem>>, vector<32x128xbf16>
    tpu.vector_store %arg10[%c1184, %c0_368], %476 {strides = array<i32>} : memref<1568x128xbf16, #tpu.memory_space<vmem>>, vector<32x128xbf16>,
    %478 = vector.extract_strided_slice %471 {offsets = [0, 384], sizes = [32, 128], strides = [1, 1]} : vector<32x896xbf16> to vector<32x128xbf16>
    %c1216 = arith.constant 1216 : index
    %c0_369 = arith.constant 0 : index
    %479 = vector.load %arg10[%c1216, %c0_369] : memref<1568x128xbf16, #tpu.memory_space<vmem>>, vector<32x128xbf16>
    tpu.vector_store %arg10[%c1216, %c0_369], %478 {strides = array<i32>} : memref<1568x128xbf16, #tpu.memory_space<vmem>>, vector<32x128xbf16>,
    %480 = vector.extract_strided_slice %471 {offsets = [0, 512], sizes = [32, 128], strides = [1, 1]} : vector<32x896xbf16> to vector<32x128xbf16>
    %c1248 = arith.constant 1248 : index
    %c0_370 = arith.constant 0 : index
    %481 = vector.load %arg10[%c1248, %c0_370] : memref<1568x128xbf16, #tpu.memory_space<vmem>>, vector<32x128xbf16>
    tpu.vector_store %arg10[%c1248, %c0_370], %480 {strides = array<i32>} : memref<1568x128xbf16, #tpu.memory_space<vmem>>, vector<32x128xbf16>,
    %482 = vector.extract_strided_slice %471 {offsets = [0, 640], sizes = [32, 128], strides = [1, 1]} : vector<32x896xbf16> to vector<32x128xbf16>
    %c1280 = arith.constant 1280 : index
    %c0_371 = arith.constant 0 : index
    %483 = vector.load %arg10[%c1280, %c0_371] : memref<1568x128xbf16, #tpu.memory_space<vmem>>, vector<32x128xbf16>
    tpu.vector_store %arg10[%c1280, %c0_371], %482 {strides = array<i32>} : memref<1568x128xbf16, #tpu.memory_space<vmem>>, vector<32x128xbf16>,
    %484 = vector.extract_strided_slice %471 {offsets = [0, 768], sizes = [32, 128], strides = [1, 1]} : vector<32x896xbf16> to vector<32x128xbf16>
    %c1312 = arith.constant 1312 : index
    %c0_372 = arith.constant 0 : index
    %485 = vector.load %arg10[%c1312, %c0_372] : memref<1568x128xbf16, #tpu.memory_space<vmem>>, vector<32x128xbf16>
    tpu.vector_store %arg10[%c1312, %c0_372], %484 {strides = array<i32>} : memref<1568x128xbf16, #tpu.memory_space<vmem>>, vector<32x128xbf16>,
    %c0_373 = arith.constant 0 : index
    %c5376_374 = arith.constant 5376 : index
    %486 = vector.load %arg9[%c0_373, %c5376_374] : memref<144x6272xbf16, #tpu.memory_space<vmem>>, vector<144x896xbf16>
    %cst_375 = arith.constant dense<0.000000e+00> : vector<32x896xf32>
    %487 = tpu.matmul %2, %486, %cst_375 {dimension_numbers = #tpu.dot_dimension_numbers<[1], [0], [0], [1], [0, 0, 1, 1], [], []>} : vector<32x144xbf16>, vector<144x896xbf16>, vector<32x896xf32> -> vector<32x896xf32>
    %488 = vector.broadcast %3 : vector<32x1xf32> to vector<32x896xf32>
    %489 = arith.addf %487, %488 : vector<32x896xf32>
    %cst_376 = arith.constant 0.000000e+00 : f32
    %490 = vector.broadcast %cst_376 : f32 to vector<32x896xf32>
    %491 = arith.maximumf %489, %490 : vector<32x896xf32>
    %492 = arith.truncf %491 : vector<32x896xf32> to vector<32x896xbf16>
    %493 = vector.extract_strided_slice %492 {offsets = [0, 0], sizes = [32, 128], strides = [1, 1]} : vector<32x896xbf16> to vector<32x128xbf16>
    %c1344 = arith.constant 1344 : index
    %c0_377 = arith.constant 0 : index
    %494 = vector.load %arg10[%c1344, %c0_377] : memref<1568x128xbf16, #tpu.memory_space<vmem>>, vector<32x128xbf16>
    tpu.vector_store %arg10[%c1344, %c0_377], %493 {strides = array<i32>} : memref<1568x128xbf16, #tpu.memory_space<vmem>>, vector<32x128xbf16>,
    %495 = vector.extract_strided_slice %492 {offsets = [0, 128], sizes = [32, 128], strides = [1, 1]} : vector<32x896xbf16> to vector<32x128xbf16>
    %c1376 = arith.constant 1376 : index
    %c0_378 = arith.constant 0 : index
    %496 = vector.load %arg10[%c1376, %c0_378] : memref<1568x128xbf16, #tpu.memory_space<vmem>>, vector<32x128xbf16>
    tpu.vector_store %arg10[%c1376, %c0_378], %495 {strides = array<i32>} : memref<1568x128xbf16, #tpu.memory_space<vmem>>, vector<32x128xbf16>,
    %497 = vector.extract_strided_slice %492 {offsets = [0, 256], sizes = [32, 128], strides = [1, 1]} : vector<32x896xbf16> to vector<32x128xbf16>
    %c1408 = arith.constant 1408 : index
    %c0_379 = arith.constant 0 : index
    %498 = vector.load %arg10[%c1408, %c0_379] : memref<1568x128xbf16, #tpu.memory_space<vmem>>, vector<32x128xbf16>
    tpu.vector_store %arg10[%c1408, %c0_379], %497 {strides = array<i32>} : memref<1568x128xbf16, #tpu.memory_space<vmem>>, vector<32x128xbf16>,
    %499 = vector.extract_strided_slice %492 {offsets = [0, 384], sizes = [32, 128], strides = [1, 1]} : vector<32x896xbf16> to vector<32x128xbf16>
    %c1440 = arith.constant 1440 : index
    %c0_380 = arith.constant 0 : index
    %500 = vector.load %arg10[%c1440, %c0_380] : memref<1568x128xbf16, #tpu.memory_space<vmem>>, vector<32x128xbf16>
    tpu.vector_store %arg10[%c1440, %c0_380], %499 {strides = array<i32>} : memref<1568x128xbf16, #tpu.memory_space<vmem>>, vector<32x128xbf16>,
    %501 = vector.extract_strided_slice %492 {offsets = [0, 512], sizes = [32, 128], strides = [1, 1]} : vector<32x896xbf16> to vector<32x128xbf16>
    %c1472 = arith.constant 1472 : index
    %c0_381 = arith.constant 0 : index
    %502 = vector.load %arg10[%c1472, %c0_381] : memref<1568x128xbf16, #tpu.memory_space<vmem>>, vector<32x128xbf16>
    tpu.vector_store %arg10[%c1472, %c0_381], %501 {strides = array<i32>} : memref<1568x128xbf16, #tpu.memory_space<vmem>>, vector<32x128xbf16>,
    %503 = vector.extract_strided_slice %492 {offsets = [0, 640], sizes = [32, 128], strides = [1, 1]} : vector<32x896xbf16> to vector<32x128xbf16>
    %c1504 = arith.constant 1504 : index
    %c0_382 = arith.constant 0 : index
    %504 = vector.load %arg10[%c1504, %c0_382] : memref<1568x128xbf16, #tpu.memory_space<vmem>>, vector<32x128xbf16>
    tpu.vector_store %arg10[%c1504, %c0_382], %503 {strides = array<i32>} : memref<1568x128xbf16, #tpu.memory_space<vmem>>, vector<32x128xbf16>,
    %505 = vector.extract_strided_slice %492 {offsets = [0, 768], sizes = [32, 128], strides = [1, 1]} : vector<32x896xbf16> to vector<32x128xbf16>
    %c1536 = arith.constant 1536 : index
    %c0_383 = arith.constant 0 : index
    %506 = vector.load %arg10[%c1536, %c0_383] : memref<1568x128xbf16, #tpu.memory_space<vmem>>, vector<32x128xbf16>
    tpu.vector_store %arg10[%c1536, %c0_383], %505 {strides = array<i32>} : memref<1568x128xbf16, #tpu.memory_space<vmem>>, vector<32x128xbf16>,
    %c0_384 = arith.constant 0 : index
    %c0_385 = arith.constant 0 : index
    %507 = vector.load %arg6[%c0_384, %c0_385] : memref<8x1568xbf16, #tpu.memory_space<vmem>>, vector<8x1568xbf16>
    %c0_386 = arith.constant 0 : index
    %c0_387 = arith.constant 0 : index
    %508 = vector.load %arg10[%c0_386, %c0_387] : memref<1568x128xbf16, #tpu.memory_space<vmem>>, vector<1568x128xbf16>
    %cst_388 = arith.constant dense<0.000000e+00> : vector<8x128xf32>
    %509 = tpu.matmul %507, %508, %cst_388 {dimension_numbers = #tpu.dot_dimension_numbers<[1], [0], [0], [1], [0, 0, 1, 1], [], []>} : vector<8x1568xbf16>, vector<1568x128xbf16>, vector<8x128xf32> -> vector<8x128xf32>
    %c0_389 = arith.constant 0 : index
    %c0_390 = arith.constant 0 : index
    %510 = vector.load %arg7[%c0_389, %c0_390] : memref<8x1xf32, #tpu.memory_space<vmem>>, vector<8x1xf32>
    %511 = vector.broadcast %510 : vector<8x1xf32> to vector<8x128xf32>
    %512 = arith.addf %509, %511 : vector<8x128xf32>
    %c0_391 = arith.constant 0 : index
    %c0_392 = arith.constant 0 : index
    %c0_393 = arith.constant 0 : index
    %513 = vector.load %arg8[%c0_391, %c0_392, %c0_393] : memref<1x8x128xf32, #tpu.memory_space<vmem>>, vector<1x8x128xf32>
    %514 = vector.shape_cast %513 : vector<1x8x128xf32> to vector<8x128xf32>
    %515 = vector.shape_cast %512 : vector<8x128xf32> to vector<1x8x128xf32>
    tpu.vector_store %arg8[%c0_391, %c0_392, %c0_393], %515 {strides = array<i32>} : memref<1x8x128xf32, #tpu.memory_space<vmem>>, vector<1x8x128xf32>,
    return
  }
  func.func @transform_0(%arg0: i32) -> (i32, i32, i32, i32) {
    %c0_i32 = arith.constant 0 : i32
    %c0_i32_0 = arith.constant 0 : i32
    %c0_i32_1 = arith.constant 0 : i32
    %c0_i32_2 = arith.constant 0 : i32
    return %arg0, %c0_i32, %c0_i32_0, %c0_i32_1 : i32, i32, i32, i32
  }
  func.func @transform_1(%arg0: i32) -> (i32, i32) {
    %c0_i32 = arith.constant 0 : i32
    %c0_i32_0 = arith.constant 0 : i32
    %c0_i32_1 = arith.constant 0 : i32
    return %c0_i32, %c0_i32_0 : i32, i32
  }
  func.func @transform_2(%arg0: i32) -> (i32, i32) {
    %c0_i32 = arith.constant 0 : i32
    %c0_i32_0 = arith.constant 0 : i32
    %c0_i32_1 = arith.constant 0 : i32
    return %c0_i32, %c0_i32_0 : i32, i32
  }
  func.func @transform_3(%arg0: i32) -> (i32, i32) {
    %c0_i32 = arith.constant 0 : i32
    %c0_i32_0 = arith.constant 0 : i32
    %c0_i32_1 = arith.constant 0 : i32
    return %c0_i32, %c0_i32_0 : i32, i32
  }
  func.func @transform_4(%arg0: i32) -> (i32, i32) {
    %c0_i32 = arith.constant 0 : i32
    %c0_i32_0 = arith.constant 0 : i32
    %c0_i32_1 = arith.constant 0 : i32
    return %c0_i32, %c0_i32_0 : i32, i32
  }
  func.func @transform_5(%arg0: i32) -> (i32, i32) {
    %c0_i32 = arith.constant 0 : i32
    %c0_i32_0 = arith.constant 0 : i32
    %c0_i32_1 = arith.constant 0 : i32
    return %c0_i32, %c0_i32_0 : i32, i32
  }
  func.func @transform_6(%arg0: i32) -> (i32, i32) {
    %c0_i32 = arith.constant 0 : i32
    %c0_i32_0 = arith.constant 0 : i32
    %c0_i32_1 = arith.constant 0 : i32
    return %c0_i32, %c0_i32_0 : i32, i32
  }
  func.func @transform_7(%arg0: i32) -> (i32, i32, i32) {
    %c0_i32 = arith.constant 0 : i32
    %c0_i32_0 = arith.constant 0 : i32
    %c0_i32_1 = arith.constant 0 : i32
    return %arg0, %c0_i32, %c0_i32_0 : i32, i32, i32
  }
}

</mosaic_0001>

<bundles_post_ra>
// kernel: _encoder_forward_impl.1
= control target key start
LH: loop header
LB: loop body
LE: loop exit
PB: predicated region body
PF: predicated region fallthrough
CT: control target
= control target key end

     0   :  { %vm111_vm0 = vcmask 1040384   ;;  %vm15597_vm1 = vmmov 1   ;;  %v20334_v3 = vmov 0.0   ;;  %v20332_v8 = vmov 0   ;;  %s20324_s0 = inlined_call_operand.vmem [shape: f32[1,4,9,6272], index: 0, kind: input, shape index: {}]   ;;  %s20325_s1 = inlined_call_operand.vmem [shape: f32[16,9], index: 1, kind: input, shape index: {}]   ;;  %s20326_s2 = inlined_call_operand.vmem [shape: f32[16,1], index: 2, kind: input, shape index: {}]   ;;  %s20327_s4 = inlined_call_operand.vmem [shape: f32[32,1], index: 4, kind: input, shape index: {}]   ;;  %s20328_s6 = inlined_call_operand.vmem [shape: f32[8,1], index: 6, kind: input, shape index: {}]   ;;  %s20329_s3 = inlined_call_operand.vmem [shape: bf16[32,144], index: 3, kind: input, shape index: {}]   ;;  %s20330_s5 = inlined_call_operand.vmem [shape: bf16[8,1568], index: 5, kind: input, shape index: {}]   ;;  %s20331_s7 = inlined_call_operand.vmem [shape: f32[1,8,128], index: 7, kind: output, shape index: {}]  }
   0x1   :  { %v81_v0 = vld [vmem:[%s20324_s0 + $0x8] sm:$0xff]  ;;  %v88_v1 = vld [vmem:[%s20324_s0 + $0x190] sm:$0x1]  ;;  %vm15648_vm2 = vmpackc.low %vm111_vm0, %vm15597_vm1  ;;  %197 = vmatprep.mubr.f32.mxu0 %v20334_v3  ;;  %274 = vmatprep.mubr.f32.mxu1 %v20334_v3  ;;  %vm104_vm3 = vcmask 72704   ;;  %vm10908_vm7 = vcmask 130048   ;;  %vm15600_vm8 = vmmov 0  }
   0x2   :  { %v14885_v4 = vpack.c.bf16 %v88_v1, %v81_v0  ;;  %v83_v5 = vld [vmem:[%s20324_s0 + $0x18] sm:$0xff]  ;;  %v90_v6 = vld [vmem:[%s20324_s0 + $0x1a0] sm:$0x1]  ;;  %15561 = vset.pattern.permute.xlu0 %v20332_v8  ;;  %15562 = vset.pattern.permute.xlu1 %v20332_v8  ;;  %v87_v10 = vld [vmem:[%s20324_s0 + $0x188] sm:$0x1]  ;;  %vm13297_vm11 = vcmask 261120  }
   0x3   :  { %v80_v7 = vld [vmem:[%s20324_s0] sm:$0xff]  ;;  %v14891_v9 = vpack.c.bf16 %v90_v6, %v83_v5  ;;  %v82_v11 = vld [vmem:[%s20324_s0 + $0x10] sm:$0xff]  ;;  %v89_v12 = vld [vmem:[%s20324_s0 + $0x198] sm:$0x1] }
   0x4   :  { %14887 = vmatprep.subr.msk.bf16.mxu0 %vm15648_vm2, %v14885_v4  ;;  %v14888_v13 = vpack.c.bf16 %v87_v10, %v80_v7  ;;  %v14894_v14 = vpack.c.bf16 %v89_v12, %v82_v11  ;;  %v86_v15 = vld [vmem:[%s20324_s0 + $0x30] sm:$0xff]  ;;  %v93_v16 = vld [vmem:[%s20324_s0 + $0x1b8] sm:$0x1]  ;;  %v15687_v17 = vld [vmem:[%s20325_s1] sm:$0xff] }
   0x5   :  { %14893 = vmatprep.subr.msk.bf16.mxu1 %vm15648_vm2, %v14891_v9  ;;  %v14903_v18 = vpack.c.bf16 %v93_v16, %v86_v15  ;;  %v85_v19 = vld [vmem:[%s20324_s0 + $0x28] sm:$0xff]  ;;  %v92_v20 = vld [vmem:[%s20324_s0 + $0x1b0] sm:$0x1]  ;;  %v84_v22 = vld [vmem:[%s20324_s0 + $0x20] sm:$0xff] }
   0x6   :  { %14890 = vmatpush1.bf16.msk.msra.mxu0 %vm15648_vm2, %v14888_v13  ;;  %14896 = vmatpush1.bf16.msk.msra.mxu1 %vm15648_vm2, %v14894_v14  ;;  %v14897_v21 = vpack.c.bf16 %v92_v20, %v85_v19  ;;  %v91_v23 = vld [vmem:[%s20324_s0 + $0x1a8] sm:$0x1]  ;;  %v468_v24 = vld [vmem:[%s20324_s0 + $0x40] sm:$0xff]  ;;  %v470_v28 = vld [vmem:[%s20324_s0 + $0x50] sm:$0xff] }
   0x7   :  { %14905 = vmatprep.subr.msk.bf16.mxu1 %vm15648_vm2, %v14903_v18  ;;  %v14900_v25 = vpack.c.bf16 %v91_v23, %v84_v22  ;;  %v475_v26 = vld [vmem:[%s20324_s0 + $0x1c8] sm:$0x1]  ;;  %v477_v29 = vld [vmem:[%s20324_s0 + $0x1d8] sm:$0x1]  ;;  %v474_v33 = vld [vmem:[%s20324_s0 + $0x1c0] sm:$0x1] }
   0x8   :  { %14899 = vmatprep.subr.msk.bf16.mxu0 %vm15648_vm2, %v14897_v21  ;;  %v14909_v27 = vpack.c.bf16 %v475_v26, %v468_v24  ;;  %v14915_v30 = vpack.c.bf16 %v477_v29, %v470_v28  ;;  %v15731_v31 = vld [vmem:[%s20325_s1 + $0x8] sm:$0xff]  ;;  %v467_v32 = vld [vmem:[%s20324_s0 + $0x38] sm:$0xff]  ;;  %v472_v34 = vld [vmem:[%s20324_s0 + $0x60] sm:$0xff] }
   0x9   :  { %13588 = vmatmul.mubr.msk.f32.vlgmr.msra.gmra.mrb[0].mxu0 %vm104_vm3, %v15687_v17  ;;  %13592 = vmatmul.mubr.msk.f32.vlgmr.msra.gmra.mrb[0].mxu1 %vm104_vm3, %v15687_v17  ;;  %v479_v35 = vld [vmem:[%s20324_s0 + $0x1e8] sm:$0x1]  ;;  %v476_v37 = vld [vmem:[%s20324_s0 + $0x1d0] sm:$0x1]  ;;  %v14912_v38 = vpack.c.bf16 %v474_v33, %v467_v32  ;;  %v471_v40 = vld [vmem:[%s20324_s0 + $0x58] sm:$0xff] }
   0xa   :  { %14908 = vmatpush3.bf16.msk.msra.mxu1 %vm15648_vm2, %v14903_v18  ;;  %203 = vmatprep.mubr.f32.mxu0 %v20334_v3  ;;  %v469_v36 = vld [vmem:[%s20324_s0 + $0x48] sm:$0xff]  ;;  %v14921_v39 = vpack.c.bf16 %v479_v35, %v472_v34  ;;  %v478_v41 = vld [vmem:[%s20324_s0 + $0x1e0] sm:$0x1]  ;;  %v480_v44 = vld [vmem:[%s20324_s0 + $0x1f0] sm:$0x1] }
   0xb   :  { %280 = vmatprep.mubr.f32.mxu1 %v20334_v3  ;;  %14902 = vmatpush1.bf16.msk.msra.mxu0 %vm15648_vm2, %v14900_v25  ;;  %v14918_v42 = vpack.c.bf16 %v476_v37, %v469_v36  ;;  %v473_v43 = vld [vmem:[%s20324_s0 + $0x68] sm:$0xff]  ;;  %v846_v46 = vld [vmem:[%s20324_s0 + $0x210] sm:$0x1]  ;;  %v14924_v47 = vpack.c.bf16 %v478_v41, %v471_v40  ;;  %v837_v50 = vld [vmem:[%s20324_s0 + $0x78] sm:$0xff] }
   0xc   :  { %14911 = vmatprep.subr.msk.bf16.mxu1 %vm15648_vm2, %v14909_v27  ;;  %14917 = vmatprep.subr.msk.bf16.mxu0 %vm15648_vm2, %v14915_v30  ;;  %v839_v45 = vld [vmem:[%s20324_s0 + $0x88] sm:$0xff]  ;;  %v14927_v48 = vpack.c.bf16 %v480_v44, %v473_v43  ;;  %v844_v51 = vld [vmem:[%s20324_s0 + $0x200] sm:$0x1]  ;;  %v836_v58 = vld [vmem:[%s20324_s0 + $0x70] sm:$0xff] }
   0xd   :  { %13589 = vmatmul.mubr.msk.f32.gmra.mrb[2].mxu0 %vm104_vm3, %v15731_v31  ;;  %13593 = vmatmul.mubr.msk.f32.gmra.mrb[2].mxu1 %vm104_vm3, %v15731_v31  ;;  %v14939_v49 = vpack.c.bf16 %v846_v46, %v839_v45  ;;  %v838_v52 = vld [vmem:[%s20324_s0 + $0x80] sm:$0xff]  ;;  %v845_v53 = vld [vmem:[%s20324_s0 + $0x208] sm:$0x1]  ;;  %v14933_v54 = vpack.c.bf16 %v844_v51, %v837_v50  ;;  %v843_v59 = vld [vmem:[%s20324_s0 + $0x1f8] sm:$0x1] }
   0xe   :  { %351 = vmatprep.mubr.f32.mxu0 %v20334_v3  ;;  %14685 = vmatprep.mubr.msk.f32.mxu1 %vm104_vm3, %v15687_v17  ;;  %v842_v55 = vld [vmem:[%s20324_s0 + $0xa0] sm:$0xff]  ;;  %v849_v56 = vld [vmem:[%s20324_s0 + $0x228] sm:$0x1]  ;;  %v14942_v57 = vpack.c.bf16 %v845_v53, %v838_v52  ;;  %v841_v61 = vld [vmem:[%s20324_s0 + $0x98] sm:$0xff]  ;;  %v14936_v63 = vpack.c.bf16 %v843_v59, %v836_v58 }
   0xf   :  { %v14951_v60 = vpack.c.bf16 %v849_v56, %v842_v55  ;;  %v848_v62 = vld [vmem:[%s20324_s0 + $0x220] sm:$0x1]  ;;  %v840_v1 = vld [vmem:[%s20324_s0 + $0x90] sm:$0xff]  ;;  %v847_v4 = vld [vmem:[%s20324_s0 + $0x218] sm:$0x1] }
  0x10   :  { %v14945_v0 = vpack.c.bf16 %v848_v62, %v841_v61  ;;  %v1206_v5 = vld [vmem:[%s20324_s0 + $0xb0] sm:$0xff]  ;;  %v1213_v6 = vld [vmem:[%s20324_s0 + $0x238] sm:$0x1]  ;;  %v1208_v7 = vld [vmem:[%s20324_s0 + $0xc0] sm:$0xff]  ;;  %v14948_v11 = vpack.c.bf16 %v847_v4, %v840_v1 }
  0x11   :  { %13596 = vmatmul.mubr.msk.f32.vlgmr.msra.gmra.mrb[4].mxu0 %vm104_vm3, %v15687_v17  ;;  %14686 = vmatmul.mubr.msk.f32.vlgmr.msra.gmra.mrb[4].mxu1 %vm104_vm3, %v15731_v31  ;;  %v1215_v9 = vld [vmem:[%s20324_s0 + $0x248] sm:$0x1]  ;;  %v31_v10 = vld [vmem:[%s20326_s2] sm:$0xff]  ;;  %v14957_v12 = vpack.c.bf16 %v1213_v6, %v1206_v5  ;;  %v1212_v15 = vld [vmem:[%s20324_s0 + $0x230] sm:$0x1] }
  0x12   :  { %14914 = vmatpush1.bf16.msk.msra.mxu1 %vm15648_vm2, %v14912_v38  ;;  %357 = vmatprep.mubr.f32.mxu0 %v20334_v3  ;;  %v14963_v13 = vpack.c.bf16 %v1215_v9, %v1208_v7  ;;  %v1205_v14 = vld [vmem:[%s20324_s0 + $0xa8] sm:$0xff]  ;;  %v1210_v16 = vld [vmem:[%s20324_s0 + $0xd0] sm:$0xff]  ;;  %v1217_v18 = vld [vmem:[%s20324_s0 + $0x258] sm:$0x1] }
  0x13   :  { %566 = vmatprep.mubr.f32.mxu1 %v20334_v3  ;;  %14923 = vmatprep.subr.msk.bf16.mxu1 %vm15648_vm2, %v14921_v39  ;;  %v32_v19 = vld [vmem:[%s20326_s2 + $0x8] sm:$0xff]  ;;  %v1207_v20 = vld [vmem:[%s20324_s0 + $0xb8] sm:$0xff]  ;;  %v1214_v21 = vld [vmem:[%s20324_s0 + $0x240] sm:$0x1]  ;;  %v14960_v22 = vpack.c.bf16 %v1212_v15, %v1205_v14  ;;  %v14969_v23 = vpack.c.bf16 %v1217_v18, %v1210_v16 }
  0x14   :  { %14920 = vmatpush1.bf16.msk.msra.mxu0 %vm15648_vm2, %v14918_v42  ;;  %96 = vperm.xlu0 %15561, %v31_v10   ;;  %v1209_v24 = vld [vmem:[%s20324_s0 + $0xc8] sm:$0xff]  ;;  %v1216_v25 = vld [vmem:[%s20324_s0 + $0x250] sm:$0x1]  ;;  %v14966_v26 = vpack.c.bf16 %v1214_v21, %v1207_v20  ;;  %v1211_v27 = vld [vmem:[%s20324_s0 + $0xd8] sm:$0xff] }
  0x15   :  { %13597 = vmatmul.mubr.msk.f32.gmra.mrb[6].mxu0 %vm104_vm3, %v15731_v31  ;;  %13603 = vmatmul.mubr.msk.f32.vlgmr.msra.gmra.mrb[6].mxu1 %vm104_vm3, %v15687_v17  ;;  %v1218_v28 = vld [vmem:[%s20324_s0 + $0x260] sm:$0x1]  ;;  %v1577_v29 = vld [vmem:[%s20324_s0 + $0xf8] sm:$0xff]  ;;  %v14972_v32 = vpack.c.bf16 %v1216_v25, %v1209_v24  ;;  %v1575_v35 = vld [vmem:[%s20324_s0 + $0xe8] sm:$0xff] }
  0x16   :  { %14926 = vmatpush1.bf16.msk.msra.mxu1 %vm15648_vm2, %v14924_v47  ;;  %572 = vmatprep.mubr.f32.mxu1 %v20334_v3  ;;  %v1584_v30 = vld [vmem:[%s20324_s0 + $0x280] sm:$0x1]  ;;  %v14975_v33 = vpack.c.bf16 %v1218_v28, %v1211_v27  ;;  %v1582_v36 = vld [vmem:[%s20324_s0 + $0x270] sm:$0x1]  ;;  %v1583_v38 = vld [vmem:[%s20324_s0 + $0x278] sm:$0x1] }
  0x17   :  { %643 = vmatprep.mubr.f32.mxu0 %v20334_v3  ;;  %14929 = vmatprep.subr.msk.bf16.mxu0 %vm15648_vm2, %v14927_v48  ;;  %v14987_v34 = vpack.c.bf16 %v1584_v30, %v1577_v29  ;;  %v1576_v37 = vld [vmem:[%s20324_s0 + $0xf0] sm:$0xff]  ;;  %v14981_v39 = vpack.c.bf16 %v1582_v36, %v1575_v35  ;;  %v1587_v41 = vld [vmem:[%s20324_s0 + $0x298] sm:$0x1]  ;;  %v1574_v43 = vld [vmem:[%s20324_s0 + $0xe0] sm:$0xff] }
  0x18   :  { %14941 = vmatprep.subr.msk.bf16.mxu1 %vm15648_vm2, %v14939_v49  ;;  %101 = vperm.xlu0 %15561, %v32_v19   ;;  %v1580_v40 = vld [vmem:[%s20324_s0 + $0x110] sm:$0xff]  ;;  %v14990_v42 = vpack.c.bf16 %v1583_v38, %v1576_v37  ;;  %v1581_v44 = vld [vmem:[%s20324_s0 + $0x268] sm:$0x1]  ;;  %v1578_v50 = vld [vmem:[%s20324_s0 + $0x100] sm:$0xff] }
  0x19   :  { %13604 = vmatmul.mubr.msk.f32.gmra.mrb[8].mxu1 %vm104_vm3, %v15731_v31  ;;  %13607 = vmatmul.mubr.msk.f32.vlgmr.msra.gmra.mrb[8].mxu0 %vm104_vm3, %v15687_v17  ;;  %v14999_v45 = vpack.c.bf16 %v1587_v41, %v1580_v40  ;;  %v1579_v46 = vld [vmem:[%s20324_s0 + $0x108] sm:$0xff]  ;;  %v1586_v47 = vld [vmem:[%s20324_s0 + $0x290] sm:$0x1]  ;;  %v1944_v52 = vld [vmem:[%s20324_s0 + $0x120] sm:$0xff] }
  0x1a   :  { %649 = vmatprep.mubr.f32.mxu0 %v20334_v3  ;;  %720 = vmatprep.mubr.f32.mxu1 %v20334_v3  ;;  %v14993_v49 = vpack.c.bf16 %v1586_v47, %v1579_v46  ;;  %v1585_v51 = vld [vmem:[%s20324_s0 + $0x288] sm:$0x1]  ;;  %v1953_v55 = vld [vmem:[%s20324_s0 + $0x2b8] sm:$0x1]  ;;  %v1948_v61 = vld [vmem:[%s20324_s0 + $0x140] sm:$0xff] }
  0x1b   :  { %14932 = vmatpush3.bf16.msk.msra.mxu0 %vm15648_vm2, %v14927_v48  ;;  %v14984_v48 = vpack.c.bf16 %v1581_v44, %v1574_v43  ;;  %v1951_v53 = vld [vmem:[%s20324_s0 + $0x2a8] sm:$0x1]  ;;  %v14996_v56 = vpack.c.bf16 %v1585_v51, %v1578_v50  ;;  %v1943_v59 = vld [vmem:[%s20324_s0 + $0x118] sm:$0xff]  ;;  %v1954_v6 = vld [vmem:[%s20324_s0 + $0x2c0] sm:$0x1] }
  0x1c   :  { %14935 = vmatprep.subr.msk.bf16.mxu0 %vm15648_vm2, %v14933_v54  ;;  %v1946_v54 = vld [vmem:[%s20324_s0 + $0x130] sm:$0xff]  ;;  %v1955_v62 = vld [vmem:[%s20324_s0 + $0x2c8] sm:$0x1]  ;;  %v1947_v5 = vld [vmem:[%s20324_s0 + $0x138] sm:$0xff] }
  0x1d   :  { %13608 = vmatmul.mubr.msk.f32.gmra.mrb[10].mxu0 %vm104_vm3, %v15731_v31  ;;  %13611 = vmatmul.mubr.msk.f32.vlgmr.msra.gmra.mrb[10].mxu1 %vm104_vm3, %v15687_v17  ;;  %v15011_v58 = vpack.c.bf16 %v1953_v55, %v1946_v54  ;;  %v15017_v4 = vpack.c.bf16 %v1955_v62, %v1948_v61  ;;  %v1949_v9 = vld [vmem:[%s20324_s0 + $0x148] sm:$0xff]  ;;  %v1956_v10 = vld [vmem:[%s20324_s0 + $0x2d0] sm:$0x1]  ;;  %v2313_v16 = vld [vmem:[%s20324_s0 + $0x158] sm:$0xff] }
  0x1e   :  { %14944 = vmatpush1.bf16.msk.msra.mxu1 %vm15648_vm2, %v14942_v57  ;;  %726 = vmatprep.mubr.f32.mxu1 %v20334_v3  ;;  %v15005_v57 = vpack.c.bf16 %v1951_v53, %v1944_v52  ;;  %v15023_v14 = vpack.c.bf16 %v1956_v10, %v1949_v9  ;;  %v2320_v18 = vld [vmem:[%s20324_s0 + $0x2e0] sm:$0x1]  ;;  %v2321_v20 = vld [vmem:[%s20324_s0 + $0x2e8] sm:$0x1]  ;;  %v2312_v25 = vld [vmem:[%s20324_s0 + $0x150] sm:$0xff] }
  0x1f   :  { %14692 = vmatprep.mubr.msk.f32.mxu0 %vm104_vm3, %v15687_v17  ;;  %14953 = vmatprep.subr.msk.bf16.mxu1 %vm15648_vm2, %v14951_v60  ;;  %v2314_v19 = vld [vmem:[%s20324_s0 + $0x160] sm:$0xff]  ;;  %v15029_v21 = vpack.c.bf16 %v2320_v18, %v2313_v16  ;;  %v2317_v28 = vld [vmem:[%s20324_s0 + $0x178] sm:$0xff]  ;;  %v13694_v37 = vld [vmem:[%s20324_s0 + $0x328] sm:$0xff] }
  0x20   :  { %v15038_v24 = vpack.c.bf16 %v2321_v20, %v2314_v19  ;;  %v2324_v29 = vld [vmem:[%s20324_s0 + $0x300] sm:$0x1]  ;;  %v13692_v35 = vld [vmem:[%s20324_s0 + $0x318] sm:$0xff]  ;;  %v13701_v38 = vld [vmem:[%s20324_s0 + $0x4b0] sm:$0x1] }
  0x21   :  { %13612 = vmatmul.mubr.msk.f32.gmra.mrb[12].mxu1 %vm104_vm3, %v15731_v31  ;;  %14693 = vmatmul.mubr.msk.f32.vlgmr.msra.gmra.mrb[12].mxu0 %vm104_vm3, %v15731_v31  ;;  %v13699_v36 = vld [vmem:[%s20324_s0 + $0x4a0] sm:$0x1]  ;;  %v15059_v41 = vpack.c.bf16 %v13701_v38, %v13694_v37  ;;  %v13698_v43 = vld [vmem:[%s20324_s0 + $0x498] sm:$0x1]  ;;  %v13700_v47 = vld [vmem:[%s20324_s0 + $0x4a8] sm:$0x1] }
  0x22   :  { %14938 = vmatpush1.bf16.msk.msra.mxu0 %vm15648_vm2, %v14936_v63  ;;  %935 = vmatprep.mubr.f32.mxu0 %v20334_v3  ;;  %v1945_v63 = vld [vmem:[%s20324_s0 + $0x128] sm:$0xff]  ;;  %v15053_v40 = vpack.c.bf16 %v13699_v36, %v13692_v35  ;;  %v13696_v44 = vld [vmem:[%s20324_s0 + $0x338] sm:$0xff]  ;;  %v13693_v46 = vld [vmem:[%s20324_s0 + $0x320] sm:$0xff] }
  0x23   :  { %1012 = vmatprep.mubr.f32.mxu1 %v20334_v3  ;;  %14947 = vmatprep.subr.msk.bf16.mxu0 %vm15648_vm2, %v14945_v0  ;;  %v1952_v0 = vld [vmem:[%s20324_s0 + $0x2b0] sm:$0x1]  ;;  %v13702_v51 = vld [vmem:[%s20324_s0 + $0x4b8] sm:$0x1]  ;;  %v15062_v52 = vpack.c.bf16 %v13700_v47, %v13693_v46  ;;  %v13697_v53 = vld [vmem:[%s20324_s0 + $0x340] sm:$0xff] }
  0x24   :  { %v15014_v7 = vpack.c.bf16 %v1952_v0, %v1945_v63  ;;  %v13695_v50 = vld [vmem:[%s20324_s0 + $0x330] sm:$0xff]  ;;  %v13704_v54 = vld [vmem:[%s20324_s0 + $0x4c8] sm:$0x1]  ;;  %v13723_v55 = vld [vmem:[%s20324_s0 + $0x360] sm:$0xff] }
  0x25   :  { %13618 = vmatmul.mubr.msk.f32.vlgmr.msra.gmra.mrb[14].mxu0 %vm104_vm3, %v15687_v17  ;;  %13622 = vmatmul.mubr.msk.f32.vlgmr.msra.gmra.mrb[14].mxu1 %vm104_vm3, %v15687_v17  ;;  %v13728_v61 = vld [vmem:[%s20324_s0 + $0x4d8] sm:$0x1]  ;;  %v13729_v63 = vld [vmem:[%s20324_s0 + $0x4e0] sm:$0x1]  ;;  %v13725_v10 = vld [vmem:[%s20324_s0 + $0x370] sm:$0xff] }
  0x26   :  { %14956 = vmatpush3.bf16.msk.msra.mxu1 %vm15648_vm2, %v14951_v60  ;;  %941 = vmatprep.mubr.f32.mxu0 %v20334_v3  ;;  %v1950_v60 = vld [vmem:[%s20324_s0 + $0x2a0] sm:$0x1]  ;;  %v13722_v62 = vld [vmem:[%s20324_s0 + $0x358] sm:$0xff]  ;;  %v13750_v16 = vld [vmem:[%s20324_s0 + $0x388] sm:$0xff] }
  0x27   :  { %1018 = vmatprep.mubr.f32.mxu1 %v20334_v3  ;;  %14950 = vmatpush1.bf16.msk.msra.mxu0 %vm15648_vm2, %v14948_v11  ;;  %v15008_v1 = vpack.c.bf16 %v1950_v60, %v1943_v59  ;;  %v2315_v11 = vld [vmem:[%s20324_s0 + $0x168] sm:$0xff]  ;;  %v13721_v60 = vld [vmem:[%s20324_s0 + $0x350] sm:$0xff]  ;;  %v13752_v19 = vld [vmem:[%s20324_s0 + $0x398] sm:$0xff] }
  0x28   :  { %14959 = vmatprep.subr.msk.bf16.mxu1 %vm15648_vm2, %v14957_v12  ;;  %14965 = vmatprep.subr.msk.bf16.mxu0 %vm15648_vm2, %v14963_v13  ;;  %v2322_v12 = vld [vmem:[%s20324_s0 + $0x2f0] sm:$0x1]  ;;  %v15020_v13 = vpack.c.bf16 %v1954_v6, %v1947_v5  ;;  %v15077_v0 = vpack.c.bf16 %v13728_v61, %v13721_v60  ;;  %v15086_v5 = vpack.c.bf16 %v13729_v63, %v13722_v62  ;;  %v13720_v6 = vld [vmem:[%s20324_s0 + $0x348] sm:$0xff]  ;;  %v13759_v20 = vld [vmem:[%s20324_s0 + $0x520] sm:$0x1] }
  0x29   :  { %13619 = vmatmul.mubr.msk.f32.gmra.mrb[16].mxu0 %vm104_vm3, %v15731_v31  ;;  %13623 = vmatmul.mubr.msk.f32.gmra.mrb[16].mxu1 %vm104_vm3, %v15731_v31  ;;  %v15035_v15 = vpack.c.bf16 %v2322_v12, %v2315_v11  ;;  %v13732_v11 = vld [vmem:[%s20324_s0 + $0x4f8] sm:$0x1]  ;;  %v13757_v18 = vld [vmem:[%s20324_s0 + $0x510] sm:$0x1]  ;;  %v13815_v61 = vld [vmem:[%s20324_s0 + $0x580] sm:$0x1] }
  0x2a   :  { %1089 = vmatprep.mubr.f32.mxu0 %v20334_v3  ;;  %14699 = vmatprep.mubr.msk.f32.mxu1 %vm104_vm3, %v15687_v17  ;;  %v13755_v36 = vld [vmem:[%s20324_s0 + $0x3b0] sm:$0xff]  ;;  %v13762_v37 = vld [vmem:[%s20324_s0 + $0x538] sm:$0x1]  ;;  %v13810_v62 = vld [vmem:[%s20324_s0 + $0x408] sm:$0xff] }
  0x2b   :  { %v13781_v38 = vld [vmem:[%s20324_s0 + $0x3d0] sm:$0xff]  ;;  %v13808_v60 = vld [vmem:[%s20324_s0 + $0x3f8] sm:$0xff]  ;;  %vm18327_vm4 = vmpackc.low %vm15597_vm1, %vm15597_vm1 }
  0x2c   :  { %v13787_v46 = vld [vmem:[%s20324_s0 + $0x550] sm:$0x1]  ;;  %vm18864_vm9 = vmpackc.low %vm15600_vm8, %vm15600_vm8 }
  0x2d   :  { %13626 = vmatmul.mubr.msk.f32.vlgmr.msra.gmra.mrb[18].mxu0 %vm104_vm3, %v15687_v17  ;;  %14700 = vmatmul.mubr.msk.f32.vlgmr.msra.gmra.mrb[18].mxu1 %vm104_vm3, %v15731_v31  ;;  %v13817_v63 = vld [vmem:[%s20324_s0 + $0x590] sm:$0x1] }
  0x2e   :  { %14962 = vmatpush1.bf16.msk.msra.mxu1 %vm15648_vm2, %v14960_v22  ;;  %1095 = vmatprep.mubr.f32.mxu0 %v20334_v3  ;;  %v2318_v22 = vld [vmem:[%s20324_s0 + $0x180] sm:$0xff] }
  0x2f   :  { %1304 = vmatprep.mubr.f32.mxu1 %v20334_v3  ;;  %14971 = vmatprep.subr.msk.bf16.mxu1 %vm15648_vm2, %v14969_v23  ;;  %v2325_v23 = vld [vmem:[%s20324_s0 + $0x308] sm:$0x1] }
  0x30   :  { %14968 = vmatpush1.bf16.msk.msra.mxu0 %vm15648_vm2, %v14966_v26  ;;  %v2319_v26 = vld [vmem:[%s20324_s0 + $0x2d8] sm:$0x1]  ;;  %v15047_v27 = vpack.c.bf16 %v2325_v23, %v2318_v22  ;;  %v15101_v22 = vpack.c.bf16 %v13757_v18, %v13750_v16  ;;  %v15107_v23 = vpack.c.bf16 %v13759_v20, %v13752_v19  ;;  %v13813_v18 = vld [vmem:[%s20324_s0 + $0x420] sm:$0xff]  ;;  %v13820_v19 = vld [vmem:[%s20324_s0 + $0x5a8] sm:$0x1] }
  0x31   :  { %13627 = vmatmul.mubr.msk.f32.gmra.mrb[20].mxu0 %vm104_vm3, %v15731_v31  ;;  %13633 = vmatmul.mubr.msk.f32.vlgmr.msra.gmra.mrb[20].mxu1 %vm104_vm3, %v15687_v17  ;;  %v15032_v30 = vpack.c.bf16 %v2319_v26, %v2312_v25  ;;  %v13756_v25 = vld [vmem:[%s20324_s0 + $0x508] sm:$0x1]  ;;  %v13839_v20 = vld [vmem:[%s20324_s0 + $0x440] sm:$0xff] }
  0x32   :  { %14974 = vmatpush1.bf16.msk.msra.mxu1 %vm15648_vm2, %v14972_v32  ;;  %1310 = vmatprep.mubr.f32.mxu1 %v20334_v3  ;;  %v15041_v32 = vpack.c.bf16 %v2324_v29, %v2317_v28  ;;  %v13754_v26 = vld [vmem:[%s20324_s0 + $0x3a8] sm:$0xff]  ;;  %v13751_v28 = vld [vmem:[%s20324_s0 + $0x390] sm:$0xff]  ;;  %v13758_v29 = vld [vmem:[%s20324_s0 + $0x518] sm:$0x1] }
  0x33   :  { %1381 = vmatprep.mubr.f32.mxu0 %v20334_v3  ;;  %14977 = vmatprep.subr.msk.bf16.mxu0 %vm15648_vm2, %v14975_v33  ;;  %v15110_v35 = vpack.c.bf16 %v13758_v29, %v13751_v28  ;;  %v13845_v28 = vld [vmem:[%s20324_s0 + $0x5c0] sm:$0x1] }
  0x34   :  { %14989 = vmatprep.subr.msk.bf16.mxu1 %vm15648_vm2, %v14987_v34  ;;  %v2323_v34 = vld [vmem:[%s20324_s0 + $0x2f8] sm:$0x1] }
  0x35   :  { %13634 = vmatmul.mubr.msk.f32.gmra.mrb[22].mxu1 %vm104_vm3, %v15731_v31  ;;  %13637 = vmatmul.mubr.msk.f32.vlgmr.msra.gmra.mrb[22].mxu0 %vm104_vm3, %v15687_v17 }
  0x36   :  { %1387 = vmatprep.mubr.f32.mxu0 %v20334_v3  ;;  %1458 = vmatprep.mubr.f32.mxu1 %v20334_v3 }
  0x37   :  { %14980 = vmatpush3.bf16.msk.msra.mxu0 %vm15648_vm2, %v14975_v33  ;;  %v2316_v33 = vld [vmem:[%s20324_s0 + $0x170] sm:$0xff] }
  0x38   :  { %14983 = vmatprep.subr.msk.bf16.mxu0 %vm15648_vm2, %v14981_v39  ;;  %v15044_v39 = vpack.c.bf16 %v2323_v34, %v2316_v33  ;;  %v13753_v33 = vld [vmem:[%s20324_s0 + $0x3a0] sm:$0xff]  ;;  %v13760_v34 = vld [vmem:[%s20324_s0 + $0x528] sm:$0x1] }
  0x39   :  { %13638 = vmatmul.mubr.msk.f32.gmra.mrb[24].mxu0 %vm104_vm3, %v15731_v31  ;;  %13641 = vmatmul.mubr.msk.f32.vlgmr.msra.gmra.mrb[24].mxu1 %vm104_vm3, %v15687_v17 }
  0x3a   :  { %14992 = vmatpush1.bf16.msk.msra.mxu1 %vm15648_vm2, %v14990_v42  ;;  %1464 = vmatprep.mubr.f32.mxu1 %v20334_v3  ;;  %v13691_v42 = vld [vmem:[%s20324_s0 + $0x310] sm:$0xff] }
  0x3b   :  { %14706 = vmatprep.mubr.msk.f32.mxu0 %vm104_vm3, %v15687_v17  ;;  %15001 = vmatprep.subr.msk.bf16.mxu1 %vm15648_vm2, %v14999_v45 }
  0x3d   :  { %13642 = vmatmul.mubr.msk.f32.gmra.mrb[26].mxu1 %vm104_vm3, %v15731_v31  ;;  %14707 = vmatmul.mubr.msk.f32.vlgmr.msra.gmra.mrb[26].mxu0 %vm104_vm3, %v15731_v31 }
  0x3e   :  { %14986 = vmatpush1.bf16.msk.msra.mxu0 %vm15648_vm2, %v14984_v48  ;;  %1673 = vmatprep.mubr.f32.mxu0 %v20334_v3  ;;  %v15056_v48 = vpack.c.bf16 %v13698_v43, %v13691_v42  ;;  %v13779_v43 = vld [vmem:[%s20324_s0 + $0x3c0] sm:$0xff] }
  0x3f   :  { %1750 = vmatprep.mubr.f32.mxu1 %v20334_v3  ;;  %14995 = vmatprep.subr.msk.bf16.mxu0 %vm15648_vm2, %v14993_v49 }
  0x41   :  { %13648 = vmatmul.mubr.msk.f32.vlgmr.msra.gmra.mrb[28].mxu0 %vm104_vm3, %v15687_v17  ;;  %13652 = vmatmul.mubr.msk.f32.vlgmr.msra.gmra.mrb[28].mxu1 %vm104_vm3, %v15687_v17 }
  0x42   :  { %15004 = vmatpush3.bf16.msk.msra.mxu1 %vm15648_vm2, %v14999_v45  ;;  %1679 = vmatprep.mubr.f32.mxu0 %v20334_v3  ;;  %v13703_v45 = vld [vmem:[%s20324_s0 + $0x4c0] sm:$0x1] }
  0x43   :  { %1756 = vmatprep.mubr.f32.mxu1 %v20334_v3  ;;  %14998 = vmatpush1.bf16.msk.msra.mxu0 %vm15648_vm2, %v14996_v56  ;;  %v15065_v49 = vpack.c.bf16 %v13703_v45, %v13696_v44  ;;  %v13730_v56 = vld [vmem:[%s20324_s0 + $0x4e8] sm:$0x1] }
  0x44   :  { %15007 = vmatprep.subr.msk.bf16.mxu1 %vm15648_vm2, %v15005_v57  ;;  %15013 = vmatprep.subr.msk.bf16.mxu0 %vm15648_vm2, %v15011_v58  ;;  %v15068_v57 = vpack.c.bf16 %v13702_v51, %v13695_v50  ;;  %v15071_v58 = vpack.c.bf16 %v13704_v54, %v13697_v53  ;;  %v15083_v59 = vpack.c.bf16 %v13730_v56, %v13723_v55  ;;  %v13786_v44 = vld [vmem:[%s20324_s0 + $0x548] sm:$0x1]  ;;  %v13778_v51 = vld [vmem:[%s20324_s0 + $0x3b8] sm:$0xff]  ;;  %v13783_v54 = vld [vmem:[%s20324_s0 + $0x3e0] sm:$0xff] }
  0x45   :  { %13649 = vmatmul.mubr.msk.f32.gmra.mrb[30].mxu0 %vm104_vm3, %v15731_v31  ;;  %13653 = vmatmul.mubr.msk.f32.gmra.mrb[30].mxu1 %vm104_vm3, %v15731_v31  ;;  %v13780_v45 = vld [vmem:[%s20324_s0 + $0x3c8] sm:$0xff]  ;;  %v15125_v47 = vpack.c.bf16 %v13786_v44, %v13779_v43  ;;  %v13873_v44 = vld [vmem:[%s20324_s0 + $0x5f0] sm:$0x1] }
  0x46   :  { %1827 = vmatprep.mubr.f32.mxu0 %v20334_v3  ;;  %14713 = vmatprep.mubr.msk.f32.mxu1 %vm104_vm3, %v15687_v17  ;;  %v15134_v50 = vpack.c.bf16 %v13787_v46, %v13780_v45  ;;  %v13790_v55 = vld [vmem:[%s20324_s0 + $0x568] sm:$0x1]  ;;  %v13868_v45 = vld [vmem:[%s20324_s0 + $0x478] sm:$0xff]  ;;  %v13875_v46 = vld [vmem:[%s20324_s0 + $0x600] sm:$0x1] }
  0x47   :  { %v13866_v43 = vld [vmem:[%s20324_s0 + $0x468] sm:$0xff] }
  0x49   :  { %13656 = vmatmul.mubr.msk.f32.vlgmr.msra.gmra.mrb[32].mxu0 %vm104_vm3, %v15687_v17  ;;  %14714 = vmatmul.mubr.msk.f32.vlgmr.msra.gmra.mrb[32].mxu1 %vm104_vm3, %v15731_v31 }
  0x4a   :  { %15010 = vmatpush1.bf16.msk.msra.mxu1 %vm15648_vm2, %v15008_v1  ;;  %1833 = vmatprep.mubr.f32.mxu0 %v20334_v3  ;;  %v13726_v1 = vld [vmem:[%s20324_s0 + $0x378] sm:$0xff] }
  0x4b   :  { %2042 = vmatprep.mubr.f32.mxu1 %v20334_v3  ;;  %15019 = vmatprep.subr.msk.bf16.mxu1 %vm15648_vm2, %v15017_v4  ;;  %v13733_v4 = vld [vmem:[%s20324_s0 + $0x500] sm:$0x1] }
  0x4c   :  { %15016 = vmatpush1.bf16.msk.msra.mxu0 %vm15648_vm2, %v15014_v7  ;;  %v13727_v7 = vld [vmem:[%s20324_s0 + $0x4d0] sm:$0x1]  ;;  %v15095_v9 = vpack.c.bf16 %v13733_v4, %v13726_v1  ;;  %v15149_v1 = vpack.c.bf16 %v13815_v61, %v13808_v60  ;;  %v15155_v4 = vpack.c.bf16 %v13817_v63, %v13810_v62  ;;  %v13878_v62 = vld [vmem:[%s20324_s0 + $0x618] sm:$0x1] }
  0x4d   :  { %13657 = vmatmul.mubr.msk.f32.gmra.mrb[34].mxu0 %vm104_vm3, %v15731_v31  ;;  %13663 = vmatmul.mubr.msk.f32.vlgmr.msra.gmra.mrb[34].mxu1 %vm104_vm3, %v15687_v17  ;;  %v15080_v12 = vpack.c.bf16 %v13727_v7, %v13720_v6  ;;  %v13814_v6 = vld [vmem:[%s20324_s0 + $0x578] sm:$0x1]  ;;  %v13871_v61 = vld [vmem:[%s20324_s0 + $0x490] sm:$0xff] }
  0x4e   :  { %15022 = vmatpush1.bf16.msk.msra.mxu1 %vm15648_vm2, %v15020_v13  ;;  %2048 = vmatprep.mubr.f32.mxu1 %v20334_v3  ;;  %v15089_v13 = vpack.c.bf16 %v13732_v11, %v13725_v10  ;;  %v13812_v7 = vld [vmem:[%s20324_s0 + $0x418] sm:$0xff]  ;;  %v13809_v10 = vld [vmem:[%s20324_s0 + $0x400] sm:$0xff]  ;;  %v13816_v11 = vld [vmem:[%s20324_s0 + $0x588] sm:$0x1] }
  0x4f   :  { %2119 = vmatprep.mubr.f32.mxu0 %v20334_v3  ;;  %15025 = vmatprep.subr.msk.bf16.mxu0 %vm15648_vm2, %v15023_v14  ;;  %v15158_v16 = vpack.c.bf16 %v13816_v11, %v13809_v10  ;;  %v13897_v63 = vld [vmem:[%s20324_s0 + $0x638] sm:$0xff] }
  0x50   :  { %15037 = vmatprep.subr.msk.bf16.mxu1 %vm15648_vm2, %v15035_v15  ;;  %v13731_v15 = vld [vmem:[%s20324_s0 + $0x4f0] sm:$0x1]  ;;  %v13903_v10 = vld [vmem:[%s20324_s0 + $0x7b8] sm:$0x1] }
  0x51   :  { %13664 = vmatmul.mubr.msk.f32.gmra.mrb[36].mxu1 %vm104_vm3, %v15731_v31  ;;  %13667 = vmatmul.mubr.msk.f32.vlgmr.msra.gmra.mrb[36].mxu0 %vm104_vm3, %v15687_v17 }
  0x52   :  { %2125 = vmatprep.mubr.f32.mxu0 %v20334_v3  ;;  %2196 = vmatprep.mubr.f32.mxu1 %v20334_v3 }
  0x53   :  { %15028 = vmatpush3.bf16.msk.msra.mxu0 %vm15648_vm2, %v15023_v14  ;;  %v13724_v14 = vld [vmem:[%s20324_s0 + $0x368] sm:$0xff] }
  0x54   :  { %15031 = vmatprep.subr.msk.bf16.mxu0 %vm15648_vm2, %v15029_v21  ;;  %v15092_v21 = vpack.c.bf16 %v13731_v15, %v13724_v14  ;;  %v13811_v14 = vld [vmem:[%s20324_s0 + $0x410] sm:$0xff]  ;;  %v13818_v15 = vld [vmem:[%s20324_s0 + $0x598] sm:$0x1] }
  0x55   :  { %13668 = vmatmul.mubr.msk.f32.gmra.mrb[38].mxu0 %vm104_vm3, %v15731_v31  ;;  %13671 = vmatmul.mubr.msk.f32.vlgmr.msra.gmra.mrb[38].mxu1 %vm104_vm3, %v15687_v17 }
  0x56   :  { %15040 = vmatpush1.bf16.msk.msra.mxu1 %vm15648_vm2, %v15038_v24  ;;  %2202 = vmatprep.mubr.f32.mxu1 %v20334_v3  ;;  %v13749_v24 = vld [vmem:[%s20324_s0 + $0x380] sm:$0xff] }
  0x57   :  { %14720 = vmatprep.mubr.msk.f32.mxu0 %vm104_vm3, %v15687_v17  ;;  %15049 = vmatprep.subr.msk.bf16.mxu1 %vm15648_vm2, %v15047_v27 }
  0x59   :  { %13672 = vmatmul.mubr.msk.f32.gmra.mrb[40].mxu1 %vm104_vm3, %v15731_v31  ;;  %14721 = vmatmul.mubr.msk.f32.vlgmr.msra.gmra.mrb[40].mxu0 %vm104_vm3, %v15731_v31 }
  0x5a   :  { %15034 = vmatpush1.bf16.msk.msra.mxu0 %vm15648_vm2, %v15032_v30  ;;  %2411 = vmatprep.mubr.f32.mxu0 %v20334_v3  ;;  %v15104_v30 = vpack.c.bf16 %v13756_v25, %v13749_v24  ;;  %v13837_v25 = vld [vmem:[%s20324_s0 + $0x430] sm:$0xff] }
  0x5b   :  { %2488 = vmatprep.mubr.f32.mxu1 %v20334_v3  ;;  %15043 = vmatprep.subr.msk.bf16.mxu0 %vm15648_vm2, %v15041_v32 }
  0x5d   :  { %13678 = vmatmul.mubr.msk.f32.vlgmr.msra.gmra.mrb[42].mxu0 %vm104_vm3, %v15687_v17  ;;  %13682 = vmatmul.mubr.msk.f32.vlgmr.msra.gmra.mrb[42].mxu1 %vm104_vm3, %v15687_v17 }
  0x5e   :  { %15052 = vmatpush3.bf16.msk.msra.mxu1 %vm15648_vm2, %v15047_v27  ;;  %2417 = vmatprep.mubr.f32.mxu0 %v20334_v3  ;;  %v13761_v27 = vld [vmem:[%s20324_s0 + $0x530] sm:$0x1] }
  0x5f   :  { %2494 = vmatprep.mubr.f32.mxu1 %v20334_v3  ;;  %15046 = vmatpush1.bf16.msk.msra.mxu0 %vm15648_vm2, %v15044_v39  ;;  %v15113_v32 = vpack.c.bf16 %v13761_v27, %v13754_v26  ;;  %v13788_v39 = vld [vmem:[%s20324_s0 + $0x558] sm:$0x1] }
  0x60   :  { %15055 = vmatprep.subr.msk.bf16.mxu1 %vm15648_vm2, %v15053_v40  ;;  %15061 = vmatprep.subr.msk.bf16.mxu0 %vm15648_vm2, %v15059_v41  ;;  %v15116_v40 = vpack.c.bf16 %v13760_v34, %v13753_v33  ;;  %v15119_v41 = vpack.c.bf16 %v13762_v37, %v13755_v36  ;;  %v15131_v42 = vpack.c.bf16 %v13788_v39, %v13781_v38  ;;  %v13844_v26 = vld [vmem:[%s20324_s0 + $0x5b8] sm:$0x1]  ;;  %v13836_v34 = vld [vmem:[%s20324_s0 + $0x428] sm:$0xff]  ;;  %v16658_v38 = vld [vmem:[%s20325_s1] sm:$0xff] }
  0x61   :  { %13679 = vmatmul.mubr.msk.f32.gmra.mrb[44].mxu0 %vm104_vm3, %v15731_v31  ;;  %13683 = vmatmul.mubr.msk.f32.gmra.mrb[44].mxu1 %vm104_vm3, %v15731_v31  ;;  %v13838_v27 = vld [vmem:[%s20324_s0 + $0x438] sm:$0xff]  ;;  %v15173_v29 = vpack.c.bf16 %v13844_v26, %v13837_v25  ;;  %v13924_v25 = vld [vmem:[%s20324_s0 + $0x660] sm:$0xff]  ;;  %v13931_v26 = vld [vmem:[%s20324_s0 + $0x7e8] sm:$0x1] }
  0x62   :  { %2565 = vmatprep.mubr.f32.mxu0 %v20334_v3  ;;  %14727 = vmatprep.mubr.msk.f32.mxu1 %vm104_vm3, %v15687_v17  ;;  %v15182_v33 = vpack.c.bf16 %v13845_v28, %v13838_v27  ;;  %v13848_v37 = vld [vmem:[%s20324_s0 + $0x5d8] sm:$0x1]  ;;  %v13926_v27 = vld [vmem:[%s20324_s0 + $0x670] sm:$0xff] }
  0x63   :  { %v13933_v28 = vld [vmem:[%s20324_s0 + $0x7f8] sm:$0x1] }
  0x65   :  { %13686 = vmatmul.mubr.msk.f32.vlgmr.msra.gmra.mrb[46].mxu0 %vm104_vm3, %v15687_v17  ;;  %14728 = vmatmul.mubr.msk.f32.vlgmr.msra.gmra.mrb[46].mxu1 %vm104_vm3, %v15731_v31 }
  0x66   :  { %15058 = vmatpush1.bf16.msk.msra.mxu1 %vm15648_vm2, %v15056_v48  ;;  %2571 = vmatprep.mubr.f32.mxu0 %v20334_v3  ;;  %v13784_v48 = vld [vmem:[%s20324_s0 + $0x3e8] sm:$0xff] }
  0x67   :  { %2781 = vmatprep.mubr.f32.mxu1 %v20334_v3  ;;  %15067 = vmatprep.subr.msk.bf16.mxu1 %vm15648_vm2, %v15065_v49  ;;  %v13791_v49 = vld [vmem:[%s20324_s0 + $0x570] sm:$0x1] }
  0x68   :  { %15064 = vmatpush1.bf16.msk.msra.mxu0 %vm15648_vm2, %v15062_v52  ;;  %v13785_v52 = vld [vmem:[%s20324_s0 + $0x540] sm:$0x1]  ;;  %v15143_v53 = vpack.c.bf16 %v13791_v49, %v13784_v48  ;;  %v15203_v48 = vpack.c.bf16 %v13875_v46, %v13868_v45  ;;  %v13936_v45 = vld [vmem:[%s20324_s0 + $0x810] sm:$0x1]  ;;  %v13955_v46 = vld [vmem:[%s20324_s0 + $0x6a8] sm:$0xff] }
  0x69   :  { %13687 = vmatmul.mubr.msk.f32.gmra.mrb[48].mxu0 %vm104_vm3, %v15731_v31  ;;  %13707 = vmatmul.mubr.msk.f32.vlgmr.msra.gmra.mrb[48].mxu1 %vm104_vm3, %v15687_v17  ;;  %v15128_v56 = vpack.c.bf16 %v13785_v52, %v13778_v51  ;;  %v13865_v49 = vld [vmem:[%s20324_s0 + $0x460] sm:$0xff]  ;;  %v13870_v51 = vld [vmem:[%s20324_s0 + $0x488] sm:$0xff]  ;;  %v13877_v52 = vld [vmem:[%s20324_s0 + $0x610] sm:$0x1] }
  0x6a   :  { %15070 = vmatpush1.bf16.msk.msra.mxu1 %vm15648_vm2, %v15068_v57  ;;  %2787 = vmatprep.mubr.f32.mxu1 %v20334_v3  ;;  %v15137_v57 = vpack.c.bf16 %v13790_v55, %v13783_v54  ;;  %v13867_v54 = vld [vmem:[%s20324_s0 + $0x470] sm:$0xff]  ;;  %v13874_v55 = vld [vmem:[%s20324_s0 + $0x5f8] sm:$0x1] }
  0x6b   :  { %2858 = vmatprep.mubr.f32.mxu0 %v20334_v3  ;;  %15073 = vmatprep.subr.msk.bf16.mxu0 %vm15648_vm2, %v15071_v58  ;;  %v15206_v60 = vpack.c.bf16 %v13874_v55, %v13867_v54  ;;  %v13954_v54 = vld [vmem:[%s20324_s0 + $0x6a0] sm:$0xff]  ;;  %v13961_v55 = vld [vmem:[%s20324_s0 + $0x828] sm:$0x1] }
  0x6c   :  { %15085 = vmatprep.subr.msk.bf16.mxu1 %vm15648_vm2, %v15083_v59  ;;  %v13789_v59 = vld [vmem:[%s20324_s0 + $0x560] sm:$0x1] }
  0x6d   :  { %13708 = vmatmul.mubr.msk.f32.gmra.mrb[50].mxu1 %vm104_vm3, %v15731_v31  ;;  %13711 = vmatmul.mubr.msk.f32.vlgmr.msra.gmra.mrb[50].mxu0 %vm104_vm3, %v15687_v17 }
  0x6e   :  { %2864 = vmatprep.mubr.f32.mxu0 %v20334_v3  ;;  %2935 = vmatprep.mubr.f32.mxu1 %v20334_v3 }
  0x6f   :  { %15076 = vmatpush3.bf16.msk.msra.mxu0 %vm15648_vm2, %v15071_v58  ;;  %v13782_v58 = vld [vmem:[%s20324_s0 + $0x3d8] sm:$0xff] }
  0x70   :  { %15079 = vmatprep.subr.msk.bf16.mxu0 %vm15648_vm2, %v15077_v0  ;;  %v15140_v0 = vpack.c.bf16 %v13789_v59, %v13782_v58  ;;  %v13869_v58 = vld [vmem:[%s20324_s0 + $0x480] sm:$0xff]  ;;  %v13876_v59 = vld [vmem:[%s20324_s0 + $0x608] sm:$0x1] }
  0x71   :  { %13712 = vmatmul.mubr.msk.f32.gmra.mrb[52].mxu0 %vm104_vm3, %v15731_v31  ;;  %13715 = vmatmul.mubr.msk.f32.vlgmr.msra.gmra.mrb[52].mxu1 %vm104_vm3, %v15687_v17 }
  0x72   :  { %15088 = vmatpush1.bf16.msk.msra.mxu1 %vm15648_vm2, %v15086_v5  ;;  %2941 = vmatprep.mubr.f32.mxu1 %v20334_v3  ;;  %v13807_v5 = vld [vmem:[%s20324_s0 + $0x3f0] sm:$0xff] }
  0x73   :  { %14734 = vmatprep.mubr.msk.f32.mxu0 %vm104_vm3, %v15687_v17  ;;  %15097 = vmatprep.subr.msk.bf16.mxu1 %vm15648_vm2, %v15095_v9 }
  0x75   :  { %13716 = vmatmul.mubr.msk.f32.gmra.mrb[54].mxu1 %vm104_vm3, %v15731_v31  ;;  %14735 = vmatmul.mubr.msk.f32.vlgmr.msra.gmra.mrb[54].mxu0 %vm104_vm3, %v15731_v31 }
  0x76   :  { %15082 = vmatpush1.bf16.msk.msra.mxu0 %vm15648_vm2, %v15080_v12  ;;  %3221 = vmatprep.mubr.f32.mxu0 %v20334_v3  ;;  %v15152_v12 = vpack.c.bf16 %v13814_v6, %v13807_v5  ;;  %v13895_v6 = vld [vmem:[%s20324_s0 + $0x628] sm:$0xff] }
  0x77   :  { %3298 = vmatprep.mubr.f32.mxu1 %v20334_v3  ;;  %15091 = vmatprep.subr.msk.bf16.mxu0 %vm15648_vm2, %v15089_v13 }
  0x79   :  { %13736 = vmatmul.mubr.msk.f32.vlgmr.msra.gmra.mrb[56].mxu0 %vm104_vm3, %v15687_v17  ;;  %13740 = vmatmul.mubr.msk.f32.vlgmr.msra.gmra.mrb[56].mxu1 %vm104_vm3, %v15687_v17 }
  0x7a   :  { %15100 = vmatpush3.bf16.msk.msra.mxu1 %vm15648_vm2, %v15095_v9  ;;  %3227 = vmatprep.mubr.f32.mxu0 %v20334_v3  ;;  %v13819_v9 = vld [vmem:[%s20324_s0 + $0x5a0] sm:$0x1] }
  0x7b   :  { %3304 = vmatprep.mubr.f32.mxu1 %v20334_v3  ;;  %15094 = vmatpush1.bf16.msk.msra.mxu0 %vm15648_vm2, %v15092_v21  ;;  %v15161_v13 = vpack.c.bf16 %v13819_v9, %v13812_v7  ;;  %v13846_v21 = vld [vmem:[%s20324_s0 + $0x5c8] sm:$0x1]  ;;  %v13902_v7 = vld [vmem:[%s20324_s0 + $0x7b0] sm:$0x1] }
  0x7c   :  { %15103 = vmatprep.subr.msk.bf16.mxu1 %vm15648_vm2, %v15101_v22  ;;  %15109 = vmatprep.subr.msk.bf16.mxu0 %vm15648_vm2, %v15107_v23  ;;  %v15164_v22 = vpack.c.bf16 %v13818_v15, %v13811_v14  ;;  %v15167_v23 = vpack.c.bf16 %v13820_v19, %v13813_v18  ;;  %v15179_v24 = vpack.c.bf16 %v13846_v21, %v13839_v20  ;;  %v13896_v9 = vld [vmem:[%s20324_s0 + $0x630] sm:$0xff]  ;;  %v13894_v15 = vld [vmem:[%s20324_s0 + $0x620] sm:$0xff]  ;;  %v13899_v19 = vld [vmem:[%s20324_s0 + $0x648] sm:$0xff] }
  0x7d   :  { %13737 = vmatmul.mubr.msk.f32.gmra.mrb[58].mxu0 %vm104_vm3, %v15731_v31  ;;  %13741 = vmatmul.mubr.msk.f32.gmra.mrb[58].mxu1 %vm104_vm3, %v15731_v31  ;;  %v15221_v11 = vpack.c.bf16 %v13902_v7, %v13895_v6  ;;  %v15230_v14 = vpack.c.bf16 %v13903_v10, %v13896_v9  ;;  %v13906_v20 = vld [vmem:[%s20324_s0 + $0x7d0] sm:$0x1]  ;;  %v13957_v10 = vld [vmem:[%s20324_s0 + $0x6b8] sm:$0xff] }
  0x7e   :  { %3375 = vmatprep.mubr.f32.mxu0 %v20334_v3  ;;  %14741 = vmatprep.mubr.msk.f32.mxu1 %vm104_vm3, %v15687_v17 }
  0x81   :  { %13744 = vmatmul.mubr.msk.f32.vlgmr.msra.gmra.mrb[60].mxu0 %vm104_vm3, %v15687_v17  ;;  %14742 = vmatmul.mubr.msk.f32.vlgmr.msra.gmra.mrb[60].mxu1 %vm104_vm3, %v15731_v31 }
  0x82   :  { %15106 = vmatpush1.bf16.msk.msra.mxu1 %vm15648_vm2, %v15104_v30  ;;  %3381 = vmatprep.mubr.f32.mxu0 %v20334_v3  ;;  %v13842_v30 = vld [vmem:[%s20324_s0 + $0x458] sm:$0xff] }
  0x83   :  { %3604 = vmatprep.mubr.f32.mxu1 %v20334_v3  ;;  %15115 = vmatprep.subr.msk.bf16.mxu1 %vm15648_vm2, %v15113_v32  ;;  %v13849_v32 = vld [vmem:[%s20324_s0 + $0x5e0] sm:$0x1] }
  0x84   :  { %15112 = vmatpush1.bf16.msk.msra.mxu0 %vm15648_vm2, %v15110_v35  ;;  %v13843_v35 = vld [vmem:[%s20324_s0 + $0x5b0] sm:$0x1]  ;;  %v15191_v36 = vpack.c.bf16 %v13849_v32, %v13842_v30  ;;  %v15245_v30 = vpack.c.bf16 %v13931_v26, %v13924_v25  ;;  %v15251_v32 = vpack.c.bf16 %v13933_v28, %v13926_v27  ;;  %v13963_v25 = vld [vmem:[%s20324_s0 + $0x838] sm:$0x1] }
  0x85   :  { %13745 = vmatmul.mubr.msk.f32.gmra.mrb[62].mxu0 %vm104_vm3, %v15731_v31  ;;  %13765 = vmatmul.mubr.msk.f32.vlgmr.msra.gmra.mrb[62].mxu1 %vm104_vm3, %v15687_v17  ;;  %v15176_v39 = vpack.c.bf16 %v13843_v35, %v13836_v34  ;;  %v13930_v34 = vld [vmem:[%s20324_s0 + $0x7e0] sm:$0x1] }
  0x86   :  { %15118 = vmatpush1.bf16.msk.msra.mxu1 %vm15648_vm2, %v15116_v40  ;;  %3610 = vmatprep.mubr.f32.mxu1 %v20334_v3  ;;  %v13928_v35 = vld [vmem:[%s20324_s0 + $0x680] sm:$0xff] }
  0x87   :  { %3681 = vmatprep.mubr.f32.mxu0 %v20334_v3  ;;  %15121 = vmatprep.subr.msk.bf16.mxu0 %vm15648_vm2, %v15119_v41 }
  0x88   :  { %15133 = vmatprep.subr.msk.bf16.mxu1 %vm15648_vm2, %v15131_v42  ;;  %v13847_v42 = vld [vmem:[%s20324_s0 + $0x5d0] sm:$0x1] }
  0x89   :  { %13766 = vmatmul.mubr.msk.f32.gmra.mrb[64].mxu1 %vm104_vm3, %v15731_v31  ;;  %13769 = vmatmul.mubr.msk.f32.vlgmr.msra.gmra.mrb[64].mxu0 %vm104_vm3, %v15687_v17 }
  0x8a   :  { %3687 = vmatprep.mubr.f32.mxu0 %v20334_v3  ;;  %3758 = vmatprep.mubr.f32.mxu1 %v20334_v3 }
  0x8b   :  { %15124 = vmatpush3.bf16.msk.msra.mxu0 %vm15648_vm2, %v15119_v41  ;;  %v13840_v41 = vld [vmem:[%s20324_s0 + $0x448] sm:$0xff] }
  0x8c   :  { %15127 = vmatprep.subr.msk.bf16.mxu0 %vm15648_vm2, %v15125_v47  ;;  %v15197_v47 = vpack.c.bf16 %v13873_v44, %v13866_v43  ;;  %v13929_v44 = vld [vmem:[%s20324_s0 + $0x688] sm:$0xff] }
  0x8d   :  { %13770 = vmatmul.mubr.msk.f32.gmra.mrb[66].mxu0 %vm104_vm3, %v15731_v31  ;;  %13773 = vmatmul.mubr.msk.f32.vlgmr.msra.gmra.mrb[66].mxu1 %vm104_vm3, %v15687_v17 }
  0x8e   :  { %15136 = vmatpush1.bf16.msk.msra.mxu1 %vm15648_vm2, %v15134_v50  ;;  %3764 = vmatprep.mubr.f32.mxu1 %v20334_v3  ;;  %v13872_v50 = vld [vmem:[%s20324_s0 + $0x5e8] sm:$0x1] }
  0x8f   :  { %14748 = vmatprep.mubr.msk.f32.mxu0 %vm104_vm3, %v15687_v17  ;;  %15145 = vmatprep.subr.msk.bf16.mxu1 %vm15648_vm2, %v15143_v53 }
  0x91   :  { %13774 = vmatmul.mubr.msk.f32.gmra.mrb[68].mxu1 %vm104_vm3, %v15731_v31  ;;  %14749 = vmatmul.mubr.msk.f32.vlgmr.msra.gmra.mrb[68].mxu0 %vm104_vm3, %v15731_v31 }
  0x92   :  { %15130 = vmatpush1.bf16.msk.msra.mxu0 %vm15648_vm2, %v15128_v56  ;;  %3987 = vmatprep.mubr.f32.mxu0 %v20334_v3  ;;  %v15200_v56 = vpack.c.bf16 %v13872_v50, %v13865_v49 }
  0x93   :  { %4064 = vmatprep.mubr.f32.mxu1 %v20334_v3  ;;  %15139 = vmatprep.subr.msk.bf16.mxu0 %vm15648_vm2, %v15137_v57  ;;  %v15209_v57 = vpack.c.bf16 %v13877_v52, %v13870_v51  ;;  %v16931_v49 = vpop.permute.xlu0 %96  ;;  %v13953_v51 = vld [vmem:[%s20324_s0 + $0x698] sm:$0xff]  ;;  %v13960_v52 = vld [vmem:[%s20324_s0 + $0x820] sm:$0x1] }
  0x95   :  { %13794 = vmatmul.mubr.msk.f32.vlgmr.msra.gmra.mrb[70].mxu0 %vm104_vm3, %v15687_v17  ;;  %13798 = vmatmul.mubr.msk.f32.vlgmr.msra.gmra.mrb[70].mxu1 %vm104_vm3, %v15687_v17 }
  0x96   :  { %15148 = vmatpush3.bf16.msk.msra.mxu1 %vm15648_vm2, %v15143_v53  ;;  %3993 = vmatprep.mubr.f32.mxu0 %v20334_v3  ;;  %v16726_v53 = vld [vmem:[%s20325_s1 + $0x8] sm:$0xff] }
  0x97   :  { %4070 = vmatprep.mubr.f32.mxu1 %v20334_v3  ;;  %15142 = vmatpush1.bf16.msk.msra.mxu0 %vm15648_vm2, %v15140_v0  ;;  %v13904_v0 = vld [vmem:[%s20324_s0 + $0x7c0] sm:$0x1] }
  0x98   :  { %15151 = vmatprep.subr.msk.bf16.mxu1 %vm15648_vm2, %v15149_v1  ;;  %15157 = vmatprep.subr.msk.bf16.mxu0 %vm15648_vm2, %v15155_v4  ;;  %v15212_v1 = vpack.c.bf16 %v13876_v59, %v13869_v58  ;;  %v15215_v4 = vpack.c.bf16 %v13878_v62, %v13871_v61  ;;  %v15227_v5 = vpack.c.bf16 %v13904_v0, %v13897_v63  ;;  %v13958_v59 = vld [vmem:[%s20324_s0 + $0x6c0] sm:$0xff]  ;;  %v13952_v0 = vld [vmem:[%s20324_s0 + $0x690] sm:$0xff] }
  0x99   :  { %13795 = vmatmul.mubr.msk.f32.gmra.mrb[72].mxu0 %vm104_vm3, %v15731_v31  ;;  %13799 = vmatmul.mubr.msk.f32.gmra.mrb[72].mxu1 %vm104_vm3, %v15731_v31  ;;  %v15269_v58 = vpack.c.bf16 %v13960_v52, %v13953_v51 }
  0x9a   :  { %4141 = vmatprep.mubr.f32.mxu0 %v20334_v3  ;;  %14755 = vmatprep.mubr.msk.f32.mxu1 %vm104_vm3, %v15687_v17 }
  0x9d   :  { %13802 = vmatmul.mubr.msk.f32.vlgmr.msra.gmra.mrb[74].mxu0 %vm104_vm3, %v15687_v17  ;;  %14756 = vmatmul.mubr.msk.f32.vlgmr.msra.gmra.mrb[74].mxu1 %vm104_vm3, %v15731_v31 }
  0x9e   :  { %15154 = vmatpush1.bf16.msk.msra.mxu1 %vm15648_vm2, %v15152_v12  ;;  %4147 = vmatprep.mubr.f32.mxu0 %v20334_v3  ;;  %v13900_v12 = vld [vmem:[%s20324_s0 + $0x650] sm:$0xff] }
  0x9f   :  { %4370 = vmatprep.mubr.f32.mxu1 %v20334_v3  ;;  %15163 = vmatprep.subr.msk.bf16.mxu1 %vm15648_vm2, %v15161_v13  ;;  %v13907_v13 = vld [vmem:[%s20324_s0 + $0x7d8] sm:$0x1] }
  0xa0   :  { %15160 = vmatpush1.bf16.msk.msra.mxu0 %vm15648_vm2, %v15158_v16  ;;  %v13901_v16 = vld [vmem:[%s20324_s0 + $0x7a8] sm:$0x1]  ;;  %v15239_v18 = vpack.c.bf16 %v13907_v13, %v13900_v12 }
  0xa1   :  { %13803 = vmatmul.mubr.msk.f32.gmra.mrb[76].mxu0 %vm104_vm3, %v15731_v31  ;;  %13823 = vmatmul.mubr.msk.f32.vlgmr.msra.gmra.mrb[76].mxu1 %vm104_vm3, %v15687_v17  ;;  %v15224_v21 = vpack.c.bf16 %v13901_v16, %v13894_v15 }
  0xa2   :  { %15166 = vmatpush1.bf16.msk.msra.mxu1 %vm15648_vm2, %v15164_v22  ;;  %4376 = vmatprep.mubr.f32.mxu1 %v20334_v3  ;;  %v15233_v22 = vpack.c.bf16 %v13906_v20, %v13899_v19 }
  0xa3   :  { %4447 = vmatprep.mubr.f32.mxu0 %v20334_v3  ;;  %15169 = vmatprep.subr.msk.bf16.mxu0 %vm15648_vm2, %v15167_v23 }
  0xa4   :  { %15181 = vmatprep.subr.msk.bf16.mxu1 %vm15648_vm2, %v15179_v24  ;;  %v13905_v24 = vld [vmem:[%s20324_s0 + $0x7c8] sm:$0x1] }
  0xa5   :  { %13824 = vmatmul.mubr.msk.f32.gmra.mrb[78].mxu1 %vm104_vm3, %v15731_v31  ;;  %13827 = vmatmul.mubr.msk.f32.vlgmr.msra.gmra.mrb[78].mxu0 %vm104_vm3, %v15687_v17  ;;  %v13841_v17 = vld [vmem:[%s20324_s0 + $0x450] sm:$0xff] }
  0xa6   :  { %4453 = vmatprep.mubr.f32.mxu0 %v20334_v3  ;;  %4524 = vmatprep.mubr.f32.mxu1 %v20334_v3  ;;  %v15185_v40 = vpack.c.bf16 %v13848_v37, %v13841_v17  ;;  %v13925_v17 = vld [vmem:[%s20324_s0 + $0x668] sm:$0xff]  ;;  %v13932_v37 = vld [vmem:[%s20324_s0 + $0x7f0] sm:$0x1] }
  0xa7   :  { %15172 = vmatpush3.bf16.msk.msra.mxu0 %vm15648_vm2, %v15167_v23  ;;  %v13898_v23 = vld [vmem:[%s20324_s0 + $0x640] sm:$0xff]  ;;  %v15254_v43 = vpack.c.bf16 %v13932_v37, %v13925_v17  ;;  %v13989_v17 = vld [vmem:[%s20324_s0 + $0x858] sm:$0x1] }
  0xa8   :  { %15175 = vmatprep.subr.msk.bf16.mxu0 %vm15648_vm2, %v15173_v29  ;;  %v15236_v29 = vpack.c.bf16 %v13905_v24, %v13898_v23 }
  0xa9   :  { %13828 = vmatmul.mubr.msk.f32.gmra.mrb[80].mxu0 %vm104_vm3, %v15731_v31  ;;  %13831 = vmatmul.mubr.msk.f32.vlgmr.msra.gmra.mrb[80].mxu1 %vm104_vm3, %v16658_v38 }
  0xaa   :  { %15184 = vmatpush1.bf16.msk.msra.mxu1 %vm15648_vm2, %v15182_v33  ;;  %4530 = vmatprep.mubr.f32.mxu1 %v20334_v3  ;;  %v13923_v33 = vld [vmem:[%s20324_s0 + $0x658] sm:$0xff] }
  0xab   :  { %14762 = vmatprep.mubr.msk.f32.mxu0 %vm104_vm3, %v16658_v38  ;;  %15193 = vmatprep.subr.msk.bf16.mxu1 %vm15648_vm2, %v15191_v36 }
  0xad   :  { %13832 = vmatmul.mubr.msk.f32.gmra.mrb[82].mxu1 %vm104_vm3, %v15731_v31  ;;  %14763 = vmatmul.mubr.msk.f32.vlgmr.msra.gmra.mrb[82].mxu0 %vm104_vm3, %v15731_v31  ;;  %v15188_v31 = vpack.c.bf16 %v13847_v42, %v13840_v41  ;;  %v13927_v41 = vld [vmem:[%s20324_s0 + $0x678] sm:$0xff]  ;;  %v13934_v42 = vld [vmem:[%s20324_s0 + $0x800] sm:$0x1] }
  0xae   :  { %15178 = vmatpush1.bf16.msk.msra.mxu0 %vm15648_vm2, %v15176_v39  ;;  %4753 = vmatprep.mubr.f32.mxu0 %v20334_v3  ;;  %v15248_v39 = vpack.c.bf16 %v13930_v34, %v13923_v33 }
  0xaf   :  { %4830 = vmatprep.mubr.f32.mxu1 %v20334_v3  ;;  %15187 = vmatprep.subr.msk.bf16.mxu0 %vm15648_vm2, %v15185_v40 }
  0xb1   :  { %13852 = vmatmul.mubr.msk.f32.vlgmr.msra.gmra.mrb[84].mxu0 %vm104_vm3, %v16658_v38  ;;  %13856 = vmatmul.mubr.msk.f32.vlgmr.msra.gmra.mrb[84].mxu1 %vm104_vm3, %v16658_v38 }
  0xb2   :  { %15196 = vmatpush3.bf16.msk.msra.mxu1 %vm15648_vm2, %v15191_v36  ;;  %4759 = vmatprep.mubr.f32.mxu0 %v20334_v3  ;;  %v13935_v36 = vld [vmem:[%s20324_s0 + $0x808] sm:$0x1] }
  0xb3   :  { %4836 = vmatprep.mubr.f32.mxu1 %v20334_v3  ;;  %15190 = vmatpush1.bf16.msk.msra.mxu0 %vm15648_vm2, %v15188_v31  ;;  %v15257_v40 = vpack.c.bf16 %v13935_v36, %v13928_v35  ;;  %v13962_v31 = vld [vmem:[%s20324_s0 + $0x830] sm:$0x1] }
  0xb4   :  { %15199 = vmatprep.subr.msk.bf16.mxu1 %vm15648_vm2, %v15197_v47  ;;  %15205 = vmatprep.subr.msk.bf16.mxu0 %vm15648_vm2, %v15203_v48  ;;  %v15260_v47 = vpack.c.bf16 %v13934_v42, %v13927_v41  ;;  %v15263_v48 = vpack.c.bf16 %v13936_v45, %v13929_v44  ;;  %v15275_v50 = vpack.c.bf16 %v13962_v31, %v13955_v46  ;;  %v13984_v44 = vld [vmem:[%s20324_s0 + $0x6e0] sm:$0xff]  ;;  %v13991_v45 = vld [vmem:[%s20324_s0 + $0x868] sm:$0x1] }
  0xb5   :  { %13853 = vmatmul.mubr.msk.f32.gmra.mrb[86].mxu0 %vm104_vm3, %v16726_v53  ;;  %13857 = vmatmul.mubr.msk.f32.gmra.mrb[86].mxu1 %vm104_vm3, %v16726_v53 }
  0xb6   :  { %4907 = vmatprep.mubr.f32.mxu0 %v20334_v3  ;;  %14769 = vmatprep.mubr.msk.f32.mxu1 %vm104_vm3, %v16658_v38 }
  0xb9   :  { %13860 = vmatmul.mubr.msk.f32.vlgmr.msra.gmra.mrb[88].mxu0 %vm104_vm3, %v16658_v38  ;;  %14770 = vmatmul.mubr.msk.f32.vlgmr.msra.gmra.mrb[88].mxu1 %vm104_vm3, %v16726_v53 }
  0xba   :  { %15202 = vmatpush1.bf16.msk.msra.mxu1 %vm15648_vm2, %v15200_v56  ;;  %4913 = vmatprep.mubr.f32.mxu0 %v20334_v3 }
  0xbb   :  { %5136 = vmatprep.mubr.f32.mxu1 %v20334_v3  ;;  %15211 = vmatprep.subr.msk.bf16.mxu1 %vm15648_vm2, %v15209_v57 }
  0xbc   :  { %15208 = vmatpush1.bf16.msk.msra.mxu0 %vm15648_vm2, %v15206_v60  ;;  %v13965_v60 = vld [vmem:[%s20324_s0 + $0x848] sm:$0x1] }
  0xbd   :  { %13861 = vmatmul.mubr.msk.f32.gmra.mrb[90].mxu0 %vm104_vm3, %v16726_v53  ;;  %13881 = vmatmul.mubr.msk.f32.vlgmr.msra.gmra.mrb[90].mxu1 %vm104_vm3, %v16658_v38  ;;  %v16982_v9 = vpack.c.bf16 %v13965_v60, %v13958_v59 }
  0xbe   :  { %15214 = vmatpush1.bf16.msk.msra.mxu1 %vm15648_vm2, %v15212_v1  ;;  %5142 = vmatprep.mubr.f32.mxu1 %v20334_v3  ;;  %v13959_v1 = vld [vmem:[%s20324_s0 + $0x818] sm:$0x1] }
  0xbf   :  { %5213 = vmatprep.mubr.f32.mxu0 %v20334_v3  ;;  %15217 = vmatprep.subr.msk.bf16.mxu0 %vm15648_vm2, %v15215_v4 }
  0xc0   :  { %15229 = vmatprep.subr.msk.bf16.mxu1 %vm15648_vm2, %v15227_v5  ;;  %v15278_v5 = vpack.c.bf16 %v13961_v55, %v13954_v54 }
  0xc1   :  { %13882 = vmatmul.mubr.msk.f32.gmra.mrb[92].mxu1 %vm104_vm3, %v16726_v53  ;;  %13885 = vmatmul.mubr.msk.f32.vlgmr.msra.gmra.mrb[92].mxu0 %vm104_vm3, %v16658_v38 }
  0xc2   :  { %5219 = vmatprep.mubr.f32.mxu0 %v20334_v3  ;;  %5290 = vmatprep.mubr.f32.mxu1 %v20334_v3 }
  0xc3   :  { %15220 = vmatpush3.bf16.msk.msra.mxu0 %vm15648_vm2, %v15215_v4  ;;  %v16974_v4 = vpop.permute.xlu0 %101 }
  0xc4   :  { %15223 = vmatprep.subr.msk.bf16.mxu0 %vm15648_vm2, %v15221_v11  ;;  %v13964_v11 = vld [vmem:[%s20324_s0 + $0x840] sm:$0x1] }
  0xc5   :  { %13886 = vmatmul.mubr.msk.f32.gmra.mrb[94].mxu0 %vm104_vm3, %v16726_v53  ;;  %13889 = vmatmul.mubr.msk.f32.vlgmr.msra.gmra.mrb[94].mxu1 %vm104_vm3, %v16658_v38  ;;  %v15281_v24 = vpack.c.bf16 %v13964_v11, %v13957_v10 }
  0xc6   :  { %15232 = vmatpush1.bf16.msk.msra.mxu1 %vm15648_vm2, %v15230_v14  ;;  %5296 = vmatprep.mubr.f32.mxu1 %v20334_v3  ;;  %v15272_v14 = vpack.c.bf16 %v13959_v1, %v13952_v0  ;;  %v13988_v0 = vld [vmem:[%s20324_s0 + $0x850] sm:$0x1] }
  0xc7   :  { %14776 = vmatprep.mubr.msk.f32.mxu0 %vm104_vm3, %v16658_v38  ;;  %15241 = vmatprep.subr.msk.bf16.mxu1 %vm15648_vm2, %v15239_v18 }
  0xc9   :  { %13890 = vmatmul.mubr.msk.f32.gmra.mrb[96].mxu1 %vm104_vm3, %v16726_v53  ;;  %14777 = vmatmul.mubr.msk.f32.vlgmr.msra.gmra.mrb[96].mxu0 %vm104_vm3, %v16726_v53 }
  0xca   :  { %15226 = vmatpush1.bf16.msk.msra.mxu0 %vm15648_vm2, %v15224_v21  ;;  %5518 = vmatprep.mubr.f32.mxu0 %v20334_v3 }
  0xcb   :  { %5595 = vmatprep.mubr.f32.mxu1 %v20334_v3  ;;  %15235 = vmatprep.subr.msk.bf16.mxu0 %vm15648_vm2, %v15233_v22 }
  0xcd   :  { %13910 = vmatmul.mubr.msk.f32.vlgmr.msra.gmra.mrb[98].mxu0 %vm104_vm3, %v16658_v38  ;;  %13914 = vmatmul.mubr.msk.f32.vlgmr.msra.gmra.mrb[98].mxu1 %vm104_vm3, %v16658_v38 }
  0xce   :  { %15244 = vmatpush3.bf16.msk.msra.mxu1 %vm15648_vm2, %v15239_v18  ;;  %5524 = vmatprep.mubr.f32.mxu0 %v20334_v3 }
  0xcf   :  { %5601 = vmatprep.mubr.f32.mxu1 %v20334_v3  ;;  %15238 = vmatpush1.bf16.msk.msra.mxu0 %vm15648_vm2, %v15236_v29 }
  0xd0   :  { %15247 = vmatprep.subr.msk.bf16.mxu1 %vm15648_vm2, %v15245_v30  ;;  %15253 = vmatprep.subr.msk.bf16.mxu0 %vm15648_vm2, %v15251_v32  ;;  %v13956_v30 = vld [vmem:[%s20324_s0 + $0x6b0] sm:$0xff] }
  0xd1   :  { %13911 = vmatmul.mubr.msk.f32.gmra.mrb[100].mxu0 %vm104_vm3, %v16726_v53  ;;  %13915 = vmatmul.mubr.msk.f32.gmra.mrb[100].mxu1 %vm104_vm3, %v16726_v53  ;;  %v13982_v32 = vld [vmem:[%s20324_s0 + $0x6d0] sm:$0xff] }
  0xd2   :  { %5672 = vmatprep.mubr.f32.mxu0 %v20334_v3  ;;  %14783 = vmatprep.mubr.msk.f32.mxu1 %vm104_vm3, %v16658_v38 }
  0xd5   :  { %13918 = vmatmul.mubr.msk.f32.vlgmr.msra.gmra.mrb[102].mxu0 %vm104_vm3, %v16658_v38  ;;  %14784 = vmatmul.mubr.msk.f32.vlgmr.msra.gmra.mrb[102].mxu1 %vm104_vm3, %v16726_v53 }
  0xd6   :  { %15250 = vmatpush1.bf16.msk.msra.mxu1 %vm15648_vm2, %v15248_v39  ;;  %5678 = vmatprep.mubr.f32.mxu0 %v20334_v3 }
  0xd7   :  { %5894 = vmatprep.mubr.f32.mxu1 %v20334_v3  ;;  %15259 = vmatprep.subr.msk.bf16.mxu1 %vm15648_vm2, %v15257_v40 }
  0xd8   :  { %15256 = vmatpush1.bf16.msk.msra.mxu0 %vm15648_vm2, %v15254_v43 }
  0xd9   :  { %13919 = vmatmul.mubr.msk.f32.gmra.mrb[104].mxu0 %vm104_vm3, %v16726_v53  ;;  %13939 = vmatmul.mubr.msk.f32.vlgmr.msra.gmra.mrb[104].mxu1 %vm104_vm3, %v16658_v38 }
  0xda   :  { %15262 = vmatpush1.bf16.msk.msra.mxu1 %vm15648_vm2, %v15260_v47  ;;  %5900 = vmatprep.mubr.f32.mxu1 %v20334_v3 }
  0xdb   :  { %5971 = vmatprep.mubr.f32.mxu0 %v20334_v3  ;;  %15265 = vmatprep.subr.msk.bf16.mxu0 %vm15648_vm2, %v15263_v48 }
  0xdc   :  { %v276_v56 = vpop.f32.mrb[0].mxu1  ;;  %15277 = vmatprep.subr.msk.bf16.mxu1 %vm15648_vm2, %v15275_v50  ;;  %v199_v57 = vpop.f32.mrb[0].mxu0  ;;  %v15284_v50 = vpack.c.bf16 %v13963_v25, %v13956_v30 }
  0xdd   :  { %v278_v61 = vpop.f32.mrb[1].mxu1  ;;  %13940 = vmatmul.mubr.msk.f32.gmra.mrb[106].mxu1 %vm104_vm3, %v16726_v53  ;;  %13943 = vmatmul.mubr.msk.f32.vlgmr.msra.gmra.mrb[106].mxu0 %vm104_vm3, %v16658_v38  ;;  %v200_v62 = vadd.f32 %v199_v57, %v16931_v49  ;;  %v201_v63 = vpop.f32.mrb[1].mxu0  ;;  %v277_v6 = vadd.f32 %v276_v56, %v16931_v49  ;;  %v15293_v57 = vpack.c.bf16 %v13989_v17, %v13982_v32 }
  0xde   :  { %5977 = vmatprep.mubr.f32.mxu0 %v20334_v3  ;;  %6048 = vmatprep.mubr.f32.mxu1 %v20334_v3  ;;  %v202_v7 = vadd.f32 %v201_v63, %v16931_v49  ;;  %v279_v15 = vadd.f32 %v278_v61, %v16931_v49  ;;  %v13981_v63 = vld [vmem:[%s20324_s0 + $0x6c8] sm:$0xff] }
  0xdf   :  { %15268 = vmatpush3.bf16.msk.msra.mxu0 %vm15648_vm2, %v15263_v48  ;;  %v439_v19 = vmax.f32 %v200_v62, 0.0  ;;  %v441_v26 = vmax.f32 %v277_v6, 0.0 }
  0xe0   :  { %v282_v12 = vpop.f32.mrb[2].mxu1  ;;  %v205_v13 = vpop.f32.mrb[2].mxu0  ;;  %15271 = vmatprep.subr.msk.bf16.mxu0 %vm15648_vm2, %v15269_v58  ;;  %v440_v28 = vmax.f32 %v202_v7, 0.0  ;;  %v442_v37 = vmax.f32 %v279_v15, 0.0  ;;  %v15299_v58 = vpack.c.bf16 %v13991_v45, %v13984_v44  ;;  %v13986_v15 = vld [vmem:[%s20324_s0 + $0x6f0] sm:$0xff] }
  0xe1   :  { %v283_v16 = vadd.f32 %v282_v12, %v16974_v4  ;;  %v284_v18 = vpop.f32.mrb[3].mxu1  ;;  %13944 = vmatmul.mubr.msk.f32.gmra.mrb[108].mxu0 %vm104_vm3, %v16726_v53  ;;  %13947 = vmatmul.mubr.msk.f32.vlgmr.msra.gmra.mrb[108].mxu1 %vm104_vm3, %v16658_v38  ;;  %v206_v20 = vadd.f32 %v205_v13, %v16974_v4  ;;  %v207_v21 = vpop.f32.mrb[3].mxu0 }
  0xe2   :  { %v285_v22 = vadd.f32 %v284_v18, %v16974_v4  ;;  %15280 = vmatpush1.bf16.msk.msra.mxu1 %vm15648_vm2, %v15278_v5  ;;  %6054 = vmatprep.mubr.f32.mxu1 %v20334_v3  ;;  %v208_v23 = vadd.f32 %v207_v21, %v16974_v4 }
  0xe3   :  { %v448_v27 = vmax.f32 %v283_v16, 0.0  ;;  %14790 = vmatprep.mubr.msk.f32.mxu0 %vm104_vm3, %v16658_v38  ;;  %v446_v29 = vmax.f32 %v206_v20, 0.0  ;;  %15289 = vmatprep.subr.msk.bf16.mxu1 %vm15648_vm2, %v16982_v9  ;;  %v13993_v16 = vld [vmem:[%s20324_s0 + $0x878] sm:$0x1] }
  0xe4   :  { %v449_v33 = vmax.f32 %v285_v22, 0.0  ;;  %v14687_v34 = vpop.f32.mrb[4].mxu1  ;;  %v447_v35 = vmax.f32 %v208_v23, 0.0  ;;  %v353_v36 = vpop.f32.mrb[4].mxu0  ;;  %v13983_v23 = vld [vmem:[%s20324_s0 + $0x6d8] sm:$0xff]  ;;  %v15305_v32 = vpack.c.bf16 %v13993_v16, %v13986_v15 }
  0xe5   :  { %v17021_v39 = vpack.c.bf16 %v448_v27, %v441_v26  ;;  %v436_v40 = vadd.f32 %v14687_v34, %v16974_v4  ;;  %v17024_v41 = vpack.c.bf16 %v446_v29, %v439_v19  ;;  %v430_v42 = vpop.f32.mrb[5].mxu1  ;;  %13948 = vmatmul.mubr.msk.f32.gmra.mrb[110].mxu1 %vm104_vm3, %v16726_v53  ;;  %14791 = vmatmul.mubr.msk.f32.vlgmr.msra.gmra.mrb[110].mxu0 %vm104_vm3, %v16726_v53  ;;  %v355_v43 = vpop.f32.mrb[5].mxu0  ;;  %v13985_v27 = vld [vmem:[%s20324_s0 + $0x6e8] sm:$0xff]  ;;  %v13994_v34 = vld [vmem:[%s20324_s0 + $0x880] sm:$0x1] }
  0xe6   :  { %v431_v46 = vadd.f32 %v430_v42, %v16931_v49  ;;  %15274 = vmatpush1.bf16.msk.msra.mxu0 %vm15648_vm2, %v15272_v14  ;;  %6270 = vmatprep.mubr.f32.mxu0 %v20334_v3  ;;  %v354_v31 = vadd.f32 %v353_v36, %v16931_v49  ;;  %v356_v47 = vadd.f32 %v355_v43, %v16931_v49  ;;  %v14020_v42 = vld [vmem:[%s20324_s0 + $0x8a0] sm:$0x1] }
  0xe7   :  { %v452_v48 = vmax.f32 %v436_v40, 0.0  ;;  %6347 = vmatprep.mubr.f32.mxu1 %v20334_v3  ;;  %15283 = vmatprep.subr.msk.bf16.mxu0 %vm15648_vm2, %v15281_v24  ;;  %v17045_v51 = vpack.c.bf16 %v447_v35, %v440_v28  ;;  %v17047_v52 = vpack.c.bf16 %v449_v33, %v442_v37  ;;  %v13990_v24 = vld [vmem:[%s20324_s0 + $0x860] sm:$0x1]  ;;  %v13992_v33 = vld [vmem:[%s20324_s0 + $0x870] sm:$0x1]  ;;  %v13987_v40 = vld [vmem:[%s20324_s0 + $0x6f8] sm:$0xff] }
  0xe8   :  { %v445_v54 = vmax.f32 %v431_v46, 0.0  ;;  %v568_v55 = vpop.f32.mrb[6].mxu1  ;;  %v359_v56 = vpop.f32.mrb[6].mxu0  ;;  %v443_v60 = vmax.f32 %v354_v31, 0.0  ;;  %v444_v5 = vmax.f32 %v356_v47, 0.0  ;;  %v15302_v37 = vpack.c.bf16 %v13990_v24, %v13983_v23 }
  0xe9   :  { %v570_v59 = vpop.f32.mrb[7].mxu1  ;;  %13968 = vmatmul.mubr.msk.f32.vlgmr.msra.gmra.mrb[112].mxu0 %vm104_vm3, %v16658_v38  ;;  %13972 = vmatmul.mubr.msk.f32.vlgmr.msra.gmra.mrb[112].mxu1 %vm104_vm3, %v16658_v38  ;;  %v360_v61 = vadd.f32 %v359_v56, %v16974_v4  ;;  %v361_v62 = vpop.f32.mrb[7].mxu0  ;;  %v569_v7 = vadd.f32 %v568_v55, %v16931_v49  ;;  %v15308_v56 = vpack.c.bf16 %v13992_v33, %v13985_v27  ;;  %v14019_v24 = vld [vmem:[%s20324_s0 + $0x898] sm:$0x1] }
  0xea   :  { %v17060_v1 = vpack.c.bf16 %v452_v48, %v445_v54  ;;  %15292 = vmatpush3.bf16.msk.msra.mxu1 %vm15648_vm2, %v16982_v9  ;;  %6276 = vmatprep.mubr.f32.mxu0 %v20334_v3  ;;  %v362_v6 = vadd.f32 %v361_v62, %v16974_v4  ;;  %v571_v11 = vadd.f32 %v570_v59, %v16931_v49  ;;  %v14013_v48 = vld [vmem:[%s20324_s0 + $0x718] sm:$0xff] }
  0xeb   :  { %6353 = vmatprep.mubr.f32.mxu1 %v20334_v3  ;;  %v450_v10 = vmax.f32 %v360_v61, 0.0  ;;  %15286 = vmatpush1.bf16.msk.msra.mxu0 %vm15648_vm2, %v15284_v50  ;;  %v15296_v9 = vpack.c.bf16 %v13988_v0, %v13981_v63  ;;  %v808_v29 = vmax.f32 %v569_v7, 0.0  ;;  %v39_v50 = vld [vmem:[%s20327_s4 + $0x10] sm:$0xff]  ;;  %v15311_v59 = vpack.c.bf16 %v13994_v34, %v13987_v40  ;;  %v14023_v33 = vld [vmem:[%s20324_s0 + $0x8b8] sm:$0x1] }
  0xec   :  { %v574_v12 = vpop.f32.mrb[8].mxu1  ;;  %v451_v13 = vmax.f32 %v362_v6, 0.0  ;;  %15295 = vmatprep.subr.msk.bf16.mxu1 %vm15648_vm2, %v15293_v57  ;;  %v645_v14 = vpop.f32.mrb[8].mxu0  ;;  %15301 = vmatprep.subr.msk.bf16.mxu0 %vm15648_vm2, %v15299_v58  ;;  %v809_v43 = vmax.f32 %v571_v11, 0.0  ;;  %v14017_v40 = vld [vmem:[%s20324_s0 + $0x888] sm:$0x1] }
  0xed   :  { %v575_v18 = vadd.f32 %v574_v12, %v16974_v4  ;;  %v17083_v19 = vpack.c.bf16 %v450_v10, %v443_v60  ;;  %v576_v20 = vpop.f32.mrb[9].mxu1  ;;  %13969 = vmatmul.mubr.msk.f32.gmra.mrb[114].mxu0 %vm104_vm3, %v16726_v53  ;;  %13973 = vmatmul.mubr.msk.f32.gmra.mrb[114].mxu1 %vm104_vm3, %v16726_v53  ;;  %v646_v21 = vadd.f32 %v645_v14, %v16931_v49  ;;  %v647_v22 = vpop.f32.mrb[9].mxu0  ;;  %v13246_v14 = vld [vmem:[%s20328_s6] sm:$0xff] }
  0xee   :  { %v577_v25 = vadd.f32 %v576_v20, %v16974_v4  ;;  %6424 = vmatprep.mubr.f32.mxu0 %v20334_v3  ;;  %14797 = vmatprep.mubr.msk.f32.mxu1 %vm104_vm3, %v16658_v38  ;;  %v648_v26 = vadd.f32 %v647_v22, %v16931_v49  ;;  %v17104_v28 = vpack.c.bf16 %v451_v13, %v444_v5  ;;  %v14011_v13 = vld [vmem:[%s20324_s0 + $0x708] sm:$0xff] }
  0xef   :  { %v815_v30 = vmax.f32 %v575_v18, 0.0  ;;  %v810_v46 = vmax.f32 %v646_v21, 0.0  ;;  %v15323_v5 = vpack.c.bf16 %v14020_v42, %v14013_v48  ;;  %10882 = vperm.xlu0 %15561, %v39_v50   ;;  %v14012_v18 = vld [vmem:[%s20324_s0 + $0x710] sm:$0xff] }
  0xf0   :  { %v816_v35 = vmax.f32 %v577_v25, 0.0  ;;  %v722_v36 = vpop.f32.mrb[10].mxu1  ;;  %v651_v17 = vpop.f32.mrb[10].mxu0  ;;  %v811_v54 = vmax.f32 %v648_v26, 0.0  ;;  %v14016_v25 = vld [vmem:[%s20324_s0 + $0x730] sm:$0xff] }
  0xf1   :  { %v17118_v44 = vpack.c.bf16 %v815_v30, %v808_v29  ;;  %v724_v45 = vpop.f32.mrb[11].mxu1  ;;  %13976 = vmatmul.mubr.msk.f32.vlgmr.msra.gmra.mrb[116].mxu0 %vm104_vm3, %v16658_v38  ;;  %14798 = vmatmul.mubr.msk.f32.vlgmr.msra.gmra.mrb[116].mxu1 %vm104_vm3, %v16726_v53  ;;  %v652_v31 = vadd.f32 %v651_v17, %v16974_v4  ;;  %v653_v47 = vpop.f32.mrb[11].mxu0  ;;  %v723_v57 = vadd.f32 %v722_v36, %v16931_v49 }
  0xf2   :  { %15298 = vmatpush1.bf16.msk.msra.mxu1 %vm15648_vm2, %v15296_v9  ;;  %6430 = vmatprep.mubr.f32.mxu0 %v20334_v3  ;;  %v654_v55 = vadd.f32 %v653_v47, %v16974_v4  ;;  %v17139_v60 = vpack.c.bf16 %v816_v35, %v809_v43  ;;  %v725_v61 = vadd.f32 %v724_v45, %v16931_v49  ;;  %v14018_v9 = vld [vmem:[%s20324_s0 + $0x890] sm:$0x1] }
  0xf3   :  { %6646 = vmatprep.mubr.f32.mxu1 %v20334_v3  ;;  %v817_v58 = vmax.f32 %v652_v31, 0.0  ;;  %15307 = vmatprep.subr.msk.bf16.mxu1 %vm15648_vm2, %v15305_v32  ;;  %v812_v21 = vmax.f32 %v723_v57, 0.0  ;;  %v15317_v32 = vpack.c.bf16 %v14018_v9, %v14011_v13  ;;  %v15326_v45 = vpack.c.bf16 %v14019_v24, %v14012_v18  ;;  %v14022_v31 = vld [vmem:[%s20324_s0 + $0x8b0] sm:$0x1] }
  0xf4   :  { %v728_v62 = vpop.f32.mrb[12].mxu1  ;;  %v818_v63 = vmax.f32 %v654_v55, 0.0  ;;  %15304 = vmatpush1.bf16.msk.msra.mxu0 %vm15648_vm2, %v15302_v37  ;;  %v14694_v0 = vpop.f32.mrb[12].mxu0  ;;  %13249 = vperm.xlu0 %15561, %v13246_v14   ;;  %v14010_v37 = vld [vmem:[%s20324_s0 + $0x700] sm:$0xff]  ;;  %v813_v42 = vmax.f32 %v725_v61, 0.0  ;;  %v17212_v50 = vpack.c.bf16 %v14023_v33, %v14016_v25 }
  0xf5   :  { %v729_v6 = vadd.f32 %v728_v62, %v16974_v4  ;;  %v17145_v7 = vpack.c.bf16 %v817_v58, %v810_v46  ;;  %v730_v10 = vpop.f32.mrb[13].mxu1  ;;  %13977 = vmatmul.mubr.msk.f32.gmra.mrb[118].mxu0 %vm104_vm3, %v16726_v53  ;;  %13997 = vmatmul.mubr.msk.f32.vlgmr.msra.gmra.mrb[118].mxu1 %vm104_vm3, %v16658_v38  ;;  %v805_v11 = vadd.f32 %v14694_v0, %v16974_v4  ;;  %v799_v12 = vpop.f32.mrb[13].mxu0  ;;  %v14015_v46 = vld [vmem:[%s20324_s0 + $0x728] sm:$0xff]  ;;  %v14049_v33 = vld [vmem:[%s20324_s0 + $0x8d8] sm:$0x1] }
  0xf6   :  { %v731_v15 = vadd.f32 %v730_v10, %v16974_v4  ;;  %15310 = vmatpush1.bf16.msk.msra.mxu1 %vm15648_vm2, %v15308_v56  ;;  %6652 = vmatprep.mubr.f32.mxu1 %v20334_v3  ;;  %v800_v16 = vadd.f32 %v799_v12, %v16931_v49  ;;  %v17169_v20 = vpack.c.bf16 %v818_v63, %v811_v54 }
  0xf7   :  { %v819_v22 = vmax.f32 %v729_v6, 0.0  ;;  %6723 = vmatprep.mubr.f32.mxu0 %v20334_v3  ;;  %v821_v23 = vmax.f32 %v805_v11, 0.0  ;;  %15313 = vmatprep.subr.msk.bf16.mxu0 %vm15648_vm2, %v15311_v59  ;;  %v15320_v56 = vpack.c.bf16 %v14017_v40, %v14010_v37  ;;  %v15329_v0 = vpack.c.bf16 %v14022_v31, %v14015_v46  ;;  %v14014_v11 = vld [vmem:[%s20324_s0 + $0x720] sm:$0xff] }
  0xf8   :  { %v820_v26 = vmax.f32 %v731_v15, 0.0  ;;  %v1014_v27 = vpop.f32.mrb[14].mxu1  ;;  %15325 = vmatprep.subr.msk.bf16.mxu1 %vm15648_vm2, %v15323_v5  ;;  %v814_v29 = vmax.f32 %v800_v16, 0.0  ;;  %v937_v30 = vpop.f32.mrb[14].mxu0  ;;  %v14021_v15 = vld [vmem:[%s20324_s0 + $0x8a8] sm:$0x1] }
  0xf9   :  { %v17185_v34 = vpack.c.bf16 %v819_v22, %v812_v21  ;;  %v1016_v35 = vpop.f32.mrb[15].mxu1  ;;  %13998 = vmatmul.mubr.msk.f32.gmra.mrb[120].mxu1 %vm104_vm3, %v16726_v53  ;;  %14001 = vmatmul.mubr.msk.f32.vlgmr.msra.gmra.mrb[120].mxu0 %vm104_vm3, %v16658_v38  ;;  %v938_v36 = vadd.f32 %v937_v30, %v16931_v49  ;;  %v939_v17 = vpop.f32.mrb[15].mxu0  ;;  %v1015_v47 = vadd.f32 %v1014_v27, %v16931_v49  ;;  %v14040_v30 = vld [vmem:[%s20324_s0 + $0x740] sm:$0xff] }
  0xfa   :  { %6729 = vmatprep.mubr.f32.mxu0 %v20334_v3  ;;  %6800 = vmatprep.mubr.f32.mxu1 %v20334_v3  ;;  %v17200_v43 = vpack.c.bf16 %v821_v23, %v814_v29  ;;  %v940_v48 = vadd.f32 %v939_v17, %v16931_v49  ;;  %v17216_v57 = vpack.c.bf16 %v820_v26, %v813_v42  ;;  %v14047_v23 = vld [vmem:[%s20324_s0 + $0x8c8] sm:$0x1] }
  0xfb   :  { %20424 = vst [vmem:[#allocation4_spill] sm:$0xff] %v17185_v34  ;;  %15316 = vmatpush3.bf16.msk.msra.mxu0 %vm15648_vm2, %v15311_v59  ;;  %v1177_v59 = vmax.f32 %v938_v36, 0.0  ;;  %v1017_v5 = vadd.f32 %v1016_v35, %v16931_v49  ;;  %v1179_v12 = vmax.f32 %v1015_v47, 0.0  ;;  %v15332_v42 = vpack.c.bf16 %v14021_v15, %v14014_v11  ;;  %v14044_v15 = vld [vmem:[%s20324_s0 + $0x760] sm:$0xff] }
  0xfc   :  { %20425 = vst [vmem:[#allocation5_spill] sm:$0xff] %v17200_v43  ;;  %v1020_v54 = vpop.f32.mrb[16].mxu1  ;;  %v943_v55 = vpop.f32.mrb[16].mxu0  ;;  %15319 = vmatprep.subr.msk.bf16.mxu0 %vm15648_vm2, %v15317_v32  ;;  %20426 = vst [vmem:[#allocation6_spill] sm:$0xff] %v17216_v57  ;;  %v1178_v9 = vmax.f32 %v940_v48, 0.0  ;;  %v14042_v32 = vld [vmem:[%s20324_s0 + $0x750] sm:$0xff]  ;;  %v15341_v48 = vpack.c.bf16 %v14047_v23, %v14040_v30 }
  0xfd   :  { %v1021_v58 = vadd.f32 %v1020_v54, %v16974_v4  ;;  %v1022_v61 = vpop.f32.mrb[17].mxu1  ;;  %14002 = vmatmul.mubr.msk.f32.gmra.mrb[122].mxu0 %vm104_vm3, %v16726_v53  ;;  %14005 = vmatmul.mubr.msk.f32.vlgmr.msra.gmra.mrb[122].mxu1 %vm104_vm3, %v16658_v38  ;;  %v944_v62 = vadd.f32 %v943_v55, %v16974_v4  ;;  %v945_v63 = vpop.f32.mrb[17].mxu0  ;;  %v1180_v35 = vmax.f32 %v1017_v5, 0.0  ;;  %v15347_v54 = vpack.c.bf16 %v14049_v33, %v14042_v32 }
  0xfe   :  { %v1023_v6 = vadd.f32 %v1022_v61, %v16974_v4  ;;  %15328 = vmatpush1.bf16.msk.msra.mxu1 %vm15648_vm2, %v15326_v45  ;;  %6806 = vmatprep.mubr.f32.mxu1 %v20334_v3  ;;  %v946_v10 = vadd.f32 %v945_v63, %v16974_v4  ;;  %v14046_v63 = vld [vmem:[%s20324_s0 + $0x8c0] sm:$0x1] }
  0xff   :  { %v1186_v13 = vmax.f32 %v1021_v58, 0.0  ;;  %14804 = vmatprep.mubr.msk.f32.mxu0 %vm104_vm3, %v16658_v38  ;;  %v1184_v14 = vmax.f32 %v944_v62, 0.0  ;;  %15337 = vmatprep.subr.msk.bf16.mxu1 %vm15648_vm2, %v17212_v50  ;;  %v14039_v62 = vld [vmem:[%s20324_s0 + $0x738] sm:$0xff] }
 0x100   :  { %v1187_v16 = vmax.f32 %v1023_v6, 0.0  ;;  %v14701_v18 = vpop.f32.mrb[18].mxu1  ;;  %v1185_v21 = vmax.f32 %v946_v10, 0.0  ;;  %v1091_v22 = vpop.f32.mrb[18].mxu0 }
 0x101   :  { %v17244_v24 = vpack.c.bf16 %v1186_v13, %v1179_v12  ;;  %v1174_v25 = vadd.f32 %v14701_v18, %v16974_v4  ;;  %v17247_v26 = vpack.c.bf16 %v1184_v14, %v1177_v59  ;;  %v1168_v27 = vpop.f32.mrb[19].mxu1  ;;  %14006 = vmatmul.mubr.msk.f32.gmra.mrb[124].mxu1 %vm104_vm3, %v16726_v53  ;;  %14805 = vmatmul.mubr.msk.f32.vlgmr.msra.gmra.mrb[124].mxu0 %vm104_vm3, %v16726_v53  ;;  %v1093_v29 = vpop.f32.mrb[19].mxu0 }
 0x102   :  { %v1169_v36 = vadd.f32 %v1168_v27, %v16931_v49  ;;  %15322 = vmatpush1.bf16.msk.msra.mxu0 %vm15648_vm2, %v15320_v56  ;;  %7022 = vmatprep.mubr.f32.mxu0 %v20334_v3  ;;  %v1092_v17 = vadd.f32 %v1091_v22, %v16931_v49  ;;  %v1094_v37 = vadd.f32 %v1093_v29, %v16931_v49  ;;  %v14041_v27 = vld [vmem:[%s20324_s0 + $0x748] sm:$0xff]  ;;  %v14048_v29 = vld [vmem:[%s20324_s0 + $0x8d0] sm:$0x1] }
 0x103   :  { %20427 = vst [vmem:[#allocation7_spill] sm:$0xff] %v17244_v24  ;;  %20428 = vst [vmem:[#allocation8_spill] sm:$0xff] %v17247_v26  ;;  %v1190_v40 = vmax.f32 %v1174_v25, 0.0  ;;  %7099 = vmatprep.mubr.f32.mxu1 %v20334_v3  ;;  %15331 = vmatprep.subr.msk.bf16.mxu0 %vm15648_vm2, %v15329_v0  ;;  %v17271_v45 = vpack.c.bf16 %v1185_v21, %v1178_v9  ;;  %v17273_v55 = vpack.c.bf16 %v1187_v16, %v1180_v35  ;;  %v14051_v16 = vld [vmem:[%s20324_s0 + $0x8e8] sm:$0x1] }
 0x104   :  { %v1183_v46 = vmax.f32 %v1169_v36, 0.0  ;;  %v1306_v31 = vpop.f32.mrb[20].mxu1  ;;  %v1097_v47 = vpop.f32.mrb[20].mxu0  ;;  %v1181_v58 = vmax.f32 %v1092_v17, 0.0  ;;  %v1182_v5 = vmax.f32 %v1094_v37, 0.0  ;;  %v15353_v17 = vpack.c.bf16 %v14051_v16, %v14044_v15  ;;  %v14043_v37 = vld [vmem:[%s20324_s0 + $0x758] sm:$0xff] }
 0x105   :  { %20429 = vst [vmem:[#allocation9_spill] sm:$0xff] %v17271_v45  ;;  %20430 = vst [vmem:[#allocation10_spill] sm:$0xff] %v17273_v55  ;;  %v1308_v56 = vpop.f32.mrb[21].mxu1  ;;  %14026 = vmatmul.mubr.msk.f32.vlgmr.msra.gmra.mrb[126].mxu0 %vm104_vm3, %v16658_v38  ;;  %14030 = vmatmul.mubr.msk.f32.vlgmr.msra.gmra.mrb[126].mxu1 %vm104_vm3, %v16658_v38  ;;  %v1098_v61 = vadd.f32 %v1097_v47, %v16974_v4  ;;  %v1099_v59 = vpop.f32.mrb[21].mxu0  ;;  %v1307_v10 = vadd.f32 %v1306_v31, %v16931_v49 }
 0x106   :  { %v17286_v0 = vpack.c.bf16 %v1190_v40, %v1183_v46  ;;  %15340 = vmatpush3.bf16.msk.msra.mxu1 %vm15648_vm2, %v17212_v50  ;;  %7028 = vmatprep.mubr.f32.mxu0 %v20334_v3  ;;  %v1100_v6 = vadd.f32 %v1099_v59, %v16974_v4  ;;  %v1309_v12 = vadd.f32 %v1308_v56, %v16931_v49  ;;  %v14050_v40 = vld [vmem:[%s20324_s0 + $0x8e0] sm:$0x1]  ;;  %v14052_v56 = vld [vmem:[%s20324_s0 + $0x8f0] sm:$0x1] }
 0x107   :  { %7105 = vmatprep.mubr.f32.mxu1 %v20334_v3  ;;  %v1188_v11 = vmax.f32 %v1098_v61, 0.0  ;;  %15334 = vmatpush1.bf16.msk.msra.mxu0 %vm15648_vm2, %v15332_v42  ;;  %v15344_v50 = vpack.c.bf16 %v14046_v63, %v14039_v62  ;;  %v1546_v35 = vmax.f32 %v1307_v10, 0.0  ;;  %v14045_v42 = vld [vmem:[%s20324_s0 + $0x768] sm:$0xff] }
 0x108   :  { %20431 = vst [vmem:[#allocation11_spill] sm:$0xff] %v17286_v0  ;;  %v1312_v13 = vpop.f32.mrb[22].mxu1  ;;  %v1189_v9 = vmax.f32 %v1100_v6, 0.0  ;;  %15343 = vmatprep.subr.msk.bf16.mxu1 %vm15648_vm2, %v15341_v48  ;;  %v1383_v14 = vpop.f32.mrb[22].mxu0  ;;  %15349 = vmatprep.subr.msk.bf16.mxu0 %vm15648_vm2, %v15347_v54  ;;  %v1547_v46 = vmax.f32 %v1309_v12, 0.0  ;;  %v15350_v54 = vpack.c.bf16 %v14048_v29, %v14041_v27  ;;  %v15356_v12 = vpack.c.bf16 %v14050_v40, %v14043_v37  ;;  %v14070_v37 = vld [vmem:[%s20324_s0 + $0x780] sm:$0xff] }
 0x109   :  { %v1313_v18 = vadd.f32 %v1312_v13, %v16974_v4  ;;  %v17309_v21 = vpack.c.bf16 %v1188_v11, %v1181_v58  ;;  %v1314_v22 = vpop.f32.mrb[23].mxu1  ;;  %14027 = vmatmul.mubr.msk.f32.gmra.mrb[128].mxu0 %vm104_vm3, %v16726_v53  ;;  %14031 = vmatmul.mubr.msk.f32.gmra.mrb[128].mxu1 %vm104_vm3, %v16726_v53  ;;  %v1384_v23 = vadd.f32 %v1383_v14, %v16931_v49  ;;  %v1385_v25 = vpop.f32.mrb[23].mxu0  ;;  %v14078_v6 = vld [vmem:[%s20324_s0 + $0x910] sm:$0x1] }
 0x10a   :  { %v1315_v30 = vadd.f32 %v1314_v22, %v16974_v4  ;;  %7176 = vmatprep.mubr.f32.mxu0 %v20334_v3  ;;  %14811 = vmatprep.mubr.msk.f32.mxu1 %vm104_vm3, %v16658_v38  ;;  %v1386_v32 = vadd.f32 %v1385_v25, %v16931_v49  ;;  %v17327_v33 = vpack.c.bf16 %v1189_v9, %v1182_v5  ;;  %v14071_v5 = vld [vmem:[%s20324_s0 + $0x788] sm:$0xff] }
 0x10b   :  { %20432 = vst [vmem:[#allocation12_spill] sm:$0xff] %v17309_v21  ;;  %v1553_v36 = vmax.f32 %v1313_v18, 0.0  ;;  %v1548_v59 = vmax.f32 %v1384_v23, 0.0  ;;  %v15359_v15 = vpack.c.bf16 %v14052_v56, %v14045_v42  ;;  %v15371_v23 = vpack.c.bf16 %v14078_v6, %v14071_v5 }
 0x10c   :  { %20433 = vst [vmem:[#allocation13_spill] sm:$0xff] %v17327_v33  ;;  %v1554_v31 = vmax.f32 %v1315_v30, 0.0  ;;  %v1460_v47 = vpop.f32.mrb[24].mxu1  ;;  %v1389_v48 = vpop.f32.mrb[24].mxu0  ;;  %v1549_v10 = vmax.f32 %v1386_v32, 0.0 }
 0x10d   :  { %v17341_v58 = vpack.c.bf16 %v1553_v36, %v1546_v35  ;;  %v1462_v61 = vpop.f32.mrb[25].mxu1  ;;  %14034 = vmatmul.mubr.msk.f32.vlgmr.msra.gmra.mrb[130].mxu0 %vm104_vm3, %v16658_v38  ;;  %14812 = vmatmul.mubr.msk.f32.vlgmr.msra.gmra.mrb[130].mxu1 %vm104_vm3, %v16726_v53  ;;  %v1390_v62 = vadd.f32 %v1389_v48, %v16974_v4  ;;  %v1391_v63 = vpop.f32.mrb[25].mxu0  ;;  %v1461_v9 = vadd.f32 %v1460_v47, %v16931_v49  ;;  %v14069_v35 = vld [vmem:[%s20324_s0 + $0x778] sm:$0xff]  ;;  %v14076_v36 = vld [vmem:[%s20324_s0 + $0x900] sm:$0x1] }
 0x10e   :  { %15346 = vmatpush1.bf16.msk.msra.mxu1 %vm15648_vm2, %v15344_v50  ;;  %7182 = vmatprep.mubr.f32.mxu0 %v20334_v3  ;;  %v1392_v11 = vadd.f32 %v1391_v63, %v16974_v4  ;;  %v17358_v13 = vpack.c.bf16 %v1554_v31, %v1547_v46  ;;  %v1463_v16 = vadd.f32 %v1462_v61, %v16931_v49  ;;  %v14077_v47 = vld [vmem:[%s20324_s0 + $0x908] sm:$0x1]  ;;  %v14074_v48 = vld [vmem:[%s20324_s0 + $0x7a0] sm:$0xff]  ;;  %v14224_v33 = vld [vmem:[%s20324_s0 + $0xbb8] sm:$0x1] }
 0x10f   :  { %20434 = vst [vmem:[#allocation14_spill] sm:$0xff] %v17341_v58  ;;  %7398 = vmatprep.mubr.f32.mxu1 %v20334_v3  ;;  %v1555_v14 = vmax.f32 %v1390_v62, 0.0  ;;  %15355 = vmatprep.subr.msk.bf16.mxu1 %vm15648_vm2, %v15353_v17  ;;  %v1550_v42 = vmax.f32 %v1461_v9, 0.0  ;;  %v15365_v62 = vpack.c.bf16 %v14076_v36, %v14069_v35  ;;  %v14081_v63 = vld [vmem:[%s20324_s0 + $0x928] sm:$0x1] }
 0x110   :  { %20435 = vst [vmem:[#allocation15_spill] sm:$0xff] %v17358_v13  ;;  %v1466_v50 = vpop.f32.mrb[26].mxu1  ;;  %v1556_v18 = vmax.f32 %v1392_v11, 0.0  ;;  %15352 = vmatpush1.bf16.msk.msra.mxu0 %vm15648_vm2, %v15350_v54  ;;  %v14708_v22 = vpop.f32.mrb[26].mxu0  ;;  %v1551_v5 = vmax.f32 %v1463_v16, 0.0  ;;  %v17412_v11 = vld [vmem:[%s20325_s1] sm:$0xff] }
 0x111   :  { %v1467_v25 = vadd.f32 %v1466_v50, %v16974_v4  ;;  %v17368_v27 = vpack.c.bf16 %v1555_v14, %v1548_v59  ;;  %v1468_v29 = vpop.f32.mrb[27].mxu1  ;;  %14035 = vmatmul.mubr.msk.f32.gmra.mrb[132].mxu0 %vm104_vm3, %v16726_v53  ;;  %14055 = vmatmul.mubr.msk.f32.vlgmr.msra.gmra.mrb[132].mxu1 %vm104_vm3, %v16658_v38  ;;  %v1543_v30 = vadd.f32 %v14708_v22, %v16974_v4  ;;  %v1537_v32 = vpop.f32.mrb[27].mxu0  ;;  %v14068_v14 = vld [vmem:[%s20324_s0 + $0x770] sm:$0xff]  ;;  %v14075_v16 = vld [vmem:[%s20324_s0 + $0x8f8] sm:$0x1] }
 0x112   :  { %v1469_v17 = vadd.f32 %v1468_v29, %v16974_v4  ;;  %15358 = vmatpush1.bf16.msk.msra.mxu1 %vm15648_vm2, %v15356_v12  ;;  %7404 = vmatprep.mubr.f32.mxu1 %v20334_v3  ;;  %v1538_v38 = vadd.f32 %v1537_v32, %v16931_v49  ;;  %v17389_v40 = vpack.c.bf16 %v1556_v18, %v1549_v10  ;;  %v14080_v29 = vld [vmem:[%s20324_s0 + $0x920] sm:$0x1] }
 0x113   :  { %20436 = vst [vmem:[#allocation16_spill] sm:$0xff] %v17368_v27  ;;  %v1557_v46 = vmax.f32 %v1467_v25, 0.0  ;;  %7475 = vmatprep.mubr.f32.mxu0 %v20334_v3  ;;  %v1559_v31 = vmax.f32 %v1543_v30, 0.0  ;;  %15361 = vmatprep.subr.msk.bf16.mxu0 %vm15648_vm2, %v15359_v15  ;;  %v15374_v50 = vpack.c.bf16 %v14077_v47, %v14070_v37  ;;  %v14073_v25 = vld [vmem:[%s20324_s0 + $0x798] sm:$0xff]  ;;  %v17448_v37 = vld [vmem:[%s20325_s1 + $0x8] sm:$0xff] }
 0x114   :  { %20437 = vst [vmem:[#allocation17_spill] sm:$0xff] %v17389_v40  ;;  %v1558_v54 = vmax.f32 %v1469_v17, 0.0  ;;  %v1752_v56 = vpop.f32.mrb[28].mxu1  ;;  %15373 = vmatprep.subr.msk.bf16.mxu1 %vm15648_vm2, %v15371_v23  ;;  %v1552_v61 = vmax.f32 %v1538_v38, 0.0  ;;  %v1675_v59 = vpop.f32.mrb[28].mxu0  ;;  %v17431_v23 = vpack.c.bf16 %v14081_v63, %v14074_v48 }
 0x115   :  { %v17405_v6 = vpack.c.bf16 %v1557_v46, %v1550_v42  ;;  %v1754_v10 = vpop.f32.mrb[29].mxu1  ;;  %14056 = vmatmul.mubr.msk.f32.gmra.mrb[134].mxu1 %vm104_vm3, %v16726_v53  ;;  %14059 = vmatmul.mubr.msk.f32.vlgmr.msra.gmra.mrb[134].mxu0 %vm104_vm3, %v17412_v11  ;;  %v1676_v12 = vadd.f32 %v1675_v59, %v16931_v49  ;;  %v1677_v9 = vpop.f32.mrb[29].mxu0  ;;  %v1753_v18 = vadd.f32 %v1752_v56, %v16931_v49  ;;  %v14079_v56 = vld [vmem:[%s20324_s0 + $0x918] sm:$0x1] }
 0x116   :  { %7481 = vmatprep.mubr.f32.mxu0 %v20334_v3  ;;  %7552 = vmatprep.mubr.f32.mxu1 %v20334_v3  ;;  %v17425_v53 = vpack.c.bf16 %v1559_v31, %v1552_v61  ;;  %v1678_v22 = vadd.f32 %v1677_v9, %v16931_v49  ;;  %v17439_v30 = vpack.c.bf16 %v1558_v54, %v1551_v5  ;;  %v14072_v5 = vld [vmem:[%s20324_s0 + $0x790] sm:$0xff] }
 0x117   :  { %20438 = vst [vmem:[#allocation18_spill] sm:$0xff] %v17405_v6  ;;  %15364 = vmatpush3.bf16.msk.msra.mxu0 %vm15648_vm2, %v15359_v15  ;;  %v15368_v15 = vpack.c.bf16 %v14075_v16, %v14068_v14  ;;  %v1755_v36 = vadd.f32 %v1754_v10, %v16931_v49  ;;  %v1915_v42 = vmax.f32 %v1676_v12, 0.0  ;;  %v15377_v54 = vpack.c.bf16 %v14080_v29, %v14073_v25  ;;  %v14098_v10 = vld [vmem:[%s20324_s0 + $0x938] sm:$0xff] }
 0x118   :  { %20439 = vst [vmem:[#allocation19_spill] sm:$0xff] %v17425_v53  ;;  %20440 = vst [vmem:[#allocation20_spill] sm:$0xff] %v17439_v30  ;;  %v1758_v32 = vpop.f32.mrb[30].mxu1  ;;  %v1681_v35 = vpop.f32.mrb[30].mxu0  ;;  %15367 = vmatprep.subr.msk.bf16.mxu0 %vm15648_vm2, %v15365_v62  ;;  %v1917_v61 = vmax.f32 %v1753_v18, 0.0  ;;  %v1916_v62 = vmax.f32 %v1678_v22, 0.0 }
 0x119   :  { %v1759_v17 = vadd.f32 %v1758_v32, %v16974_v4  ;;  %v1760_v38 = vpop.f32.mrb[31].mxu1  ;;  %14060 = vmatmul.mubr.msk.f32.gmra.mrb[136].mxu0 %vm104_vm3, %v17448_v37  ;;  %14063 = vmatmul.mubr.msk.f32.vlgmr.msra.gmra.mrb[136].mxu1 %vm104_vm3, %v17412_v11  ;;  %v1682_v46 = vadd.f32 %v1681_v35, %v16974_v4  ;;  %v1683_v31 = vpop.f32.mrb[31].mxu0  ;;  %v1918_v18 = vmax.f32 %v1755_v36, 0.0  ;;  %v14107_v36 = vld [vmem:[%s20324_s0 + $0xad0] sm:$0x1] }
 0x11a   :  { %v1761_v47 = vadd.f32 %v1760_v38, %v16974_v4  ;;  %15376 = vmatpush1.bf16.msk.msra.mxu1 %vm15648_vm2, %v15374_v50  ;;  %7558 = vmatprep.mubr.f32.mxu1 %v20334_v3  ;;  %v1684_v48 = vadd.f32 %v1683_v31, %v16974_v4  ;;  %v14105_v50 = vld [vmem:[%s20324_s0 + $0xac0] sm:$0x1] }
 0x11b   :  { %v1924_v59 = vmax.f32 %v1759_v17, 0.0  ;;  %14818 = vmatprep.mubr.msk.f32.mxu0 %vm104_vm3, %v17412_v11  ;;  %v1922_v63 = vmax.f32 %v1682_v46, 0.0  ;;  %15385 = vmatprep.subr.msk.bf16.mxu1 %vm15648_vm2, %v17431_v23  ;;  %v14100_v17 = vld [vmem:[%s20324_s0 + $0x948] sm:$0xff] }
 0x11c   :  { %v1925_v12 = vmax.f32 %v1761_v47, 0.0  ;;  %v14715_v9 = vpop.f32.mrb[32].mxu1  ;;  %v1923_v14 = vmax.f32 %v1684_v48, 0.0  ;;  %v1829_v16 = vpop.f32.mrb[32].mxu0  ;;  %v15380_v47 = vpack.c.bf16 %v14079_v56, %v14072_v5  ;;  %v14104_v5 = vld [vmem:[%s20324_s0 + $0xab8] sm:$0x1] }
 0x11d   :  { %v17477_v22 = vpack.c.bf16 %v1924_v59, %v1917_v61  ;;  %v1912_v25 = vadd.f32 %v14715_v9, %v16974_v4  ;;  %v17480_v29 = vpack.c.bf16 %v1922_v63, %v1915_v42  ;;  %v1906_v32 = vpop.f32.mrb[33].mxu1  ;;  %14064 = vmatmul.mubr.msk.f32.gmra.mrb[138].mxu1 %vm104_vm3, %v17448_v37  ;;  %14819 = vmatmul.mubr.msk.f32.vlgmr.msra.gmra.mrb[138].mxu0 %vm104_vm3, %v17448_v37  ;;  %v1831_v35 = vpop.f32.mrb[33].mxu0 }
 0x11e   :  { %v1907_v38 = vadd.f32 %v1906_v32, %v16931_v49  ;;  %15370 = vmatpush1.bf16.msk.msra.mxu0 %vm15648_vm2, %v15368_v15  ;;  %7774 = vmatprep.mubr.f32.mxu0 %v20334_v3  ;;  %v1830_v42 = vadd.f32 %v1829_v16, %v16931_v49  ;;  %v1832_v46 = vadd.f32 %v1831_v35, %v16931_v49 }
 0x11f   :  { %20441 = vst [vmem:[#allocation21_spill] sm:$0xff] %v17477_v22  ;;  %20442 = vst [vmem:[#allocation22_spill] sm:$0xff] %v17480_v29  ;;  %v1928_v31 = vmax.f32 %v1912_v25, 0.0  ;;  %7851 = vmatprep.mubr.f32.mxu1 %v20334_v3  ;;  %15379 = vmatprep.subr.msk.bf16.mxu0 %vm15648_vm2, %v15377_v54  ;;  %v17501_v48 = vpack.c.bf16 %v1923_v14, %v1916_v62  ;;  %v17503_v61 = vpack.c.bf16 %v1925_v12, %v1918_v18  ;;  %v14097_v62 = vld [vmem:[%s20324_s0 + $0x930] sm:$0xff]  ;;  %v14106_v25 = vld [vmem:[%s20324_s0 + $0xac8] sm:$0x1] }
 0x120   :  { %v1921_v59 = vmax.f32 %v1907_v38, 0.0  ;;  %v2044_v63 = vpop.f32.mrb[34].mxu1  ;;  %v1835_v15 = vpop.f32.mrb[34].mxu0  ;;  %v15389_v9 = vpack.c.bf16 %v14105_v50, %v14098_v10  ;;  %v15395_v32 = vpack.c.bf16 %v14107_v36, %v14100_v17  ;;  %v1919_v16 = vmax.f32 %v1830_v42, 0.0  ;;  %v14099_v42 = vld [vmem:[%s20324_s0 + $0x940] sm:$0xff] }
 0x121   :  { %20443 = vst [vmem:[#allocation23_spill] sm:$0xff] %v17501_v48  ;;  %20444 = vst [vmem:[#allocation24_spill] sm:$0xff] %v17503_v61  ;;  %v2046_v8 = vpop.f32.mrb[35].mxu1  ;;  %14084 = vmatmul.mubr.msk.f32.vlgmr.msra.gmra.mrb[140].mxu0 %vm104_vm3, %v17412_v11  ;;  %14088 = vmatmul.mubr.msk.f32.vlgmr.msra.gmra.mrb[140].mxu1 %vm104_vm3, %v17412_v11  ;;  %v1836_v54 = vadd.f32 %v1835_v15, %v16974_v4  ;;  %v1837_v56 = vpop.f32.mrb[35].mxu0  ;;  %v1920_v12 = vmax.f32 %v1832_v46, 0.0  ;;  %v2045_v50 = vadd.f32 %v2044_v63, %v16931_v49  ;;  %v14102_v15 = vld [vmem:[%s20324_s0 + $0x958] sm:$0xff] }
 0x122   :  { %v17516_v10 = vpack.c.bf16 %v1928_v31, %v1921_v59  ;;  %15388 = vmatpush3.bf16.msk.msra.mxu1 %vm15648_vm2, %v17431_v23  ;;  %7780 = vmatprep.mubr.f32.mxu0 %v20334_v3  ;;  %v1838_v14 = vadd.f32 %v1837_v56, %v16974_v4  ;;  %v2047_v35 = vadd.f32 %v2046_v8, %v16931_v49  ;;  %v14109_v46 = vld [vmem:[%s20324_s0 + $0xae0] sm:$0x1] }
 0x123   :  { %7857 = vmatprep.mubr.f32.mxu1 %v20334_v3  ;;  %v1926_v18 = vmax.f32 %v1836_v54, 0.0  ;;  %15382 = vmatpush1.bf16.msk.msra.mxu0 %vm15648_vm2, %v15380_v47  ;;  %v15392_v36 = vpack.c.bf16 %v14104_v5, %v14097_v62  ;;  %v2284_v62 = vmax.f32 %v2045_v50, 0.0 }
 0x124   :  { %20445 = vst [vmem:[#allocation25_spill] sm:$0xff] %v17516_v10  ;;  %v2050_v23 = vpop.f32.mrb[36].mxu1  ;;  %v1927_v17 = vmax.f32 %v1838_v14, 0.0  ;;  %15391 = vmatprep.subr.msk.bf16.mxu1 %vm15648_vm2, %v15389_v9  ;;  %v2121_v38 = vpop.f32.mrb[36].mxu0  ;;  %15397 = vmatprep.subr.msk.bf16.mxu0 %vm15648_vm2, %v15395_v32  ;;  %v14103_v9 = vld [vmem:[%s20324_s0 + $0x960] sm:$0xff]  ;;  %v15398_v14 = vpack.c.bf16 %v14106_v25, %v14099_v42 }
 0x125   :  { %v2051_v8 = vadd.f32 %v2050_v23, %v16974_v4  ;;  %v17542_v31 = vpack.c.bf16 %v1926_v18, %v1919_v16  ;;  %v2052_v47 = vpop.f32.mrb[37].mxu1  ;;  %14085 = vmatmul.mubr.msk.f32.gmra.mrb[142].mxu0 %vm104_vm3, %v17448_v37  ;;  %14089 = vmatmul.mubr.msk.f32.gmra.mrb[142].mxu1 %vm104_vm3, %v17448_v37  ;;  %v2122_v59 = vadd.f32 %v2121_v38, %v16931_v49  ;;  %v2123_v63 = vpop.f32.mrb[37].mxu0  ;;  %v14110_v32 = vld [vmem:[%s20324_s0 + $0xae8] sm:$0x1]  ;;  %v14101_v18 = vld [vmem:[%s20324_s0 + $0x950] sm:$0xff]  ;;  %v2285_v23 = vmax.f32 %v2047_v35, 0.0 }
 0x126   :  { %v2053_v16 = vadd.f32 %v2052_v47, %v16974_v4  ;;  %7928 = vmatprep.mubr.f32.mxu0 %v20334_v3  ;;  %14825 = vmatprep.mubr.msk.f32.mxu1 %vm104_vm3, %v17412_v11  ;;  %v2124_v54 = vadd.f32 %v2123_v63, %v16931_v49  ;;  %v17563_v56 = vpack.c.bf16 %v1927_v17, %v1920_v12  ;;  %v14108_v3 = vld [vmem:[%s20324_s0 + $0xad8] sm:$0x1]  ;;  %v14129_v42 = vld [vmem:[%s20324_s0 + $0x980] sm:$0xff]  ;;  %v20449_v63 = vmov 0.0  }
 0x127   :  { %20446 = vst [vmem:[#allocation26_spill] sm:$0xff] %v17542_v31  ;;  %v2291_v5 = vmax.f32 %v2051_v8, 0.0  ;;  %v15401_v31 = vpack.c.bf16 %v14109_v46, %v14102_v15  ;;  %v17571_v22 = vpack.c.bf16 %v14110_v32, %v14103_v9  ;;  %v2286_v25 = vmax.f32 %v2122_v59, 0.0  ;;  %v14136_v46 = vld [vmem:[%s20324_s0 + $0xb08] sm:$0x1] }
 0x128   :  { %20447 = vst [vmem:[#allocation27_spill] sm:$0xff] %v17563_v56  ;;  %v2292_v38 = vmax.f32 %v2053_v16, 0.0  ;;  %v2198_v10 = vpop.f32.mrb[38].mxu1  ;;  %v2127_v47 = vpop.f32.mrb[38].mxu0  ;;  %v2287_v8 = vmax.f32 %v2124_v54, 0.0  ;;  %v15404_v16 = vpack.c.bf16 %v14108_v3, %v14101_v18 }
 0x129   :  { %v17573_v12 = vpack.c.bf16 %v2291_v5, %v2284_v62  ;;  %v2200_v50 = vpop.f32.mrb[39].mxu1  ;;  %14092 = vmatmul.mubr.msk.f32.vlgmr.msra.gmra.mrb[144].mxu0 %vm104_vm3, %v17412_v11  ;;  %14826 = vmatmul.mubr.msk.f32.vlgmr.msra.gmra.mrb[144].mxu1 %vm104_vm3, %v17448_v37  ;;  %v2128_v35 = vadd.f32 %v2127_v47, %v16974_v4  ;;  %v2129_v17 = vpop.f32.mrb[39].mxu0  ;;  %v2199_v9 = vadd.f32 %v2198_v10, %v16931_v49  ;;  %v14134_v18 = vld [vmem:[%s20324_s0 + $0xaf8] sm:$0x1] }
 0x12a   :  { %15394 = vmatpush1.bf16.msk.msra.mxu1 %vm15648_vm2, %v15392_v36  ;;  %7934 = vmatprep.mubr.f32.mxu0 %v20449_v63  ;;  %v2130_v15 = vadd.f32 %v2129_v17, %v16974_v4  ;;  %v17590_v59 = vpack.c.bf16 %v2292_v38, %v2285_v23  ;;  %v2201_v62 = vadd.f32 %v2200_v50, %v16931_v49 }
 0x12b   :  { %20448 = vst [vmem:[#allocation28_spill] sm:$0xff] %v17573_v12  ;;  %8144 = vmatprep.mubr.f32.mxu1 %v20449_v63  ;;  %v2293_v32 = vmax.f32 %v2128_v35, 0.0  ;;  %15400 = vmatpush1.bf16.msk.msra.mxu0 %vm15648_vm2, %v15398_v14  ;;  %v15419_v10 = vpack.c.bf16 %v14136_v46, %v14129_v42  ;;  %v14127_v14 = vld [vmem:[%s20324_s0 + $0x970] sm:$0xff]  ;;  %v2288_v17 = vmax.f32 %v2199_v9, 0.0 }
 0x12c   :  { %20450 = vst [vmem:[#allocation29_spill] sm:$0xff] %v17590_v59  ;;  %v2204_v5 = vpop.f32.mrb[40].mxu1  ;;  %v2294_v36 = vmax.f32 %v2130_v15, 0.0  ;;  %15403 = vmatprep.subr.msk.bf16.mxu1 %vm15648_vm2, %v15401_v31  ;;  %v14722_v54 = vpop.f32.mrb[40].mxu0  ;;  %15409 = vmatprep.subr.msk.bf16.mxu0 %vm15648_vm2, %v17571_v22  ;;  %v17627_v15 = vld [vmem:[%s20324_s0 + $0x968] sm:$0xff] }
 0x12d   :  { %v2205_v23 = vadd.f32 %v2204_v5, %v16974_v4  ;;  %v17603_v38 = vpack.c.bf16 %v2293_v32, %v2286_v25  ;;  %v2206_v47 = vpop.f32.mrb[41].mxu1  ;;  %14093 = vmatmul.mubr.msk.f32.gmra.mrb[146].mxu0 %vm104_vm3, %v17448_v37  ;;  %14113 = vmatmul.mubr.msk.f32.vlgmr.msra.gmra.mrb[146].mxu1 %vm104_vm3, %v17412_v11  ;;  %v2281_v3 = vadd.f32 %v14722_v54, %v16974_v4  ;;  %v2275_v31 = vpop.f32.mrb[41].mxu0  ;;  %v17632_v32 = vld [vmem:[%s20324_s0 + $0xaf0] sm:$0x1] }
 0x12e   :  { %v2207_v50 = vadd.f32 %v2206_v47, %v16974_v4  ;;  %8150 = vmatprep.mubr.f32.mxu1 %v20449_v63  ;;  %8221 = vmatprep.mubr.f32.mxu0 %v20449_v63  ;;  %v2276_v25 = vadd.f32 %v2275_v31, %v16931_v49  ;;  %v17620_v35 = vpack.c.bf16 %v2294_v36, %v2287_v8  ;;  %v14128_v8 = vld [vmem:[%s20324_s0 + $0x978] sm:$0xff]  ;;  %v2289_v47 = vmax.f32 %v2201_v62, 0.0  ;;  %v14139_v62 = vld [vmem:[%s20324_s0 + $0xb20] sm:$0x1] }
 0x12f   :  { %20451 = vst [vmem:[#allocation30_spill] sm:$0xff] %v17603_v38  ;;  %v2295_v42 = vmax.f32 %v2205_v23, 0.0  ;;  %15406 = vmatpush1.bf16.msk.msra.mxu1 %vm15648_vm2, %v15404_v16  ;;  %v2297_v46 = vmax.f32 %v2281_v3, 0.0  ;;  %v15413_v16 = vpack.c.bf16 %v14134_v18, %v14127_v14  ;;  %v14135_v23 = vld [vmem:[%s20324_s0 + $0xb00] sm:$0x1] }
 0x130   :  { %20452 = vst [vmem:[#allocation31_spill] sm:$0xff] %v17620_v35  ;;  %v2296_v9 = vmax.f32 %v2207_v50, 0.0  ;;  %v2490_v5 = vpop.f32.mrb[42].mxu1  ;;  %v2290_v36 = vmax.f32 %v2276_v25, 0.0  ;;  %v2413_v54 = vpop.f32.mrb[42].mxu0  ;;  %15421 = vmatprep.subr.msk.bf16.mxu1 %vm15648_vm2, %v15419_v10  ;;  %v14132_v10 = vld [vmem:[%s20324_s0 + $0x998] sm:$0xff] }
 0x131   :  { %v17642_v3 = vpack.c.bf16 %v2295_v42, %v2288_v17  ;;  %v2492_v31 = vpop.f32.mrb[43].mxu1  ;;  %14114 = vmatmul.mubr.msk.f32.gmra.mrb[148].mxu1 %vm104_vm3, %v17448_v37  ;;  %14117 = vmatmul.mubr.msk.f32.vlgmr.msra.gmra.mrb[148].mxu0 %vm104_vm3, %v17412_v11  ;;  %v2414_v50 = vadd.f32 %v2413_v54, %v16931_v49  ;;  %v2415_v14 = vpop.f32.mrb[43].mxu0  ;;  %v2491_v25 = vadd.f32 %v2490_v5, %v16931_v49  ;;  %v14131_v54 = vld [vmem:[%s20324_s0 + $0x990] sm:$0xff] }
 0x132   :  { %8227 = vmatprep.mubr.f32.mxu0 %v20449_v63  ;;  %8298 = vmatprep.mubr.f32.mxu1 %v20449_v63  ;;  %v17657_v18 = vpack.c.bf16 %v2297_v46, %v2290_v36  ;;  %v2416_v17 = vadd.f32 %v2415_v14, %v16931_v49  ;;  %v15422_v42 = vpack.c.bf16 %v14135_v23, %v14128_v8 }
 0x133   :  { %20453 = vst [vmem:[#allocation32_spill] sm:$0xff] %v17642_v3  ;;  %15412 = vmatpush3.bf16.msk.msra.mxu0 %vm15648_vm2, %v17571_v22  ;;  %v14138_v3 = vld [vmem:[%s20324_s0 + $0xb18] sm:$0x1]  ;;  %v17670_v38 = vpack.c.bf16 %v2296_v9, %v2289_v47  ;;  %v15416_v22 = vpack.c.bf16 %v17632_v32, %v17627_v15  ;;  %v17676_v5 = vpack.c.bf16 %v14139_v62, %v14132_v10  ;;  %v2653_v9 = vmax.f32 %v2414_v50, 0.0 }
 0x134   :  { %20454 = vst [vmem:[#allocation33_spill] sm:$0xff] %v17657_v18  ;;  %v2496_v46 = vpop.f32.mrb[44].mxu1  ;;  %v2419_v36 = vpop.f32.mrb[44].mxu0  ;;  %15415 = vmatprep.subr.msk.bf16.mxu0 %vm15648_vm2, %v15413_v16  ;;  %v2493_v8 = vadd.f32 %v2492_v31, %v16931_v49  ;;  %v15425_v32 = vpack.c.bf16 %v14138_v3, %v14131_v54  ;;  %v14137_v31 = vld [vmem:[%s20324_s0 + $0xb10] sm:$0x1]  ;;  %v2655_v10 = vmax.f32 %v2491_v25, 0.0 }
 0x135   :  { %20455 = vst [vmem:[#allocation34_spill] sm:$0xff] %v17670_v38  ;;  %v2497_v23 = vadd.f32 %v2496_v46, %v16974_v4  ;;  %v2498_v14 = vpop.f32.mrb[45].mxu1  ;;  %14118 = vmatmul.mubr.msk.f32.gmra.mrb[150].mxu0 %vm104_vm3, %v17448_v37  ;;  %14121 = vmatmul.mubr.msk.f32.vlgmr.msra.gmra.mrb[150].mxu1 %vm104_vm3, %v17412_v11  ;;  %v2420_v47 = vadd.f32 %v2419_v36, %v16974_v4  ;;  %v2421_v16 = vpop.f32.mrb[45].mxu0  ;;  %v2654_v50 = vmax.f32 %v2416_v17, 0.0  ;;  %v14130_v36 = vld [vmem:[%s20324_s0 + $0x988] sm:$0xff] }
 0x136   :  { %v2499_v18 = vadd.f32 %v2498_v14, %v16974_v4  ;;  %8304 = vmatprep.mubr.f32.mxu1 %v20449_v63  ;;  %14832 = vmatprep.mubr.msk.f32.mxu0 %vm104_vm3, %v17412_v11  ;;  %v2422_v15 = vadd.f32 %v2421_v16, %v16974_v4  ;;  %v14156_v14 = vld [vmem:[%s20324_s0 + $0x9a8] sm:$0xff]  ;;  %v14163_v25 = vld [vmem:[%s20324_s0 + $0xb30] sm:$0x1]  ;;  %v2656_v17 = vmax.f32 %v2493_v8, 0.0  ;;  %v14165_v8 = vld [vmem:[%s20324_s0 + $0xb40] sm:$0x1] }
 0x137   :  { %v2662_v62 = vmax.f32 %v2497_v23, 0.0  ;;  %v2660_v46 = vmax.f32 %v2420_v47, 0.0  ;;  %15424 = vmatpush1.bf16.msk.msra.mxu1 %vm15648_vm2, %v15422_v42  ;;  %v15437_v59 = vpack.c.bf16 %v14163_v25, %v14156_v14 }
 0x138   :  { %v2663_v3 = vmax.f32 %v2499_v18, 0.0  ;;  %v14729_v54 = vpop.f32.mrb[46].mxu1  ;;  %v2661_v16 = vmax.f32 %v2422_v15, 0.0  ;;  %v2567_v38 = vpop.f32.mrb[46].mxu0  ;;  %15433 = vmatprep.subr.msk.bf16.mxu1 %vm15648_vm2, %v17676_v5  ;;  %v14158_v15 = vld [vmem:[%s20324_s0 + $0x9b8] sm:$0xff] }
 0x139   :  { %v17707_v42 = vpack.c.bf16 %v2662_v62, %v2655_v10  ;;  %v2650_v23 = vadd.f32 %v14729_v54, %v16974_v4  ;;  %v17710_v47 = vpack.c.bf16 %v2660_v46, %v2653_v9  ;;  %v2644_v35 = vpop.f32.mrb[47].mxu1  ;;  %14122 = vmatmul.mubr.msk.f32.gmra.mrb[152].mxu1 %vm104_vm3, %v17448_v37  ;;  %14833 = vmatmul.mubr.msk.f32.vlgmr.msra.gmra.mrb[152].mxu0 %vm104_vm3, %v17448_v37  ;;  %v2569_v18 = vpop.f32.mrb[47].mxu0 }
 0x13a   :  { %v2645_v10 = vadd.f32 %v2644_v35, %v16931_v49  ;;  %15418 = vmatpush1.bf16.msk.msra.mxu0 %vm15648_vm2, %v15416_v22  ;;  %8541 = vmatprep.mubr.f32.mxu0 %v20449_v63  ;;  %v2568_v9 = vadd.f32 %v2567_v38, %v16931_v49  ;;  %v2570_v62 = vadd.f32 %v2569_v18, %v16931_v49 }
 0x13b   :  { %20456 = vst [vmem:[#allocation35_spill] sm:$0xff] %v17707_v42  ;;  %20457 = vst [vmem:[#allocation36_spill] sm:$0xff] %v17710_v47  ;;  %v2666_v46 = vmax.f32 %v2650_v23, 0.0  ;;  %8618 = vmatprep.mubr.f32.mxu1 %v20449_v63  ;;  %15427 = vmatprep.subr.msk.bf16.mxu0 %vm15648_vm2, %v15425_v32  ;;  %v15428_v54 = vpack.c.bf16 %v14137_v31, %v14130_v36  ;;  %v17731_v42 = vpack.c.bf16 %v2661_v16, %v2654_v50  ;;  %v14155_v50 = vld [vmem:[%s20324_s0 + $0x9a0] sm:$0xff]  ;;  %v14162_v36 = vld [vmem:[%s20324_s0 + $0xb28] sm:$0x1] }
 0x13c   :  { %v17733_v47 = vpack.c.bf16 %v2663_v3, %v2656_v17  ;;  %v2659_v35 = vmax.f32 %v2645_v10, 0.0  ;;  %v2783_v12 = vpop.f32.mrb[48].mxu1  ;;  %v2573_v22 = vpop.f32.mrb[48].mxu0  ;;  %v15443_v56 = vpack.c.bf16 %v14165_v8, %v14158_v15  ;;  %v2657_v38 = vmax.f32 %v2568_v9, 0.0  ;;  %v14164_v23 = vld [vmem:[%s20324_s0 + $0xb38] sm:$0x1] }
 0x13d   :  { %20458 = vst [vmem:[#allocation37_spill] sm:$0xff] %v17731_v42  ;;  %v2785_v61 = vpop.f32.mrb[49].mxu1  ;;  %14142 = vmatmul.mubr.msk.f32.vlgmr.msra.gmra.mrb[154].mxu0 %vm104_vm3, %v17412_v11  ;;  %14146 = vmatmul.mubr.msk.f32.vlgmr.msra.gmra.mrb[154].mxu1 %vm104_vm3, %v17412_v11  ;;  %v2574_v32 = vadd.f32 %v2573_v22, %v16974_v4  ;;  %v2575_v31 = vpop.f32.mrb[49].mxu0  ;;  %v2658_v3 = vmax.f32 %v2570_v62, 0.0  ;;  %v2784_v25 = vadd.f32 %v2783_v12, %v16931_v49  ;;  %v14167_v9 = vld [vmem:[%s20324_s0 + $0xb50] sm:$0x1] }
 0x13e   :  { %20459 = vst [vmem:[#allocation38_spill] sm:$0xff] %v17733_v47  ;;  %v17746_v14 = vpack.c.bf16 %v2666_v46, %v2659_v35  ;;  %8547 = vmatprep.mubr.f32.mxu0 %v20449_v63  ;;  %8624 = vmatprep.mubr.f32.mxu1 %v20449_v63  ;;  %v2576_v16 = vadd.f32 %v2575_v31, %v16974_v4  ;;  %v14161_v35 = vld [vmem:[%s20324_s0 + $0x9d0] sm:$0xff]  ;;  %v14168_v22 = vld [vmem:[%s20324_s0 + $0xb58] sm:$0x1]  ;;  %v14166_v47 = vld [vmem:[%s20324_s0 + $0xb48] sm:$0x1] }
 0x13f   :  { %v2664_v17 = vmax.f32 %v2574_v32, 0.0  ;;  %15430 = vmatpush1.bf16.msk.msra.mxu0 %vm15648_vm2, %v15428_v54  ;;  %15436 = vmatpush3.bf16.msk.msra.mxu1 %vm15648_vm2, %v17676_v5  ;;  %v2786_v18 = vadd.f32 %v2785_v61, %v16931_v49  ;;  %v15440_v12 = vpack.c.bf16 %v14162_v36, %v14155_v50  ;;  %v14157_v5 = vld [vmem:[%s20324_s0 + $0x9b0] sm:$0xff]  ;;  %v14160_v54 = vld [vmem:[%s20324_s0 + $0x9c8] sm:$0xff]  ;;  %v3023_v50 = vmax.f32 %v2784_v25, 0.0 }
 0x140   :  { %20460 = vst [vmem:[#allocation39_spill] sm:$0xff] %v17746_v14  ;;  %v2789_v15 = vpop.f32.mrb[50].mxu1  ;;  %v2665_v8 = vmax.f32 %v2576_v16, 0.0  ;;  %15439 = vmatprep.subr.msk.bf16.mxu1 %vm15648_vm2, %v15437_v59  ;;  %v2860_v10 = vpop.f32.mrb[50].mxu0  ;;  %15445 = vmatprep.subr.msk.bf16.mxu0 %vm15648_vm2, %v15443_v56  ;;  %v15446_v16 = vpack.c.bf16 %v14164_v23, %v14157_v5  ;;  %v17801_v42 = vpack.c.bf16 %v14168_v22, %v14161_v35  ;;  %v14187_v5 = vld [vmem:[%s20324_s0 + $0x9f0] sm:$0xff] }
 0x141   :  { %v2790_v61 = vadd.f32 %v2789_v15, %v16974_v4  ;;  %v17772_v62 = vpack.c.bf16 %v2664_v17, %v2657_v38  ;;  %v2791_v46 = vpop.f32.mrb[51].mxu1  ;;  %14143 = vmatmul.mubr.msk.f32.gmra.mrb[156].mxu0 %vm104_vm3, %v17448_v37  ;;  %14147 = vmatmul.mubr.msk.f32.gmra.mrb[156].mxu1 %vm104_vm3, %v17448_v37  ;;  %v2861_v56 = vadd.f32 %v2860_v10, %v16931_v49  ;;  %v2862_v59 = vpop.f32.mrb[51].mxu0  ;;  %v14159_v17 = vld [vmem:[%s20324_s0 + $0x9c0] sm:$0xff]  ;;  %v3024_v15 = vmax.f32 %v2786_v18, 0.0 }
 0x142   :  { %v2792_v38 = vadd.f32 %v2791_v46, %v16974_v4  ;;  %8695 = vmatprep.mubr.f32.mxu0 %v20449_v63  ;;  %14839 = vmatprep.mubr.msk.f32.mxu1 %vm104_vm3, %v17412_v11  ;;  %v2863_v32 = vadd.f32 %v2862_v59, %v16931_v49  ;;  %v17793_v31 = vpack.c.bf16 %v2665_v8, %v2658_v3 }
 0x143   :  { %20461 = vst [vmem:[#allocation40_spill] sm:$0xff] %v17772_v62  ;;  %v3030_v36 = vmax.f32 %v2790_v61, 0.0  ;;  %v15449_v62 = vpack.c.bf16 %v14167_v9, %v14160_v54  ;;  %v3025_v23 = vmax.f32 %v2861_v56, 0.0  ;;  %v14194_v9 = vld [vmem:[%s20324_s0 + $0xb78] sm:$0x1]  ;;  %v15452_v22 = vpack.c.bf16 %v14166_v47, %v14159_v17 }
 0x144   :  { %20462 = vst [vmem:[#allocation41_spill] sm:$0xff] %v17793_v31  ;;  %v3031_v10 = vmax.f32 %v2792_v38, 0.0  ;;  %v2937_v14 = vpop.f32.mrb[52].mxu1  ;;  %v2866_v46 = vpop.f32.mrb[52].mxu0  ;;  %v3026_v61 = vmax.f32 %v2863_v32, 0.0 }
 0x145   :  { %v17803_v3 = vpack.c.bf16 %v3030_v36, %v3023_v50  ;;  %v2939_v25 = vpop.f32.mrb[53].mxu1  ;;  %14150 = vmatmul.mubr.msk.f32.vlgmr.msra.gmra.mrb[158].mxu0 %vm104_vm3, %v17412_v11  ;;  %14840 = vmatmul.mubr.msk.f32.vlgmr.msra.gmra.mrb[158].mxu1 %vm104_vm3, %v17448_v37  ;;  %v2867_v18 = vadd.f32 %v2866_v46, %v16974_v4  ;;  %v2868_v8 = vpop.f32.mrb[53].mxu0  ;;  %v2938_v54 = vadd.f32 %v2937_v14, %v16931_v49  ;;  %v14192_v17 = vld [vmem:[%s20324_s0 + $0xb68] sm:$0x1] }
 0x146   :  { %15442 = vmatpush1.bf16.msk.msra.mxu1 %vm15648_vm2, %v15440_v12  ;;  %8701 = vmatprep.mubr.f32.mxu0 %v20449_v63  ;;  %v2869_v59 = vadd.f32 %v2868_v8, %v16974_v4  ;;  %v17820_v56 = vpack.c.bf16 %v3031_v10, %v3024_v15  ;;  %v2940_v38 = vadd.f32 %v2939_v25, %v16931_v49 }
 0x147   :  { %8938 = vmatprep.mubr.f32.mxu1 %v20449_v63  ;;  %v3032_v35 = vmax.f32 %v2867_v18, 0.0  ;;  %15448 = vmatpush1.bf16.msk.msra.mxu0 %vm15648_vm2, %v15446_v16  ;;  %v15467_v14 = vpack.c.bf16 %v14194_v9, %v14187_v5  ;;  %v14185_v16 = vld [vmem:[%s20324_s0 + $0x9e0] sm:$0xff]  ;;  %v3027_v18 = vmax.f32 %v2938_v54, 0.0  ;;  %v17857_v9 = vld [vmem:[%s20324_s0 + $0x9d8] sm:$0xff] }
 0x148   :  { %v2943_v50 = vpop.f32.mrb[54].mxu1  ;;  %v3033_v12 = vmax.f32 %v2869_v59, 0.0  ;;  %15451 = vmatprep.subr.msk.bf16.mxu1 %vm15648_vm2, %v15449_v62  ;;  %v14736_v32 = vpop.f32.mrb[54].mxu0  ;;  %15457 = vmatprep.subr.msk.bf16.mxu0 %vm15648_vm2, %v17801_v42  ;;  %v17862_v59 = vld [vmem:[%s20324_s0 + $0xb60] sm:$0x1] }
 0x149   :  { %v2944_v36 = vadd.f32 %v2943_v50, %v16974_v4  ;;  %v17833_v15 = vpack.c.bf16 %v3032_v35, %v3025_v23  ;;  %v2945_v10 = vpop.f32.mrb[55].mxu1  ;;  %14151 = vmatmul.mubr.msk.f32.gmra.mrb[160].mxu0 %vm104_vm3, %v17448_v37  ;;  %14171 = vmatmul.mubr.msk.f32.vlgmr.msra.gmra.mrb[160].mxu1 %vm104_vm3, %v17412_v11  ;;  %v3020_v47 = vadd.f32 %v14736_v32, %v16974_v4  ;;  %v3014_v62 = vpop.f32.mrb[55].mxu0  ;;  %v14193_v32 = vld [vmem:[%s20324_s0 + $0xb70] sm:$0x1] }
 0x14a   :  { %v2946_v46 = vadd.f32 %v2945_v10, %v16974_v4  ;;  %8944 = vmatprep.mubr.f32.mxu1 %v20449_v63  ;;  %9015 = vmatprep.mubr.f32.mxu0 %v20449_v63  ;;  %v3015_v25 = vadd.f32 %v3014_v62, %v16931_v49  ;;  %v17850_v23 = vpack.c.bf16 %v3033_v12, %v3026_v61  ;;  %v14186_v61 = vld [vmem:[%s20324_s0 + $0x9e8] sm:$0xff] }
 0x14b   :  { %v3034_v8 = vmax.f32 %v2944_v36, 0.0  ;;  %15454 = vmatpush1.bf16.msk.msra.mxu1 %vm15648_vm2, %v15452_v22  ;;  %v3036_v5 = vmax.f32 %v3020_v47, 0.0  ;;  %v15461_v22 = vpack.c.bf16 %v14192_v17, %v14185_v16  ;;  %v3028_v36 = vmax.f32 %v2940_v38, 0.0  ;;  %v14197_v38 = vld [vmem:[%s20324_s0 + $0xb90] sm:$0x1] }
 0x14c   :  { %v3035_v54 = vmax.f32 %v2946_v46, 0.0  ;;  %v3300_v35 = vpop.f32.mrb[56].mxu1  ;;  %v3029_v50 = vmax.f32 %v3015_v25, 0.0  ;;  %v3223_v12 = vpop.f32.mrb[56].mxu0  ;;  %15469 = vmatprep.subr.msk.bf16.mxu1 %vm15648_vm2, %v15467_v14  ;;  %v14190_v14 = vld [vmem:[%s20324_s0 + $0xa08] sm:$0xff] }
 0x14d   :  { %v17872_v10 = vpack.c.bf16 %v3034_v8, %v3027_v18  ;;  %v3302_v47 = vpop.f32.mrb[57].mxu1  ;;  %14172 = vmatmul.mubr.msk.f32.gmra.mrb[162].mxu1 %vm104_vm3, %v17448_v37  ;;  %14175 = vmatmul.mubr.msk.f32.vlgmr.msra.gmra.mrb[162].mxu0 %vm104_vm3, %v17412_v11  ;;  %v3224_v62 = vadd.f32 %v3223_v12, %v16931_v49  ;;  %v3225_v16 = vpop.f32.mrb[57].mxu0  ;;  %v3301_v46 = vadd.f32 %v3300_v35, %v16931_v49  ;;  %v14189_v8 = vld [vmem:[%s20324_s0 + $0xa00] sm:$0xff]  ;;  %v14196_v12 = vld [vmem:[%s20324_s0 + $0xb88] sm:$0x1] }
 0x14e   :  { %9021 = vmatprep.mubr.f32.mxu0 %v20449_v63  ;;  %9092 = vmatprep.mubr.f32.mxu1 %v20449_v63  ;;  %v17887_v17 = vpack.c.bf16 %v3036_v5, %v3029_v50  ;;  %v3226_v25 = vadd.f32 %v3225_v16, %v16931_v49  ;;  %v15470_v18 = vpack.c.bf16 %v14193_v32, %v14186_v61 }
 0x14f   :  { %15460 = vmatpush3.bf16.msk.msra.mxu0 %vm15648_vm2, %v17801_v42  ;;  %v17900_v31 = vpack.c.bf16 %v3035_v54, %v3028_v36  ;;  %v15464_v42 = vpack.c.bf16 %v17862_v59, %v17857_v9  ;;  %v17906_v35 = vpack.c.bf16 %v14197_v38, %v14190_v14  ;;  %v3303_v61 = vadd.f32 %v3302_v47, %v16931_v49  ;;  %v14195_v47 = vld [vmem:[%s20324_s0 + $0xb80] sm:$0x1] }
 0x150   :  { %v3306_v5 = vpop.f32.mrb[58].mxu1  ;;  %v3229_v50 = vpop.f32.mrb[58].mxu0  ;;  %15463 = vmatprep.subr.msk.bf16.mxu0 %vm15648_vm2, %v15461_v22  ;;  %v3463_v54 = vmax.f32 %v3224_v62, 0.0  ;;  %v15473_v59 = vpack.c.bf16 %v14196_v12, %v14189_v8  ;;  %v3465_v14 = vmax.f32 %v3301_v46, 0.0  ;;  %v3464_v62 = vmax.f32 %v3226_v25, 0.0 }
 0x151   :  { %v3307_v32 = vadd.f32 %v3306_v5, %v16974_v4  ;;  %v3308_v16 = vpop.f32.mrb[59].mxu1  ;;  %14176 = vmatmul.mubr.msk.f32.gmra.mrb[164].mxu0 %vm104_vm3, %v17448_v37  ;;  %14179 = vmatmul.mubr.msk.f32.vlgmr.msra.gmra.mrb[164].mxu1 %vm104_vm3, %v17412_v11  ;;  %v3230_v36 = vadd.f32 %v3229_v50, %v16974_v4  ;;  %v3231_v22 = vpop.f32.mrb[59].mxu0  ;;  %v14188_v50 = vld [vmem:[%s20324_s0 + $0x9f8] sm:$0xff]  ;;  %v14221_v46 = vld [vmem:[%s20324_s0 + $0xba0] sm:$0x1]  ;;  %v3466_v25 = vmax.f32 %v3303_v61, 0.0 }
 0x152   :  { %v3309_v29 = vadd.f32 %v3308_v16, %v16974_v4  ;;  %9098 = vmatprep.mubr.f32.mxu1 %v20449_v63  ;;  %14846 = vmatprep.mubr.msk.f32.mxu0 %vm104_vm3, %v17412_v11  ;;  %v3232_v9 = vadd.f32 %v3231_v22, %v16974_v4  ;;  %v14214_v16 = vld [vmem:[%s20324_s0 + $0xa18] sm:$0xff]  ;;  %v14223_v61 = vld [vmem:[%s20324_s0 + $0xbb0] sm:$0x1] }
 0x153   :  { %v3472_v38 = vmax.f32 %v3307_v32, 0.0  ;;  %v3470_v5 = vmax.f32 %v3230_v36, 0.0  ;;  %15472 = vmatpush1.bf16.msk.msra.mxu1 %vm15648_vm2, %v15470_v18  ;;  %v15485_v40 = vpack.c.bf16 %v14221_v46, %v14214_v16 }
 0x154   :  { %v3473_v8 = vmax.f32 %v3309_v29, 0.0  ;;  %v14743_v12 = vpop.f32.mrb[60].mxu1  ;;  %v3471_v22 = vmax.f32 %v3232_v9, 0.0  ;;  %v3377_v48 = vpop.f32.mrb[60].mxu0  ;;  %15481 = vmatprep.subr.msk.bf16.mxu1 %vm15648_vm2, %v17906_v35  ;;  %v14216_v9 = vld [vmem:[%s20324_s0 + $0xa28] sm:$0xff] }
 0x155   :  { %v17937_v18 = vpack.c.bf16 %v3472_v38, %v3465_v14  ;;  %v3460_v32 = vadd.f32 %v14743_v12, %v16974_v4  ;;  %v17940_v36 = vpack.c.bf16 %v3470_v5, %v3463_v54  ;;  %v3454_v53 = vpop.f32.mrb[61].mxu1  ;;  %14180 = vmatmul.mubr.msk.f32.gmra.mrb[166].mxu1 %vm104_vm3, %v17448_v37  ;;  %14847 = vmatmul.mubr.msk.f32.vlgmr.msra.gmra.mrb[166].mxu0 %vm104_vm3, %v17448_v37  ;;  %v3379_v29 = vpop.f32.mrb[61].mxu0 }
 0x156   :  { %v3455_v14 = vadd.f32 %v3454_v53, %v16931_v49  ;;  %15466 = vmatpush1.bf16.msk.msra.mxu0 %vm15648_vm2, %v15464_v42  ;;  %9335 = vmatprep.mubr.f32.mxu0 %v20449_v63  ;;  %v3378_v54 = vadd.f32 %v3377_v48, %v16931_v49  ;;  %v3380_v38 = vadd.f32 %v3379_v29, %v16931_v49 }
 0x157   :  { %v3476_v5 = vmax.f32 %v3460_v32, 0.0  ;;  %9412 = vmatprep.mubr.f32.mxu1 %v20449_v63  ;;  %15475 = vmatprep.subr.msk.bf16.mxu0 %vm15648_vm2, %v15473_v59  ;;  %v15476_v12 = vpack.c.bf16 %v14195_v47, %v14188_v50  ;;  %v17961_v6 = vpack.c.bf16 %v3471_v22, %v3464_v62  ;;  %v17963_v30 = vpack.c.bf16 %v3473_v8, %v3466_v25  ;;  %v14213_v62 = vld [vmem:[%s20324_s0 + $0xa10] sm:$0xff]  ;;  %v14220_v50 = vld [vmem:[%s20324_s0 + $0xb98] sm:$0x1]  ;;  %v14222_v32 = vld [vmem:[%s20324_s0 + $0xba8] sm:$0x1] }
 0x158   :  { %v3469_v53 = vmax.f32 %v3455_v14, 0.0  ;;  %v3606_v27 = vpop.f32.mrb[62].mxu1  ;;  %v3383_v42 = vpop.f32.mrb[62].mxu0  ;;  %v15491_v58 = vpack.c.bf16 %v14223_v61, %v14216_v9  ;;  %v3467_v48 = vmax.f32 %v3378_v54, 0.0  ;;  %v3468_v8 = vmax.f32 %v3380_v38, 0.0 }
 0x159   :  { %v3608_v13 = vpop.f32.mrb[63].mxu1  ;;  %14200 = vmatmul.mubr.msk.f32.vlgmr.msra.gmra.mrb[168].mxu0 %vm104_vm3, %v17412_v11  ;;  %14204 = vmatmul.mubr.msk.f32.vlgmr.msra.gmra.mrb[168].mxu1 %vm104_vm3, %v17412_v11  ;;  %v3384_v59 = vadd.f32 %v3383_v42, %v16974_v4  ;;  %v3385_v47 = vpop.f32.mrb[63].mxu0  ;;  %v3607_v46 = vadd.f32 %v3606_v27, %v16931_v49  ;;  %v15488_v27 = vpack.c.bf16 %v14220_v50, %v14213_v62  ;;  %v14225_v54 = vld [vmem:[%s20324_s0 + $0xbc0] sm:$0x1]  ;;  %v14226_v42 = vld [vmem:[%s20324_s0 + $0xbc8] sm:$0x1] }
 0x15a   :  { %v17976_v16 = vpack.c.bf16 %v3476_v5, %v3469_v53  ;;  %9341 = vmatprep.mubr.f32.mxu0 %v20449_v63  ;;  %9418 = vmatprep.mubr.f32.mxu1 %v20449_v63  ;;  %v3386_v22 = vadd.f32 %v3385_v47, %v16974_v4  ;;  %v3609_v29 = vadd.f32 %v3608_v13, %v16931_v49  ;;  %v14219_v53 = vld [vmem:[%s20324_s0 + $0xa40] sm:$0xff] }
 0x15b   :  { %v3474_v25 = vmax.f32 %v3384_v59, 0.0  ;;  %15478 = vmatpush1.bf16.msk.msra.mxu0 %vm15648_vm2, %v15476_v12  ;;  %15484 = vmatpush3.bf16.msk.msra.mxu1 %vm15648_vm2, %v17906_v35  ;;  %v14215_v35 = vld [vmem:[%s20324_s0 + $0xa20] sm:$0xff]  ;;  %v14218_v12 = vld [vmem:[%s20324_s0 + $0xa38] sm:$0xff]  ;;  %v3846_v62 = vmax.f32 %v3607_v46, 0.0  ;;  %v18031_v24 = vpack.c.bf16 %v14226_v42, %v14219_v53 }
 0x15c   :  { %20463 = vst [vmem:[#allocation42_spill] sm:$0xff] %v17976_v16  ;;  %v3612_v9 = vpop.f32.mrb[64].mxu1  ;;  %v3475_v61 = vmax.f32 %v3386_v22, 0.0  ;;  %15487 = vmatprep.subr.msk.bf16.mxu1 %vm15648_vm2, %v15485_v40  ;;  %v3683_v14 = vpop.f32.mrb[64].mxu0  ;;  %15493 = vmatprep.subr.msk.bf16.mxu0 %vm15648_vm2, %v15491_v58  ;;  %v15494_v22 = vpack.c.bf16 %v14222_v32, %v14215_v35  ;;  %v15497_v21 = vpack.c.bf16 %v14225_v54, %v14218_v12  ;;  %v14245_v35 = vld [vmem:[%s20324_s0 + $0xa60] sm:$0xff] }
 0x15d   :  { %v3613_v13 = vadd.f32 %v3612_v9, %v16974_v4  ;;  %v18002_v38 = vpack.c.bf16 %v3474_v25, %v3467_v48  ;;  %v3614_v5 = vpop.f32.mrb[65].mxu1  ;;  %14201 = vmatmul.mubr.msk.f32.gmra.mrb[170].mxu0 %vm104_vm3, %v17448_v37  ;;  %14205 = vmatmul.mubr.msk.f32.gmra.mrb[170].mxu1 %vm104_vm3, %v17448_v37  ;;  %v3684_v58 = vadd.f32 %v3683_v14, %v16931_v49  ;;  %v3685_v40 = vpop.f32.mrb[65].mxu0  ;;  %v14217_v25 = vld [vmem:[%s20324_s0 + $0xa30] sm:$0xff]  ;;  %v3847_v9 = vmax.f32 %v3609_v29, 0.0  ;;  %v14252_v54 = vld [vmem:[%s20324_s0 + $0xbe8] sm:$0x1] }
 0x15e   :  { %v3615_v48 = vadd.f32 %v3614_v5, %v16974_v4  ;;  %9489 = vmatprep.mubr.f32.mxu0 %v20449_v63  ;;  %14853 = vmatprep.mubr.msk.f32.mxu1 %vm104_vm3, %v17412_v11  ;;  %v3686_v59 = vadd.f32 %v3685_v40, %v16931_v49  ;;  %v18023_v47 = vpack.c.bf16 %v3475_v61, %v3468_v8 }
 0x15f   :  { %20464 = vst [vmem:[#allocation43_spill] sm:$0xff] %v18002_v38  ;;  %v3853_v50 = vmax.f32 %v3613_v13, 0.0  ;;  %v3848_v32 = vmax.f32 %v3684_v58, 0.0  ;;  %v15500_v53 = vpack.c.bf16 %v14224_v33, %v14217_v25  ;;  %v18070_v33 = vld [vmem:[%s20325_s1] sm:$0xff]  ;;  %v14243_v25 = vld [vmem:[%s20324_s0 + $0xa50] sm:$0xff] }
 0x160   :  { %20465 = vst [vmem:[#allocation44_spill] sm:$0xff] %v18023_v47  ;;  %v3854_v14 = vmax.f32 %v3615_v48, 0.0  ;;  %v3760_v0 = vpop.f32.mrb[66].mxu1  ;;  %v3689_v5 = vpop.f32.mrb[66].mxu0  ;;  %v3849_v13 = vmax.f32 %v3686_v59, 0.0 }
 0x161   :  { %v18033_v8 = vpack.c.bf16 %v3853_v50, %v3846_v62  ;;  %v3762_v46 = vpop.f32.mrb[67].mxu1  ;;  %14208 = vmatmul.mubr.msk.f32.vlgmr.msra.gmra.mrb[172].mxu0 %vm104_vm3, %v17412_v11  ;;  %14854 = vmatmul.mubr.msk.f32.vlgmr.msra.gmra.mrb[172].mxu1 %vm104_vm3, %v17448_v37  ;;  %v3690_v29 = vadd.f32 %v3689_v5, %v16974_v4  ;;  %v3691_v61 = vpop.f32.mrb[67].mxu0  ;;  %v3761_v40 = vadd.f32 %v3760_v0, %v16931_v49 }
 0x162   :  { %15490 = vmatpush1.bf16.msk.msra.mxu1 %vm15648_vm2, %v15488_v27  ;;  %9495 = vmatprep.mubr.f32.mxu0 %v20449_v63  ;;  %v3692_v11 = vadd.f32 %v3691_v61, %v16974_v4  ;;  %v18050_v58 = vpack.c.bf16 %v3854_v14, %v3847_v9  ;;  %v3763_v42 = vadd.f32 %v3762_v46, %v16931_v49  ;;  %v14250_v14 = vld [vmem:[%s20324_s0 + $0xbd8] sm:$0x1] }
 0x163   :  { %20466 = vst [vmem:[#allocation45_spill] sm:$0xff] %v18033_v8  ;;  %9732 = vmatprep.mubr.f32.mxu1 %v20449_v63  ;;  %v3855_v12 = vmax.f32 %v3690_v29, 0.0  ;;  %15496 = vmatpush1.bf16.msk.msra.mxu0 %vm15648_vm2, %v15494_v22  ;;  %v15515_v0 = vpack.c.bf16 %v14252_v54, %v14245_v35  ;;  %v14251_v35 = vld [vmem:[%s20324_s0 + $0xbe0] sm:$0x1] }
 0x164   :  { %20467 = vst [vmem:[#allocation46_spill] sm:$0xff] %v18050_v58  ;;  %v3766_v48 = vpop.f32.mrb[68].mxu1  ;;  %v3856_v27 = vmax.f32 %v3692_v11, 0.0  ;;  %15499 = vmatprep.subr.msk.bf16.mxu1 %vm15648_vm2, %v15497_v21  ;;  %v14750_v59 = vpop.f32.mrb[68].mxu0  ;;  %15505 = vmatprep.subr.msk.bf16.mxu0 %vm15648_vm2, %v18031_v24  ;;  %v3851_v54 = vmax.f32 %v3763_v42, 0.0 }
 0x165   :  { %v3767_v62 = vadd.f32 %v3766_v48, %v16974_v4  ;;  %v18063_v50 = vpack.c.bf16 %v3855_v12, %v3848_v32  ;;  %v3768_v9 = vpop.f32.mrb[69].mxu1  ;;  %14209 = vmatmul.mubr.msk.f32.gmra.mrb[174].mxu0 %vm104_vm3, %v17448_v37  ;;  %14229 = vmatmul.mubr.msk.f32.vlgmr.msra.gmra.mrb[174].mxu1 %vm104_vm3, %v18070_v33  ;;  %v3843_v21 = vadd.f32 %v14750_v59, %v16974_v4  ;;  %v3837_v22 = vpop.f32.mrb[69].mxu0  ;;  %v3850_v32 = vmax.f32 %v3761_v40, 0.0  ;;  %v14244_v40 = vld [vmem:[%s20324_s0 + $0xa58] sm:$0xff] }
 0x166   :  { %v3769_v37 = vadd.f32 %v3768_v9, %v16974_v4  ;;  %v18082_v5 = vpack.c.bf16 %v3856_v27, %v3849_v13  ;;  %9738 = vmatprep.mubr.f32.mxu1 %v20449_v63  ;;  %9809 = vmatprep.mubr.f32.mxu0 %v20449_v63  ;;  %v3838_v46 = vadd.f32 %v3837_v22, %v16931_v49  ;;  %v14248_v9 = vld [vmem:[%s20324_s0 + $0xa78] sm:$0xff] }
 0x167   :  { %20468 = vst [vmem:[#allocation47_spill] sm:$0xff] %v18063_v50  ;;  %v3857_v29 = vmax.f32 %v3767_v62, 0.0  ;;  %15502 = vmatpush1.bf16.msk.msra.mxu1 %vm15648_vm2, %v15500_v53  ;;  %v3859_v61 = vmax.f32 %v3843_v21, 0.0  ;;  %v15509_v27 = vpack.c.bf16 %v14250_v14, %v14243_v25  ;;  %v18102_v62 = vld [vmem:[%s20325_s1 + $0x8] sm:$0xff]  ;;  %v14255_v21 = vld [vmem:[%s20324_s0 + $0xc00] sm:$0x1] }
 0x168   :  { %20469 = vst [vmem:[#allocation48_spill] sm:$0xff] %v18082_v5  ;;  %v3858_v11 = vmax.f32 %v3769_v37, 0.0  ;;  %v4066_v13 = vpop.f32.mrb[70].mxu1  ;;  %v3852_v12 = vmax.f32 %v3838_v46, 0.0  ;;  %v3989_v48 = vpop.f32.mrb[70].mxu0  ;;  %15517 = vmatprep.subr.msk.bf16.mxu1 %vm15648_vm2, %v15515_v0  ;;  %v14242_v46 = vld [vmem:[%s20324_s0 + $0xa48] sm:$0xff] }
 0x169   :  { %v18097_v59 = vpack.c.bf16 %v3857_v29, %v3850_v32  ;;  %v4068_v53 = vpop.f32.mrb[71].mxu1  ;;  %14230 = vmatmul.mubr.msk.f32.gmra.mrb[176].mxu1 %vm104_vm3, %v18102_v62  ;;  %14233 = vmatmul.mubr.msk.f32.vlgmr.msra.gmra.mrb[176].mxu0 %vm104_vm3, %v18070_v33  ;;  %v3990_v42 = vadd.f32 %v3989_v48, %v16931_v49  ;;  %v3991_v0 = vpop.f32.mrb[71].mxu0  ;;  %v4067_v14 = vadd.f32 %v4066_v13, %v16931_v49  ;;  %v14249_v32 = vld [vmem:[%s20324_s0 + $0xbd0] sm:$0x1]  ;;  %v14254_v13 = vld [vmem:[%s20324_s0 + $0xbf8] sm:$0x1] }
 0x16a   :  { %v18115_v22 = vpack.c.bf16 %v3858_v11, %v3851_v54  ;;  %9815 = vmatprep.mubr.f32.mxu0 %v20449_v63  ;;  %9886 = vmatprep.mubr.f32.mxu1 %v20449_v63  ;;  %v18119_v25 = vpack.c.bf16 %v3859_v61, %v3852_v12  ;;  %v3992_v37 = vadd.f32 %v3991_v0, %v16931_v49 }
 0x16b   :  { %20470 = vst [vmem:[#allocation49_spill] sm:$0xff] %v18097_v59  ;;  %15508 = vmatpush3.bf16.msk.msra.mxu0 %vm15648_vm2, %v18031_v24  ;;  %v15518_v29 = vpack.c.bf16 %v14251_v35, %v14244_v40  ;;  %v4069_v61 = vadd.f32 %v4068_v53, %v16931_v49  ;;  %v14247_v24 = vld [vmem:[%s20324_s0 + $0xa70] sm:$0xff]  ;;  %v18141_v12 = vpack.c.bf16 %v14255_v21, %v14248_v9 }
 0x16c   :  { %20471 = vst [vmem:[#allocation50_spill] sm:$0xff] %v18115_v22  ;;  %20472 = vst [vmem:[#allocation51_spill] sm:$0xff] %v18119_v25  ;;  %v4072_v54 = vpop.f32.mrb[72].mxu1  ;;  %v3995_v11 = vpop.f32.mrb[72].mxu0  ;;  %15511 = vmatprep.subr.msk.bf16.mxu0 %vm15648_vm2, %v15509_v27  ;;  %v4229_v27 = vmax.f32 %v3990_v42, 0.0  ;;  %v4230_v25 = vmax.f32 %v3992_v37, 0.0  ;;  %v15512_v21 = vpack.c.bf16 %v14249_v32, %v14242_v46 }
 0x16d   :  { %v4073_v48 = vadd.f32 %v4072_v54, %v16974_v4  ;;  %v4074_v35 = vpop.f32.mrb[73].mxu1  ;;  %14234 = vmatmul.mubr.msk.f32.gmra.mrb[178].mxu0 %vm104_vm3, %v18102_v62  ;;  %14237 = vmatmul.mubr.msk.f32.vlgmr.msra.gmra.mrb[178].mxu1 %vm104_vm3, %v18070_v33  ;;  %v3996_v40 = vadd.f32 %v3995_v11, %v16974_v4  ;;  %v3997_v53 = vpop.f32.mrb[73].mxu0  ;;  %v14253_v54 = vld [vmem:[%s20324_s0 + $0xbf0] sm:$0x1]  ;;  %v4231_v22 = vmax.f32 %v4067_v14, 0.0  ;;  %v15521_v11 = vpack.c.bf16 %v14254_v13, %v14247_v24  ;;  %v14246_v14 = vld [vmem:[%s20324_s0 + $0xa68] sm:$0xff] }
 0x16e   :  { %v4075_v0 = vadd.f32 %v4074_v35, %v16974_v4  ;;  %9892 = vmatprep.mubr.f32.mxu1 %v20449_v63  ;;  %14860 = vmatprep.mubr.msk.f32.mxu0 %vm104_vm3, %v18070_v33  ;;  %v3998_v9 = vadd.f32 %v3997_v53, %v16974_v4  ;;  %v14279_v37 = vld [vmem:[%s20324_s0 + $0xc10] sm:$0x1]  ;;  %v4232_v35 = vmax.f32 %v4069_v61, 0.0 }
 0x16f   :  { %v4238_v42 = vmax.f32 %v4073_v48, 0.0  ;;  %v4236_v59 = vmax.f32 %v3996_v40, 0.0  ;;  %15520 = vmatpush1.bf16.msk.msra.mxu1 %vm15648_vm2, %v15518_v29  ;;  %v14272_v48 = vld [vmem:[%s20324_s0 + $0xa88] sm:$0xff] }
 0x170   :  { %v4239_v5 = vmax.f32 %v4075_v0, 0.0  ;;  %v14757_v55 = vpop.f32.mrb[74].mxu1  ;;  %v4237_v53 = vmax.f32 %v3998_v9, 0.0  ;;  %v4143_v46 = vpop.f32.mrb[74].mxu0  ;;  %15529 = vmatprep.subr.msk.bf16.mxu1 %vm15648_vm2, %v18141_v12 }
 0x171   :  { %v18168_v32 = vpack.c.bf16 %v4238_v42, %v4231_v22  ;;  %v4226_v29 = vadd.f32 %v14757_v55, %v16974_v4  ;;  %v18171_v24 = vpack.c.bf16 %v4236_v59, %v4229_v27  ;;  %v4220_v13 = vpop.f32.mrb[75].mxu1  ;;  %14238 = vmatmul.mubr.msk.f32.gmra.mrb[180].mxu1 %vm104_vm3, %v18102_v62  ;;  %14861 = vmatmul.mubr.msk.f32.vlgmr.msra.gmra.mrb[180].mxu0 %vm104_vm3, %v18102_v62  ;;  %v4145_v61 = vpop.f32.mrb[75].mxu0  ;;  %v14274_v22 = vld [vmem:[%s20324_s0 + $0xa98] sm:$0xff]  ;;  %v14281_v55 = vld [vmem:[%s20324_s0 + $0xc20] sm:$0x1] }
 0x172   :  { %v18186_v59 = vpack.c.bf16 %v4239_v5, %v4232_v35  ;;  %v4221_v27 = vadd.f32 %v4220_v13, %v16931_v49  ;;  %v18189_v40 = vpack.c.bf16 %v4237_v53, %v4230_v25  ;;  %15514 = vmatpush1.bf16.msk.msra.mxu0 %vm15648_vm2, %v15512_v21  ;;  %10129 = vmatprep.mubr.f32.mxu0 %v20449_v63 }
 0x173   :  { %20473 = vst [vmem:[#allocation52_spill] sm:$0xff] %v18168_v32  ;;  %20474 = vst [vmem:[#allocation53_spill] sm:$0xff] %v18171_v24  ;;  %v4242_v0 = vmax.f32 %v4226_v29, 0.0  ;;  %10206 = vmatprep.mubr.f32.mxu1 %v20449_v63  ;;  %v4144_v9 = vadd.f32 %v4143_v46, %v16931_v49  ;;  %v4146_v42 = vadd.f32 %v4145_v61, %v16931_v49  ;;  %15523 = vmatprep.subr.msk.bf16.mxu0 %vm15648_vm2, %v15521_v11  ;;  %v14278_v11 = vld [vmem:[%s20324_s0 + $0xc08] sm:$0x1] }
 0x174   :  { %20475 = vst [vmem:[#allocation54_spill] sm:$0xff] %v18186_v59  ;;  %20476 = vst [vmem:[#allocation55_spill] sm:$0xff] %v18189_v40  ;;  %v15524_v5 = vpack.c.bf16 %v14253_v54, %v14246_v14  ;;  %v4235_v35 = vmax.f32 %v4221_v27, 0.0  ;;  %v4372_v13 = vpop.f32.mrb[76].mxu1  ;;  %v4149_v25 = vpop.f32.mrb[76].mxu0  ;;  %v15533_v53 = vpack.c.bf16 %v14279_v37, %v14272_v48  ;;  %v15539_v59 = vpack.c.bf16 %v14281_v55, %v14274_v22  ;;  %v14271_v54 = vld [vmem:[%s20324_s0 + $0xa80] sm:$0xff] }
 0x175   :  { %v4374_v40 = vpop.f32.mrb[77].mxu1  ;;  %14258 = vmatmul.mubr.msk.f32.vlgmr.msra.gmra.mrb[182].mxu0 %vm104_vm3, %v18070_v33  ;;  %14262 = vmatmul.mubr.msk.f32.vlgmr.msra.gmra.mrb[182].mxu1 %vm104_vm3, %v18070_v33  ;;  %v4233_v21 = vmax.f32 %v4144_v9, 0.0  ;;  %v4150_v46 = vadd.f32 %v4149_v25, %v16974_v4  ;;  %v4151_v29 = vpop.f32.mrb[77].mxu0  ;;  %v4234_v14 = vmax.f32 %v4146_v42, 0.0  ;;  %v4373_v48 = vadd.f32 %v4372_v13, %v16931_v49  ;;  %v14280_v55 = vld [vmem:[%s20324_s0 + $0xc18] sm:$0x1] }
 0x176   :  { %v18210_v37 = vpack.c.bf16 %v4242_v0, %v4235_v35  ;;  %10135 = vmatprep.mubr.f32.mxu0 %v20449_v63  ;;  %10212 = vmatprep.mubr.f32.mxu1 %v20449_v63  ;;  %v4152_v61 = vadd.f32 %v4151_v29, %v16974_v4  ;;  %v4375_v27 = vadd.f32 %v4374_v40, %v16931_v49  ;;  %v14277_v29 = vld [vmem:[%s20324_s0 + $0xab0] sm:$0xff] }
 0x177   :  { %v4240_v22 = vmax.f32 %v4150_v46, 0.0  ;;  %15526 = vmatpush1.bf16.msk.msra.mxu0 %vm15648_vm2, %v15524_v5  ;;  %15532 = vmatpush3.bf16.msk.msra.mxu1 %vm15648_vm2, %v18141_v12  ;;  %v15536_v42 = vpack.c.bf16 %v14278_v11, %v14271_v54  ;;  %v14273_v12 = vld [vmem:[%s20324_s0 + $0xa90] sm:$0xff]  ;;  %v14276_v46 = vld [vmem:[%s20324_s0 + $0xaa8] sm:$0xff] }
 0x178   :  { %20477 = vst [vmem:[#allocation56_spill] sm:$0xff] %v18210_v37  ;;  %v4378_v0 = vpop.f32.mrb[78].mxu1  ;;  %v4241_v9 = vmax.f32 %v4152_v61, 0.0  ;;  %15535 = vmatprep.subr.msk.bf16.mxu1 %vm15648_vm2, %v15533_v53  ;;  %v4449_v35 = vpop.f32.mrb[78].mxu0  ;;  %15541 = vmatprep.subr.msk.bf16.mxu0 %vm15648_vm2, %v15539_v59  ;;  %v14283_v5 = vld [vmem:[%s20324_s0 + $0xc30] sm:$0x1] }
 0x179   :  { %v4379_v40 = vadd.f32 %v4378_v0, %v16974_v4  ;;  %v18236_v13 = vpack.c.bf16 %v4240_v22, %v4233_v21  ;;  %v4380_v25 = vpop.f32.mrb[79].mxu1  ;;  %14259 = vmatmul.mubr.msk.f32.gmra.mrb[184].mxu0 %vm104_vm3, %v18102_v62  ;;  %14263 = vmatmul.mubr.msk.f32.gmra.mrb[184].mxu1 %vm104_vm3, %v18102_v62  ;;  %v4450_v59 = vadd.f32 %v4449_v35, %v16931_v49  ;;  %v4451_v53 = vpop.f32.mrb[79].mxu0  ;;  %v14284_v21 = vld [vmem:[%s20324_s0 + $0xc38] sm:$0x1]  ;;  %v4612_v22 = vmax.f32 %v4373_v48, 0.0  ;;  %v14275_v37 = vld [vmem:[%s20324_s0 + $0xaa0] sm:$0xff] }
 0x17a   :  { %v4381_v54 = vadd.f32 %v4380_v25, %v16974_v4  ;;  %v18253_v11 = vpack.c.bf16 %v4241_v9, %v4234_v14  ;;  %10283 = vmatprep.mubr.f32.mxu0 %v20449_v63  ;;  %14867 = vmatprep.mubr.msk.f32.mxu1 %vm104_vm3, %v18070_v33  ;;  %v4452_v61 = vadd.f32 %v4451_v53, %v16931_v49  ;;  %v14282_v9 = vld [vmem:[%s20324_s0 + $0xc28] sm:$0x1] }
 0x17b   :  { %20478 = vst [vmem:[#allocation57_spill] sm:$0xff] %v18236_v13  ;;  %v4619_v0 = vmax.f32 %v4379_v40, 0.0  ;;  %v15542_v35 = vpack.c.bf16 %v14280_v55, %v14273_v12  ;;  %v4613_v13 = vmax.f32 %v4375_v27, 0.0  ;;  %v15545_v14 = vpack.c.bf16 %v14283_v5, %v14276_v46 }
 0x17c   :  { %20479 = vst [vmem:[#allocation58_spill] sm:$0xff] %v18253_v11  ;;  %v4620_v32 = vmax.f32 %v4381_v54, 0.0  ;;  %v4526_v24 = vpop.f32.mrb[80].mxu1  ;;  %v4455_v25 = vpop.f32.mrb[80].mxu0  ;;  %v15551_v11 = vpack.c.bf16 %v14284_v21, %v14277_v29  ;;  %v4614_v48 = vmax.f32 %v4450_v59, 0.0  ;;  %v4615_v5 = vmax.f32 %v4452_v61, 0.0 }
 0x17d   :  { %v18265_v26 = vpack.c.bf16 %v4619_v0, %v4612_v22  ;;  %v4528_v53 = vpop.f32.mrb[81].mxu1  ;;  %14266 = vmatmul.mubr.msk.f32.vlgmr.msra.gmra.mrb[186].mxu0 %vm104_vm3, %v18070_v33  ;;  %14868 = vmatmul.mubr.msk.f32.vlgmr.msra.gmra.mrb[186].mxu1 %vm104_vm3, %v18102_v62  ;;  %v4456_v55 = vadd.f32 %v4455_v25, %v16974_v4  ;;  %v4457_v27 = vpop.f32.mrb[81].mxu0  ;;  %v4527_v46 = vadd.f32 %v4526_v24, %v16931_v49  ;;  %v3066_v0 = vlaneseq }
 0x17e   :  { %v18272_v12 = vpack.c.bf16 %v4620_v32, %v4613_v13  ;;  %15538 = vmatpush1.bf16.msk.msra.mxu1 %vm15648_vm2, %v15536_v42  ;;  %10289 = vmatprep.mubr.f32.mxu0 %v20449_v63  ;;  %v4458_v40 = vadd.f32 %v4457_v27, %v16974_v4  ;;  %v15548_v59 = vpack.c.bf16 %v14282_v9, %v14275_v37 }
 0x17f   :  { %20480 = vst [vmem:[#allocation59_spill] sm:$0xff] %v18265_v26  ;;  %10525 = vmatprep.mubr.f32.mxu1 %v20449_v63  ;;  %v4621_v29 = vmax.f32 %v4456_v55, 0.0  ;;  %15544 = vmatpush1.bf16.msk.msra.mxu0 %vm15648_vm2, %v15542_v35  ;;  %v4529_v32 = vadd.f32 %v4528_v53, %v16931_v49  ;;  %v4616_v9 = vmax.f32 %v4527_v46, 0.0 }
 0x180   :  { %20481 = vst [vmem:[#allocation60_spill] sm:$0xff] %v18272_v12  ;;  %v4532_v13 = vpop.f32.mrb[82].mxu1  ;;  %v4622_v21 = vmax.f32 %v4458_v40, 0.0  ;;  %15547 = vmatprep.subr.msk.bf16.mxu1 %vm15648_vm2, %v15545_v14  ;;  %15553 = vmatprep.subr.msk.bf16.mxu0 %vm15648_vm2, %v15551_v11  ;;  %v14764_v42 = vpop.f32.mrb[82].mxu0 }
 0x181   :  { %v4533_v24 = vadd.f32 %v4532_v13, %v16974_v4  ;;  %v18288_v54 = vpack.c.bf16 %v4621_v29, %v4614_v48  ;;  %v4534_v61 = vpop.f32.mrb[83].mxu1  ;;  %14267 = vmatmul.mubr.msk.f32.gmra.mrb[188].mxu0 %vm104_vm3, %v18102_v62  ;;  %14287 = vmatmul.mubr.msk.f32.vlgmr.msra.gmra.mrb[188].mxu1 %vm104_vm3, %v18070_v33  ;;  %v4609_v37 = vadd.f32 %v14764_v42, %v16974_v4  ;;  %v4603_v22 = vpop.f32.mrb[83].mxu0  ;;  %v4617_v55 = vmax.f32 %v4529_v32, 0.0 }
 0x182   :  { %v4535_v35 = vadd.f32 %v4534_v61, %v16974_v4  ;;  %v18296_v25 = vpack.c.bf16 %v4622_v21, %v4615_v5  ;;  %10531 = vmatprep.mubr.f32.mxu1 %v20449_v63  ;;  %10602 = vmatprep.mubr.f32.mxu0 %v20449_v63  ;;  %v4604_v14 = vadd.f32 %v4603_v22, %v16931_v49  ;;  %v20484_v29 = vmov 0  }
 0x183   :  { %20482 = vst [vmem:[#allocation61_spill] sm:$0xff] %v18288_v54  ;;  %v4623_v53 = vmax.f32 %v4533_v24, 0.0  ;;  %15550 = vmatpush1.bf16.msk.msra.mxu1 %vm15648_vm2, %v15548_v59  ;;  %v4625_v48 = vmax.f32 %v4609_v37, 0.0  ;;  %v18311_v24 = vshrl.u32 %v3066_v0, 7 }
 0x184   :  { %20483 = vst [vmem:[#allocation62_spill] sm:$0xff] %v18296_v25  ;;  %v4624_v27 = vmax.f32 %v4535_v35, 0.0  ;;  %v4832_v40 = vpop.f32.mrb[84].mxu1  ;;  %10915 = vmatprep.subr.bf16.mxu1 %v20484_v29  ;;  %v4618_v13 = vmax.f32 %v4604_v14, 0.0  ;;  %v4755_v5 = vpop.f32.mrb[84].mxu0 }
 0x185   :  { %v18304_v21 = vpack.c.bf16 %v4623_v53, %v4616_v9  ;;  %v4834_v42 = vpop.f32.mrb[85].mxu1  ;;  %14288 = vmatmul.mubr.msk.f32.gmra.mrb[190].mxu1 %vm104_vm3, %v18102_v62  ;;  %14291 = vmatmul.mubr.msk.f32.vlgmr.msra.gmra.mrb[190].mxu0 %vm104_vm3, %v18070_v33  ;;  %v4756_v46 = vadd.f32 %v4755_v5, %v16931_v49  ;;  %v4757_v59 = vpop.f32.mrb[85].mxu0  ;;  %v4833_v37 = vadd.f32 %v4832_v40, %v16931_v49 }
 0x186   :  { %v18313_v32 = vpack.c.bf16 %v4624_v27, %v4617_v55  ;;  %10608 = vmatprep.mubr.f32.mxu0 %v20449_v63  ;;  %10679 = vmatprep.mubr.f32.mxu1 %v20449_v63  ;;  %v18317_v61 = vpack.c.bf16 %v4625_v48, %v4618_v13  ;;  %v4758_v22 = vadd.f32 %v4757_v59, %v16931_v49  ;;  %v3072_v27 = vsub.s32 4, %v18311_v24 }
 0x187   :  { %20485 = vst [vmem:[#allocation63_spill] sm:$0xff] %v18304_v21  ;;  %15556 = vmatpush3.bf16.msk.msra.mxu0 %vm15648_vm2, %v15551_v11  ;;  %v4835_v35 = vadd.f32 %v4834_v42, %v16931_v49  ;;  %v4995_v2 = vmax.f32 %v4756_v46, 0.0  ;;  %v20350_v42 = vsub.s32 0, %v18311_v24  ;;  %v4997_v59 = vmax.f32 %v4833_v37, 0.0 }
 0x188   :  { %20486 = vst [vmem:[#allocation64_spill] sm:$0xff] %v18313_v32  ;;  %20487 = vst [vmem:[#allocation65_spill] sm:$0xff] %v18317_v61  ;;  %v4838_v14 = vpop.f32.mrb[86].mxu1  ;;  %10968 = vmatprep.subr.bf16.mxu0 %v20484_v29  ;;  %v4761_v0 = vpop.f32.mrb[86].mxu0  ;;  %v4996_v13 = vmax.f32 %v4758_v22, 0.0 }
 0x189   :  { %v4839_v53 = vadd.f32 %v4838_v14, %v16974_v4  ;;  %v4840_v48 = vpop.f32.mrb[87].mxu1  ;;  %14292 = vmatmul.mubr.msk.f32.gmra.mrb[192].mxu0 %vm104_vm3, %v18102_v62  ;;  %14295 = vmatmul.mubr.msk.f32.vlgmr.msra.gmra.mrb[192].mxu1 %vm104_vm3, %v18070_v33  ;;  %v4762_v11 = vadd.f32 %v4761_v0, %v16974_v4  ;;  %v4763_v55 = vpop.f32.mrb[87].mxu0  ;;  %v3062_v0 = vsel %vm18327_vm4, 65537, %v20484_v29 }
 0x18a   :  { %v4841_v40 = vadd.f32 %v4840_v48, %v16974_v4  ;;  %10916 = vmatpush1.bf16.msra.mxu1 %v20484_v29  ;;  %10685 = vmatprep.mubr.f32.mxu1 %v20449_v63  ;;  %v4764_v5 = vadd.f32 %v4763_v55, %v16974_v4  ;;  %v4998_v48 = vmax.f32 %v4835_v35, 0.0  ;;  %v18351_v55 = vrot.slane %v3062_v0, %v20350_v42 }
 0x18b   :  { %v5004_v14 = vmax.f32 %v4839_v53, 0.0  ;;  %14874 = vmatprep.mubr.msk.f32.mxu0 %vm104_vm3, %v18070_v33  ;;  %10917 = vmatprep.subr.bf16.mxu1 %v20484_v29  ;;  %v5002_v46 = vmax.f32 %v4762_v11, 0.0 }
 0x18c   :  { %v5005_v22 = vmax.f32 %v4841_v40, 0.0  ;;  %v14771_v61 = vpop.f32.mrb[88].mxu1  ;;  %v5003_v63 = vmax.f32 %v4764_v5, 0.0  ;;  %v4909_v37 = vpop.f32.mrb[88].mxu0  ;;  %vm3094_vm5 = vcmp.ne.s16.totalorder %v18351_v55, 0 }
 0x18d   :  { %v18353_v53 = vpack.c.bf16 %v5004_v14, %v4997_v59  ;;  %v4992_v33 = vadd.f32 %v14771_v61, %v16974_v4  ;;  %v18356_v32 = vpack.c.bf16 %v5002_v46, %v4995_v2  ;;  %v4986_v11 = vpop.f32.mrb[89].mxu1  ;;  %14296 = vmatmul.mubr.msk.f32.gmra.mrb[194].mxu1 %vm104_vm3, %v18102_v62  ;;  %14875 = vmatmul.mubr.msk.f32.vlgmr.msra.gmra.mrb[194].mxu0 %vm104_vm3, %v18102_v62  ;;  %v4911_v35 = vpop.f32.mrb[89].mxu0 }
 0x18e   :  { %v18362_v9 = vpack.c.bf16 %v5005_v22, %v4998_v48  ;;  %v4987_v40 = vadd.f32 %v4986_v11, %v16931_v49  ;;  %10918 = vmatpush1.bf16.msra.mxu1 %v20484_v29  ;;  %10969 = vmatpush1.bf16.msra.mxu0 %v20484_v29  ;;  %v18367_v5 = vpack.c.bf16 %v5003_v63, %v4996_v13 }
 0x18f   :  { %20490 = vst [vmem:[#allocation66_spill] sm:$0xff] %v18353_v53  ;;  %20491 = vst [vmem:[#allocation67_spill] sm:$0xff] %v18356_v32  ;;  %v5008_v61 = vmax.f32 %v4992_v33, 0.0  ;;  %10919 = vmatprep.subr.bf16.mxu1 %v20484_v29  ;;  %10970 = vmatprep.subr.bf16.mxu0 %v20484_v29  ;;  %v4910_v2 = vadd.f32 %v4909_v37, %v16931_v49  ;;  %v4912_v62 = vadd.f32 %v4911_v35, %v16931_v49 }
 0x190   :  { %20492 = vst [vmem:[#allocation68_spill] sm:$0xff] %v18362_v9  ;;  %20493 = vst [vmem:[#allocation69_spill] sm:$0xff] %v18367_v5  ;;  %v5001_v59 = vmax.f32 %v4987_v40, 0.0  ;;  %v5138_v14 = vpop.f32.mrb[90].mxu1  ;;  %v4915_v46 = vpop.f32.mrb[90].mxu0  ;;  %v18374_v48 = vrot.slane %v3062_v0, %v3072_v27 }
 0x191   :  { %v5140_v22 = vpop.f32.mrb[91].mxu1  ;;  %v4999_v11 = vmax.f32 %v4910_v2, 0.0  ;;  %v4916_v63 = vadd.f32 %v4915_v46, %v16974_v4  ;;  %v4917_v13 = vpop.f32.mrb[91].mxu0  ;;  %v5000_v37 = vmax.f32 %v4912_v62, 0.0  ;;  %v5139_v40 = vadd.f32 %v5138_v14, %v16931_v49 }
 0x192   :  { %v18377_v33 = vpack.c.bf16 %v5008_v61, %v5001_v59  ;;  %10920 = vmatpush1.bf16.msra.mxu1 %v20484_v29  ;;  %10971 = vmatpush1.bf16.msra.mxu0 %v20484_v29  ;;  %v4918_v35 = vadd.f32 %v4917_v13, %v16974_v4  ;;  %v5141_v0 = vadd.f32 %v5140_v22, %v16931_v49  ;;  %vm3095_vm6 = vcmp.ne.s16.totalorder %v18374_v48, 0 }
 0x193   :  { %14374 = vmatprep.subr.msk.bf16.mxu1 %vm3094_vm5, %v17803_v3  ;;  %10972 = vmatprep.subr.bf16.mxu0 %v20484_v29  ;;  %v5006_v27 = vmax.f32 %v4916_v63, 0.0 }
 0x194   :  { %20494 = vst [vmem:[#allocation70_spill] sm:$0xff] %v18377_v33  ;;  %v5144_v61 = vpop.f32.mrb[92].mxu1  ;;  %v5007_v2 = vmax.f32 %v4918_v35, 0.0  ;;  %v5215_v59 = vpop.f32.mrb[92].mxu0  ;;  %v15563_v33 = vld [vmem:[%s20329_s3 + $0x4] ss:$8 sps:$4 sm:$0xff]  }
 0x195   :  { %v5145_v62 = vadd.f32 %v5144_v61, %v16974_v4  ;;  %v18390_v46 = vpack.c.bf16 %v5006_v27, %v4999_v11  ;;  %v5146_v13 = vpop.f32.mrb[93].mxu1  ;;  %v5216_v14 = vadd.f32 %v5215_v59, %v16931_v49  ;;  %v5217_v42 = vpop.f32.mrb[93].mxu0  ;;  %v5378_v11 = vmax.f32 %v5139_v40, 0.0  ;;  %14304 = vmatprep.mubr.msk.bf16.mxu1 %vm10908_vm7, %v15563_v33  ;;  %14306 = vmatprep.mubr.msk.bf16.mxu0 %vm10908_vm7, %v15563_v33 }
 0x196   :  { %v5147_v63 = vadd.f32 %v5146_v13, %v16974_v4  ;;  %10922 = vmatpush1.bf16.msra.mxu1 %v20484_v29  ;;  %10973 = vmatpush1.bf16.msra.mxu0 %v20484_v29  ;;  %v18399_v22 = vpack.c.bf16 %v5007_v2, %v5000_v37  ;;  %v5218_v35 = vadd.f32 %v5217_v42, %v16931_v49  ;;  %v5379_v61 = vmax.f32 %v5141_v0, 0.0 }
 0x197   :  { %20495 = vst [vmem:[#allocation71_spill] sm:$0xff] %v18390_v46  ;;  %v5385_v27 = vmax.f32 %v5145_v62, 0.0  ;;  %10923 = vmatprep.subr.bf16.mxu1 %v17045_v51  ;;  %14376 = vmatprep.subr.msk.bf16.mxu0 %vm3094_vm5, %v17833_v15  ;;  %v3102_v40 = vsel %vm3095_vm6, %v17820_v56, 0  ;;  %v5380_v51 = vmax.f32 %v5216_v14, 0.0 }
 0x198   :  { %20496 = vst [vmem:[#allocation72_spill] sm:$0xff] %v18399_v22  ;;  %v5386_v59 = vmax.f32 %v5147_v63, 0.0  ;;  %v5292_v13 = vpop.f32.mrb[94].mxu1  ;;  %v5221_v46 = vpop.f32.mrb[94].mxu0  ;;  %v5381_v0 = vmax.f32 %v5218_v35, 0.0 }
 0x199   :  { %v18408_v37 = vpack.c.bf16 %v5385_v27, %v5378_v11  ;;  %v5294_v42 = vpop.f32.mrb[95].mxu1  ;;  %v5222_v2 = vadd.f32 %v5221_v46, %v16974_v4  ;;  %v5223_v62 = vpop.f32.mrb[95].mxu0  ;;  %v5293_v33 = vadd.f32 %v5292_v13, %v16931_v49 }
 0x19a   :  { %v18414_v22 = vpack.c.bf16 %v5386_v59, %v5379_v61  ;;  %10924 = vmatpush1.bf16.msra.mxu1 %v17024_v41  ;;  %10975 = vmatpush1.bf16.msra.mxu0 %v3102_v40  ;;  %v5224_v63 = vadd.f32 %v5223_v62, %v16974_v4  ;;  %v5295_v14 = vadd.f32 %v5294_v42, %v16931_v49 }
 0x19b   :  { %20497 = vst [vmem:[#allocation73_spill] sm:$0xff] %v18408_v37  ;;  %10925 = vmatprep.subr.bf16.mxu1 %v17820_v56  ;;  %10976 = vmatprep.subr.bf16.mxu0 %v17047_v52  ;;  %v5387_v11 = vmax.f32 %v5222_v2, 0.0  ;;  %v5382_v42 = vmax.f32 %v5293_v33, 0.0 }
 0x19c   :  { %20498 = vst [vmem:[#allocation74_spill] sm:$0xff] %v18414_v22  ;;  %v5298_v27 = vpop.f32.mrb[96].mxu1  ;;  %v5388_v46 = vmax.f32 %v5224_v63, 0.0  ;;  %v14778_v37 = vpop.f32.mrb[96].mxu0  ;;  %v5383_v62 = vmax.f32 %v5295_v14, 0.0 }
 0x19d   :  { %v5299_v61 = vadd.f32 %v5298_v27, %v16974_v4  ;;  %v18423_v59 = vpack.c.bf16 %v5387_v11, %v5380_v51  ;;  %v5300_v41 = vpop.f32.mrb[97].mxu1  ;;  %v5375_v35 = vadd.f32 %v14778_v37, %v16974_v4  ;;  %v5369_v40 = vpop.f32.mrb[97].mxu0 }
 0x19e   :  { %v5301_v13 = vadd.f32 %v5300_v41, %v16974_v4  ;;  %10926 = vmatpush1.bf16.msra.mxu1 %v17803_v3  ;;  %10977 = vmatpush1.bf16.msra.mxu0 %v17021_v39  ;;  %v18429_v52 = vpack.c.bf16 %v5388_v46, %v5381_v0  ;;  %v5370_v56 = vadd.f32 %v5369_v40, %v16931_v49 }
 0x19f   :  { %20499 = vst [vmem:[#allocation75_spill] sm:$0xff] %v18423_v59  ;;  %v5389_v2 = vmax.f32 %v5299_v61, 0.0  ;;  %10978 = vmatprep.subr.bf16.mxu0 %v17850_v23  ;;  %v5391_v51 = vmax.f32 %v5375_v35, 0.0 }
 0x1a0   :  { %20500 = vst [vmem:[#allocation76_spill] sm:$0xff] %v18429_v52  ;;  %v5390_v63 = vmax.f32 %v5301_v13, 0.0  ;;  %v5597_v11 = vpop.f32.mrb[98].mxu1  ;;  %v5384_v37 = vmax.f32 %v5370_v56, 0.0  ;;  %v5520_v27 = vpop.f32.mrb[98].mxu0 }
 0x1a1   :  { %v18433_v22 = vpack.c.bf16 %v5389_v2, %v5382_v42  ;;  %v5599_v41 = vpop.f32.mrb[99].mxu1  ;;  %v5521_v3 = vadd.f32 %v5520_v27, %v16931_v49  ;;  %v5522_v39 = vpop.f32.mrb[99].mxu0  ;;  %v5598_v14 = vadd.f32 %v5597_v11, %v16931_v49 }
 0x1a2   :  { %v18436_v0 = vpack.c.bf16 %v5390_v63, %v5383_v62  ;;  %10979 = vmatpush1.bf16.msra.mxu0 %v17833_v15  ;;  %v18439_v33 = vpack.c.bf16 %v5391_v51, %v5384_v37  ;;  %v5523_v46 = vadd.f32 %v5522_v39, %v16931_v49  ;;  %v5600_v61 = vadd.f32 %v5599_v41, %v16931_v49 }
 0x1a3   :  { %20501 = vst [vmem:[#allocation77_spill] sm:$0xff] %v18433_v22  ;;  %v5760_v42 = vmax.f32 %v5521_v3, 0.0  ;;  %v5762_v37 = vmax.f32 %v5598_v14, 0.0 }
 0x1a4   :  { %20502 = vst [vmem:[#allocation78_spill] sm:$0xff] %v18436_v0  ;;  %20503 = vst [vmem:[#allocation79_spill] sm:$0xff] %v18439_v33  ;;  %v5603_v35 = vpop.f32.mrb[100].mxu1  ;;  %v5526_v40 = vpop.f32.mrb[100].mxu0  ;;  %v5761_v15 = vmax.f32 %v5523_v46, 0.0  ;;  %v5763_v11 = vmax.f32 %v5600_v61, 0.0 }
 0x1a5   :  { %v5604_v13 = vadd.f32 %v5603_v35, %v16974_v4  ;;  %v5605_v56 = vpop.f32.mrb[101].mxu1  ;;  %v5527_v2 = vadd.f32 %v5526_v40, %v16974_v4  ;;  %v5528_v62 = vpop.f32.mrb[101].mxu0 }
 0x1a6   :  { %v5606_v63 = vadd.f32 %v5605_v56, %v16974_v4  ;;  %v5529_v51 = vadd.f32 %v5528_v62, %v16974_v4 }
 0x1a7   :  { %v5769_v27 = vmax.f32 %v5604_v13, 0.0  ;;  %v5767_v39 = vmax.f32 %v5527_v2, 0.0 }
 0x1a8   :  { %v5770_v33 = vmax.f32 %v5606_v63, 0.0  ;;  %v14785_v41 = vpop.f32.mrb[102].mxu1  ;;  %v5768_v0 = vmax.f32 %v5529_v51, 0.0  ;;  %v5674_v22 = vpop.f32.mrb[102].mxu0 }
 0x1a9   :  { %v18448_v52 = vpack.c.bf16 %v5769_v27, %v5762_v37  ;;  %v5757_v3 = vadd.f32 %v14785_v41, %v16974_v4  ;;  %v18451_v35 = vpack.c.bf16 %v5767_v39, %v5760_v42  ;;  %v5751_v40 = vpop.f32.mrb[103].mxu1  ;;  %v5675_v56 = vadd.f32 %v5674_v22, %v16931_v49  ;;  %v5676_v46 = vpop.f32.mrb[103].mxu0 }
 0x1aa   :  { %v18454_v59 = vpack.c.bf16 %v5770_v33, %v5763_v11  ;;  %v5752_v14 = vadd.f32 %v5751_v40, %v16931_v49  ;;  %v18457_v13 = vpack.c.bf16 %v5768_v0, %v5761_v15  ;;  %v5677_v61 = vadd.f32 %v5676_v46, %v16931_v49 }
 0x1ab   :  { %v5773_v2 = vmax.f32 %v5757_v3, 0.0  ;;  %v5764_v27 = vmax.f32 %v5675_v56, 0.0 }
 0x1ac   :  { %v5766_v62 = vmax.f32 %v5752_v14, 0.0  ;;  %v5896_v63 = vpop.f32.mrb[104].mxu1  ;;  %v5680_v51 = vpop.f32.mrb[104].mxu0  ;;  %v5765_v22 = vmax.f32 %v5677_v61, 0.0 }
 0x1ad   :  { %v5898_v37 = vpop.f32.mrb[105].mxu1  ;;  %v5681_v42 = vadd.f32 %v5680_v51, %v16974_v4  ;;  %v5682_v39 = vpop.f32.mrb[105].mxu0  ;;  %v5897_v11 = vadd.f32 %v5896_v63, %v16931_v49 }
 0x1ae   :  { %v18461_v41 = vpack.c.bf16 %v5773_v2, %v5766_v62  ;;  %v5683_v33 = vadd.f32 %v5682_v39, %v16974_v4  ;;  %v5899_v15 = vadd.f32 %v5898_v37, %v16931_v49 }
 0x1af   :  { %v5771_v0 = vmax.f32 %v5681_v42, 0.0  ;;  %v6136_v42 = vmax.f32 %v5897_v11, 0.0 }
 0x1b0   :  { %v5902_v40 = vpop.f32.mrb[106].mxu1  ;;  %v5772_v3 = vmax.f32 %v5683_v33, 0.0  ;;  %v5973_v46 = vpop.f32.mrb[106].mxu0  ;;  %v6137_v37 = vmax.f32 %v5899_v15, 0.0 }
 0x1b1   :  { %v5903_v14 = vadd.f32 %v5902_v40, %v16974_v4  ;;  %v18467_v9 = vpack.c.bf16 %v5771_v0, %v5764_v27  ;;  %v5904_v56 = vpop.f32.mrb[107].mxu1  ;;  %v5974_v51 = vadd.f32 %v5973_v46, %v16931_v49  ;;  %v5975_v2 = vpop.f32.mrb[107].mxu0 }
 0x1b2   :  { %v5905_v61 = vadd.f32 %v5904_v56, %v16974_v4  ;;  %v18471_v62 = vpack.c.bf16 %v5772_v3, %v5765_v22  ;;  %v5976_v63 = vadd.f32 %v5975_v2, %v16931_v49 }
 0x1b3   :  { %v6143_v39 = vmax.f32 %v5903_v14, 0.0  ;;  %v6138_v0 = vmax.f32 %v5974_v51, 0.0 }
 0x1b4   :  { %v6144_v5 = vmax.f32 %v5905_v61, 0.0  ;;  %v6050_v33 = vpop.f32.mrb[108].mxu1  ;;  %v5979_v53 = vpop.f32.mrb[108].mxu0  ;;  %v6139_v56 = vmax.f32 %v5976_v63, 0.0 }
 0x1b5   :  { %v18474_v32 = vpack.c.bf16 %v6143_v39, %v6136_v42  ;;  %v6052_v27 = vpop.f32.mrb[109].mxu1  ;;  %v5980_v40 = vadd.f32 %v5979_v53, %v16974_v4  ;;  %v5981_v46 = vpop.f32.mrb[109].mxu0  ;;  %v6051_v3 = vadd.f32 %v6050_v33, %v16931_v49 }
 0x1b6   :  { %v18477_v21 = vpack.c.bf16 %v6144_v5, %v6137_v37  ;;  %v5982_v22 = vadd.f32 %v5981_v46, %v16974_v4  ;;  %v6053_v15 = vadd.f32 %v6052_v27, %v16931_v49 }
 0x1b7   :  { %v6145_v11 = vmax.f32 %v5980_v40, 0.0  ;;  %v6140_v40 = vmax.f32 %v6051_v3, 0.0 }
 0x1b8   :  { %v6056_v14 = vpop.f32.mrb[110].mxu1  ;;  %v6146_v2 = vmax.f32 %v5982_v22, 0.0  ;;  %v14792_v61 = vpop.f32.mrb[110].mxu0  ;;  %v6141_v25 = vmax.f32 %v6053_v15, 0.0 }
 0x1b9   :  { %v6057_v42 = vadd.f32 %v6056_v14, %v16974_v4  ;;  %v18483_v39 = vpack.c.bf16 %v6145_v11, %v6138_v0  ;;  %v6058_v51 = vpop.f32.mrb[111].mxu1  ;;  %v6133_v53 = vadd.f32 %v14792_v61, %v16974_v4  ;;  %v6127_v5 = vpop.f32.mrb[111].mxu0 }
 0x1ba   :  { %v6059_v63 = vadd.f32 %v6058_v51, %v16974_v4  ;;  %v18487_v37 = vpack.c.bf16 %v6146_v2, %v6139_v56  ;;  %v6128_v33 = vadd.f32 %v6127_v5, %v16931_v49 }
 0x1bb   :  { %v6147_v46 = vmax.f32 %v6057_v42, 0.0  ;;  %v6149_v27 = vmax.f32 %v6133_v53, 0.0 }
 0x1bc   :  { %v6148_v22 = vmax.f32 %v6059_v63, 0.0  ;;  %v6349_v12 = vpop.f32.mrb[112].mxu1  ;;  %v6142_v54 = vmax.f32 %v6128_v33, 0.0  ;;  %v6272_v14 = vpop.f32.mrb[112].mxu0 }
 0x1bd   :  { %v18490_v0 = vpack.c.bf16 %v6147_v46, %v6140_v40  ;;  %v6351_v11 = vpop.f32.mrb[113].mxu1  ;;  %v6273_v61 = vadd.f32 %v6272_v14, %v16931_v49  ;;  %v6274_v26 = vpop.f32.mrb[113].mxu0  ;;  %v6350_v3 = vadd.f32 %v6349_v12, %v16931_v49 }
 0x1be   :  { %v18493_v58 = vpack.c.bf16 %v6148_v22, %v6141_v25  ;;  %v18495_v56 = vpack.c.bf16 %v6149_v27, %v6142_v54  ;;  %v6275_v2 = vadd.f32 %v6274_v26, %v16931_v49  ;;  %v6352_v15 = vadd.f32 %v6351_v11, %v16931_v49 }
 0x1bf   :  { %20504 = vst [vmem:[#allocation80_spill] sm:$0xff] %v18490_v0  ;;  %v6512_v63 = vmax.f32 %v6273_v61, 0.0  ;;  %v6514_v27 = vmax.f32 %v6350_v3, 0.0 }
 0x1c0   :  { %20505 = vst [vmem:[#allocation81_spill] sm:$0xff] %v18493_v58  ;;  %20506 = vst [vmem:[#allocation82_spill] sm:$0xff] %v18495_v56  ;;  %v6355_v42 = vpop.f32.mrb[114].mxu1  ;;  %v6278_v51 = vpop.f32.mrb[114].mxu0  ;;  %v6513_v46 = vmax.f32 %v6275_v2, 0.0  ;;  %v6515_v12 = vmax.f32 %v6352_v15, 0.0 }
 0x1c1   :  { %v6356_v53 = vadd.f32 %v6355_v42, %v16974_v4  ;;  %v6357_v5 = vpop.f32.mrb[115].mxu1  ;;  %v6279_v33 = vadd.f32 %v6278_v51, %v16974_v4  ;;  %v6280_v40 = vpop.f32.mrb[115].mxu0 }
 0x1c2   :  { %v6358_v25 = vadd.f32 %v6357_v5, %v16974_v4  ;;  %v6281_v54 = vadd.f32 %v6280_v40, %v16974_v4 }
 0x1c3   :  { %v6521_v26 = vmax.f32 %v6356_v53, 0.0  ;;  %v6519_v22 = vmax.f32 %v6279_v33, 0.0 }
 0x1c4   :  { %v6522_v14 = vmax.f32 %v6358_v25, 0.0  ;;  %v14799_v11 = vpop.f32.mrb[116].mxu1  ;;  %v6520_v50 = vmax.f32 %v6281_v54, 0.0  ;;  %v6426_v45 = vpop.f32.mrb[116].mxu0 }
 0x1c5   :  { %v18504_v8 = vpack.c.bf16 %v6521_v26, %v6514_v27  ;;  %v6509_v61 = vadd.f32 %v14799_v11, %v16974_v4  ;;  %v18507_v42 = vpack.c.bf16 %v6519_v22, %v6512_v63  ;;  %v6503_v51 = vpop.f32.mrb[117].mxu1  ;;  %v6427_v5 = vadd.f32 %v6426_v45, %v16931_v49  ;;  %v6428_v2 = vpop.f32.mrb[117].mxu0 }
 0x1c6   :  { %v18510_v56 = vpack.c.bf16 %v6522_v14, %v6515_v12  ;;  %v6504_v3 = vadd.f32 %v6503_v51, %v16931_v49  ;;  %v18513_v53 = vpack.c.bf16 %v6520_v50, %v6513_v46  ;;  %v6429_v15 = vadd.f32 %v6428_v2, %v16931_v49 }
 0x1c7   :  { %20507 = vst [vmem:[#allocation83_spill] sm:$0xff] %v18504_v8  ;;  %20508 = vst [vmem:[#allocation84_spill] sm:$0xff] %v18507_v42  ;;  %v6525_v33 = vmax.f32 %v6509_v61, 0.0  ;;  %v6516_v26 = vmax.f32 %v6427_v5, 0.0 }
 0x1c8   :  { %20509 = vst [vmem:[#allocation85_spill] sm:$0xff] %v18510_v56  ;;  %20510 = vst [vmem:[#allocation86_spill] sm:$0xff] %v18513_v53  ;;  %v6518_v40 = vmax.f32 %v6504_v3, 0.0  ;;  %v6648_v25 = vpop.f32.mrb[118].mxu1  ;;  %v6432_v54 = vpop.f32.mrb[118].mxu0  ;;  %v6517_v45 = vmax.f32 %v6429_v15, 0.0 }
 0x1c9   :  { %v6650_v27 = vpop.f32.mrb[119].mxu1  ;;  %v6433_v63 = vadd.f32 %v6432_v54, %v16974_v4  ;;  %v6434_v22 = vpop.f32.mrb[119].mxu0  ;;  %v6649_v14 = vadd.f32 %v6648_v25, %v16931_v49 }
 0x1ca   :  { %v18517_v11 = vpack.c.bf16 %v6525_v33, %v6518_v40  ;;  %v6435_v12 = vadd.f32 %v6434_v22, %v16974_v4  ;;  %v6651_v46 = vadd.f32 %v6650_v27, %v16931_v49 }
 0x1cb   :  { %v6523_v50 = vmax.f32 %v6433_v63, 0.0  ;;  %v6888_v63 = vmax.f32 %v6649_v14, 0.0 }
 0x1cc   :  { %20511 = vst [vmem:[#allocation87_spill] sm:$0xff] %v18517_v11  ;;  %v6654_v51 = vpop.f32.mrb[120].mxu1  ;;  %v6524_v61 = vmax.f32 %v6435_v12, 0.0  ;;  %v6725_v2 = vpop.f32.mrb[120].mxu0  ;;  %v6889_v27 = vmax.f32 %v6651_v46, 0.0 }
 0x1cd   :  { %v6655_v3 = vadd.f32 %v6654_v51, %v16974_v4  ;;  %v18523_v8 = vpack.c.bf16 %v6523_v50, %v6516_v26  ;;  %v6656_v5 = vpop.f32.mrb[121].mxu1  ;;  %v6726_v54 = vadd.f32 %v6725_v2, %v16931_v49  ;;  %v6727_v33 = vpop.f32.mrb[121].mxu0 }
 0x1ce   :  { %v6657_v15 = vadd.f32 %v6656_v5, %v16974_v4  ;;  %v18527_v40 = vpack.c.bf16 %v6524_v61, %v6517_v45  ;;  %v6728_v25 = vadd.f32 %v6727_v33, %v16931_v49 }
 0x1cf   :  { %20512 = vst [vmem:[#allocation88_spill] sm:$0xff] %v18523_v8  ;;  %v6895_v22 = vmax.f32 %v6655_v3, 0.0  ;;  %v6890_v50 = vmax.f32 %v6726_v54, 0.0 }
 0x1d0   :  { %20513 = vst [vmem:[#allocation89_spill] sm:$0xff] %v18527_v40  ;;  %v6896_v11 = vmax.f32 %v6657_v15, 0.0  ;;  %v6802_v12 = vpop.f32.mrb[122].mxu1  ;;  %v6731_v56 = vpop.f32.mrb[122].mxu0  ;;  %v6891_v5 = vmax.f32 %v6728_v25, 0.0 }
 0x1d1   :  { %v18530_v42 = vpack.c.bf16 %v6895_v22, %v6888_v63  ;;  %v6804_v26 = vpop.f32.mrb[123].mxu1  ;;  %v6732_v51 = vadd.f32 %v6731_v56, %v16974_v4  ;;  %v6733_v2 = vpop.f32.mrb[123].mxu0  ;;  %v6803_v61 = vadd.f32 %v6802_v12, %v16931_v49 }
 0x1d2   :  { %v18533_v8 = vpack.c.bf16 %v6896_v11, %v6889_v27  ;;  %v6734_v45 = vadd.f32 %v6733_v2, %v16974_v4  ;;  %v6805_v46 = vadd.f32 %v6804_v26, %v16931_v49 }
 0x1d3   :  { %20514 = vst [vmem:[#allocation90_spill] sm:$0xff] %v18530_v42  ;;  %v6897_v14 = vmax.f32 %v6732_v51, 0.0  ;;  %v6892_v51 = vmax.f32 %v6803_v61, 0.0 }
 0x1d4   :  { %20515 = vst [vmem:[#allocation91_spill] sm:$0xff] %v18533_v8  ;;  %v6808_v3 = vpop.f32.mrb[124].mxu1  ;;  %v6898_v33 = vmax.f32 %v6734_v45, 0.0  ;;  %v14806_v15 = vpop.f32.mrb[124].mxu0  ;;  %v6893_v42 = vmax.f32 %v6805_v46, 0.0 }
 0x1d5   :  { %v6809_v63 = vadd.f32 %v6808_v3, %v16974_v4  ;;  %v18539_v22 = vpack.c.bf16 %v6897_v14, %v6890_v50  ;;  %v6810_v54 = vpop.f32.mrb[125].mxu1  ;;  %v6885_v56 = vadd.f32 %v14806_v15, %v16974_v4  ;;  %v6879_v11 = vpop.f32.mrb[125].mxu0 }
 0x1d6   :  { %v6811_v25 = vadd.f32 %v6810_v54, %v16974_v4  ;;  %v18543_v27 = vpack.c.bf16 %v6898_v33, %v6891_v5  ;;  %v6880_v12 = vadd.f32 %v6879_v11, %v16931_v49 }
 0x1d7   :  { %20516 = vst [vmem:[#allocation92_spill] sm:$0xff] %v18539_v22  ;;  %v6899_v2 = vmax.f32 %v6809_v63, 0.0  ;;  %v6901_v26 = vmax.f32 %v6885_v56, 0.0 }
 0x1d8   :  { %20517 = vst [vmem:[#allocation93_spill] sm:$0xff] %v18543_v27  ;;  %v6900_v45 = vmax.f32 %v6811_v25, 0.0  ;;  %v7101_v8 = vpop.f32.mrb[126].mxu1  ;;  %v6894_v40 = vmax.f32 %v6880_v12, 0.0  ;;  %v7024_v3 = vpop.f32.mrb[126].mxu0 }
 0x1d9   :  { %v18546_v50 = vpack.c.bf16 %v6899_v2, %v6892_v51  ;;  %v7103_v14 = vpop.f32.mrb[127].mxu1  ;;  %v7025_v15 = vadd.f32 %v7024_v3, %v16931_v49  ;;  %v7026_v22 = vpop.f32.mrb[127].mxu0  ;;  %v7102_v61 = vadd.f32 %v7101_v8, %v16931_v49 }
 0x1da   :  { %v18549_v53 = vpack.c.bf16 %v6900_v45, %v6893_v42  ;;  %v18551_v5 = vpack.c.bf16 %v6901_v26, %v6894_v40  ;;  %v7027_v33 = vadd.f32 %v7026_v22, %v16931_v49  ;;  %v7104_v46 = vadd.f32 %v7103_v14, %v16931_v49 }
 0x1db   :  { %20518 = vst [vmem:[#allocation94_spill] sm:$0xff] %v18546_v50  ;;  %v7264_v25 = vmax.f32 %v7025_v15, 0.0  ;;  %v7266_v26 = vmax.f32 %v7102_v61, 0.0 }
 0x1dc   :  { %20519 = vst [vmem:[#allocation95_spill] sm:$0xff] %v18549_v53  ;;  %20520 = vst [vmem:[#allocation96_spill] sm:$0xff] %v18551_v5  ;;  %v7107_v63 = vpop.f32.mrb[128].mxu1  ;;  %v7030_v54 = vpop.f32.mrb[128].mxu0  ;;  %v7265_v2 = vmax.f32 %v7027_v33, 0.0  ;;  %v7267_v8 = vmax.f32 %v7104_v46, 0.0 }
 0x1dd   :  { %v7108_v56 = vadd.f32 %v7107_v63, %v16974_v4  ;;  %v7109_v11 = vpop.f32.mrb[129].mxu1  ;;  %v7031_v12 = vadd.f32 %v7030_v54, %v16974_v4  ;;  %v7032_v51 = vpop.f32.mrb[129].mxu0 }
 0x1de   :  { %v7110_v42 = vadd.f32 %v7109_v11, %v16974_v4  ;;  %v7033_v40 = vadd.f32 %v7032_v51, %v16974_v4 }
 0x1df   :  { %v7273_v22 = vmax.f32 %v7108_v56, 0.0  ;;  %v7271_v45 = vmax.f32 %v7031_v12, 0.0 }
 0x1e0   :  { %v7274_v3 = vmax.f32 %v7110_v42, 0.0  ;;  %v14813_v14 = vpop.f32.mrb[130].mxu1  ;;  %v7272_v5 = vmax.f32 %v7033_v40, 0.0  ;;  %v7178_v50 = vpop.f32.mrb[130].mxu0 }
 0x1e1   :  { %v18560_v53 = vpack.c.bf16 %v7273_v22, %v7266_v26  ;;  %v7261_v15 = vadd.f32 %v14813_v14, %v16974_v4  ;;  %v18563_v63 = vpack.c.bf16 %v7271_v45, %v7264_v25  ;;  %v7255_v54 = vpop.f32.mrb[131].mxu1  ;;  %v7179_v11 = vadd.f32 %v7178_v50, %v16931_v49  ;;  %v7180_v33 = vpop.f32.mrb[131].mxu0 }
 0x1e2   :  { %v18566_v27 = vpack.c.bf16 %v7274_v3, %v7267_v8  ;;  %v7256_v61 = vadd.f32 %v7255_v54, %v16931_v49  ;;  %v18569_v56 = vpack.c.bf16 %v7272_v5, %v7265_v2  ;;  %v7181_v46 = vadd.f32 %v7180_v33, %v16931_v49 }
 0x1e3   :  { %20521 = vst [vmem:[#allocation97_spill] sm:$0xff] %v18560_v53  ;;  %20522 = vst [vmem:[#allocation98_spill] sm:$0xff] %v18563_v63  ;;  %v7277_v12 = vmax.f32 %v7261_v15, 0.0  ;;  %v7268_v22 = vmax.f32 %v7179_v11, 0.0  ;;  %v37_v11 = vld [vmem:[%s20327_s4] sm:$0xff] }
 0x1e4   :  { %20523 = vst [vmem:[#allocation99_spill] sm:$0xff] %v18566_v27  ;;  %20524 = vst [vmem:[#allocation100_spill] sm:$0xff] %v18569_v56  ;;  %v7270_v51 = vmax.f32 %v7256_v61, 0.0  ;;  %v7400_v42 = vpop.f32.mrb[132].mxu1  ;;  %v7184_v40 = vpop.f32.mrb[132].mxu0  ;;  %v7269_v50 = vmax.f32 %v7181_v46, 0.0  ;;  %10872 = vperm.xlu1 %15562, %v37_v11  }
 0x1e5   :  { %v7402_v26 = vpop.f32.mrb[133].mxu1  ;;  %v7185_v25 = vadd.f32 %v7184_v40, %v16974_v4  ;;  %v7186_v45 = vpop.f32.mrb[133].mxu0  ;;  %v7401_v3 = vadd.f32 %v7400_v42, %v16931_v49 }
 0x1e6   :  { %v18573_v14 = vpack.c.bf16 %v7277_v12, %v7270_v51  ;;  %v7187_v8 = vadd.f32 %v7186_v45, %v16974_v4  ;;  %v7403_v2 = vadd.f32 %v7402_v26, %v16931_v49 }
 0x1e7   :  { %v7275_v5 = vmax.f32 %v7185_v25, 0.0  ;;  %v7640_v45 = vmax.f32 %v7401_v3, 0.0 }
 0x1e8   :  { %20525 = vst [vmem:[#allocation101_spill] sm:$0xff] %v18573_v14  ;;  %v7406_v54 = vpop.f32.mrb[134].mxu1  ;;  %v7276_v15 = vmax.f32 %v7187_v8, 0.0  ;;  %v7477_v33 = vpop.f32.mrb[134].mxu0  ;;  %v7641_v14 = vmax.f32 %v7403_v2, 0.0 }
 0x1e9   :  { %v7407_v61 = vadd.f32 %v7406_v54, %v16974_v4  ;;  %v18582_v40 = vpack.c.bf16 %v7275_v5, %v7268_v22  ;;  %v7408_v12 = vpop.f32.mrb[135].mxu1  ;;  %v7478_v46 = vadd.f32 %v7477_v33, %v16931_v49  ;;  %v7479_v51 = vpop.f32.mrb[135].mxu0  ;;  %v38_v22 = vld [vmem:[%s20327_s4 + $0x8] sm:$0xff] }
 0x1ea   :  { %v7409_v42 = vadd.f32 %v7408_v12, %v16974_v4  ;;  %v18586_v25 = vpack.c.bf16 %v7276_v15, %v7269_v50  ;;  %v7480_v26 = vadd.f32 %v7479_v51, %v16931_v49  ;;  %10877 = vperm.xlu1 %15562, %v38_v22  }
 0x1eb   :  { %20526 = vst [vmem:[#allocation102_spill] sm:$0xff] %v18582_v40  ;;  %v7647_v8 = vmax.f32 %v7407_v61, 0.0  ;;  %v7642_v33 = vmax.f32 %v7478_v46, 0.0 }
 0x1ec   :  { %20527 = vst [vmem:[#allocation103_spill] sm:$0xff] %v18586_v25  ;;  %v7648_v53 = vmax.f32 %v7409_v42, 0.0  ;;  %v7554_v27 = vpop.f32.mrb[136].mxu1  ;;  %v7483_v63 = vpop.f32.mrb[136].mxu0  ;;  %v7643_v3 = vmax.f32 %v7480_v26, 0.0 }
 0x1ed   :  { %v18592_v5 = vpack.c.bf16 %v7647_v8, %v7640_v45  ;;  %v7556_v54 = vpop.f32.mrb[137].mxu1  ;;  %v7484_v11 = vadd.f32 %v7483_v63, %v16974_v4  ;;  %v7485_v50 = vpop.f32.mrb[137].mxu0  ;;  %v7555_v61 = vadd.f32 %v7554_v27, %v16931_v49 }
 0x1ee   :  { %v18595_v15 = vpack.c.bf16 %v7648_v53, %v7641_v14  ;;  %v7486_v2 = vadd.f32 %v7485_v50, %v16974_v4  ;;  %v7557_v51 = vadd.f32 %v7556_v54, %v16931_v49 }
 0x1ef   :  { %20528 = vst [vmem:[#allocation104_spill] sm:$0xff] %v18592_v5  ;;  %v7649_v12 = vmax.f32 %v7484_v11, 0.0  ;;  %v7644_v11 = vmax.f32 %v7555_v61, 0.0 }
 0x1f0   :  { %20529 = vst [vmem:[#allocation105_spill] sm:$0xff] %v18595_v15  ;;  %v7560_v42 = vpop.f32.mrb[138].mxu1  ;;  %v7650_v40 = vmax.f32 %v7486_v2, 0.0  ;;  %v14820_v45 = vpop.f32.mrb[138].mxu0  ;;  %v7645_v5 = vmax.f32 %v7557_v51, 0.0 }
 0x1f1   :  { %v18600_v8 = vpack.c.bf16 %v7649_v12, %v7642_v33  ;;  %v7561_v46 = vadd.f32 %v7560_v42, %v16974_v4  ;;  %v7562_v63 = vpop.f32.mrb[139].mxu1  ;;  %v7637_v22 = vadd.f32 %v14820_v45, %v16974_v4  ;;  %v7631_v53 = vpop.f32.mrb[139].mxu0  ;;  %v40_v42 = vld [vmem:[%s20327_s4 + $0x18] sm:$0xff] }
 0x1f2   :  { %v18604_v14 = vpack.c.bf16 %v7650_v40, %v7643_v3  ;;  %v7563_v26 = vadd.f32 %v7562_v63, %v16974_v4  ;;  %v7632_v27 = vadd.f32 %v7631_v53, %v16931_v49  ;;  %10887 = vperm.xlu1 %15562, %v40_v42  }
 0x1f3   :  { %20530 = vst [vmem:[#allocation106_spill] sm:$0xff] %v18600_v8  ;;  %v7651_v50 = vmax.f32 %v7561_v46, 0.0  ;;  %v7653_v54 = vmax.f32 %v7637_v22, 0.0 }
 0x1f4   :  { %20531 = vst [vmem:[#allocation107_spill] sm:$0xff] %v18604_v14  ;;  %v7652_v2 = vmax.f32 %v7563_v26, 0.0  ;;  %v7646_v15 = vmax.f32 %v7632_v27, 0.0  ;;  %v7776_v33 = vpop.f32.mrb[140].mxu0  ;;  %v7853_v12 = vpop.f32.mrb[140].mxu1 }
 0x1f5   :  { %v18611_v45 = vpack.c.bf16 %v7651_v50, %v7644_v11  ;;  %v7778_v40 = vpop.f32.mrb[141].mxu0  ;;  %v7855_v3 = vpop.f32.mrb[141].mxu1  ;;  %v7777_v61 = vadd.f32 %v7776_v33, %v16931_v49  ;;  %v7854_v51 = vadd.f32 %v7853_v12, %v16931_v49 }
 0x1f6   :  { %v18613_v63 = vpack.c.bf16 %v7652_v2, %v7645_v5  ;;  %v18615_v53 = vpack.c.bf16 %v7653_v54, %v7646_v15  ;;  %v7779_v46 = vadd.f32 %v7778_v40, %v16931_v49  ;;  %v7856_v22 = vadd.f32 %v7855_v3, %v16931_v49 }
 0x1f7   :  { %20532 = vst [vmem:[#allocation108_spill] sm:$0xff] %v18611_v45  ;;  %v8016_v54 = vmax.f32 %v7777_v61, 0.0  ;;  %v8018_v2 = vmax.f32 %v7854_v51, 0.0 }
 0x1f8   :  { %20533 = vst [vmem:[#allocation109_spill] sm:$0xff] %v18613_v63  ;;  %20534 = vst [vmem:[#allocation110_spill] sm:$0xff] %v18615_v53  ;;  %v7782_v26 = vpop.f32.mrb[142].mxu0  ;;  %v7859_v27 = vpop.f32.mrb[142].mxu1  ;;  %v8017_v53 = vmax.f32 %v7779_v46, 0.0  ;;  %v8019_v40 = vmax.f32 %v7856_v22, 0.0 }
 0x1f9   :  { %v7783_v11 = vadd.f32 %v7782_v26, %v16974_v4  ;;  %v7860_v50 = vadd.f32 %v7859_v27, %v16974_v4  ;;  %v7784_v45 = vpop.f32.mrb[143].mxu0  ;;  %v7861_v42 = vpop.f32.mrb[143].mxu1 }
 0x1fa   :  { %v7785_v5 = vadd.f32 %v7784_v45, %v16974_v4  ;;  %v7862_v15 = vadd.f32 %v7861_v42, %v16974_v4 }
 0x1fb   :  { %v8023_v33 = vmax.f32 %v7783_v11, 0.0  ;;  %v8025_v12 = vmax.f32 %v7860_v50, 0.0 }
 0x1fc   :  { %v8024_v63 = vmax.f32 %v7785_v5, 0.0  ;;  %v8026_v3 = vmax.f32 %v7862_v15, 0.0  ;;  %v7930_v8 = vpop.f32.mrb[144].mxu0  ;;  %v14827_v14 = vpop.f32.mrb[144].mxu1 }
 0x1fd   :  { %v18625_v25 = vpack.c.bf16 %v8023_v33, %v8016_v54  ;;  %v18627_v26 = vpack.c.bf16 %v8025_v12, %v8018_v2  ;;  %v8013_v27 = vadd.f32 %v14827_v14, %v16974_v4  ;;  %v7932_v56 = vpop.f32.mrb[145].mxu0  ;;  %v8007_v45 = vpop.f32.mrb[145].mxu1  ;;  %v7931_v46 = vadd.f32 %v7930_v8, %v16931_v49 }
 0x1fe   :  { %v18630_v0 = vpack.c.bf16 %v8024_v63, %v8017_v53  ;;  %v18632_v61 = vpack.c.bf16 %v8026_v3, %v8019_v40  ;;  %v8008_v51 = vadd.f32 %v8007_v45, %v16931_v49  ;;  %v7933_v11 = vadd.f32 %v7932_v56, %v16931_v49 }
 0x1ff   :  { %20535 = vst [vmem:[#allocation111_spill] sm:$0xff] %v18625_v25  ;;  %20536 = vst [vmem:[#allocation112_spill] sm:$0xff] %v18627_v26  ;;  %v8029_v22 = vmax.f32 %v8013_v27, 0.0  ;;  %v8020_v53 = vmax.f32 %v7931_v46, 0.0 }
 0x200   :  { %20537 = vst [vmem:[#allocation113_spill] sm:$0xff] %v18630_v0  ;;  %20538 = vst [vmem:[#allocation114_spill] sm:$0xff] %v18632_v61  ;;  %v8022_v50 = vmax.f32 %v8008_v51, 0.0  ;;  %v7936_v42 = vpop.f32.mrb[146].mxu0  ;;  %v8146_v5 = vpop.f32.mrb[146].mxu1  ;;  %v8021_v40 = vmax.f32 %v7933_v11, 0.0 }
 0x201   :  { %v7937_v15 = vadd.f32 %v7936_v42, %v16974_v4  ;;  %v7938_v54 = vpop.f32.mrb[147].mxu0  ;;  %v8148_v14 = vpop.f32.mrb[147].mxu1  ;;  %v8147_v12 = vadd.f32 %v8146_v5, %v16931_v49 }
 0x202   :  { %v18638_v2 = vpack.c.bf16 %v8029_v22, %v8022_v50  ;;  %v7939_v63 = vadd.f32 %v7938_v54, %v16974_v4  ;;  %v8149_v3 = vadd.f32 %v8148_v14, %v16931_v49 }
 0x203   :  { %v8027_v33 = vmax.f32 %v7937_v15, 0.0  ;;  %v8386_v46 = vmax.f32 %v8147_v12, 0.0 }
 0x204   :  { %20539 = vst [vmem:[#allocation115_spill] sm:$0xff] %v18638_v2  ;;  %v8028_v8 = vmax.f32 %v7939_v63, 0.0  ;;  %v8152_v56 = vpop.f32.mrb[148].mxu1  ;;  %v8223_v27 = vpop.f32.mrb[148].mxu0  ;;  %v8387_v11 = vmax.f32 %v8149_v3, 0.0 }
 0x205   :  { %v18643_v45 = vpack.c.bf16 %v8027_v33, %v8020_v53  ;;  %v8153_v51 = vadd.f32 %v8152_v56, %v16974_v4  ;;  %v8154_v42 = vpop.f32.mrb[149].mxu1  ;;  %v8225_v26 = vpop.f32.mrb[149].mxu0  ;;  %v8224_v5 = vadd.f32 %v8223_v27, %v16931_v49 }
 0x206   :  { %v18646_v22 = vpack.c.bf16 %v8028_v8, %v8021_v40  ;;  %v8155_v50 = vadd.f32 %v8154_v42, %v16974_v4  ;;  %v8226_v14 = vadd.f32 %v8225_v26, %v16931_v49 }
 0x207   :  { %20540 = vst [vmem:[#allocation116_spill] sm:$0xff] %v18643_v45  ;;  %v8393_v15 = vmax.f32 %v8153_v51, 0.0  ;;  %v8388_v12 = vmax.f32 %v8224_v5, 0.0 }
 0x208   :  { %20541 = vst [vmem:[#allocation117_spill] sm:$0xff] %v18646_v22  ;;  %v8394_v54 = vmax.f32 %v8155_v50, 0.0  ;;  %v8229_v63 = vpop.f32.mrb[150].mxu0  ;;  %v8300_v2 = vpop.f32.mrb[150].mxu1  ;;  %v8389_v26 = vmax.f32 %v8226_v14, 0.0 }
 0x209   :  { %v18651_v53 = vpack.c.bf16 %v8393_v15, %v8386_v46  ;;  %v8230_v33 = vadd.f32 %v8229_v63, %v16974_v4  ;;  %v8231_v56 = vpop.f32.mrb[151].mxu0  ;;  %v8302_v45 = vpop.f32.mrb[151].mxu1  ;;  %v8301_v27 = vadd.f32 %v8300_v2, %v16931_v49 }
 0x20a   :  { %v18654_v40 = vpack.c.bf16 %v8394_v54, %v8387_v11  ;;  %v8232_v8 = vadd.f32 %v8231_v56, %v16974_v4  ;;  %v8303_v42 = vadd.f32 %v8302_v45, %v16931_v49 }
 0x20b   :  { %v8395_v51 = vmax.f32 %v8230_v33, 0.0  ;;  %14375 = vmatprep.subr.msk.bf16.mxu1 %vm3094_vm5, %v18651_v53  ;;  %v8390_v33 = vmax.f32 %v8301_v27, 0.0 }
 0x20c   :  { %v8396_v3 = vmax.f32 %v8232_v8, 0.0  ;;  %v8306_v50 = vpop.f32.mrb[152].mxu1  ;;  %v14834_v46 = vpop.f32.mrb[152].mxu0  ;;  %10928 = vmatpush1.bf16.msra.mxu1 %v20484_v29 }
 0x20d   :  { %v18663_v15 = vpack.c.bf16 %v8395_v51, %v8388_v12  ;;  %v8307_v11 = vadd.f32 %v8306_v50, %v16974_v4  ;;  %v8383_v5 = vadd.f32 %v14834_v46, %v16974_v4  ;;  %v8308_v54 = vpop.f32.mrb[153].mxu1  ;;  %v8377_v2 = vpop.f32.mrb[153].mxu0  ;;  %10929 = vmatprep.subr.bf16.mxu1 %v18457_v13  ;;  %v18678_v12 = vsel %vm3095_vm6, %v18654_v40, 0 }
 0x20e   :  { %v18668_v63 = vpack.c.bf16 %v8396_v3, %v8389_v26  ;;  %v8309_v14 = vadd.f32 %v8308_v54, %v16974_v4  ;;  %v8378_v45 = vadd.f32 %v8377_v2, %v16931_v49  ;;  %v8391_v51 = vmax.f32 %v8303_v42, 0.0 }
 0x20f   :  { %v8397_v56 = vmax.f32 %v8307_v11, 0.0  ;;  %v8399_v8 = vmax.f32 %v8383_v5, 0.0  ;;  %14377 = vmatprep.subr.msk.bf16.mxu0 %vm3094_vm5, %v18663_v15 }
 0x210   :  { %v8398_v50 = vmax.f32 %v8309_v14, 0.0  ;;  %v8392_v26 = vmax.f32 %v8378_v45, 0.0  ;;  %v8543_v3 = vpop.f32.mrb[154].mxu0  ;;  %v8620_v46 = vpop.f32.mrb[154].mxu1  ;;  %10930 = vmatpush1.bf16.msra.mxu1 %v18451_v35  ;;  %10981 = vmatpush1.bf16.msra.mxu0 %v18678_v12  ;;  %v18695_v45 = vld [vmem:[%s20329_s3] ss:$8 sps:$4 sm:$0xff]  }
 0x211   :  { %v18682_v27 = vpack.c.bf16 %v8397_v56, %v8390_v33  ;;  %v8545_v11 = vpop.f32.mrb[155].mxu0  ;;  %v8622_v5 = vpop.f32.mrb[155].mxu1  ;;  %10931 = vmatprep.subr.bf16.mxu1 %v18654_v40  ;;  %10982 = vmatprep.subr.bf16.mxu0 %v18454_v59  ;;  %v8544_v42 = vadd.f32 %v8543_v3, %v16931_v49  ;;  %v8621_v14 = vadd.f32 %v8620_v46, %v16931_v49 }
 0x212   :  { %v18686_v54 = vpack.c.bf16 %v8398_v50, %v8391_v51  ;;  %v18688_v2 = vpack.c.bf16 %v8399_v8, %v8392_v26  ;;  %v8546_v33 = vadd.f32 %v8545_v11, %v16931_v49  ;;  %v8623_v56 = vadd.f32 %v8622_v5, %v16931_v49 }
 0x213   :  { %v8783_v11 = vmax.f32 %v8544_v42, 0.0  ;;  %v8785_v5 = vmax.f32 %v8621_v14, 0.0 }
 0x214   :  { %v8549_v22 = vpop.f32.mrb[156].mxu0  ;;  %v8626_v61 = vpop.f32.mrb[156].mxu1  ;;  %10932 = vmatpush1.bf16.msra.mxu1 %v18651_v53  ;;  %10983 = vmatpush1.bf16.msra.mxu0 %v18448_v52  ;;  %v8786_v58 = vmax.f32 %v8623_v56, 0.0 }
 0x215   :  { %v8550_v8 = vadd.f32 %v8549_v22, %v16974_v4  ;;  %v8627_v51 = vadd.f32 %v8626_v61, %v16974_v4  ;;  %v8551_v50 = vpop.f32.mrb[157].mxu0  ;;  %v8628_v26 = vpop.f32.mrb[157].mxu1  ;;  %10984 = vmatprep.subr.bf16.mxu0 %v18668_v63  ;;  %11021 = vmatprep.subr.bf16.mxu1 %v20484_v29  ;;  %v18711_v61 = vld [vmem:[%s20329_s3 + $0x14] ss:$8 sps:$4 sm:$0xff]   ;;  %v8784_v22 = vmax.f32 %v8546_v33, 0.0 }
 0x216   :  { %v8552_v3 = vadd.f32 %v8551_v50, %v16974_v4  ;;  %v8629_v46 = vadd.f32 %v8628_v26, %v16974_v4 }
 0x217   :  { %v8790_v25 = vmax.f32 %v8550_v8, 0.0  ;;  %v8792_v0 = vmax.f32 %v8627_v51, 0.0  ;;  %10948 = vmatmul.mubr.bf16.vlgmr.msra.gmra.mrb[196].mxu1 %v18695_v45 }
 0x218   :  { %v8791_v16 = vmax.f32 %v8552_v3, 0.0  ;;  %v8793_v43 = vmax.f32 %v8629_v46, 0.0  ;;  %v8697_v34 = vpop.f32.mrb[158].mxu0  ;;  %v14841_v47 = vpop.f32.mrb[158].mxu1  ;;  %10985 = vmatpush1.bf16.msra.mxu0 %v18663_v15  ;;  %11022 = vmatpush1.bf16.msra.mxu1 %v20484_v29 }
 0x219   :  { %v18715_v42 = vpack.c.bf16 %v8790_v25, %v8783_v11  ;;  %v18717_v14 = vpack.c.bf16 %v8792_v0, %v8785_v5  ;;  %v8780_v8 = vadd.f32 %v14841_v47, %v16974_v4  ;;  %v8699_v51 = vpop.f32.mrb[159].mxu0  ;;  %v8774_v50 = vpop.f32.mrb[159].mxu1  ;;  %11023 = vmatprep.subr.bf16.mxu1 %v20484_v29  ;;  %11074 = vmatprep.subr.bf16.mxu0 %v20484_v29  ;;  %v18734_v47 = vld [vmem:[%s20329_s3 + $0x10] ss:$8 sps:$4 sm:$0xff]  }
 0x21a   :  { %v18721_v33 = vpack.c.bf16 %v8791_v16, %v8784_v22  ;;  %v18723_v56 = vpack.c.bf16 %v8793_v43, %v8786_v58  ;;  %v8775_v26 = vadd.f32 %v8774_v50, %v16931_v49  ;;  %v8698_v3 = vadd.f32 %v8697_v34, %v16931_v49  ;;  %14305 = vmatprep.mubr.msk.bf16.mxu1 %vm10908_vm7, %v18711_v61 }
 0x21b   :  { %v8796_v25 = vmax.f32 %v8780_v8, 0.0  ;;  %11001 = vmatmul.mubr.bf16.vlgmr.msra.gmra.mrb[196].mxu0 %v18695_v45  ;;  %v8700_v43 = vadd.f32 %v8699_v51, %v16931_v49 }
 0x21c   :  { %20542 = vst [vmem:[#allocation118_spill] sm:$0xff] %v18723_v56  ;;  %v8789_v16 = vmax.f32 %v8775_v26, 0.0  ;;  %v8703_v58 = vpop.f32.mrb[160].mxu0  ;;  %v8940_v0 = vpop.f32.mrb[160].mxu1  ;;  %11024 = vmatpush1.bf16.msra.mxu1 %v20484_v29  ;;  %11075 = vmatpush1.bf16.msra.mxu0 %v20484_v29  ;;  %v8787_v8 = vmax.f32 %v8698_v3, 0.0 }
 0x21d   :  { %v8704_v34 = vadd.f32 %v8703_v58, %v16974_v4  ;;  %v8705_v46 = vpop.f32.mrb[161].mxu0  ;;  %v8942_v11 = vpop.f32.mrb[161].mxu1  ;;  %11025 = vmatprep.subr.bf16.mxu1 %v20484_v29  ;;  %11076 = vmatprep.subr.bf16.mxu0 %v20484_v29  ;;  %v8941_v50 = vadd.f32 %v8940_v0, %v16931_v49  ;;  %v8788_v26 = vmax.f32 %v8700_v43, 0.0 }
 0x21e   :  { %v18742_v5 = vpack.c.bf16 %v8796_v25, %v8789_v16  ;;  %v8706_v22 = vadd.f32 %v8705_v46, %v16974_v4  ;;  %14307 = vmatprep.mubr.msk.bf16.mxu0 %vm10908_vm7, %v18711_v61  ;;  %v8943_v57 = vadd.f32 %v8942_v11, %v16931_v49  ;;  %v18765_v46 = vld [vmem:[%s20329_s3 + $0x4] ss:$8 sps:$4 sm:$0xff]  }
 0x21f   :  { %v8794_v51 = vmax.f32 %v8704_v34, 0.0  ;;  %10958 = vmatmul.mubr.bf16.gmra.mrb[200].mxu1 %v18734_v47 }
 0x220   :  { %20543 = vst [vmem:[#allocation119_spill] sm:$0xff] %v18742_v5  ;;  %v8795_v58 = vmax.f32 %v8706_v22, 0.0  ;;  %v8946_v38 = vpop.f32.mrb[162].mxu1  ;;  %v9017_v56 = vpop.f32.mrb[162].mxu0  ;;  %11026 = vmatpush1.bf16.msra.mxu1 %v20484_v29  ;;  %11077 = vmatpush1.bf16.msra.mxu0 %v20484_v29 }
 0x221   :  { %v18752_v25 = vpack.c.bf16 %v8794_v51, %v8787_v8  ;;  %v8947_v16 = vadd.f32 %v8946_v38, %v16974_v4  ;;  %v8948_v3 = vpop.f32.mrb[163].mxu1  ;;  %v9019_v34 = vpop.f32.mrb[163].mxu0  ;;  %14378 = vmatprep.subr.msk.bf16.mxu1 %vm3094_vm5, %v17872_v10  ;;  %11078 = vmatprep.subr.bf16.mxu0 %v20484_v29  ;;  %v9180_v38 = vmax.f32 %v8941_v50, 0.0  ;;  %v9018_v22 = vadd.f32 %v9017_v56, %v16931_v49 }
 0x222   :  { %v18759_v43 = vpack.c.bf16 %v8795_v58, %v8788_v26  ;;  %v8949_v0 = vadd.f32 %v8948_v3, %v16974_v4  ;;  %14308 = vmatprep.mubr.msk.bf16.mxu1 %vm10908_vm7, %v18765_v46  ;;  %v3104_v8 = vsel %vm3095_vm6, %v17850_v23, 0  ;;  %v9181_v51 = vmax.f32 %v8943_v57, 0.0 }
 0x223   :  { %20544 = vst [vmem:[#allocation120_spill] sm:$0xff] %v18752_v25  ;;  %v9187_v11 = vmax.f32 %v8947_v16, 0.0  ;;  %11011 = vmatmul.mubr.bf16.gmra.mrb[200].mxu0 %v18734_v47  ;;  %v9020_v58 = vadd.f32 %v9019_v34, %v16931_v49  ;;  %v9182_v34 = vmax.f32 %v9018_v22, 0.0 }
 0x224   :  { %20545 = vst [vmem:[#allocation121_spill] sm:$0xff] %v18759_v43  ;;  %v9188_v26 = vmax.f32 %v8949_v0, 0.0  ;;  %v9023_v3 = vpop.f32.mrb[164].mxu0  ;;  %v9094_v5 = vpop.f32.mrb[164].mxu1  ;;  %11028 = vmatpush1.bf16.msra.mxu1 %v3104_v8  ;;  %11079 = vmatpush1.bf16.msra.mxu0 %v20484_v29 }
 0x225   :  { %v18776_v43 = vpack.c.bf16 %v9187_v11, %v9180_v38  ;;  %v9024_v50 = vadd.f32 %v9023_v3, %v16974_v4  ;;  %v9025_v56 = vpop.f32.mrb[165].mxu0  ;;  %v9096_v16 = vpop.f32.mrb[165].mxu1  ;;  %11029 = vmatprep.subr.bf16.mxu1 %v17104_v28  ;;  %11080 = vmatprep.subr.bf16.mxu0 %v20484_v29  ;;  %v9095_v38 = vadd.f32 %v9094_v5, %v16931_v49  ;;  %v3106_v11 = vsel %vm3095_vm6, %v17900_v31, 0 }
 0x226   :  { %v18781_v23 = vpack.c.bf16 %v9188_v26, %v9181_v51  ;;  %v9026_v57 = vadd.f32 %v9025_v56, %v16974_v4  ;;  %14310 = vmatprep.mubr.msk.bf16.mxu0 %vm10908_vm7, %v18765_v46  ;;  %v9183_v8 = vmax.f32 %v9020_v58, 0.0  ;;  %v9097_v28 = vadd.f32 %v9096_v16, %v16931_v49 }
 0x227   :  { %20546 = vst [vmem:[#allocation122_spill] sm:$0xff] %v18776_v43  ;;  %v9189_v0 = vmax.f32 %v9024_v50, 0.0 }
 0x228   :  { %20547 = vst [vmem:[#allocation123_spill] sm:$0xff] %v18781_v23  ;;  %v9190_v3 = vmax.f32 %v9026_v57, 0.0  ;;  %v9100_v43 = vpop.f32.mrb[166].mxu1  ;;  %v14848_v51 = vpop.f32.mrb[166].mxu0  ;;  %11030 = vmatpush1.bf16.msra.mxu1 %v17083_v19  ;;  %11081 = vmatpush1.bf16.msra.mxu0 %v3106_v11  ;;  %v9184_v19 = vmax.f32 %v9095_v38, 0.0 }
 0x229   :  { %v18792_v26 = vpack.c.bf16 %v9189_v0, %v9182_v34  ;;  %v9101_v22 = vadd.f32 %v9100_v43, %v16974_v4  ;;  %v9177_v50 = vadd.f32 %v14848_v51, %v16974_v4  ;;  %v9102_v5 = vpop.f32.mrb[167].mxu1  ;;  %v9171_v56 = vpop.f32.mrb[167].mxu0  ;;  %11031 = vmatprep.subr.bf16.mxu1 %v17900_v31  ;;  %11082 = vmatprep.subr.bf16.mxu0 %v20484_v29  ;;  %v9185_v0 = vmax.f32 %v9097_v28, 0.0 }
 0x22a   :  { %v18798_v58 = vpack.c.bf16 %v9190_v3, %v9183_v8  ;;  %v9103_v16 = vadd.f32 %v9102_v5, %v16974_v4  ;;  %v9172_v57 = vadd.f32 %v9171_v56, %v16931_v49 }
 0x22b   :  { %20548 = vst [vmem:[#allocation124_spill] sm:$0xff] %v18792_v26  ;;  %v9191_v11 = vmax.f32 %v9101_v22, 0.0  ;;  %v9193_v34 = vmax.f32 %v9177_v50, 0.0 }
 0x22c   :  { %20549 = vst [vmem:[#allocation125_spill] sm:$0xff] %v18798_v58  ;;  %v9192_v23 = vmax.f32 %v9103_v16, 0.0  ;;  %v9186_v43 = vmax.f32 %v9172_v57, 0.0  ;;  %v9337_v26 = vpop.f32.mrb[168].mxu0  ;;  %v9414_v51 = vpop.f32.mrb[168].mxu1  ;;  %11032 = vmatpush1.bf16.msra.mxu1 %v17872_v10  ;;  %11083 = vmatpush1.bf16.msra.mxu0 %v17060_v1  ;;  %v18819_v1 = vsel %vm3095_vm6, %v18668_v63, 0 }
 0x22d   :  { %v18804_v31 = vpack.c.bf16 %v9191_v11, %v9184_v19  ;;  %v9339_v8 = vpop.f32.mrb[169].mxu0  ;;  %v9416_v3 = vpop.f32.mrb[169].mxu1  ;;  %14379 = vmatprep.subr.msk.bf16.mxu1 %vm3094_vm5, %v18682_v27  ;;  %11084 = vmatprep.subr.bf16.mxu0 %v20484_v29  ;;  %v9338_v22 = vadd.f32 %v9337_v26, %v16931_v49  ;;  %v9415_v10 = vadd.f32 %v9414_v51, %v16931_v49 }
 0x22e   :  { %v18810_v38 = vpack.c.bf16 %v9192_v23, %v9185_v0  ;;  %v18812_v28 = vpack.c.bf16 %v9193_v34, %v9186_v43  ;;  %v9340_v50 = vadd.f32 %v9339_v8, %v16931_v49  ;;  %v9417_v5 = vadd.f32 %v9416_v3, %v16931_v49 }
 0x22f   :  { %20550 = vst [vmem:[#allocation126_spill] sm:$0xff] %v18804_v31  ;;  %v18834_v0 = vsel %vm3095_vm6, %v18686_v54, 0  ;;  %v9577_v43 = vmax.f32 %v9338_v22, 0.0  ;;  %v9579_v51 = vmax.f32 %v9415_v10, 0.0 }
 0x230   :  { %20551 = vst [vmem:[#allocation127_spill] sm:$0xff] %v18810_v38  ;;  %20552 = vst [vmem:[#allocation128_spill] sm:$0xff] %v18812_v28  ;;  %v9343_v56 = vpop.f32.mrb[170].mxu0  ;;  %v9420_v16 = vpop.f32.mrb[170].mxu1  ;;  %11034 = vmatpush1.bf16.msra.mxu1 %v18819_v1  ;;  %11085 = vmatpush1.bf16.msra.mxu0 %v17887_v17 }
 0x231   :  { %v9344_v23 = vadd.f32 %v9343_v56, %v16974_v4  ;;  %v9421_v26 = vadd.f32 %v9420_v16, %v16974_v4  ;;  %v9345_v57 = vpop.f32.mrb[171].mxu0  ;;  %v9422_v19 = vpop.f32.mrb[171].mxu1  ;;  %11035 = vmatprep.subr.bf16.mxu1 %v18471_v62  ;;  %11086 = vmatprep.subr.bf16.mxu0 %v20484_v29  ;;  %v9578_v56 = vmax.f32 %v9340_v50, 0.0  ;;  %v9580_v16 = vmax.f32 %v9417_v5, 0.0 }
 0x232   :  { %v9346_v11 = vadd.f32 %v9345_v57, %v16974_v4  ;;  %v9423_v34 = vadd.f32 %v9422_v19, %v16974_v4 }
 0x233   :  { %v9584_v8 = vmax.f32 %v9344_v23, 0.0  ;;  %v9586_v3 = vmax.f32 %v9421_v26, 0.0 }
 0x234   :  { %v9585_v28 = vmax.f32 %v9346_v11, 0.0  ;;  %v9587_v38 = vmax.f32 %v9423_v34, 0.0  ;;  %v9491_v31 = vpop.f32.mrb[172].mxu0  ;;  %v14855_v58 = vpop.f32.mrb[172].mxu1  ;;  %11036 = vmatpush1.bf16.msra.mxu1 %v18467_v9  ;;  %11087 = vmatpush1.bf16.msra.mxu0 %v18834_v0 }
 0x235   :  { %v18838_v57 = vpack.c.bf16 %v9584_v8, %v9577_v43  ;;  %v18840_v19 = vpack.c.bf16 %v9586_v3, %v9579_v51  ;;  %v9574_v25 = vadd.f32 %v14855_v58, %v16974_v4  ;;  %v9493_v22 = vpop.f32.mrb[173].mxu0  ;;  %v9568_v10 = vpop.f32.mrb[173].mxu1  ;;  %11037 = vmatprep.subr.bf16.mxu1 %v18686_v54  ;;  %11088 = vmatprep.subr.bf16.mxu0 %v20484_v29 }
 0x236   :  { %v18844_v50 = vpack.c.bf16 %v9585_v28, %v9578_v56  ;;  %v18846_v5 = vpack.c.bf16 %v9587_v38, %v9580_v16  ;;  %v9569_v23 = vadd.f32 %v9568_v10, %v16931_v49  ;;  %v9492_v26 = vadd.f32 %v9491_v31, %v16931_v49 }
 0x237   :  { %v9590_v11 = vmax.f32 %v9574_v25, 0.0  ;;  %v9494_v34 = vadd.f32 %v9493_v22, %v16931_v49 }
 0x238   :  { %20553 = vst [vmem:[#allocation129_spill] sm:$0xff] %v18846_v5  ;;  %v9583_v43 = vmax.f32 %v9569_v23, 0.0  ;;  %v9497_v51 = vpop.f32.mrb[174].mxu0  ;;  %v9734_v58 = vpop.f32.mrb[174].mxu1  ;;  %11038 = vmatpush1.bf16.msra.mxu1 %v18682_v27  ;;  %11089 = vmatpush1.bf16.msra.mxu0 %v18461_v41  ;;  %v9581_v56 = vmax.f32 %v9492_v26, 0.0 }
 0x239   :  { %v9498_v28 = vadd.f32 %v9497_v51, %v16974_v4  ;;  %v9499_v38 = vpop.f32.mrb[175].mxu0  ;;  %v9736_v8 = vpop.f32.mrb[175].mxu1  ;;  %14380 = vmatprep.subr.msk.bf16.mxu1 %vm3094_vm5, %v18651_v53  ;;  %11090 = vmatprep.subr.bf16.mxu0 %v20484_v29  ;;  %v9735_v22 = vadd.f32 %v9734_v58, %v16931_v49  ;;  %v9582_v10 = vmax.f32 %v9494_v34, 0.0  ;;  %v3065_v34 = vsel %vm18864_vm9, 65537, %v20484_v29 }
 0x23a   :  { %v18859_v25 = vpack.c.bf16 %v9590_v11, %v9583_v43  ;;  %v9500_v31 = vadd.f32 %v9499_v38, %v16974_v4  ;;  %v9737_v11 = vadd.f32 %v9736_v8, %v16931_v49 }
 0x23b   :  { %v9588_v16 = vmax.f32 %v9498_v28, 0.0  ;;  %11054 = vmatmul.mubr.bf16.vlgmr.msra.gmra.mrb[204].mxu1 %v18695_v45 }
 0x23c   :  { %20554 = vst [vmem:[#allocation130_spill] sm:$0xff] %v18859_v25  ;;  %v9589_v23 = vmax.f32 %v9500_v31, 0.0  ;;  %v9740_v43 = vpop.f32.mrb[176].mxu1  ;;  %v9811_v51 = vpop.f32.mrb[176].mxu0  ;;  %11091 = vmatpush1.bf16.msra.mxu0 %v18688_v2  ;;  %11243 = vmatpush1.bf16.msra.mxu1 %v20484_v29  ;;  %v9974_v31 = vmax.f32 %v9735_v22, 0.0 }
 0x23d   :  { %v18873_v38 = vpack.c.bf16 %v9588_v16, %v9581_v56  ;;  %v9741_v25 = vadd.f32 %v9740_v43, %v16974_v4  ;;  %v9742_v26 = vpop.f32.mrb[177].mxu1  ;;  %v9813_v28 = vpop.f32.mrb[177].mxu0  ;;  %11244 = vmatprep.subr.bf16.mxu1 %v18457_v13  ;;  %14383 = vmatprep.subr.msk.bf16.mxu0 %vm3094_vm5, %v18663_v15  ;;  %v9812_v16 = vadd.f32 %v9811_v51, %v16931_v49  ;;  %v9975_v13 = vmax.f32 %v9737_v11, 0.0 }
 0x23e   :  { %v18883_v58 = vpack.c.bf16 %v9589_v23, %v9582_v10  ;;  %v9743_v8 = vadd.f32 %v9742_v26, %v16974_v4  ;;  %14309 = vmatprep.mubr.msk.bf16.mxu1 %vm10908_vm7, %v18711_v61  ;;  %v20558_v10 = vsub.s32 0, %v18311_v24 }
 0x23f   :  { %20557 = vst [vmem:[#allocation131_spill] sm:$0xff] %v18873_v38  ;;  %v9981_v56 = vmax.f32 %v9741_v25, 0.0  ;;  %11107 = vmatmul.mubr.bf16.vlgmr.msra.gmra.mrb[204].mxu0 %v18695_v45  ;;  %v9814_v38 = vadd.f32 %v9813_v28, %v16931_v49  ;;  %v9976_v24 = vmax.f32 %v9812_v16, 0.0 }
 0x240   :  { %v9982_v43 = vmax.f32 %v9743_v8, 0.0  ;;  %v9817_v5 = vpop.f32.mrb[178].mxu0  ;;  %v9888_v3 = vpop.f32.mrb[178].mxu1  ;;  %11245 = vmatpush1.bf16.msra.mxu1 %v18451_v35  ;;  %11296 = vmatpush1.bf16.msra.mxu0 %v18678_v12  ;;  %v18895_v23 = vrot.slane %v3065_v34, %v20558_v10 }
 0x241   :  { %v18897_v22 = vpack.c.bf16 %v9981_v56, %v9974_v31  ;;  %v9818_v25 = vadd.f32 %v9817_v5, %v16974_v4  ;;  %v9819_v51 = vpop.f32.mrb[179].mxu0  ;;  %v9890_v26 = vpop.f32.mrb[179].mxu1  ;;  %11246 = vmatprep.subr.bf16.mxu1 %v18654_v40  ;;  %11297 = vmatprep.subr.bf16.mxu0 %v18454_v59  ;;  %v9889_v28 = vadd.f32 %v9888_v3, %v16931_v49  ;;  %v9977_v5 = vmax.f32 %v9814_v38, 0.0 }
 0x242   :  { %v18902_v11 = vpack.c.bf16 %v9982_v43, %v9975_v13  ;;  %v9820_v35 = vadd.f32 %v9819_v51, %v16974_v4  ;;  %14311 = vmatprep.mubr.msk.bf16.mxu0 %vm10908_vm7, %v18711_v61  ;;  %v9891_v8 = vadd.f32 %v9890_v26, %v16931_v49  ;;  %vm3100_vm10 = vcmp.ne.s16.totalorder %v18895_v23, 0  ;;  %v20700_v23 = vld [vmem:[#allocation114_spill] sm:$0xff] }
 0x243   :  { %v9983_v12 = vmax.f32 %v9818_v25, 0.0  ;;  %11064 = vmatmul.mubr.bf16.gmra.mrb[208].mxu1 %v18734_v47  ;;  %v9978_v3 = vmax.f32 %v9889_v28, 0.0  ;;  %v3107_v51 = vsel %vm3100_vm10, %v17887_v17, 0 }
 0x244   :  { %v9984_v34 = vmax.f32 %v9820_v35, 0.0  ;;  %v9894_v40 = vpop.f32.mrb[180].mxu1  ;;  %v14862_v31 = vpop.f32.mrb[180].mxu0  ;;  %11247 = vmatpush1.bf16.msra.mxu1 %v18651_v53  ;;  %11298 = vmatpush1.bf16.msra.mxu0 %v18448_v52  ;;  %v9979_v26 = vmax.f32 %v9891_v8, 0.0 }
 0x245   :  { %v18913_v59 = vpack.c.bf16 %v9983_v12, %v9976_v24  ;;  %v9895_v56 = vadd.f32 %v9894_v40, %v16974_v4  ;;  %v9971_v16 = vadd.f32 %v14862_v31, %v16974_v4  ;;  %v9896_v13 = vpop.f32.mrb[181].mxu1  ;;  %v9965_v43 = vpop.f32.mrb[181].mxu0  ;;  %14381 = vmatprep.subr.msk.bf16.mxu1 %vm3094_vm5, %v17940_v36  ;;  %11299 = vmatprep.subr.bf16.mxu0 %v18668_v63  ;;  %v3485_v31 = vsel %vm3095_vm6, %v17961_v6, 0 }
 0x246   :  { %v18921_v38 = vpack.c.bf16 %v9984_v34, %v9977_v5  ;;  %v9897_v52 = vadd.f32 %v9896_v13, %v16974_v4  ;;  %v9966_v53 = vadd.f32 %v9965_v43, %v16931_v49  ;;  %14312 = vmatprep.mubr.msk.bf16.mxu1 %vm10908_vm7, %v18765_v46 }
 0x247   :  { %v9985_v10 = vmax.f32 %v9895_v56, 0.0  ;;  %v9987_v25 = vmax.f32 %v9971_v16, 0.0  ;;  %11115 = vmatmul.mubr.bf16.gmra.mrb[208].mxu0 %v18734_v47 }
 0x248   :  { %v9986_v63 = vmax.f32 %v9897_v52, 0.0  ;;  %v9980_v35 = vmax.f32 %v9966_v53, 0.0  ;;  %v10131_v24 = vpop.f32.mrb[182].mxu0  ;;  %v10208_v12 = vpop.f32.mrb[182].mxu1  ;;  %11249 = vmatpush1.bf16.msra.mxu1 %v3107_v51  ;;  %11300 = vmatpush1.bf16.msra.mxu0 %v18663_v15 }
 0x249   :  { %v18932_v5 = vpack.c.bf16 %v9985_v10, %v9978_v3  ;;  %v10133_v34 = vpop.f32.mrb[183].mxu0  ;;  %v10210_v28 = vpop.f32.mrb[183].mxu1  ;;  %11250 = vmatprep.subr.bf16.mxu1 %v17139_v60  ;;  %14384 = vmatprep.subr.msk.bf16.mxu0 %vm3094_vm5, %v17937_v18  ;;  %v10132_v8 = vadd.f32 %v10131_v24, %v16931_v49  ;;  %v10209_v15 = vadd.f32 %v10208_v12, %v16931_v49 }
 0x24a   :  { %v18938_v40 = vpack.c.bf16 %v9986_v63, %v9979_v26  ;;  %v18940_v17 = vpack.c.bf16 %v9987_v25, %v9980_v35  ;;  %14314 = vmatprep.mubr.msk.bf16.mxu0 %vm10908_vm7, %v18765_v46  ;;  %v10134_v60 = vadd.f32 %v10133_v34, %v16931_v49  ;;  %v10211_v56 = vadd.f32 %v10210_v28, %v16931_v49 }
 0x24b   :  { %v10371_v51 = vmax.f32 %v10132_v8, 0.0  ;;  %v10373_v26 = vmax.f32 %v10209_v15, 0.0 }
 0x24c   :  { %v10137_v16 = vpop.f32.mrb[184].mxu0  ;;  %v10214_v13 = vpop.f32.mrb[184].mxu1  ;;  %11251 = vmatpush1.bf16.msra.mxu1 %v17118_v44  ;;  %11302 = vmatpush1.bf16.msra.mxu0 %v3485_v31  ;;  %v10372_v44 = vmax.f32 %v10134_v60, 0.0  ;;  %v10374_v24 = vmax.f32 %v10211_v56, 0.0 }
 0x24d   :  { %v10138_v43 = vadd.f32 %v10137_v16, %v16974_v4  ;;  %v10215_v52 = vadd.f32 %v10214_v13, %v16974_v4  ;;  %v10139_v53 = vpop.f32.mrb[185].mxu0  ;;  %v10216_v3 = vpop.f32.mrb[185].mxu1  ;;  %11252 = vmatprep.subr.bf16.mxu1 %v17961_v6  ;;  %11303 = vmatprep.subr.bf16.mxu0 %v17169_v20 }
 0x24e   :  { %v10140_v10 = vadd.f32 %v10139_v53, %v16974_v4  ;;  %v10217_v25 = vadd.f32 %v10216_v3, %v16974_v4 }
 0x24f   :  { %v10378_v63 = vmax.f32 %v10138_v43, 0.0  ;;  %v10380_v35 = vmax.f32 %v10215_v52, 0.0  ;;  %v18978_v43 = vsel %vm3100_vm10, %v18688_v2, 0 }
 0x250   :  { %v10379_v12 = vmax.f32 %v10140_v10, 0.0  ;;  %v10381_v34 = vmax.f32 %v10217_v25, 0.0  ;;  %v10285_v28 = vpop.f32.mrb[186].mxu0  ;;  %v14869_v31 = vpop.f32.mrb[186].mxu1  ;;  %11253 = vmatpush1.bf16.msra.mxu1 %v17940_v36  ;;  %11304 = vmatpush1.bf16.msra.mxu0 %v17145_v7 }
 0x251   :  { %v18960_v6 = vpack.c.bf16 %v10378_v63, %v10371_v51  ;;  %v18962_v20 = vpack.c.bf16 %v10380_v35, %v10373_v26  ;;  %v10368_v16 = vadd.f32 %v14869_v31, %v16974_v4  ;;  %v10287_v8 = vpop.f32.mrb[187].mxu0  ;;  %v10362_v15 = vpop.f32.mrb[187].mxu1  ;;  %14382 = vmatprep.subr.msk.bf16.mxu1 %vm3094_vm5, %v18715_v42  ;;  %11305 = vmatprep.subr.bf16.mxu0 %v17963_v30 }
 0x252   :  { %v18968_v60 = vpack.c.bf16 %v10379_v12, %v10372_v44  ;;  %v18970_v56 = vpack.c.bf16 %v10381_v34, %v10374_v24  ;;  %v10363_v36 = vadd.f32 %v10362_v15, %v16931_v49  ;;  %v10286_v7 = vadd.f32 %v10285_v28, %v16931_v49 }
 0x253   :  { %v10384_v13 = vmax.f32 %v10368_v16, 0.0  ;;  %v10288_v52 = vadd.f32 %v10287_v8, %v16931_v49 }
 0x254   :  { %v10377_v53 = vmax.f32 %v10363_v36, 0.0  ;;  %v10291_v3 = vpop.f32.mrb[188].mxu0  ;;  %v10527_v10 = vpop.f32.mrb[188].mxu1  ;;  %11255 = vmatpush1.bf16.msra.mxu1 %v18978_v43  ;;  %11306 = vmatpush1.bf16.msra.mxu0 %v17937_v18  ;;  %v10375_v44 = vmax.f32 %v10286_v7, 0.0  ;;  %v18995_v18 = vsel %vm3095_vm6, %v18721_v33, 0 }
 0x255   :  { %v10292_v25 = vadd.f32 %v10291_v3, %v16974_v4  ;;  %v10293_v51 = vpop.f32.mrb[189].mxu0  ;;  %v10529_v26 = vpop.f32.mrb[189].mxu1  ;;  %11256 = vmatprep.subr.bf16.mxu1 %v18477_v21  ;;  %14385 = vmatprep.subr.msk.bf16.mxu0 %vm3094_vm5, %v18717_v14  ;;  %v10528_v12 = vadd.f32 %v10527_v10, %v16931_v49  ;;  %v10376_v34 = vmax.f32 %v10288_v52, 0.0 }
 0x256   :  { %v18988_v63 = vpack.c.bf16 %v10384_v13, %v10377_v53  ;;  %v10294_v35 = vadd.f32 %v10293_v51, %v16974_v4  ;;  %v10530_v31 = vadd.f32 %v10529_v26, %v16931_v49 }
 0x257   :  { %v10382_v24 = vmax.f32 %v10292_v25, 0.0  ;;  %v10767_v3 = vmax.f32 %v10528_v12, 0.0  ;;  %v20561_v12 = vld [vmem:[#allocation118_spill] sm:$0xff] }
 0x258   :  { %20559 = vst [vmem:[#allocation132_spill] sm:$0xff] %v18988_v63  ;;  %v10383_v28 = vmax.f32 %v10294_v35, 0.0  ;;  %v10533_v16 = vpop.f32.mrb[190].mxu1  ;;  %v10604_v8 = vpop.f32.mrb[190].mxu0  ;;  %11257 = vmatpush1.bf16.msra.mxu1 %v18474_v32  ;;  %11308 = vmatpush1.bf16.msra.mxu0 %v18995_v18  ;;  %v10768_v51 = vmax.f32 %v10530_v31, 0.0 }
 0x259   :  { %v19000_v15 = vpack.c.bf16 %v10382_v24, %v10375_v44  ;;  %v10534_v36 = vadd.f32 %v10533_v16, %v16974_v4  ;;  %v10535_v7 = vpop.f32.mrb[191].mxu1  ;;  %v10606_v13 = vpop.f32.mrb[191].mxu0  ;;  %11258 = vmatprep.subr.bf16.mxu1 %v18721_v33  ;;  %11309 = vmatprep.subr.bf16.mxu0 %v18487_v37  ;;  %v10605_v25 = vadd.f32 %v10604_v8, %v16931_v49 }
 0x25a   :  { %v19005_v52 = vpack.c.bf16 %v10383_v28, %v10376_v34  ;;  %v10536_v53 = vadd.f32 %v10535_v7, %v16974_v4  ;;  %v10607_v35 = vadd.f32 %v10606_v13, %v16931_v49 }
 0x25b   :  { %v10774_v10 = vmax.f32 %v10534_v36, 0.0  ;;  %v10769_v36 = vmax.f32 %v10605_v25, 0.0 }
 0x25c   :  { %v10775_v26 = vmax.f32 %v10536_v53, 0.0  ;;  %v10610_v44 = vpop.f32.mrb[192].mxu0  ;;  %v10681_v24 = vpop.f32.mrb[192].mxu1  ;;  %11259 = vmatpush1.bf16.msra.mxu1 %v18715_v42  ;;  %11310 = vmatpush1.bf16.msra.mxu0 %v18483_v39 }
 0x25d   :  { %v19012_v16 = vpack.c.bf16 %v10774_v10, %v10767_v3  ;;  %v10611_v34 = vadd.f32 %v10610_v44, %v16974_v4  ;;  %v10612_v28 = vpop.f32.mrb[193].mxu0  ;;  %v10683_v7 = vpop.f32.mrb[193].mxu1  ;;  %11311 = vmatprep.subr.bf16.mxu0 %v20561_v12  ;;  %14386 = vmatprep.subr.msk.bf16.mxu1 %vm3094_vm5, %v18682_v27  ;;  %v10682_v53 = vadd.f32 %v10681_v24, %v16931_v49  ;;  %v10770_v3 = vmax.f32 %v10607_v35, 0.0 }
 0x25e   :  { %v19019_v31 = vpack.c.bf16 %v10775_v26, %v10768_v51  ;;  %v10613_v8 = vadd.f32 %v10612_v28, %v16974_v4  ;;  %v10684_v44 = vadd.f32 %v10683_v7, %v16931_v49 }
 0x25f   :  { %20560 = vst [vmem:[#allocation133_spill] sm:$0xff] %v19012_v16  ;;  %v10776_v13 = vmax.f32 %v10611_v34, 0.0  ;;  %11275 = vmatmul.mubr.bf16.vlgmr.msra.gmra.mrb[212].mxu1 %v18695_v45 }
 0x260   :  { %v10777_v10 = vmax.f32 %v10613_v8, 0.0  ;;  %v10687_v16 = vpop.f32.mrb[194].mxu1  ;;  %v14876_v63 = vpop.f32.mrb[194].mxu0  ;;  %11312 = vmatpush1.bf16.msra.mxu0 %v18717_v14  ;;  %11349 = vmatpush1.bf16.msra.mxu1 %v18819_v1  ;;  %v10771_v1 = vmax.f32 %v10682_v53, 0.0  ;;  %v20565_v53 = vld [vmem:[#allocation4_spill] sm:$0xff] }
 0x261   :  { %v19027_v51 = vpack.c.bf16 %v10776_v13, %v10769_v36  ;;  %v10688_v26 = vadd.f32 %v10687_v16, %v16974_v4  ;;  %v10764_v25 = vadd.f32 %v14876_v63, %v16974_v4  ;;  %v10689_v34 = vpop.f32.mrb[195].mxu1  ;;  %v10758_v24 = vpop.f32.mrb[195].mxu0  ;;  %11350 = vmatprep.subr.bf16.mxu1 %v18471_v62  ;;  %11401 = vmatprep.subr.bf16.mxu0 %v20484_v29  ;;  %v10772_v63 = vmax.f32 %v10684_v44, 0.0  ;;  %v20569_v44 = vld [vmem:[#allocation81_spill] sm:$0xff] }
 0x262   :  { %v19033_v35 = vpack.c.bf16 %v10777_v10, %v10770_v3  ;;  %v10690_v28 = vadd.f32 %v10689_v34, %v16974_v4  ;;  %v10759_v7 = vadd.f32 %v10758_v24, %v16931_v49  ;;  %14313 = vmatprep.mubr.msk.bf16.mxu1 %vm10908_vm7, %v18711_v61  ;;  %v19085_v3 = vsel %vm3095_vm6, %v20561_v12, 0  ;;  %v20568_v10 = vld [vmem:[#allocation42_spill] sm:$0xff]  ;;  %v20571_v34 = vld [vmem:[#allocation80_spill] sm:$0xff] }
 0x263   :  { %v10778_v8 = vmax.f32 %v10688_v26, 0.0  ;;  %v10780_v16 = vmax.f32 %v10764_v25, 0.0  ;;  %11328 = vmatmul.mubr.bf16.vlgmr.msra.gmra.mrb[212].mxu0 %v18695_v45  ;;  %v20570_v26 = vld [vmem:[#allocation121_spill] sm:$0xff]  ;;  %v20572_v24 = vld [vmem:[#allocation82_spill] sm:$0xff] }
 0x264   :  { %v10779_v36 = vmax.f32 %v10690_v28, 0.0  ;;  %v10773_v13 = vmax.f32 %v10759_v7, 0.0  ;;  %11351 = vmatpush1.bf16.msra.mxu1 %v18467_v9  ;;  %11402 = vmatpush1.bf16.msra.mxu0 %v18834_v0  ;;  %v20562_v9 = vld [vmem:[#allocation43_spill] sm:$0xff]  ;;  %v19094_v25 = vsel %vm3095_vm6, %v20570_v26, 0  ;;  %v20582_v7 = vld [vmem:[#allocation48_spill] sm:$0xff] }
 0x265   :  { %v19042_v62 = vpack.c.bf16 %v10778_v8, %v10771_v1  ;;  %11352 = vmatprep.subr.bf16.mxu1 %v18686_v54  ;;  %11403 = vmatprep.subr.bf16.mxu0 %v20484_v29  ;;  %v3487_v54 = vsel %vm3095_vm6, %v17963_v30, 0  ;;  %v20566_v30 = vld [vmem:[#allocation5_spill] sm:$0xff]  ;;  %v20573_v28 = vld [vmem:[#allocation119_spill] sm:$0xff]  ;;  %v20583_v8 = vld [vmem:[#allocation86_spill] sm:$0xff] }
 0x266   :  { %v19046_v49 = vpack.c.bf16 %v10779_v36, %v10772_v63  ;;  %v19048_v4 = vpack.c.bf16 %v10780_v16, %v10773_v13  ;;  %14315 = vmatprep.mubr.msk.bf16.mxu0 %vm10908_vm7, %v18711_v61  ;;  %v19157_v1 = vsel %vm3100_vm10, %v20573_v28, 0  ;;  %v20584_v16 = vld [vmem:[#allocation124_spill] sm:$0xff]  ;;  %v20585_v63 = vld [vmem:[#allocation123_spill] sm:$0xff] }
 0x267   :  { %11285 = vmatmul.mubr.bf16.gmra.mrb[216].mxu1 %v18734_v47  ;;  %v19168_v36 = vsel %vm3095_vm6, %v20585_v63, 0  ;;  %v20586_v13 = vld [vmem:[#allocation84_spill] sm:$0xff] }
 0x268   :  { %11353 = vmatpush1.bf16.msra.mxu1 %v18682_v27  ;;  %11404 = vmatpush1.bf16.msra.mxu0 %v18461_v41  ;;  %v20563_v27 = vld [vmem:[#allocation6_spill] sm:$0xff]  ;;  %v20564_v41 = vld [vmem:[#allocation44_spill] sm:$0xff] }
 0x269   :  { %14387 = vmatprep.subr.msk.bf16.mxu1 %vm3094_vm5, %v20562_v9  ;;  %11405 = vmatprep.subr.bf16.mxu0 %v20484_v29  ;;  %v3489_v0 = vsel %vm3095_vm6, %v20564_v41, 0 }
 0x26a   :  { %14316 = vmatprep.mubr.msk.bf16.mxu1 %vm10908_vm7, %v18765_v46 }
 0x26b   :  { %11338 = vmatmul.mubr.bf16.gmra.mrb[216].mxu0 %v18734_v47 }
 0x26c   :  { %11355 = vmatpush1.bf16.msra.mxu1 %v3487_v54  ;;  %11406 = vmatpush1.bf16.msra.mxu0 %v18688_v2  ;;  %v20567_v2 = vld [vmem:[#allocation120_spill] sm:$0xff]  ;;  %v20588_v54 = vld [vmem:[#allocation83_spill] sm:$0xff] }
 0x26d   :  { %11356 = vmatprep.subr.bf16.mxu1 %v20563_v27  ;;  %11407 = vmatprep.subr.bf16.mxu0 %v20484_v29  ;;  %v20589_v27 = vld [vmem:[#allocation125_spill] sm:$0xff] }
 0x26e   :  { %14318 = vmatprep.mubr.msk.bf16.mxu0 %vm10908_vm7, %v18765_v46 }
 0x270   :  { %11357 = vmatpush1.bf16.msra.mxu1 %v20565_v53  ;;  %11408 = vmatpush1.bf16.msra.mxu0 %v3489_v0  ;;  %v20592_v0 = vld [vmem:[#allocation50_spill] sm:$0xff] }
 0x271   :  { %11358 = vmatprep.subr.bf16.mxu1 %v20564_v41  ;;  %11409 = vmatprep.subr.bf16.mxu0 %v20484_v29  ;;  %v20590_v41 = vld [vmem:[#allocation49_spill] sm:$0xff]  ;;  %v3872_v53 = vsel %vm3095_vm6, %v20592_v0, 0 }
 0x274   :  { %11359 = vmatpush1.bf16.msra.mxu1 %v20562_v9  ;;  %11410 = vmatpush1.bf16.msra.mxu0 %v20566_v30  ;;  %v20587_v9 = vld [vmem:[#allocation85_spill] sm:$0xff]  ;;  %v20593_v30 = vld [vmem:[#allocation12_spill] sm:$0xff] }
 0x275   :  { %14388 = vmatprep.subr.msk.bf16.mxu1 %vm3094_vm5, %v20567_v2  ;;  %11411 = vmatprep.subr.bf16.mxu0 %v20484_v29 }
 0x278   :  { %11361 = vmatpush1.bf16.msra.mxu1 %v19085_v3  ;;  %11412 = vmatpush1.bf16.msra.mxu0 %v20568_v10 }
 0x279   :  { %11362 = vmatprep.subr.bf16.mxu1 %v20569_v44  ;;  %11413 = vmatprep.subr.bf16.mxu0 %v20484_v29 }
 0x27c   :  { %11363 = vmatpush1.bf16.msra.mxu1 %v20571_v34  ;;  %11414 = vmatpush1.bf16.msra.mxu0 %v19094_v25 }
 0x27d   :  { %11364 = vmatprep.subr.bf16.mxu1 %v20570_v26  ;;  %11415 = vmatprep.subr.bf16.mxu0 %v20484_v29 }
 0x280   :  { %11365 = vmatpush1.bf16.msra.mxu1 %v20567_v2  ;;  %11416 = vmatpush1.bf16.msra.mxu0 %v20572_v24 }
 0x281   :  { %14389 = vmatprep.subr.msk.bf16.mxu1 %vm3094_vm5, %v18715_v42  ;;  %11417 = vmatprep.subr.bf16.mxu0 %v20484_v29 }
 0x283   :  { %11381 = vmatmul.mubr.bf16.vlgmr.msra.gmra.mrb[220].mxu1 %v18695_v45 }
 0x284   :  { %11418 = vmatpush1.bf16.msra.mxu0 %v20573_v28  ;;  %11570 = vmatpush1.bf16.msra.mxu1 %v18978_v43  ;;  %v20578_v43 = vld [vmem:[#allocation8_spill] sm:$0xff] }
 0x285   :  { %11571 = vmatprep.subr.bf16.mxu1 %v18477_v21  ;;  %14392 = vmatprep.subr.msk.bf16.mxu0 %vm3094_vm5, %v18717_v14  ;;  %v20574_v21 = vld [vmem:[#allocation45_spill] sm:$0xff] }
 0x286   :  { %14317 = vmatprep.mubr.msk.bf16.mxu1 %vm10908_vm7, %v18711_v61 }
 0x287   :  { %11434 = vmatmul.mubr.bf16.vlgmr.msra.gmra.mrb[220].mxu0 %v18695_v45 }
 0x288   :  { %11572 = vmatpush1.bf16.msra.mxu1 %v18474_v32  ;;  %11623 = vmatpush1.bf16.msra.mxu0 %v18995_v18  ;;  %v3490_v32 = vsel %vm3100_vm10, %v20568_v10, 0  ;;  %v20579_v18 = vld [vmem:[#allocation10_spill] sm:$0xff]  ;;  %v19227_v10 = vsel %vm3095_vm6, %v20589_v27, 0 }
 0x289   :  { %11573 = vmatprep.subr.bf16.mxu1 %v18721_v33  ;;  %11624 = vmatprep.subr.bf16.mxu0 %v18487_v37  ;;  %v20575_v37 = vld [vmem:[#allocation9_spill] sm:$0xff] }
 0x28a   :  { %14319 = vmatprep.mubr.msk.bf16.mxu0 %vm10908_vm7, %v18711_v61 }
 0x28b   :  { %11391 = vmatmul.mubr.bf16.gmra.mrb[224].mxu1 %v18734_v47 }
 0x28c   :  { %11574 = vmatpush1.bf16.msra.mxu1 %v18715_v42  ;;  %11625 = vmatpush1.bf16.msra.mxu0 %v18483_v39  ;;  %v20576_v39 = vld [vmem:[#allocation47_spill] sm:$0xff]  ;;  %v20577_v42 = vld [vmem:[#allocation46_spill] sm:$0xff] }
 0x28d   :  { %14390 = vmatprep.subr.msk.bf16.mxu1 %vm3094_vm5, %v20574_v21  ;;  %11626 = vmatprep.subr.bf16.mxu0 %v20561_v12  ;;  %v3868_v33 = vsel %vm3095_vm6, %v20577_v42, 0  ;;  %v20581_v12 = vld [vmem:[#allocation122_spill] sm:$0xff] }
 0x28e   :  { %14320 = vmatprep.mubr.msk.bf16.mxu1 %vm10908_vm7, %v18765_v46 }
 0x28f   :  { %11442 = vmatmul.mubr.bf16.gmra.mrb[224].mxu0 %v18734_v47 }
 0x290   :  { %11576 = vmatpush1.bf16.msra.mxu1 %v3490_v32  ;;  %11627 = vmatpush1.bf16.msra.mxu0 %v18717_v14  ;;  %v20580_v14 = vld [vmem:[#allocation7_spill] sm:$0xff]  ;;  %v20601_v32 = vld [vmem:[#allocation128_spill] sm:$0xff] }
 0x291   :  { %11577 = vmatprep.subr.bf16.mxu1 %v20575_v37  ;;  %14393 = vmatprep.subr.msk.bf16.mxu0 %vm3094_vm5, %v20576_v39  ;;  %v19263_v37 = vld [vmem:[%s20329_s3 + $0x14] ss:$8 sps:$4 sm:$0xff]  }
 0x292   :  { %14322 = vmatprep.mubr.msk.bf16.mxu0 %vm10908_vm7, %v18765_v46 }
 0x294   :  { %11578 = vmatpush1.bf16.msra.mxu1 %v20578_v43  ;;  %11629 = vmatpush1.bf16.msra.mxu0 %v3868_v33  ;;  %v20603_v33 = vld [vmem:[#allocation15_spill] sm:$0xff]  ;;  %v20604_v43 = vld [vmem:[#allocation52_spill] sm:$0xff] }
 0x295   :  { %11579 = vmatprep.subr.bf16.mxu1 %v20577_v42  ;;  %11630 = vmatprep.subr.bf16.mxu0 %v20579_v18  ;;  %v19286_v42 = vld [vmem:[%s20329_s3 + $0x10] ss:$8 sps:$4 sm:$0xff]  }
 0x296   :  { %v20605_v18 = vld [vmem:[#allocation55_spill] sm:$0xff] }
 0x298   :  { %11580 = vmatpush1.bf16.msra.mxu1 %v20574_v21  ;;  %11631 = vmatpush1.bf16.msra.mxu0 %v20580_v14  ;;  %v19251_v21 = vld [vmem:[%s20329_s3] ss:$8 sps:$4 sm:$0xff]   ;;  %v4251_v14 = vsel %vm3095_vm6, %v20605_v18, 0 }
 0x299   :  { %14391 = vmatprep.subr.msk.bf16.mxu1 %vm3094_vm5, %v20581_v12  ;;  %11632 = vmatprep.subr.bf16.mxu0 %v20582_v7 }
 0x29c   :  { %11582 = vmatpush1.bf16.msra.mxu1 %v19157_v1  ;;  %11633 = vmatpush1.bf16.msra.mxu0 %v20576_v39  ;;  %v20602_v39 = vld [vmem:[#allocation53_spill] sm:$0xff] }
 0x29d   :  { %11583 = vmatprep.subr.bf16.mxu1 %v20583_v8  ;;  %14394 = vmatprep.subr.msk.bf16.mxu0 %vm3094_vm5, %v20584_v16 }
 0x2a0   :  { %11584 = vmatpush1.bf16.msra.mxu1 %v20586_v13  ;;  %11635 = vmatpush1.bf16.msra.mxu0 %v19168_v36 }
 0x2a1   :  { %11585 = vmatprep.subr.bf16.mxu1 %v20585_v63  ;;  %11636 = vmatprep.subr.bf16.mxu0 %v20587_v9 }
 0x2a4   :  { %11586 = vmatpush1.bf16.msra.mxu1 %v20581_v12  ;;  %11637 = vmatpush1.bf16.msra.mxu0 %v20588_v54 }
 0x2a5   :  { %11638 = vmatprep.subr.bf16.mxu0 %v20589_v27  ;;  %14395 = vmatprep.subr.msk.bf16.mxu1 %vm3094_vm5, %v20567_v2 }
 0x2a7   :  { %11602 = vmatmul.mubr.bf16.vlgmr.msra.gmra.mrb[228].mxu1 %v18695_v45 }
 0x2a8   :  { %11639 = vmatpush1.bf16.msra.mxu0 %v20584_v16  ;;  %11676 = vmatpush1.bf16.msra.mxu1 %v19085_v3  ;;  %v20595_v3 = vld [vmem:[#allocation126_spill] sm:$0xff] }
 0x2a9   :  { %11677 = vmatprep.subr.bf16.mxu1 %v20569_v44  ;;  %11728 = vmatprep.subr.bf16.mxu0 %v20484_v29  ;;  %v20596_v44 = vld [vmem:[#allocation51_spill] sm:$0xff] }
 0x2aa   :  { %14321 = vmatprep.mubr.msk.bf16.mxu1 %vm10908_vm7, %v18711_v61 }
 0x2ab   :  { %11655 = vmatmul.mubr.bf16.vlgmr.msra.gmra.mrb[228].mxu0 %v18695_v45  ;;  %v3870_v45 = vsel %vm3095_vm6, %v20582_v7, 0  ;;  %v20607_v7 = vld [vmem:[#allocation17_spill] sm:$0xff] }
 0x2ac   :  { %11678 = vmatpush1.bf16.msra.mxu1 %v20571_v34  ;;  %11729 = vmatpush1.bf16.msra.mxu0 %v19094_v25  ;;  %v20598_v25 = vld [vmem:[#allocation127_spill] sm:$0xff] }
 0x2ad   :  { %11679 = vmatprep.subr.bf16.mxu1 %v20570_v26  ;;  %11730 = vmatprep.subr.bf16.mxu0 %v20484_v29  ;;  %v20597_v26 = vld [vmem:[#allocation89_spill] sm:$0xff]  ;;  %v19236_v34 = vsel %vm3095_vm6, %v20598_v25, 0 }
 0x2ae   :  { %14323 = vmatprep.mubr.msk.bf16.mxu0 %vm10908_vm7, %v18711_v61  ;;  %v20591_v61 = vld [vmem:[#allocation13_spill] sm:$0xff] }
 0x2af   :  { %11612 = vmatmul.mubr.bf16.gmra.mrb[232].mxu1 %v18734_v47 }
 0x2b0   :  { %11680 = vmatpush1.bf16.msra.mxu1 %v20567_v2  ;;  %11731 = vmatpush1.bf16.msra.mxu0 %v20572_v24  ;;  %v20594_v2 = vld [vmem:[#allocation11_spill] sm:$0xff]  ;;  %v20599_v24 = vld [vmem:[#allocation88_spill] sm:$0xff] }
 0x2b1   :  { %14396 = vmatprep.subr.msk.bf16.mxu1 %vm3094_vm5, %v20590_v41  ;;  %11732 = vmatprep.subr.bf16.mxu0 %v20484_v29 }
 0x2b2   :  { %14324 = vmatprep.mubr.msk.bf16.mxu1 %vm10908_vm7, %v18765_v46 }
 0x2b3   :  { %11665 = vmatmul.mubr.bf16.gmra.mrb[232].mxu0 %v18734_v47 }
 0x2b4   :  { %11682 = vmatpush1.bf16.msra.mxu1 %v3870_v45  ;;  %11733 = vmatpush1.bf16.msra.mxu0 %v20573_v28  ;;  %v20600_v28 = vld [vmem:[#allocation87_spill] sm:$0xff] }
 0x2b5   :  { %11683 = vmatprep.subr.bf16.mxu1 %v20591_v61  ;;  %11734 = vmatprep.subr.bf16.mxu0 %v20484_v29 }
 0x2b6   :  { %14326 = vmatprep.mubr.msk.bf16.mxu0 %vm10908_vm7, %v18765_v46 }
 0x2b8   :  { %11684 = vmatpush1.bf16.msra.mxu1 %v20593_v30  ;;  %11735 = vmatpush1.bf16.msra.mxu0 %v3872_v53  ;;  %v20613_v53 = vld [vmem:[#allocation92_spill] sm:$0xff] }
 0x2b9   :  { %11685 = vmatprep.subr.bf16.mxu1 %v20592_v0  ;;  %11736 = vmatprep.subr.bf16.mxu0 %v20484_v29 }
 0x2bc   :  { %11686 = vmatpush1.bf16.msra.mxu1 %v20590_v41  ;;  %11737 = vmatpush1.bf16.msra.mxu0 %v20594_v2 }
 0x2bd   :  { %14397 = vmatprep.subr.msk.bf16.mxu1 %vm3094_vm5, %v20595_v3  ;;  %11738 = vmatprep.subr.bf16.mxu0 %v20484_v29 }
 0x2c0   :  { %11688 = vmatpush1.bf16.msra.mxu1 %v19227_v10  ;;  %11739 = vmatpush1.bf16.msra.mxu0 %v20596_v44 }
 0x2c1   :  { %11689 = vmatprep.subr.bf16.mxu1 %v20597_v26  ;;  %11740 = vmatprep.subr.bf16.mxu0 %v20484_v29 }
 0x2c4   :  { %11690 = vmatpush1.bf16.msra.mxu1 %v20599_v24  ;;  %11741 = vmatpush1.bf16.msra.mxu0 %v19236_v34 }
 0x2c5   :  { %11691 = vmatprep.subr.bf16.mxu1 %v20598_v25  ;;  %11742 = vmatprep.subr.bf16.mxu0 %v20484_v29 }
 0x2c8   :  { %11692 = vmatpush1.bf16.msra.mxu1 %v20595_v3  ;;  %11743 = vmatpush1.bf16.msra.mxu0 %v20600_v28 }
 0x2c9   :  { %14398 = vmatprep.subr.msk.bf16.mxu1 %vm3094_vm5, %v20581_v12  ;;  %11744 = vmatprep.subr.bf16.mxu0 %v20484_v29 }
 0x2cb   :  { %11708 = vmatmul.mubr.bf16.vlgmr.msra.gmra.mrb[236].mxu1 %v19251_v21 }
 0x2cc   :  { %11745 = vmatpush1.bf16.msra.mxu0 %v20601_v32  ;;  %11897 = vmatpush1.bf16.msra.mxu1 %v19157_v1  ;;  %v20608_v1 = vld [vmem:[#allocation16_spill] sm:$0xff] }
 0x2cd   :  { %11898 = vmatprep.subr.bf16.mxu1 %v20583_v8  ;;  %14401 = vmatprep.subr.msk.bf16.mxu0 %vm3094_vm5, %v20584_v16  ;;  %v19314_v8 = vsel %vm3100_vm10, %v20601_v32, 0 }
 0x2ce   :  { %14325 = vmatprep.mubr.msk.bf16.mxu1 %vm10908_vm7, %v19263_v37 }
 0x2cf   :  { %11761 = vmatmul.mubr.bf16.vlgmr.msra.gmra.mrb[236].mxu0 %v19251_v21 }
 0x2d0   :  { %11899 = vmatpush1.bf16.msra.mxu1 %v20586_v13  ;;  %11950 = vmatpush1.bf16.msra.mxu0 %v19168_v36  ;;  %v19327_v36 = vsel %vm3095_vm6, %v18844_v50, 0  ;;  %v20611_v13 = vld [vmem:[#allocation90_spill] sm:$0xff] }
 0x2d1   :  { %11900 = vmatprep.subr.bf16.mxu1 %v20585_v63  ;;  %11951 = vmatprep.subr.bf16.mxu0 %v20587_v9  ;;  %v20610_v63 = vld [vmem:[#allocation91_spill] sm:$0xff]  ;;  %v20612_v9 = vld [vmem:[#allocation93_spill] sm:$0xff] }
 0x2d2   :  { %14327 = vmatprep.mubr.msk.bf16.mxu0 %vm10908_vm7, %v19263_v37 }
 0x2d3   :  { %11718 = vmatmul.mubr.bf16.gmra.mrb[240].mxu1 %v18734_v47  ;;  %v3873_v47 = vsel %vm3100_vm10, %v20596_v44, 0 }
 0x2d4   :  { %11901 = vmatpush1.bf16.msra.mxu1 %v20581_v12  ;;  %11952 = vmatpush1.bf16.msra.mxu0 %v20588_v54  ;;  %v20606_v12 = vld [vmem:[#allocation14_spill] sm:$0xff] }
 0x2d5   :  { %14399 = vmatprep.subr.msk.bf16.mxu1 %vm3094_vm5, %v20602_v39  ;;  %11953 = vmatprep.subr.bf16.mxu0 %v20589_v27 }
 0x2d6   :  { %14328 = vmatprep.mubr.msk.bf16.mxu1 %vm10908_vm7, %v18765_v46 }
 0x2d7   :  { %11769 = vmatmul.mubr.bf16.gmra.mrb[240].mxu0 %v19286_v42 }
 0x2d8   :  { %11903 = vmatpush1.bf16.msra.mxu1 %v3873_v47  ;;  %11954 = vmatpush1.bf16.msra.mxu0 %v20584_v16  ;;  %v19318_v16 = vpop.permute.xlu1 %10872 }
 0x2d9   :  { %11904 = vmatprep.subr.bf16.mxu1 %v20603_v33  ;;  %14402 = vmatprep.subr.msk.bf16.mxu0 %vm3094_vm5, %v20604_v43 }
 0x2da   :  { %14330 = vmatprep.mubr.msk.bf16.mxu0 %vm10908_vm7, %v18765_v46  ;;  %v20609_v46 = vld [vmem:[#allocation54_spill] sm:$0xff] }
 0x2dc   :  { %11905 = vmatpush1.bf16.msra.mxu1 %v20606_v12  ;;  %11956 = vmatpush1.bf16.msra.mxu0 %v4251_v14  ;;  %v19333_v27 = vpop.permute.xlu1 %10877 }
 0x2dd   :  { %11906 = vmatprep.subr.bf16.mxu1 %v20605_v18  ;;  %11957 = vmatprep.subr.bf16.mxu0 %v20607_v7 }
 0x2e0   :  { %11907 = vmatpush1.bf16.msra.mxu1 %v20602_v39  ;;  %11958 = vmatpush1.bf16.msra.mxu0 %v20608_v1  ;;  %v20614_v39 = vld [vmem:[#allocation129_spill] sm:$0xff] }
 0x2e1   :  { %14400 = vmatprep.subr.msk.bf16.mxu1 %vm3094_vm5, %v18838_v57  ;;  %11959 = vmatprep.subr.bf16.mxu0 %v20609_v46 }
 0x2e4   :  { %11909 = vmatpush1.bf16.msra.mxu1 %v19314_v8  ;;  %11960 = vmatpush1.bf16.msra.mxu0 %v20604_v43 }
 0x2e5   :  { %11910 = vmatprep.subr.bf16.mxu1 %v20610_v63  ;;  %14403 = vmatprep.subr.msk.bf16.mxu0 %vm3094_vm5, %v18840_v19 }
 0x2e8   :  { %11911 = vmatpush1.bf16.msra.mxu1 %v20611_v13  ;;  %11962 = vmatpush1.bf16.msra.mxu0 %v19327_v36 }
 0x2e9   :  { %11912 = vmatprep.subr.bf16.mxu1 %v18844_v50  ;;  %11963 = vmatprep.subr.bf16.mxu0 %v20612_v9 }
 0x2ea   :  { %v10949_v54 = vpop.f32.mrb[196].mxu1 }
 0x2eb   :  { %v10950_v41 = vadd.f32 %v10949_v54, %v19318_v16  ;;  %v10951_v45 = vpop.f32.mrb[197].mxu1 }
 0x2ec   :  { %v10952_v61 = vadd.f32 %v10951_v45, %v19318_v16  ;;  %v10953_v0 = vpop.f32.mrb[198].mxu1  ;;  %11913 = vmatpush1.bf16.msra.mxu1 %v18838_v57  ;;  %11964 = vmatpush1.bf16.msra.mxu0 %v20613_v53 }
 0x2ed   :  { %v11123_v30 = vmax.f32 %v10950_v41, 0.0  ;;  %v10954_v2 = vadd.f32 %v10953_v0, %v19333_v27  ;;  %v10955_v44 = vpop.f32.mrb[199].mxu1  ;;  %11965 = vmatprep.subr.bf16.mxu0 %v20614_v39  ;;  %14404 = vmatprep.subr.msk.bf16.mxu1 %vm3094_vm5, %v20595_v3  ;;  %v19350_v41 = vpop.permute.xlu0 %10882 }
 0x2ee   :  { %v10956_v47 = vadd.f32 %v10955_v44, %v19333_v27  ;;  %v11002_v33 = vpop.f32.mrb[196].mxu0  ;;  %v11124_v12 = vmax.f32 %v10952_v61, 0.0 }
 0x2ef   :  { %v11130_v43 = vmax.f32 %v10954_v2, 0.0  ;;  %11929 = vmatmul.mubr.bf16.vlgmr.msra.gmra.mrb[244].mxu1 %v19251_v21  ;;  %v11003_v18 = vadd.f32 %v11002_v33, %v19318_v16  ;;  %v11004_v14 = vpop.f32.mrb[197].mxu0 }
 0x2f0   :  { %v11131_v7 = vmax.f32 %v10956_v47, 0.0  ;;  %11966 = vmatpush1.bf16.msra.mxu0 %v18840_v19  ;;  %12003 = vmatpush1.bf16.msra.mxu1 %v19227_v10  ;;  %v11005_v1 = vadd.f32 %v11004_v14, %v19318_v16  ;;  %v11006_v54 = vpop.f32.mrb[198].mxu0  ;;  %v19359_v10 = vpop.permute.xlu1 %10887 }
 0x2f1   :  { %v19352_v45 = vpack.c.bf16 %v11130_v43, %v11123_v30  ;;  %12004 = vmatprep.subr.bf16.mxu1 %v20597_v26  ;;  %v11125_v0 = vmax.f32 %v11003_v18, 0.0  ;;  %12055 = vmatprep.subr.bf16.mxu0 %v20484_v29  ;;  %v11007_v2 = vadd.f32 %v11006_v54, %v19333_v27  ;;  %v11008_v61 = vpop.f32.mrb[199].mxu0 }
 0x2f2   :  { %v19357_v44 = vpack.c.bf16 %v11131_v7, %v11124_v12  ;;  %v10959_v47 = vpop.f32.mrb[200].mxu1  ;;  %v11126_v33 = vmax.f32 %v11005_v1, 0.0  ;;  %v11009_v14 = vadd.f32 %v11008_v61, %v19333_v27  ;;  %14329 = vmatprep.mubr.msk.bf16.mxu1 %vm10908_vm7, %v19263_v37 }
 0x2f3   :  { %v10960_v30 = vadd.f32 %v10959_v47, %v19350_v41  ;;  %v10961_v26 = vpop.f32.mrb[201].mxu1  ;;  %11982 = vmatmul.mubr.bf16.vlgmr.msra.gmra.mrb[244].mxu0 %v19251_v21  ;;  %v11132_v43 = vmax.f32 %v11007_v2, 0.0 }
 0x2f4   :  { %20615 = vst [vmem:[#allocation118_spill] sm:$0xff] %v19357_v44  ;;  %v10962_v18 = vadd.f32 %v10961_v26, %v19350_v41  ;;  %v10963_v54 = vpop.f32.mrb[202].mxu1  ;;  %12005 = vmatpush1.bf16.msra.mxu1 %v20599_v24  ;;  %12056 = vmatpush1.bf16.msra.mxu0 %v19236_v34  ;;  %v11133_v12 = vmax.f32 %v11009_v14, 0.0  ;;  %v20632_v44 = vld [vmem:[#allocation130_spill] sm:$0xff] }
 0x2f5   :  { %v10964_v7 = vadd.f32 %v10963_v54, %v19359_v10  ;;  %v19370_v1 = vpack.c.bf16 %v11132_v43, %v11125_v0  ;;  %v10965_v61 = vpop.f32.mrb[203].mxu1  ;;  %12006 = vmatprep.subr.bf16.mxu1 %v20598_v25  ;;  %12057 = vmatprep.subr.bf16.mxu0 %v20484_v29  ;;  %v11137_v24 = vmax.f32 %v10960_v30, 0.0 }
 0x2f6   :  { %v10966_v47 = vadd.f32 %v10965_v61, %v19359_v10  ;;  %v19375_v2 = vpack.c.bf16 %v11133_v12, %v11126_v33  ;;  %v11012_v26 = vpop.f32.mrb[200].mxu0  ;;  %14331 = vmatprep.mubr.msk.bf16.mxu0 %vm10908_vm7, %v19263_v37  ;;  %v11138_v0 = vmax.f32 %v10962_v18, 0.0 }
 0x2f7   :  { %20616 = vst [vmem:[#allocation43_spill] sm:$0xff] %v19370_v1  ;;  %v11144_v34 = vmax.f32 %v10964_v7, 0.0  ;;  %v11013_v14 = vadd.f32 %v11012_v26, %v19350_v41  ;;  %v11014_v54 = vpop.f32.mrb[201].mxu0  ;;  %11939 = vmatmul.mubr.bf16.gmra.mrb[248].mxu1 %v19286_v42  ;;  %v20619_v7 = vld [vmem:[#allocation57_spill] sm:$0xff] }
 0x2f8   :  { %20617 = vst [vmem:[#allocation6_spill] sm:$0xff] %v19375_v2  ;;  %v11145_v43 = vmax.f32 %v10966_v47, 0.0  ;;  %v11015_v25 = vadd.f32 %v11014_v54, %v19350_v41  ;;  %v11016_v1 = vpop.f32.mrb[202].mxu0  ;;  %12007 = vmatpush1.bf16.msra.mxu1 %v20595_v3  ;;  %12058 = vmatpush1.bf16.msra.mxu0 %v20600_v28  ;;  %v19397_v3 = vld [vmem:[%s20329_s3 + $0x4] ss:$8 sps:$4 sm:$0xff]   ;;  %v4253_v47 = vsel %vm3095_vm6, %v20609_v46, 0 }
 0x2f9   :  { %v19384_v33 = vpack.c.bf16 %v11144_v34, %v11137_v24  ;;  %v11017_v12 = vadd.f32 %v11016_v1, %v19359_v10  ;;  %v11018_v30 = vpop.f32.mrb[203].mxu0  ;;  %14405 = vmatprep.subr.msk.bf16.mxu1 %vm3094_vm5, %v20619_v7  ;;  %12059 = vmatprep.subr.bf16.mxu0 %v20484_v29  ;;  %v11139_v28 = vmax.f32 %v11013_v14, 0.0  ;;  %v20622_v54 = vld [vmem:[#allocation20_spill] sm:$0xff]  ;;  %v20624_v14 = vld [vmem:[#allocation58_spill] sm:$0xff] }
 0x2fa   :  { %v19391_v18 = vpack.c.bf16 %v11145_v43, %v11138_v0  ;;  %v11019_v61 = vadd.f32 %v11018_v30, %v19359_v10  ;;  %14332 = vmatprep.mubr.msk.bf16.mxu1 %vm10908_vm7, %v19397_v3  ;;  %v11140_v26 = vmax.f32 %v11015_v25, 0.0  ;;  %v4255_v46 = vsel %vm3095_vm6, %v20624_v14, 0  ;;  %v20625_v43 = vld [vmem:[#allocation18_spill] sm:$0xff]  ;;  %v20627_v25 = vld [vmem:[#allocation131_spill] sm:$0xff]  ;;  %v20628_v30 = vld [vmem:[#allocation56_spill] sm:$0xff] }
 0x2fb   :  { %20618 = vst [vmem:[#allocation44_spill] sm:$0xff] %v19384_v33  ;;  %v11146_v1 = vmax.f32 %v11017_v12, 0.0  ;;  %11992 = vmatmul.mubr.bf16.gmra.mrb[248].mxu0 %v19286_v42  ;;  %v19429_v12 = vsel %vm3095_vm6, %v20614_v39, 0 }
 0x2fc   :  { %20620 = vst [vmem:[#allocation4_spill] sm:$0xff] %v19391_v18  ;;  %v11147_v24 = vmax.f32 %v11019_v61, 0.0  ;;  %12009 = vmatpush1.bf16.msra.mxu1 %v4253_v47  ;;  %12060 = vmatpush1.bf16.msra.mxu0 %v20601_v32  ;;  %v20626_v32 = vld [vmem:[#allocation19_spill] sm:$0xff] }
 0x2fd   :  { %v19406_v34 = vpack.c.bf16 %v11146_v1, %v11139_v28  ;;  %12010 = vmatprep.subr.bf16.mxu1 %v20622_v54  ;;  %12061 = vmatprep.subr.bf16.mxu0 %v20484_v29  ;;  %v20629_v61 = vld [vmem:[#allocation95_spill] sm:$0xff]  ;;  %v20630_v28 = vld [vmem:[#allocation94_spill] sm:$0xff] }
 0x2fe   :  { %v19410_v0 = vpack.c.bf16 %v11147_v24, %v11140_v26  ;;  %14334 = vmatprep.mubr.msk.bf16.mxu0 %vm10908_vm7, %v19397_v3 }
 0x2ff   :  { %20621 = vst [vmem:[#allocation5_spill] sm:$0xff] %v19406_v34 }
 0x300   :  { %20623 = vst [vmem:[#allocation120_spill] sm:$0xff] %v19410_v0  ;;  %12011 = vmatpush1.bf16.msra.mxu1 %v20625_v43  ;;  %12062 = vmatpush1.bf16.msra.mxu0 %v4255_v46 }
 0x301   :  { %12012 = vmatprep.subr.bf16.mxu1 %v20624_v14  ;;  %12063 = vmatprep.subr.bf16.mxu0 %v20484_v29  ;;  %v20631_v14 = vld [vmem:[#allocation96_spill] sm:$0xff] }
 0x304   :  { %12013 = vmatpush1.bf16.msra.mxu1 %v20619_v7  ;;  %12064 = vmatpush1.bf16.msra.mxu0 %v20626_v32  ;;  %v19438_v7 = vsel %vm3095_vm6, %v18883_v58, 0 }
 0x305   :  { %14406 = vmatprep.subr.msk.bf16.mxu1 %vm3094_vm5, %v20627_v25  ;;  %12065 = vmatprep.subr.bf16.mxu0 %v20484_v29 }
 0x308   :  { %12015 = vmatpush1.bf16.msra.mxu1 %v19429_v12  ;;  %12066 = vmatpush1.bf16.msra.mxu0 %v20628_v30 }
 0x309   :  { %12016 = vmatprep.subr.bf16.mxu1 %v20629_v61  ;;  %12067 = vmatprep.subr.bf16.mxu0 %v20484_v29 }
 0x30c   :  { %12017 = vmatpush1.bf16.msra.mxu1 %v20630_v28  ;;  %12068 = vmatpush1.bf16.msra.mxu0 %v19438_v7 }
 0x30d   :  { %12018 = vmatprep.subr.bf16.mxu1 %v18883_v58  ;;  %12069 = vmatprep.subr.bf16.mxu0 %v20484_v29 }
 0x30e   :  { %v11055_v1 = vpop.f32.mrb[204].mxu1 }
 0x30f   :  { %v11056_v47 = vadd.f32 %v11055_v1, %v19318_v16  ;;  %v11057_v26 = vpop.f32.mrb[205].mxu1 }
 0x310   :  { %v11058_v24 = vadd.f32 %v11057_v26, %v19318_v16  ;;  %v11059_v54 = vpop.f32.mrb[206].mxu1  ;;  %12019 = vmatpush1.bf16.msra.mxu1 %v20627_v25  ;;  %12070 = vmatpush1.bf16.msra.mxu0 %v20631_v14 }
 0x311   :  { %v11127_v46 = vmax.f32 %v11056_v47, 0.0  ;;  %v11060_v43 = vadd.f32 %v11059_v54, %v19333_v27  ;;  %v11061_v32 = vpop.f32.mrb[207].mxu1  ;;  %14407 = vmatprep.subr.msk.bf16.mxu1 %vm3094_vm5, %v18838_v57  ;;  %12071 = vmatprep.subr.bf16.mxu0 %v20484_v29 }
 0x312   :  { %v11062_v1 = vadd.f32 %v11061_v32, %v19333_v27  ;;  %v11108_v0 = vpop.f32.mrb[204].mxu0  ;;  %v11128_v18 = vmax.f32 %v11058_v24, 0.0 }
 0x313   :  { %v11134_v2 = vmax.f32 %v11060_v43, 0.0  ;;  %12035 = vmatmul.mubr.bf16.vlgmr.msra.gmra.mrb[252].mxu1 %v19251_v21  ;;  %v11109_v26 = vadd.f32 %v11108_v0, %v19318_v16  ;;  %v11110_v34 = vpop.f32.mrb[205].mxu0 }
 0x314   :  { %v11135_v47 = vmax.f32 %v11062_v1, 0.0  ;;  %12072 = vmatpush1.bf16.msra.mxu0 %v20632_v44  ;;  %12224 = vmatpush1.bf16.msra.mxu1 %v19314_v8  ;;  %v11111_v54 = vpop.f32.mrb[206].mxu0 }
 0x315   :  { %v19458_v33 = vpack.c.bf16 %v11134_v2, %v11127_v46  ;;  %12225 = vmatprep.subr.bf16.mxu1 %v20610_v63  ;;  %14410 = vmatprep.subr.msk.bf16.mxu0 %vm3094_vm5, %v18840_v19  ;;  %v11129_v43 = vmax.f32 %v11109_v26, 0.0  ;;  %v11112_v32 = vadd.f32 %v11111_v54, %v19333_v27  ;;  %v11113_v0 = vpop.f32.mrb[207].mxu0 }
 0x316   :  { %v19465_v34 = vpack.c.bf16 %v11135_v47, %v11128_v18  ;;  %v11065_v24 = vpop.f32.mrb[208].mxu1  ;;  %14333 = vmatprep.mubr.msk.bf16.mxu1 %vm10908_vm7, %v19263_v37 }
 0x317   :  { %v11066_v8 = vadd.f32 %v11065_v24, %v19350_v41  ;;  %v11067_v2 = vpop.f32.mrb[209].mxu1  ;;  %12088 = vmatmul.mubr.bf16.vlgmr.msra.gmra.mrb[252].mxu0 %v19251_v21  ;;  %v11136_v63 = vmax.f32 %v11112_v32, 0.0 }
 0x318   :  { %20633 = vst [vmem:[#allocation42_spill] sm:$0xff] %v19465_v34  ;;  %v11068_v46 = vadd.f32 %v11067_v2, %v19350_v41  ;;  %v11069_v1 = vpop.f32.mrb[210].mxu1  ;;  %12226 = vmatpush1.bf16.msra.mxu1 %v20611_v13  ;;  %12277 = vmatpush1.bf16.msra.mxu0 %v19327_v36 }
 0x319   :  { %v11070_v18 = vadd.f32 %v11069_v1, %v19359_v10  ;;  %v19475_v26 = vpack.c.bf16 %v11136_v63, %v11129_v43  ;;  %v11071_v47 = vpop.f32.mrb[211].mxu1  ;;  %12227 = vmatprep.subr.bf16.mxu1 %v18844_v50  ;;  %12278 = vmatprep.subr.bf16.mxu0 %v20612_v9  ;;  %v11141_v32 = vmax.f32 %v11066_v8, 0.0  ;;  %v20636_v1 = vld [vmem:[#allocation59_spill] sm:$0xff] }
 0x31a   :  { %v11072_v54 = vadd.f32 %v11071_v47, %v19359_v10  ;;  %v11116_v0 = vpop.f32.mrb[208].mxu0  ;;  %14335 = vmatprep.mubr.msk.bf16.mxu0 %vm10908_vm7, %v19263_v37  ;;  %v11142_v43 = vmax.f32 %v11068_v46, 0.0 }
 0x31b   :  { %20634 = vst [vmem:[#allocation81_spill] sm:$0xff] %v19475_v26  ;;  %v11148_v24 = vmax.f32 %v11070_v18, 0.0  ;;  %v11117_v13 = vadd.f32 %v11116_v0, %v19350_v41  ;;  %v11118_v36 = vpop.f32.mrb[209].mxu0  ;;  %12045 = vmatmul.mubr.bf16.gmra.mrb[0].mxu1 %v19286_v42  ;;  %v20641_v0 = vld [vmem:[#allocation60_spill] sm:$0xff] }
 0x31c   :  { %v11149_v2 = vmax.f32 %v11072_v54, 0.0  ;;  %v11119_v63 = vpop.f32.mrb[210].mxu0  ;;  %12228 = vmatpush1.bf16.msra.mxu1 %v18838_v57  ;;  %12279 = vmatpush1.bf16.msra.mxu0 %v20613_v53  ;;  %v4256_v53 = vsel %vm3100_vm10, %v20628_v30, 0  ;;  %v20640_v54 = vld [vmem:[#allocation61_spill] sm:$0xff]  ;;  %v19525_v36 = vsel %vm3100_vm10, %v20632_v44, 0 }
 0x31d   :  { %v19486_v50 = vpack.c.bf16 %v11148_v24, %v11141_v32  ;;  %v11120_v9 = vadd.f32 %v11119_v63, %v19359_v10  ;;  %14408 = vmatprep.subr.msk.bf16.mxu1 %vm3094_vm5, %v20636_v1  ;;  %12280 = vmatprep.subr.bf16.mxu0 %v20614_v39  ;;  %v11121_v8 = vpop.f32.mrb[211].mxu0  ;;  %v11143_v46 = vmax.f32 %v11117_v13, 0.0  ;;  %v20639_v39 = vld [vmem:[#allocation23_spill] sm:$0xff]  ;;  %v4634_v32 = vsel %vm3095_vm6, %v20641_v0, 0  ;;  %v20642_v24 = vld [vmem:[#allocation22_spill] sm:$0xff]  ;;  %v20644_v30 = vld [vmem:[#allocation21_spill] sm:$0xff] }
 0x31e   :  { %v19493_v18 = vpack.c.bf16 %v11149_v2, %v11142_v43  ;;  %14336 = vmatprep.mubr.msk.bf16.mxu1 %vm10908_vm7, %v19397_v3  ;;  %v20645_v13 = vld [vmem:[#allocation62_spill] sm:$0xff]  ;;  %v20646_v43 = vld [vmem:[#allocation100_spill] sm:$0xff]  ;;  %v19536_v2 = vsel %vm3095_vm6, %v18902_v11, 0 }
 0x31f   :  { %20635 = vst [vmem:[#allocation121_spill] sm:$0xff] %v19486_v50  ;;  %v11150_v57 = vmax.f32 %v11120_v9, 0.0  ;;  %12096 = vmatmul.mubr.bf16.gmra.mrb[0].mxu0 %v19286_v42  ;;  %v20647_v63 = vld [vmem:[#allocation98_spill] sm:$0xff]  ;;  %v20648_v9 = vld [vmem:[#allocation99_spill] sm:$0xff] }
 0x320   :  { %20637 = vst [vmem:[#allocation80_spill] sm:$0xff] %v19493_v18  ;;  %12230 = vmatpush1.bf16.msra.mxu1 %v4256_v53  ;;  %12281 = vmatpush1.bf16.msra.mxu0 %v18840_v19  ;;  %v20643_v19 = vld [vmem:[#allocation24_spill] sm:$0xff] }
 0x321   :  { %v19502_v47 = vpack.c.bf16 %v11150_v57, %v11143_v46  ;;  %12231 = vmatprep.subr.bf16.mxu1 %v20639_v39  ;;  %14411 = vmatprep.subr.msk.bf16.mxu0 %vm3094_vm5, %v20640_v54  ;;  %v20649_v39 = vld [vmem:[#allocation97_spill] sm:$0xff] }
 0x322   :  { %14338 = vmatprep.mubr.msk.bf16.mxu0 %vm10908_vm7, %v19397_v3 }
 0x323   :  { %20638 = vst [vmem:[#allocation82_spill] sm:$0xff] %v19502_v47 }
 0x324   :  { %12232 = vmatpush1.bf16.msra.mxu1 %v20642_v24  ;;  %12283 = vmatpush1.bf16.msra.mxu0 %v4634_v32 }
 0x325   :  { %12233 = vmatprep.subr.bf16.mxu1 %v20641_v0  ;;  %12284 = vmatprep.subr.bf16.mxu0 %v20643_v19 }
 0x328   :  { %12234 = vmatpush1.bf16.msra.mxu1 %v20636_v1  ;;  %12285 = vmatpush1.bf16.msra.mxu0 %v20644_v30 }
 0x329   :  { %14409 = vmatprep.subr.msk.bf16.mxu1 %vm3094_vm5, %v18897_v22  ;;  %12286 = vmatprep.subr.bf16.mxu0 %v20645_v13 }
 0x32c   :  { %12236 = vmatpush1.bf16.msra.mxu1 %v19525_v36  ;;  %12287 = vmatpush1.bf16.msra.mxu0 %v20640_v54 }
 0x32d   :  { %12237 = vmatprep.subr.bf16.mxu1 %v20646_v43  ;;  %14412 = vmatprep.subr.msk.bf16.mxu0 %vm3094_vm5, %v18913_v59 }
 0x330   :  { %12238 = vmatpush1.bf16.msra.mxu1 %v20647_v63  ;;  %12289 = vmatpush1.bf16.msra.mxu0 %v19536_v2 }
 0x331   :  { %12239 = vmatprep.subr.bf16.mxu1 %v18902_v11  ;;  %12290 = vmatprep.subr.bf16.mxu0 %v20648_v9 }
 0x332   :  { %v11276_v1 = vpop.f32.mrb[212].mxu1 }
 0x333   :  { %v11277_v8 = vadd.f32 %v11276_v1, %v19318_v16  ;;  %v11278_v46 = vpop.f32.mrb[213].mxu1 }
 0x334   :  { %v11279_v57 = vadd.f32 %v11278_v46, %v19318_v16  ;;  %v11280_v53 = vpop.f32.mrb[214].mxu1  ;;  %12240 = vmatpush1.bf16.msra.mxu1 %v18897_v22  ;;  %12291 = vmatpush1.bf16.msra.mxu0 %v20649_v39 }
 0x335   :  { %v11450_v54 = vmax.f32 %v11277_v8, 0.0  ;;  %v11281_v0 = vadd.f32 %v11280_v53, %v19333_v27  ;;  %v11282_v32 = vpop.f32.mrb[215].mxu1  ;;  %12292 = vmatprep.subr.bf16.mxu0 %v18921_v38  ;;  %14413 = vmatprep.subr.msk.bf16.mxu1 %vm3094_vm5, %v20627_v25 }
 0x336   :  { %v11283_v24 = vadd.f32 %v11282_v32, %v19333_v27  ;;  %v11329_v19 = vpop.f32.mrb[212].mxu0  ;;  %v11451_v47 = vmax.f32 %v11279_v57, 0.0 }
 0x337   :  { %v11457_v30 = vmax.f32 %v11281_v0, 0.0  ;;  %12256 = vmatmul.mubr.bf16.vlgmr.msra.gmra.mrb[4].mxu1 %v19251_v21  ;;  %v11330_v1 = vadd.f32 %v11329_v19, %v19318_v16  ;;  %v11331_v46 = vpop.f32.mrb[213].mxu0 }
 0x338   :  { %v11458_v8 = vmax.f32 %v11283_v24, 0.0  ;;  %12293 = vmatpush1.bf16.msra.mxu0 %v18913_v59  ;;  %12330 = vmatpush1.bf16.msra.mxu1 %v19429_v12  ;;  %v11332_v53 = vadd.f32 %v11331_v46, %v19318_v16  ;;  %v11333_v26 = vpop.f32.mrb[214].mxu0 }
 0x339   :  { %v19557_v18 = vpack.c.bf16 %v11457_v30, %v11450_v54  ;;  %12331 = vmatprep.subr.bf16.mxu1 %v20629_v61  ;;  %v11452_v32 = vmax.f32 %v11330_v1, 0.0  ;;  %12382 = vmatprep.subr.bf16.mxu0 %v20484_v29  ;;  %v11334_v0 = vadd.f32 %v11333_v26, %v19333_v27  ;;  %v11335_v19 = vpop.f32.mrb[215].mxu0 }
 0x33a   :  { %v19562_v34 = vpack.c.bf16 %v11458_v8, %v11451_v47  ;;  %v11286_v57 = vpop.f32.mrb[216].mxu1  ;;  %v11453_v24 = vmax.f32 %v11332_v53, 0.0  ;;  %v11336_v50 = vadd.f32 %v11335_v19, %v19333_v27  ;;  %14337 = vmatprep.mubr.msk.bf16.mxu1 %vm10908_vm7, %v19263_v37 }
 0x33b   :  { %20650 = vst [vmem:[#allocation119_spill] sm:$0xff] %v19557_v18  ;;  %v11287_v12 = vadd.f32 %v11286_v57, %v19350_v41  ;;  %v11288_v54 = vpop.f32.mrb[217].mxu1  ;;  %12309 = vmatmul.mubr.bf16.vlgmr.msra.gmra.mrb[4].mxu0 %v19251_v21  ;;  %v11459_v61 = vmax.f32 %v11334_v0, 0.0 }
 0x33c   :  { %v11289_v30 = vadd.f32 %v11288_v54, %v19350_v41  ;;  %v11290_v1 = vpop.f32.mrb[218].mxu1  ;;  %12332 = vmatpush1.bf16.msra.mxu1 %v20630_v28  ;;  %12383 = vmatpush1.bf16.msra.mxu0 %v19438_v7  ;;  %v11460_v26 = vmax.f32 %v11336_v50, 0.0 }
 0x33d   :  { %v11291_v47 = vadd.f32 %v11290_v1, %v19359_v10  ;;  %v19573_v46 = vpack.c.bf16 %v11459_v61, %v11452_v32  ;;  %v11292_v8 = vpop.f32.mrb[219].mxu1  ;;  %12333 = vmatprep.subr.bf16.mxu1 %v18883_v58  ;;  %12384 = vmatprep.subr.bf16.mxu0 %v20484_v29  ;;  %v11464_v28 = vmax.f32 %v11287_v12, 0.0 }
 0x33e   :  { %v11293_v53 = vadd.f32 %v11292_v8, %v19359_v10  ;;  %v19578_v0 = vpack.c.bf16 %v11460_v26, %v11453_v24  ;;  %v11339_v19 = vpop.f32.mrb[216].mxu0  ;;  %14339 = vmatprep.mubr.msk.bf16.mxu0 %vm10908_vm7, %v19263_v37  ;;  %v11465_v32 = vmax.f32 %v11289_v30, 0.0  ;;  %v20653_v26 = vld [vmem:[#allocation63_spill] sm:$0xff]  ;;  %v4636_v8 = vsel %vm3095_vm6, %v20645_v13, 0 }
 0x33f   :  { %v11471_v7 = vmax.f32 %v11291_v47, 0.0  ;;  %v11340_v50 = vadd.f32 %v11339_v19, %v19350_v41  ;;  %v11341_v57 = vpop.f32.mrb[217].mxu0  ;;  %12266 = vmatmul.mubr.bf16.gmra.mrb[8].mxu1 %v19286_v42 }
 0x340   :  { %20651 = vst [vmem:[#allocation45_spill] sm:$0xff] %v19578_v0  ;;  %v11472_v54 = vmax.f32 %v11293_v53, 0.0  ;;  %v11342_v58 = vadd.f32 %v11341_v57, %v19350_v41  ;;  %v11343_v61 = vpop.f32.mrb[218].mxu0  ;;  %12334 = vmatpush1.bf16.msra.mxu1 %v20627_v25  ;;  %12385 = vmatpush1.bf16.msra.mxu0 %v20631_v14 }
 0x341   :  { %v19587_v24 = vpack.c.bf16 %v11471_v7, %v11464_v28  ;;  %v11344_v1 = vadd.f32 %v11343_v61, %v19359_v10  ;;  %v11345_v12 = vpop.f32.mrb[219].mxu0  ;;  %14414 = vmatprep.subr.msk.bf16.mxu1 %vm3094_vm5, %v20653_v26  ;;  %12386 = vmatprep.subr.bf16.mxu0 %v20484_v29  ;;  %v11466_v25 = vmax.f32 %v11340_v50, 0.0  ;;  %v20655_v7 = vld [vmem:[#allocation27_spill] sm:$0xff]  ;;  %v20657_v50 = vld [vmem:[#allocation64_spill] sm:$0xff] }
 0x342   :  { %v19594_v30 = vpack.c.bf16 %v11472_v54, %v11465_v32  ;;  %v11346_v47 = vadd.f32 %v11345_v12, %v19359_v10  ;;  %14340 = vmatprep.mubr.msk.bf16.mxu1 %vm10908_vm7, %v19397_v3  ;;  %v11467_v53 = vmax.f32 %v11342_v58, 0.0  ;;  %v4638_v13 = vsel %vm3095_vm6, %v20657_v50, 0  ;;  %v20658_v32 = vld [vmem:[#allocation26_spill] sm:$0xff]  ;;  %v20660_v58 = vld [vmem:[#allocation65_spill] sm:$0xff]  ;;  %v20661_v61 = vld [vmem:[#allocation103_spill] sm:$0xff] }
 0x343   :  { %20652 = vst [vmem:[#allocation9_spill] sm:$0xff] %v19587_v24  ;;  %v11473_v14 = vmax.f32 %v11344_v1, 0.0  ;;  %12319 = vmatmul.mubr.bf16.gmra.mrb[8].mxu0 %v19286_v42  ;;  %v19627_v54 = vsel %vm3095_vm6, %v18921_v38, 0  ;;  %v19636_v1 = vsel %vm3095_vm6, %v18938_v40, 0  ;;  %v20662_v12 = vld [vmem:[#allocation102_spill] sm:$0xff] }
 0x344   :  { %v11474_v19 = vmax.f32 %v11346_v47, 0.0  ;;  %12336 = vmatpush1.bf16.msra.mxu1 %v4636_v8  ;;  %12387 = vmatpush1.bf16.msra.mxu0 %v20632_v44  ;;  %v20659_v44 = vld [vmem:[#allocation25_spill] sm:$0xff] }
 0x345   :  { %v19604_v28 = vpack.c.bf16 %v11473_v14, %v11466_v25  ;;  %12337 = vmatprep.subr.bf16.mxu1 %v20655_v7  ;;  %12388 = vmatprep.subr.bf16.mxu0 %v20484_v29 }
 0x346   :  { %v19608_v57 = vpack.c.bf16 %v11474_v19, %v11467_v53  ;;  %14342 = vmatprep.mubr.msk.bf16.mxu0 %vm10908_vm7, %v19397_v3  ;;  %v20663_v53 = vld [vmem:[#allocation101_spill] sm:$0xff] }
 0x347   :  { %20654 = vst [vmem:[#allocation47_spill] sm:$0xff] %v19604_v28 }
 0x348   :  { %20656 = vst [vmem:[#allocation46_spill] sm:$0xff] %v19608_v57  ;;  %12338 = vmatpush1.bf16.msra.mxu1 %v20658_v32  ;;  %12389 = vmatpush1.bf16.msra.mxu0 %v4638_v13 }
 0x349   :  { %12339 = vmatprep.subr.bf16.mxu1 %v20657_v50  ;;  %12390 = vmatprep.subr.bf16.mxu0 %v20484_v29 }
 0x34c   :  { %12340 = vmatpush1.bf16.msra.mxu1 %v20653_v26  ;;  %12391 = vmatpush1.bf16.msra.mxu0 %v20659_v44 }
 0x34d   :  { %14415 = vmatprep.subr.msk.bf16.mxu1 %vm3094_vm5, %v18932_v5  ;;  %12392 = vmatprep.subr.bf16.mxu0 %v20484_v29 }
 0x350   :  { %12342 = vmatpush1.bf16.msra.mxu1 %v19627_v54  ;;  %12393 = vmatpush1.bf16.msra.mxu0 %v20660_v58 }
 0x351   :  { %12343 = vmatprep.subr.bf16.mxu1 %v20661_v61  ;;  %12394 = vmatprep.subr.bf16.mxu0 %v20484_v29 }
 0x354   :  { %12344 = vmatpush1.bf16.msra.mxu1 %v20662_v12  ;;  %12395 = vmatpush1.bf16.msra.mxu0 %v19636_v1 }
 0x355   :  { %12345 = vmatprep.subr.bf16.mxu1 %v18938_v40  ;;  %12396 = vmatprep.subr.bf16.mxu0 %v20484_v29 }
 0x356   :  { %v11382_v26 = vpop.f32.mrb[220].mxu1 }
 0x357   :  { %v11383_v47 = vadd.f32 %v11382_v26, %v19318_v16  ;;  %v11384_v25 = vpop.f32.mrb[221].mxu1 }
 0x358   :  { %v11385_v14 = vadd.f32 %v11384_v25, %v19318_v16  ;;  %v11386_v8 = vpop.f32.mrb[222].mxu1  ;;  %12346 = vmatpush1.bf16.msra.mxu1 %v18932_v5  ;;  %12397 = vmatpush1.bf16.msra.mxu0 %v20663_v53 }
 0x359   :  { %v11454_v19 = vmax.f32 %v11383_v47, 0.0  ;;  %v11387_v7 = vadd.f32 %v11386_v8, %v19333_v27  ;;  %v11388_v50 = vpop.f32.mrb[223].mxu1  ;;  %14416 = vmatprep.subr.msk.bf16.mxu1 %vm3094_vm5, %v18897_v22  ;;  %12398 = vmatprep.subr.bf16.mxu0 %v20484_v29 }
 0x35a   :  { %v11389_v13 = vadd.f32 %v11388_v50, %v19333_v27  ;;  %v11435_v32 = vpop.f32.mrb[220].mxu0  ;;  %v11455_v24 = vmax.f32 %v11385_v14, 0.0 }
 0x35b   :  { %v11461_v44 = vmax.f32 %v11387_v7, 0.0  ;;  %12362 = vmatmul.mubr.bf16.vlgmr.msra.gmra.mrb[12].mxu1 %v19251_v21  ;;  %v11436_v26 = vadd.f32 %v11435_v32, %v19318_v16  ;;  %v11437_v25 = vpop.f32.mrb[221].mxu0 }
 0x35c   :  { %v11462_v47 = vmax.f32 %v11389_v13, 0.0  ;;  %12399 = vmatpush1.bf16.msra.mxu0 %v18940_v17  ;;  %12551 = vmatpush1.bf16.msra.mxu1 %v19525_v36  ;;  %v11438_v8 = vpop.f32.mrb[222].mxu0 }
 0x35d   :  { %v19656_v57 = vpack.c.bf16 %v11461_v44, %v11454_v19  ;;  %12552 = vmatprep.subr.bf16.mxu1 %v20646_v43  ;;  %14419 = vmatprep.subr.msk.bf16.mxu0 %vm3094_vm5, %v18913_v59  ;;  %v11456_v7 = vmax.f32 %v11436_v26, 0.0  ;;  %v11439_v50 = vadd.f32 %v11438_v8, %v19333_v27  ;;  %v11440_v32 = vpop.f32.mrb[223].mxu0 }
 0x35e   :  { %v19663_v25 = vpack.c.bf16 %v11462_v47, %v11455_v24  ;;  %v11392_v14 = vpop.f32.mrb[224].mxu1  ;;  %14341 = vmatprep.mubr.msk.bf16.mxu1 %vm10908_vm7, %v19263_v37 }
 0x35f   :  { %20664 = vst [vmem:[#allocation8_spill] sm:$0xff] %v19656_v57  ;;  %v11393_v36 = vadd.f32 %v11392_v14, %v19350_v41  ;;  %v11394_v19 = vpop.f32.mrb[225].mxu1  ;;  %12415 = vmatmul.mubr.bf16.vlgmr.msra.gmra.mrb[12].mxu0 %v19251_v21  ;;  %v11463_v43 = vmax.f32 %v11439_v50, 0.0 }
 0x360   :  { %v11395_v13 = vadd.f32 %v11394_v19, %v19350_v41  ;;  %v11396_v44 = vpop.f32.mrb[226].mxu1  ;;  %12553 = vmatpush1.bf16.msra.mxu1 %v20647_v63  ;;  %12604 = vmatpush1.bf16.msra.mxu0 %v19536_v2 }
 0x361   :  { %v11397_v24 = vadd.f32 %v11396_v44, %v19359_v10  ;;  %v19673_v26 = vpack.c.bf16 %v11463_v43, %v11456_v7  ;;  %v11398_v47 = vpop.f32.mrb[227].mxu1  ;;  %12554 = vmatprep.subr.bf16.mxu1 %v18902_v11  ;;  %12605 = vmatprep.subr.bf16.mxu0 %v20648_v9  ;;  %v11468_v50 = vmax.f32 %v11393_v36, 0.0  ;;  %v20666_v44 = vld [vmem:[#allocation67_spill] sm:$0xff] }
 0x362   :  { %v11399_v8 = vadd.f32 %v11398_v47, %v19359_v10  ;;  %v11443_v32 = vpop.f32.mrb[224].mxu0  ;;  %14343 = vmatprep.mubr.msk.bf16.mxu0 %vm10908_vm7, %v19263_v37  ;;  %v11469_v7 = vmax.f32 %v11395_v13, 0.0 }
 0x363   :  { %v11475_v14 = vmax.f32 %v11397_v24, 0.0  ;;  %v11444_v63 = vadd.f32 %v11443_v32, %v19350_v41  ;;  %v11445_v2 = vpop.f32.mrb[225].mxu0  ;;  %12372 = vmatmul.mubr.bf16.gmra.mrb[16].mxu1 %v19286_v42  ;;  %v20669_v32 = vld [vmem:[#allocation69_spill] sm:$0xff] }
 0x364   :  { %v11476_v19 = vmax.f32 %v11399_v8, 0.0  ;;  %v11446_v43 = vpop.f32.mrb[226].mxu0  ;;  %12555 = vmatpush1.bf16.msra.mxu1 %v18897_v22  ;;  %12606 = vmatpush1.bf16.msra.mxu0 %v20649_v39  ;;  %v4639_v39 = vsel %vm3100_vm10, %v20660_v58, 0  ;;  %v20668_v8 = vld [vmem:[#allocation66_spill] sm:$0xff]  ;;  %v19723_v2 = vsel %vm3100_vm10, %v18940_v17, 0 }
 0x365   :  { %v19684_v11 = vpack.c.bf16 %v11475_v14, %v11468_v50  ;;  %v11447_v9 = vadd.f32 %v11446_v43, %v19359_v10  ;;  %14417 = vmatprep.subr.msk.bf16.mxu1 %vm3094_vm5, %v20666_v44  ;;  %12607 = vmatprep.subr.bf16.mxu0 %v18921_v38  ;;  %v11448_v36 = vpop.f32.mrb[227].mxu0  ;;  %v11470_v13 = vmax.f32 %v11444_v63, 0.0  ;;  %v20667_v38 = vld [vmem:[#allocation29_spill] sm:$0xff]  ;;  %v5017_v50 = vsel %vm3095_vm6, %v20669_v32, 0  ;;  %v20670_v14 = vld [vmem:[#allocation28_spill] sm:$0xff]  ;;  %v20672_v58 = vld [vmem:[#allocation30_spill] sm:$0xff] }
 0x366   :  { %v19691_v24 = vpack.c.bf16 %v11476_v19, %v11469_v7  ;;  %14344 = vmatprep.mubr.msk.bf16.mxu1 %vm10908_vm7, %v19397_v3  ;;  %v20673_v63 = vld [vmem:[#allocation68_spill] sm:$0xff]  ;;  %v20674_v7 = vld [vmem:[#allocation105_spill] sm:$0xff]  ;;  %v19734_v19 = vsel %vm3095_vm6, %v18968_v60, 0 }
 0x367   :  { %20665 = vst [vmem:[#allocation10_spill] sm:$0xff] %v19684_v11  ;;  %v11477_v22 = vmax.f32 %v11447_v9, 0.0  ;;  %12423 = vmatmul.mubr.bf16.gmra.mrb[16].mxu0 %v19286_v42  ;;  %v20675_v43 = vld [vmem:[#allocation104_spill] sm:$0xff]  ;;  %v20676_v9 = vld [vmem:[#allocation107_spill] sm:$0xff] }
 0x368   :  { %12557 = vmatpush1.bf16.msra.mxu1 %v4639_v39  ;;  %12608 = vmatpush1.bf16.msra.mxu0 %v18913_v59  ;;  %v20671_v59 = vld [vmem:[#allocation31_spill] sm:$0xff] }
 0x369   :  { %v19700_v47 = vpack.c.bf16 %v11477_v22, %v11470_v13  ;;  %12558 = vmatprep.subr.bf16.mxu1 %v20667_v38  ;;  %14420 = vmatprep.subr.msk.bf16.mxu0 %vm3094_vm5, %v20668_v8  ;;  %v20677_v38 = vld [vmem:[#allocation106_spill] sm:$0xff] }
 0x36a   :  { %14346 = vmatprep.mubr.msk.bf16.mxu0 %vm10908_vm7, %v19397_v3 }
 0x36c   :  { %12559 = vmatpush1.bf16.msra.mxu1 %v20670_v14  ;;  %12610 = vmatpush1.bf16.msra.mxu0 %v5017_v50 }
 0x36d   :  { %12560 = vmatprep.subr.bf16.mxu1 %v20669_v32  ;;  %12611 = vmatprep.subr.bf16.mxu0 %v20671_v59 }
 0x370   :  { %12561 = vmatpush1.bf16.msra.mxu1 %v20666_v44  ;;  %12612 = vmatpush1.bf16.msra.mxu0 %v20672_v58 }
 0x371   :  { %14418 = vmatprep.subr.msk.bf16.mxu1 %vm3094_vm5, %v18960_v6  ;;  %12613 = vmatprep.subr.bf16.mxu0 %v20673_v63 }
 0x374   :  { %12563 = vmatpush1.bf16.msra.mxu1 %v19723_v2  ;;  %12614 = vmatpush1.bf16.msra.mxu0 %v20668_v8 }
 0x375   :  { %12564 = vmatprep.subr.bf16.mxu1 %v20674_v7  ;;  %14421 = vmatprep.subr.msk.bf16.mxu0 %vm3094_vm5, %v18962_v20 }
 0x378   :  { %12565 = vmatpush1.bf16.msra.mxu1 %v20675_v43  ;;  %12616 = vmatpush1.bf16.msra.mxu0 %v19734_v19 }
 0x379   :  { %12566 = vmatprep.subr.bf16.mxu1 %v18968_v60  ;;  %12617 = vmatprep.subr.bf16.mxu0 %v20676_v9 }
 0x37a   :  { %v11603_v44 = vpop.f32.mrb[228].mxu1 }
 0x37b   :  { %v11604_v36 = vadd.f32 %v11603_v44, %v19318_v16  ;;  %v11605_v13 = vpop.f32.mrb[229].mxu1 }
 0x37c   :  { %v11606_v22 = vadd.f32 %v11605_v13, %v19318_v16  ;;  %v11607_v39 = vpop.f32.mrb[230].mxu1  ;;  %12567 = vmatpush1.bf16.msra.mxu1 %v18960_v6  ;;  %12618 = vmatpush1.bf16.msra.mxu0 %v20677_v38 }
 0x37d   :  { %v11777_v8 = vmax.f32 %v11604_v36, 0.0  ;;  %v11608_v32 = vadd.f32 %v11607_v39, %v19333_v27  ;;  %v11609_v50 = vpop.f32.mrb[231].mxu1  ;;  %12619 = vmatprep.subr.bf16.mxu0 %v18970_v56  ;;  %14422 = vmatprep.subr.msk.bf16.mxu1 %vm3094_vm5, %v18932_v5 }
 0x37e   :  { %v11610_v14 = vadd.f32 %v11609_v50, %v19333_v27  ;;  %v11656_v59 = vpop.f32.mrb[228].mxu0  ;;  %v11778_v11 = vmax.f32 %v11606_v22, 0.0 }
 0x37f   :  { %v11784_v58 = vmax.f32 %v11608_v32, 0.0  ;;  %12583 = vmatmul.mubr.bf16.vlgmr.msra.gmra.mrb[20].mxu1 %v19251_v21  ;;  %v11657_v44 = vadd.f32 %v11656_v59, %v19318_v16  ;;  %v11658_v13 = vpop.f32.mrb[229].mxu0 }
 0x380   :  { %v11785_v36 = vmax.f32 %v11610_v14, 0.0  ;;  %12620 = vmatpush1.bf16.msra.mxu0 %v18962_v20  ;;  %12657 = vmatpush1.bf16.msra.mxu1 %v19627_v54  ;;  %v11659_v39 = vadd.f32 %v11658_v13, %v19318_v16  ;;  %v11660_v57 = vpop.f32.mrb[230].mxu0 }
 0x381   :  { %v19755_v18 = vpack.c.bf16 %v11784_v58, %v11777_v8  ;;  %12658 = vmatprep.subr.bf16.mxu1 %v20661_v61  ;;  %v11779_v50 = vmax.f32 %v11657_v44, 0.0  ;;  %12709 = vmatprep.subr.bf16.mxu0 %v20484_v29  ;;  %v11661_v32 = vadd.f32 %v11660_v57, %v19333_v27  ;;  %v11662_v59 = vpop.f32.mrb[231].mxu0 }
 0x382   :  { %v19760_v0 = vpack.c.bf16 %v11785_v36, %v11778_v11  ;;  %v11613_v22 = vpop.f32.mrb[232].mxu1  ;;  %v11780_v14 = vmax.f32 %v11659_v39, 0.0  ;;  %v11663_v28 = vadd.f32 %v11662_v59, %v19333_v27  ;;  %14345 = vmatprep.mubr.msk.bf16.mxu1 %vm10908_vm7, %v19263_v37 }
 0x383   :  { %v11614_v54 = vadd.f32 %v11613_v22, %v19350_v41  ;;  %v11615_v8 = vpop.f32.mrb[233].mxu1  ;;  %12636 = vmatmul.mubr.bf16.vlgmr.msra.gmra.mrb[20].mxu0 %v19251_v21  ;;  %v11786_v61 = vmax.f32 %v11661_v32, 0.0 }
 0x384   :  { %v11616_v58 = vadd.f32 %v11615_v8, %v19350_v41  ;;  %v11617_v44 = vpop.f32.mrb[234].mxu1  ;;  %12659 = vmatpush1.bf16.msra.mxu1 %v20662_v12  ;;  %12710 = vmatpush1.bf16.msra.mxu0 %v19636_v1  ;;  %v11787_v57 = vmax.f32 %v11663_v28, 0.0 }
 0x385   :  { %v11618_v11 = vadd.f32 %v11617_v44, %v19359_v10  ;;  %v19771_v13 = vpack.c.bf16 %v11786_v61, %v11779_v50  ;;  %v11619_v36 = vpop.f32.mrb[235].mxu1  ;;  %12660 = vmatprep.subr.bf16.mxu1 %v18938_v40  ;;  %12711 = vmatprep.subr.bf16.mxu0 %v20484_v29  ;;  %v11791_v12 = vmax.f32 %v11614_v54, 0.0  ;;  %v20678_v61 = vld [vmem:[#allocation71_spill] sm:$0xff] }
 0x386   :  { %v11620_v21 = vadd.f32 %v11619_v36, %v19359_v10  ;;  %v19776_v39 = vpack.c.bf16 %v11787_v57, %v11780_v14  ;;  %v11666_v32 = vpop.f32.mrb[232].mxu0  ;;  %14347 = vmatprep.mubr.msk.bf16.mxu0 %vm10908_vm7, %v19263_v37  ;;  %v11792_v50 = vmax.f32 %v11616_v58, 0.0  ;;  %v5019_v57 = vsel %vm3095_vm6, %v20673_v63, 0 }
 0x387   :  { %v11798_v1 = vmax.f32 %v11618_v11, 0.0  ;;  %v11667_v28 = vadd.f32 %v11666_v32, %v19350_v41  ;;  %v11668_v59 = vpop.f32.mrb[233].mxu0  ;;  %12593 = vmatmul.mubr.bf16.gmra.mrb[24].mxu1 %v19286_v42  ;;  %v20679_v32 = vld [vmem:[#allocation34_spill] sm:$0xff] }
 0x388   :  { %v11799_v22 = vmax.f32 %v11620_v21, 0.0  ;;  %v11669_v40 = vadd.f32 %v11668_v59, %v19350_v41  ;;  %v11670_v8 = vpop.f32.mrb[234].mxu0  ;;  %12661 = vmatpush1.bf16.msra.mxu1 %v18932_v5  ;;  %12712 = vmatpush1.bf16.msra.mxu0 %v20663_v53  ;;  %v20684_v59 = vld [vmem:[#allocation70_spill] sm:$0xff] }
 0x389   :  { %v19785_v14 = vpack.c.bf16 %v11798_v1, %v11791_v12  ;;  %v11671_v37 = vadd.f32 %v11670_v8, %v19359_v10  ;;  %v11672_v54 = vpop.f32.mrb[235].mxu0  ;;  %14423 = vmatprep.subr.msk.bf16.mxu1 %vm3094_vm5, %v20678_v61  ;;  %12713 = vmatprep.subr.bf16.mxu0 %v20484_v29  ;;  %v11793_v5 = vmax.f32 %v11667_v28, 0.0  ;;  %v20682_v1 = vld [vmem:[#allocation32_spill] sm:$0xff]  ;;  %v19825_v28 = vsel %vm3095_vm6, %v18970_v56, 0 }
 0x38a   :  { %v19792_v58 = vpack.c.bf16 %v11799_v22, %v11792_v50  ;;  %v11673_v44 = vadd.f32 %v11672_v54, %v19359_v10  ;;  %14348 = vmatprep.mubr.msk.bf16.mxu1 %vm10908_vm7, %v19397_v3  ;;  %v11794_v11 = vmax.f32 %v11669_v40, 0.0  ;;  %v20685_v50 = vld [vmem:[#allocation109_spill] sm:$0xff]  ;;  %v19834_v22 = vsel %vm3095_vm6, %v19005_v52, 0  ;;  %v20686_v40 = vld [vmem:[#allocation108_spill] sm:$0xff] }
 0x38b   :  { %v11800_v53 = vmax.f32 %v11671_v37, 0.0  ;;  %12646 = vmatmul.mubr.bf16.gmra.mrb[24].mxu0 %v19286_v42  ;;  %v20681_v42 = vld [vmem:[#allocation72_spill] sm:$0xff] }
 0x38c   :  { %v11801_v36 = vmax.f32 %v11673_v44, 0.0  ;;  %12663 = vmatpush1.bf16.msra.mxu1 %v5019_v57  ;;  %12714 = vmatpush1.bf16.msra.mxu0 %v18940_v17  ;;  %v5021_v63 = vsel %vm3095_vm6, %v20681_v42, 0  ;;  %v20683_v17 = vld [vmem:[#allocation33_spill] sm:$0xff] }
 0x38d   :  { %v19802_v21 = vpack.c.bf16 %v11800_v53, %v11793_v5  ;;  %12664 = vmatprep.subr.bf16.mxu1 %v20679_v32  ;;  %12715 = vmatprep.subr.bf16.mxu0 %v20484_v29  ;;  %v20687_v5 = vld [vmem:[#allocation110_spill] sm:$0xff] }
 0x38e   :  { %v19806_v12 = vpack.c.bf16 %v11801_v36, %v11794_v11  ;;  %14350 = vmatprep.mubr.msk.bf16.mxu0 %vm10908_vm7, %v19397_v3 }
 0x390   :  { %20680 = vst [vmem:[#allocation7_spill] sm:$0xff] %v19806_v12  ;;  %12665 = vmatpush1.bf16.msra.mxu1 %v20682_v1  ;;  %12716 = vmatpush1.bf16.msra.mxu0 %v5021_v63  ;;  %v19853_v63 = vld [vmem:[%s20329_s3] ss:$8 sps:$4 sm:$0xff]  }
 0x391   :  { %12666 = vmatprep.subr.bf16.mxu1 %v20681_v42  ;;  %12717 = vmatprep.subr.bf16.mxu0 %v20484_v29 }
 0x394   :  { %12667 = vmatpush1.bf16.msra.mxu1 %v20678_v61  ;;  %12718 = vmatpush1.bf16.msra.mxu0 %v20683_v17 }
 0x395   :  { %14424 = vmatprep.subr.msk.bf16.mxu1 %vm3094_vm5, %v19000_v15  ;;  %12719 = vmatprep.subr.bf16.mxu0 %v20484_v29 }
 0x398   :  { %12669 = vmatpush1.bf16.msra.mxu1 %v19825_v28  ;;  %12720 = vmatpush1.bf16.msra.mxu0 %v20684_v59 }
 0x399   :  { %12670 = vmatprep.subr.bf16.mxu1 %v20685_v50  ;;  %12721 = vmatprep.subr.bf16.mxu0 %v20484_v29 }
 0x39c   :  { %12671 = vmatpush1.bf16.msra.mxu1 %v20686_v40  ;;  %12722 = vmatpush1.bf16.msra.mxu0 %v19834_v22 }
 0x39d   :  { %12672 = vmatprep.subr.bf16.mxu1 %v19005_v52  ;;  %12723 = vmatprep.subr.bf16.mxu0 %v20484_v29 }
 0x39e   :  { %v11709_v8 = vpop.f32.mrb[236].mxu1 }
 0x39f   :  { %v11710_v37 = vadd.f32 %v11709_v8, %v19318_v16  ;;  %v11711_v54 = vpop.f32.mrb[237].mxu1 }
 0x3a0   :  { %v11712_v61 = vadd.f32 %v11711_v54, %v19318_v16  ;;  %v11713_v44 = vpop.f32.mrb[238].mxu1  ;;  %12673 = vmatpush1.bf16.msra.mxu1 %v19000_v15  ;;  %12724 = vmatpush1.bf16.msra.mxu0 %v20687_v5  ;;  %v20688_v54 = vld [vmem:[#allocation132_spill] sm:$0xff] }
 0x3a1   :  { %v11781_v53 = vmax.f32 %v11710_v37, 0.0  ;;  %v11714_v57 = vadd.f32 %v11713_v44, %v19333_v27  ;;  %v11715_v11 = vpop.f32.mrb[239].mxu1  ;;  %14425 = vmatprep.subr.msk.bf16.mxu1 %vm3094_vm5, %v18960_v6  ;;  %12725 = vmatprep.subr.bf16.mxu0 %v20484_v29 }
 0x3a2   :  { %v11716_v36 = vadd.f32 %v11715_v11, %v19333_v27  ;;  %v11762_v32 = vpop.f32.mrb[236].mxu0  ;;  %v11782_v8 = vmax.f32 %v11712_v61, 0.0 }
 0x3a3   :  { %v11788_v42 = vmax.f32 %v11714_v57, 0.0  ;;  %12689 = vmatmul.mubr.bf16.vlgmr.msra.gmra.mrb[28].mxu1 %v19853_v63  ;;  %v11763_v1 = vadd.f32 %v11762_v32, %v19318_v16  ;;  %v11764_v17 = vpop.f32.mrb[237].mxu0 }
 0x3a4   :  { %v11789_v37 = vmax.f32 %v11716_v36, 0.0  ;;  %12726 = vmatpush1.bf16.msra.mxu0 %v20688_v54  ;;  %12878 = vmatpush1.bf16.msra.mxu1 %v19723_v2  ;;  %v11765_v44 = vpop.f32.mrb[238].mxu0  ;;  %v19871_v2 = vld [vmem:[%s20329_s3 + $0x14] ss:$8 sps:$4 sm:$0xff]  }
 0x3a5   :  { %v19859_v11 = vpack.c.bf16 %v11788_v42, %v11781_v53  ;;  %12879 = vmatprep.subr.bf16.mxu1 %v20674_v7  ;;  %14428 = vmatprep.subr.msk.bf16.mxu0 %vm3094_vm5, %v18962_v20  ;;  %v11783_v57 = vmax.f32 %v11763_v1, 0.0  ;;  %v11766_v12 = vadd.f32 %v11765_v44, %v19333_v27  ;;  %v11767_v32 = vpop.f32.mrb[239].mxu0 }
 0x3a6   :  { %v19866_v17 = vpack.c.bf16 %v11789_v37, %v11782_v8  ;;  %v11719_v61 = vpop.f32.mrb[240].mxu1  ;;  %14349 = vmatprep.mubr.msk.bf16.mxu1 %vm10908_vm7, %v19871_v2 }
 0x3a7   :  { %v11720_v7 = vadd.f32 %v11719_v61, %v19350_v41  ;;  %v11721_v53 = vpop.f32.mrb[241].mxu1  ;;  %12742 = vmatmul.mubr.bf16.vlgmr.msra.gmra.mrb[28].mxu0 %v19853_v63  ;;  %v11790_v36 = vmax.f32 %v11766_v12, 0.0 }
 0x3a8   :  { %v11722_v42 = vadd.f32 %v11721_v53, %v19350_v41  ;;  %v11723_v1 = vpop.f32.mrb[242].mxu1  ;;  %12880 = vmatpush1.bf16.msra.mxu1 %v20675_v43  ;;  %12931 = vmatpush1.bf16.msra.mxu0 %v19734_v19 }
 0x3a9   :  { %v11724_v8 = vadd.f32 %v11723_v1, %v19359_v10  ;;  %v19881_v37 = vpack.c.bf16 %v11790_v36, %v11783_v57  ;;  %v11725_v44 = vpop.f32.mrb[243].mxu1  ;;  %12881 = vmatprep.subr.bf16.mxu1 %v18968_v60  ;;  %12932 = vmatprep.subr.bf16.mxu0 %v20676_v9  ;;  %v11795_v12 = vmax.f32 %v11720_v7, 0.0  ;;  %v19892_v57 = vld [vmem:[%s20329_s3 + $0x10] ss:$8 sps:$4 sm:$0xff]  }
 0x3aa   :  { %v11726_v32 = vadd.f32 %v11725_v44, %v19359_v10  ;;  %v11770_v61 = vpop.f32.mrb[240].mxu0  ;;  %14351 = vmatprep.mubr.msk.bf16.mxu0 %vm10908_vm7, %v19871_v2  ;;  %v11796_v60 = vmax.f32 %v11722_v42, 0.0 }
 0x3ab   :  { %v11802_v53 = vmax.f32 %v11724_v8, 0.0  ;;  %v11771_v43 = vadd.f32 %v11770_v61, %v19350_v41  ;;  %v11772_v19 = vpop.f32.mrb[241].mxu0  ;;  %12699 = vmatmul.mubr.bf16.gmra.mrb[32].mxu1 %v19892_v57  ;;  %v20689_v8 = vld [vmem:[#allocation73_spill] sm:$0xff] }
 0x3ac   :  { %v11803_v9 = vmax.f32 %v11726_v32, 0.0  ;;  %v11773_v36 = vpop.f32.mrb[242].mxu0  ;;  %12882 = vmatpush1.bf16.msra.mxu1 %v18960_v6  ;;  %12933 = vmatpush1.bf16.msra.mxu0 %v20677_v38  ;;  %v5022_v38 = vsel %vm3100_vm10, %v20684_v59, 0  ;;  %v20693_v19 = vld [vmem:[#allocation36_spill] sm:$0xff]  ;;  %v20695_v59 = vld [vmem:[#allocation35_spill] sm:$0xff] }
 0x3ad   :  { %v19897_v1 = vpack.c.bf16 %v11802_v53, %v11795_v12  ;;  %v11774_v7 = vadd.f32 %v11773_v36, %v19359_v10  ;;  %14426 = vmatprep.subr.msk.bf16.mxu1 %vm3094_vm5, %v20689_v8  ;;  %12934 = vmatprep.subr.bf16.mxu0 %v18970_v56  ;;  %v11775_v44 = vpop.f32.mrb[243].mxu0  ;;  %v11797_v42 = vmax.f32 %v11771_v43, 0.0  ;;  %v20690_v56 = vld [vmem:[#allocation37_spill] sm:$0xff]  ;;  %v20691_v12 = vld [vmem:[#allocation75_spill] sm:$0xff]  ;;  %v20692_v53 = vld [vmem:[#allocation74_spill] sm:$0xff] }
 0x3ae   :  { %v19904_v61 = vpack.c.bf16 %v11803_v9, %v11796_v60  ;;  %14352 = vmatprep.mubr.msk.bf16.mxu1 %vm10908_vm7, %v19397_v3  ;;  %v5400_v43 = vsel %vm3095_vm6, %v20692_v53, 0  ;;  %v20696_v60 = vld [vmem:[#allocation133_spill] sm:$0xff]  ;;  %v10398_v9 = vsel %vm3100_vm10, %v20688_v54, 0 }
 0x3af   :  { %v11804_v6 = vmax.f32 %v11774_v7, 0.0  ;;  %12750 = vmatmul.mubr.bf16.gmra.mrb[32].mxu0 %v19892_v57  ;;  %v20698_v36 = vld [vmem:[#allocation113_spill] sm:$0xff]  ;;  %v10789_v7 = vsel %vm3095_vm6, %v19019_v31, 0 }
 0x3b0   :  { %12884 = vmatpush1.bf16.msra.mxu1 %v5022_v38  ;;  %12935 = vmatpush1.bf16.msra.mxu0 %v18962_v20  ;;  %v20694_v20 = vld [vmem:[#allocation38_spill] sm:$0xff] }
 0x3b1   :  { %v19913_v32 = vpack.c.bf16 %v11804_v6, %v11797_v42  ;;  %12885 = vmatprep.subr.bf16.mxu1 %v20690_v56  ;;  %14429 = vmatprep.subr.msk.bf16.mxu0 %vm3094_vm5, %v20691_v12 }
 0x3b2   :  { %14354 = vmatprep.mubr.msk.bf16.mxu0 %vm10908_vm7, %v19397_v3  ;;  %v20697_v3 = vld [vmem:[#allocation76_spill] sm:$0xff] }
 0x3b4   :  { %12886 = vmatpush1.bf16.msra.mxu1 %v20693_v19  ;;  %12937 = vmatpush1.bf16.msra.mxu0 %v5400_v43 }
 0x3b5   :  { %12887 = vmatprep.subr.bf16.mxu1 %v20692_v53  ;;  %12938 = vmatprep.subr.bf16.mxu0 %v20694_v20 }
 0x3b8   :  { %12888 = vmatpush1.bf16.msra.mxu1 %v20689_v8  ;;  %12939 = vmatpush1.bf16.msra.mxu0 %v20695_v59  ;;  %v20699_v8 = vld [vmem:[#allocation111_spill] sm:$0xff] }
 0x3b9   :  { %14427 = vmatprep.subr.msk.bf16.mxu1 %vm3094_vm5, %v20696_v60  ;;  %12940 = vmatprep.subr.bf16.mxu0 %v20697_v3 }
 0x3bc   :  { %12890 = vmatpush1.bf16.msra.mxu1 %v10398_v9  ;;  %12941 = vmatpush1.bf16.msra.mxu0 %v20691_v12  ;;  %v20701_v12 = vld [vmem:[#allocation112_spill] sm:$0xff] }
 0x3bd   :  { %12891 = vmatprep.subr.bf16.mxu1 %v20698_v36  ;;  %14430 = vmatprep.subr.msk.bf16.mxu0 %vm3094_vm5, %v19027_v51 }
 0x3c0   :  { %12892 = vmatpush1.bf16.msra.mxu1 %v20699_v8  ;;  %12943 = vmatpush1.bf16.msra.mxu0 %v10789_v7 }
 0x3c1   :  { %12893 = vmatprep.subr.bf16.mxu1 %v19019_v31  ;;  %12944 = vmatprep.subr.bf16.mxu0 %v20700_v23 }
 0x3c2   :  { %v11930_v44 = vpop.f32.mrb[244].mxu1 }
 0x3c3   :  { %v11931_v42 = vadd.f32 %v11930_v44, %v19318_v16  ;;  %v11932_v6 = vpop.f32.mrb[245].mxu1 }
 0x3c4   :  { %v11933_v38 = vadd.f32 %v11932_v6, %v19318_v16  ;;  %v11934_v56 = vpop.f32.mrb[246].mxu1  ;;  %12894 = vmatpush1.bf16.msra.mxu1 %v20696_v60  ;;  %12945 = vmatpush1.bf16.msra.mxu0 %v20701_v12 }
 0x3c5   :  { %v12104_v53 = vmax.f32 %v11931_v42, 0.0  ;;  %v11935_v43 = vadd.f32 %v11934_v56, %v19333_v27  ;;  %v11936_v19 = vpop.f32.mrb[247].mxu1  ;;  %12946 = vmatprep.subr.bf16.mxu0 %v19033_v35  ;;  %14431 = vmatprep.subr.msk.bf16.mxu1 %vm3094_vm5, %v19000_v15 }
 0x3c6   :  { %v11937_v31 = vadd.f32 %v11936_v19, %v19333_v27  ;;  %v11983_v20 = vpop.f32.mrb[244].mxu0  ;;  %v12105_v36 = vmax.f32 %v11933_v38, 0.0 }
 0x3c7   :  { %v12111_v59 = vmax.f32 %v11935_v43, 0.0  ;;  %12910 = vmatmul.mubr.bf16.vlgmr.msra.gmra.mrb[36].mxu1 %v19853_v63  ;;  %v11984_v60 = vadd.f32 %v11983_v20, %v19318_v16  ;;  %v11985_v9 = vpop.f32.mrb[245].mxu0 }
 0x3c8   :  { %v12112_v7 = vmax.f32 %v11937_v31, 0.0  ;;  %12947 = vmatpush1.bf16.msra.mxu0 %v19027_v51  ;;  %12984 = vmatpush1.bf16.msra.mxu1 %v19825_v28  ;;  %v11986_v8 = vadd.f32 %v11985_v9, %v19318_v16  ;;  %v11987_v23 = vpop.f32.mrb[246].mxu0 }
 0x3c9   :  { %v19962_v44 = vpack.c.bf16 %v12111_v59, %v12104_v53  ;;  %12985 = vmatprep.subr.bf16.mxu1 %v20685_v50  ;;  %v12106_v42 = vmax.f32 %v11984_v60, 0.0  ;;  %13036 = vmatprep.subr.bf16.mxu0 %v20484_v29  ;;  %v11988_v6 = vadd.f32 %v11987_v23, %v19333_v27  ;;  %v11989_v56 = vpop.f32.mrb[247].mxu0 }
 0x3ca   :  { %v19967_v12 = vpack.c.bf16 %v12112_v7, %v12105_v36  ;;  %v11940_v38 = vpop.f32.mrb[248].mxu1  ;;  %v12107_v43 = vmax.f32 %v11986_v8, 0.0  ;;  %v11990_v51 = vadd.f32 %v11989_v56, %v19333_v27  ;;  %14353 = vmatprep.mubr.msk.bf16.mxu1 %vm10908_vm7, %v19871_v2 }
 0x3cb   :  { %v11941_v28 = vadd.f32 %v11940_v38, %v19350_v41  ;;  %v11942_v53 = vpop.f32.mrb[249].mxu1  ;;  %12963 = vmatmul.mubr.bf16.vlgmr.msra.gmra.mrb[36].mxu0 %v19853_v63  ;;  %v12113_v50 = vmax.f32 %v11988_v6, 0.0 }
 0x3cc   :  { %v11943_v19 = vadd.f32 %v11942_v53, %v19350_v41  ;;  %v11944_v31 = vpop.f32.mrb[250].mxu1  ;;  %12986 = vmatpush1.bf16.msra.mxu1 %v20686_v40  ;;  %13037 = vmatpush1.bf16.msra.mxu0 %v19834_v22  ;;  %v12114_v20 = vmax.f32 %v11990_v51, 0.0  ;;  %v20702_v53 = vld [vmem:[#allocation77_spill] sm:$0xff] }
 0x3cd   :  { %v11945_v59 = vadd.f32 %v11944_v31, %v19359_v10  ;;  %v19978_v60 = vpack.c.bf16 %v12113_v50, %v12106_v42  ;;  %v11946_v9 = vpop.f32.mrb[251].mxu1  ;;  %12987 = vmatprep.subr.bf16.mxu1 %v19005_v52  ;;  %13038 = vmatprep.subr.bf16.mxu0 %v20484_v29  ;;  %v12118_v40 = vmax.f32 %v11941_v28, 0.0 }
 0x3ce   :  { %v11947_v36 = vadd.f32 %v11946_v9, %v19359_v10  ;;  %v19983_v7 = vpack.c.bf16 %v12114_v20, %v12107_v43  ;;  %v11993_v8 = vpop.f32.mrb[248].mxu0  ;;  %14355 = vmatprep.mubr.msk.bf16.mxu0 %vm10908_vm7, %v19871_v2  ;;  %v12119_v42 = vmax.f32 %v11943_v19, 0.0  ;;  %v5402_v20 = vsel %vm3095_vm6, %v20697_v3, 0  ;;  %v20705_v3 = vld [vmem:[#allocation40_spill] sm:$0xff] }
 0x3cf   :  { %v12125_v22 = vmax.f32 %v11945_v59, 0.0  ;;  %v11994_v23 = vadd.f32 %v11993_v8, %v19350_v41  ;;  %v11995_v6 = vpop.f32.mrb[249].mxu0  ;;  %12920 = vmatmul.mubr.bf16.gmra.mrb[40].mxu1 %v19892_v57  ;;  %v20703_v8 = vld [vmem:[#allocation41_spill] sm:$0xff] }
 0x3d0   :  { %v12126_v56 = vmax.f32 %v11947_v36, 0.0  ;;  %v11996_v52 = vadd.f32 %v11995_v6, %v19350_v41  ;;  %v11997_v38 = vpop.f32.mrb[250].mxu0  ;;  %12988 = vmatpush1.bf16.msra.mxu1 %v19000_v15  ;;  %13039 = vmatpush1.bf16.msra.mxu0 %v20687_v5  ;;  %v15596_v15 = vld [vmem:[%s20329_s3 + $0x4] ss:$8 sps:$4 sm:$0xff]   ;;  %v10791_v6 = vsel %vm3095_vm6, %v19033_v35, 0 }
 0x3d1   :  { %v19992_v43 = vpack.c.bf16 %v12125_v22, %v12118_v40  ;;  %v11998_v51 = vadd.f32 %v11997_v38, %v19359_v10  ;;  %v11999_v28 = vpop.f32.mrb[251].mxu0  ;;  %14432 = vmatprep.subr.msk.bf16.mxu1 %vm3094_vm5, %v20702_v53  ;;  %13040 = vmatprep.subr.bf16.mxu0 %v20484_v29  ;;  %v12120_v5 = vmax.f32 %v11994_v23, 0.0  ;;  %v20704_v22 = vld [vmem:[#allocation78_spill] sm:$0xff]  ;;  %v20709_v38 = vld [vmem:[#allocation116_spill] sm:$0xff] }
 0x3d2   :  { %v19999_v50 = vpack.c.bf16 %v12126_v56, %v12119_v42  ;;  %v12000_v19 = vadd.f32 %v11999_v28, %v19359_v10  ;;  %14356 = vmatprep.mubr.msk.bf16.mxu1 %vm10908_vm7, %v15596_v15  ;;  %v12121_v59 = vmax.f32 %v11996_v52, 0.0  ;;  %v5404_v23 = vsel %vm3095_vm6, %v20704_v22, 0  ;;  %v20707_v42 = vld [vmem:[#allocation79_spill] sm:$0xff]  ;;  %v20708_v56 = vld [vmem:[#allocation117_spill] sm:$0xff] }
 0x3d3   :  { %v12127_v31 = vmax.f32 %v11998_v51, 0.0  ;;  %12973 = vmatmul.mubr.bf16.gmra.mrb[40].mxu0 %v19892_v57  ;;  %v10793_v52 = vsel %vm3095_vm6, %v19046_v49, 0 }
 0x3d4   :  { %v12128_v9 = vmax.f32 %v12000_v19, 0.0  ;;  %12990 = vmatpush1.bf16.msra.mxu1 %v5402_v20  ;;  %13041 = vmatpush1.bf16.msra.mxu0 %v20688_v54  ;;  %v20706_v54 = vld [vmem:[#allocation39_spill] sm:$0xff] }
 0x3d5   :  { %v20011_v36 = vpack.c.bf16 %v12127_v31, %v12120_v5  ;;  %12991 = vmatprep.subr.bf16.mxu1 %v20703_v8  ;;  %13042 = vmatprep.subr.bf16.mxu0 %v20484_v29  ;;  %v20710_v19 = vld [vmem:[#allocation115_spill] sm:$0xff] }
 0x3d6   :  { %v20015_v40 = vpack.c.bf16 %v12128_v9, %v12121_v59  ;;  %14358 = vmatprep.mubr.msk.bf16.mxu0 %vm10908_vm7, %v15596_v15 }
 0x3d8   :  { %12992 = vmatpush1.bf16.msra.mxu1 %v20705_v3  ;;  %13043 = vmatpush1.bf16.msra.mxu0 %v5404_v23 }
 0x3d9   :  { %12993 = vmatprep.subr.bf16.mxu1 %v20704_v22  ;;  %13044 = vmatprep.subr.bf16.mxu0 %v20484_v29 }
 0x3dc   :  { %12994 = vmatpush1.bf16.msra.mxu1 %v20702_v53  ;;  %13045 = vmatpush1.bf16.msra.mxu0 %v20706_v54 }
 0x3dd   :  { %14433 = vmatprep.subr.msk.bf16.mxu1 %vm3094_vm5, %v19042_v62  ;;  %13046 = vmatprep.subr.bf16.mxu0 %v20484_v29 }
 0x3e0   :  { %12996 = vmatpush1.bf16.msra.mxu1 %v10791_v6  ;;  %13047 = vmatpush1.bf16.msra.mxu0 %v20707_v42 }
 0x3e1   :  { %12997 = vmatprep.subr.bf16.mxu1 %v20708_v56  ;;  %13048 = vmatprep.subr.bf16.mxu0 %v20484_v29 }
 0x3e4   :  { %12998 = vmatpush1.bf16.msra.mxu1 %v20709_v38  ;;  %13049 = vmatpush1.bf16.msra.mxu0 %v10793_v52 }
 0x3e5   :  { %12999 = vmatprep.subr.bf16.mxu1 %v19046_v49  ;;  %13050 = vmatprep.subr.bf16.mxu0 %v20484_v29 }
 0x3e6   :  { %v12036_v55 = vpop.f32.mrb[252].mxu1 }
 0x3e7   :  { %v12037_v35 = vadd.f32 %v12036_v55, %v19318_v16  ;;  %v12038_v51 = vpop.f32.mrb[253].mxu1  ;;  %v20712_v55 = vld [vmem:[#allocation44_spill] sm:$0xff] }
 0x3e8   :  { %v12039_v28 = vadd.f32 %v12038_v51, %v19318_v16  ;;  %v12040_v53 = vpop.f32.mrb[254].mxu1  ;;  %13000 = vmatpush1.bf16.msra.mxu1 %v19042_v62  ;;  %13051 = vmatpush1.bf16.msra.mxu0 %v20710_v19 }
 0x3e9   :  { %v12108_v48 = vmax.f32 %v12037_v35, 0.0  ;;  %v12041_v15 = vadd.f32 %v12040_v53, %v19333_v27  ;;  %v12042_v5 = vpop.f32.mrb[255].mxu1  ;;  %14546 = vmatprep.subr.bf16.mxu1 %v19458_v33  ;;  %13052 = vmatprep.subr.bf16.mxu0 %v20484_v29  ;;  %v20711_v33 = vld [vmem:[#allocation121_spill] sm:$0xff]  ;;  %v20713_v53 = vld [vmem:[#allocation42_spill] sm:$0xff] }
 0x3ea   :  { %v12043_v49 = vadd.f32 %v12042_v5, %v19333_v27  ;;  %v12089_v31 = vpop.f32.mrb[252].mxu0  ;;  %v12109_v62 = vmax.f32 %v12039_v28, 0.0 }
 0x3eb   :  { %v12115_v20 = vmax.f32 %v12041_v15, 0.0  ;;  %13016 = vmatmul.mubr.bf16.vlgmr.msra.gmra.mrb[44].mxu1 %v19853_v63  ;;  %v12090_v59 = vadd.f32 %v12089_v31, %v19318_v16  ;;  %v12091_v9 = vpop.f32.mrb[253].mxu0 }
 0x3ec   :  { %v12116_v8 = vmax.f32 %v12043_v49, 0.0  ;;  %13053 = vmatpush1.bf16.msra.mxu0 %v19048_v4  ;;  %14547 = vmatpush3.bf16.msra.mxu1 %v19352_v45  ;;  %v12092_v22 = vpop.f32.mrb[254].mxu0  ;;  %v20714_v9 = vld [vmem:[#allocation118_spill] sm:$0xff] }
 0x3ed   :  { %v20054_v23 = vpack.c.bf16 %v12115_v20, %v12108_v48  ;;  %14548 = vmatprep.subr.bf16.mxu1 %v20711_v33  ;;  %14568 = vmatprep.subr.bf16.mxu0 %v19663_v25  ;;  %v12110_v29 = vmax.f32 %v12090_v59, 0.0  ;;  %v12093_v3 = vadd.f32 %v12092_v22, %v19333_v27  ;;  %v12094_v54 = vpop.f32.mrb[255].mxu0  ;;  %v20068_v25 = vld [vmem:[%s20330_s5] sm:$0xff] }
 0x3ee   :  { %v20059_v6 = vpack.c.bf16 %v12116_v8, %v12109_v62  ;;  %v12046_v42 = vpop.f32.mrb[0].mxu1  ;;  %14357 = vmatprep.mubr.msk.bf16.mxu1 %vm10908_vm7, %v19871_v2  ;;  %v14361_v48 = vcombine.high %v20068_v25, %v20068_v25  ;;  %v20715_v8 = vld [vmem:[#allocation80_spill] sm:$0xff] }
 0x3ef   :  { %v12047_v4 = vadd.f32 %v12046_v42, %v19350_v41  ;;  %v12048_v45 = vpop.f32.mrb[1].mxu1  ;;  %13069 = vmatmul.mubr.bf16.vlgmr.msra.gmra.mrb[44].mxu0 %v19853_v63  ;;  %v12117_v56 = vmax.f32 %v12093_v3, 0.0  ;;  %v20716_v42 = vld [vmem:[#allocation4_spill] sm:$0xff] }
 0x3f0   :  { %v12049_v52 = vadd.f32 %v12048_v45, %v19350_v41  ;;  %v12050_v38 = vpop.f32.mrb[2].mxu1  ;;  %14549 = vmatpush3.bf16.msra.mxu1 %v20712_v55  ;;  %14569 = vmatpush3.bf16.msra.mxu0 %v19562_v34  ;;  %v20719_v45 = vld [vmem:[#allocation47_spill] sm:$0xff]  ;;  %v20726_v55 = vld [vmem:[#allocation9_spill] sm:$0xff] }
 0x3f1   :  { %v12051_v35 = vadd.f32 %v12050_v38, %v19359_v10  ;;  %v20074_v51 = vpack.c.bf16 %v12117_v56, %v12110_v29  ;;  %v12052_v28 = vpop.f32.mrb[3].mxu1  ;;  %14550 = vmatprep.subr.bf16.mxu1 %v20713_v53  ;;  %14570 = vmatprep.subr.bf16.mxu0 %v19691_v24  ;;  %v12122_v15 = vmax.f32 %v12047_v4, 0.0  ;;  %v13142_v24 = vld [vmem:[%s20330_s5 + $0x8] sm:$0xff]  ;;  %v20720_v56 = vld [vmem:[#allocation82_spill] sm:$0xff]  ;;  %v20728_v53 = vld [vmem:[#allocation8_spill] sm:$0xff] }
 0x3f2   :  { %v12053_v63 = vadd.f32 %v12052_v28, %v19359_v10  ;;  %v12097_v19 = vpop.f32.mrb[0].mxu0  ;;  %14359 = vmatprep.mubr.msk.bf16.mxu0 %vm10908_vm7, %v19871_v2  ;;  %v12123_v31 = vmax.f32 %v12049_v52, 0.0  ;;  %v14363_v29 = vcombine.high %v13142_v24, %v13142_v24  ;;  %v20717_v4 = vld [vmem:[#allocation81_spill] sm:$0xff]  ;;  %v20724_v38 = vld [vmem:[#allocation6_spill] sm:$0xff]  ;;  %v20727_v28 = vld [vmem:[#allocation120_spill] sm:$0xff] }
 0x3f3   :  { %v12129_v34 = vmax.f32 %v12051_v35, 0.0  ;;  %v12098_v5 = vadd.f32 %v12097_v19, %v19350_v41  ;;  %v12099_v49 = vpop.f32.mrb[1].mxu0  ;;  %13026 = vmatmul.mubr.bf16.gmra.mrb[48].mxu1 %v19892_v57  ;;  %v20722_v52 = vld [vmem:[#allocation45_spill] sm:$0xff]  ;;  %v14360_v35 = vcombine.low %v20068_v25, %v20068_v25 }
 0x3f4   :  { %v12130_v20 = vmax.f32 %v12053_v63, 0.0  ;;  %v12100_v59 = vpop.f32.mrb[2].mxu0  ;;  %14551 = vmatpush3.bf16.msra.mxu1 %v20714_v9  ;;  %14571 = vmatpush3.bf16.msra.mxu0 %v19594_v30 }
 0x3f5   :  { %v20090_v2 = vpack.c.bf16 %v12129_v34, %v12122_v15  ;;  %v12101_v62 = vadd.f32 %v12100_v59, %v19359_v10  ;;  %14552 = vmatprep.subr.bf16.mxu1 %v20715_v8  ;;  %14572 = vmatprep.subr.bf16.mxu0 %v19673_v26  ;;  %v12102_v22 = vpop.f32.mrb[3].mxu0  ;;  %v12124_v3 = vmax.f32 %v12098_v5, 0.0  ;;  %v20718_v26 = vld [vmem:[#allocation43_spill] sm:$0xff] }
 0x3f6   :  { %v20095_v33 = vpack.c.bf16 %v12130_v20, %v12123_v31  ;;  %13333 = vmatprep.mubr.bf16.mxu1 %v14361_v48  ;;  %v14362_v48 = vcombine.low %v13142_v24, %v13142_v24 }
 0x3f7   :  { %v12131_v54 = vmax.f32 %v12101_v62, 0.0  ;;  %13077 = vmatmul.mubr.bf16.gmra.mrb[48].mxu0 %v19892_v57  ;;  %v20721_v57 = vld [vmem:[#allocation5_spill] sm:$0xff] }
 0x3f8   :  { %14553 = vmatpush3.bf16.msra.mxu1 %v20716_v42  ;;  %14573 = vmatpush3.bf16.msra.mxu0 %v19573_v46  ;;  %v20723_v46 = vld [vmem:[#allocation119_spill] sm:$0xff] }
 0x3f9   :  { %v20100_v30 = vpack.c.bf16 %v12131_v54, %v12124_v3  ;;  %14554 = vmatprep.subr.bf16.mxu1 %v20717_v4  ;;  %14574 = vmatprep.subr.bf16.mxu0 %v19700_v47  ;;  %v20725_v47 = vld [vmem:[#allocation46_spill] sm:$0xff] }
 0x3fa   :  { %13373 = vmatprep.mubr.bf16.mxu0 %v14363_v29 }
 0x3fc   :  { %14555 = vmatpush3.bf16.msra.mxu1 %v20718_v26  ;;  %14575 = vmatpush3.bf16.msra.mxu0 %v20719_v45 }
 0x3fd   :  { %14556 = vmatprep.subr.bf16.mxu1 %v20720_v56  ;;  %14576 = vmatprep.subr.bf16.mxu0 %v19755_v18  ;;  %v20119_v18 = vld [vmem:[%s20330_s5 + $0x10] sm:$0xff] }
 0x400   :  { %14557 = vmatpush3.bf16.msra.mxu1 %v20721_v57  ;;  %14577 = vmatpush3.bf16.msra.mxu0 %v20722_v52 }
 0x401   :  { %14558 = vmatprep.subr.bf16.mxu1 %v20723_v46  ;;  %14578 = vmatprep.subr.bf16.mxu0 %v19785_v14  ;;  %v14365_v14 = vcombine.high %v20119_v18, %v20119_v18 }
 0x404   :  { %14559 = vmatpush3.bf16.msra.mxu1 %v20724_v38  ;;  %14579 = vmatpush3.bf16.msra.mxu0 %v20725_v47 }
 0x405   :  { %14560 = vmatprep.subr.bf16.mxu1 %v20726_v55  ;;  %14580 = vmatprep.subr.bf16.mxu0 %v19760_v0  ;;  %v20132_v0 = vld [vmem:[%s20330_s5 + $0x18] sm:$0xff] }
 0x408   :  { %14561 = vmatpush3.bf16.msra.mxu1 %v20727_v28  ;;  %14581 = vmatpush3.bf16.msra.mxu0 %v20728_v53 }
 0x409   :  { %14582 = vmatprep.subr.bf16.mxu0 %v19792_v58  ;;  %14590 = vmatprep.subr.bf16.mxu1 %v19881_v37  ;;  %v20729_v58 = vld [vmem:[#allocation10_spill] sm:$0xff]  ;;  %v14367_v37 = vcombine.high %v20132_v0, %v20132_v0 }
 0x40a   :  { %v12257_v63 = vpop.f32.mrb[4].mxu1 }
 0x40b   :  { %v12258_v19 = vadd.f32 %v12257_v63, %v19318_v16  ;;  %v12259_v25 = vpop.f32.mrb[5].mxu1  ;;  %13334 = vmatmul.mubr.bf16.vlgmr.msra.gmra.mrb[52].mxu1 %v14360_v35 }
 0x40c   :  { %v12260_v15 = vadd.f32 %v12259_v25, %v19318_v16  ;;  %v12261_v34 = vpop.f32.mrb[6].mxu1  ;;  %14583 = vmatpush3.bf16.msra.mxu0 %v20729_v58  ;;  %14591 = vmatpush3.bf16.msra.mxu1 %v19771_v13  ;;  %v20730_v58 = vld [vmem:[#allocation7_spill] sm:$0xff] }
 0x40d   :  { %v12431_v5 = vmax.f32 %v12258_v19, 0.0  ;;  %v12262_v49 = vadd.f32 %v12261_v34, %v19333_v27  ;;  %v12263_v31 = vpop.f32.mrb[7].mxu1  ;;  %14592 = vmatprep.subr.bf16.mxu1 %v19913_v32  ;;  %13413 = vmatprep.mubr.bf16.mxu1 %v14365_v14 }
 0x40e   :  { %v12264_v20 = vadd.f32 %v12263_v31, %v19333_v27  ;;  %v12310_v24 = vpop.f32.mrb[4].mxu0  ;;  %v12432_v8 = vmax.f32 %v12260_v15, 0.0 }
 0x40f   :  { %v12438_v59 = vmax.f32 %v12262_v49, 0.0  ;;  %13374 = vmatmul.mubr.bf16.vlgmr.msra.gmra.mrb[52].mxu0 %v14362_v48  ;;  %v12311_v9 = vadd.f32 %v12310_v24, %v19318_v16  ;;  %v12312_v62 = vpop.f32.mrb[5].mxu0 }
 0x410   :  { %v12439_v13 = vmax.f32 %v12264_v20, 0.0  ;;  %14593 = vmatpush3.bf16.msra.mxu1 %v19802_v21  ;;  %v12313_v22 = vadd.f32 %v12312_v62, %v19318_v16  ;;  %v12314_v29 = vpop.f32.mrb[6].mxu0  ;;  %13453 = vmatprep.mubr.bf16.mxu0 %v14367_v37 }
 0x411   :  { %v12459_v3 = vpack.c.bf16 %v12438_v59, %v12431_v5  ;;  %14594 = vmatprep.subr.bf16.mxu1 %v19962_v44  ;;  %v12433_v32 = vmax.f32 %v12311_v9, 0.0  ;;  %v12315_v54 = vadd.f32 %v12314_v29, %v19333_v27  ;;  %v12316_v42 = vpop.f32.mrb[7].mxu0 }
 0x412   :  { %v12460_v4 = vpack.c.bf16 %v12439_v13, %v12432_v8  ;;  %v12267_v26 = vpop.f32.mrb[8].mxu1  ;;  %v12434_v45 = vmax.f32 %v12313_v22, 0.0  ;;  %v12317_v56 = vadd.f32 %v12316_v42, %v19333_v27  ;;  %v14366_v22 = vcombine.low %v20132_v0, %v20132_v0 }
 0x413   :  { %v12268_v57 = vadd.f32 %v12267_v26, %v19350_v41  ;;  %v12269_v52 = vpop.f32.mrb[9].mxu1  ;;  %14612 = vmatprep.subr.bf16.mxu0 %v12459_v3  ;;  %v12440_v21 = vmax.f32 %v12315_v54, 0.0 }
 0x414   :  { %v12270_v46 = vadd.f32 %v12269_v52, %v19350_v41  ;;  %v12271_v38 = vpop.f32.mrb[10].mxu1  ;;  %14595 = vmatpush3.bf16.msra.mxu1 %v19776_v39  ;;  %14613 = vmatpush3.bf16.msra.mxu0 %v19983_v7  ;;  %v12441_v44 = vmax.f32 %v12317_v56, 0.0 }
 0x415   :  { %v12272_v47 = vadd.f32 %v12271_v38, %v19359_v10  ;;  %v12461_v55 = vpack.c.bf16 %v12440_v21, %v12433_v32  ;;  %v12273_v35 = vpop.f32.mrb[11].mxu1  ;;  %14596 = vmatprep.subr.bf16.mxu1 %v19992_v43  ;;  %v12445_v63 = vmax.f32 %v12268_v57, 0.0 }
 0x416   :  { %v12274_v28 = vadd.f32 %v12273_v35, %v19359_v10  ;;  %v12462_v53 = vpack.c.bf16 %v12441_v44, %v12434_v45  ;;  %v12320_v14 = vpop.f32.mrb[8].mxu0  ;;  %v12446_v15 = vmax.f32 %v12270_v46, 0.0 }
 0x417   :  { %v12452_v19 = vmax.f32 %v12272_v47, 0.0  ;;  %v12321_v25 = vadd.f32 %v12320_v14, %v19350_v41  ;;  %v12322_v48 = vpop.f32.mrb[9].mxu0 }
 0x418   :  { %v12453_v39 = vmax.f32 %v12274_v28, 0.0  ;;  %v12323_v7 = vadd.f32 %v12322_v48, %v19350_v41  ;;  %v12324_v34 = vpop.f32.mrb[10].mxu0  ;;  %14597 = vmatpush3.bf16.msra.mxu1 %v20730_v58 }
 0x419   :  { %v12466_v37 = vpack.c.bf16 %v12452_v19, %v12445_v63  ;;  %v12325_v5 = vadd.f32 %v12324_v34, %v19359_v10  ;;  %v12326_v43 = vpop.f32.mrb[11].mxu0  ;;  %14598 = vmatprep.subr.bf16.mxu1 %v19967_v12  ;;  %v12447_v20 = vmax.f32 %v12321_v25, 0.0 }
 0x41a   :  { %v12467_v49 = vpack.c.bf16 %v12453_v39, %v12446_v15  ;;  %v12327_v31 = vadd.f32 %v12326_v43, %v19359_v10  ;;  %v12448_v59 = vmax.f32 %v12323_v7, 0.0 }
 0x41b   :  { %v12454_v24 = vmax.f32 %v12325_v5, 0.0  ;;  %14614 = vmatprep.subr.bf16.mxu0 %v12466_v37 }
 0x41c   :  { %v12455_v9 = vmax.f32 %v12327_v31, 0.0  ;;  %14599 = vmatpush3.bf16.msra.mxu1 %v19859_v11  ;;  %14615 = vmatpush3.bf16.msra.mxu0 %v20015_v40  ;;  %v20174_v11 = vld [vmem:[%s20330_s5 + $0x20] sm:$0xff] }
 0x41d   :  { %v12468_v62 = vpack.c.bf16 %v12454_v24, %v12447_v20  ;;  %14600 = vmatprep.subr.bf16.mxu1 %v19999_v50  ;;  %14616 = vmatprep.subr.bf16.mxu0 %v12460_v4 }
 0x41e   :  { %v12469_v8 = vpack.c.bf16 %v12455_v9, %v12448_v59 }
 0x420   :  { %14601 = vmatpush3.bf16.msra.mxu1 %v19897_v1  ;;  %14617 = vmatpush3.bf16.msra.mxu0 %v20054_v23  ;;  %v14364_v1 = vcombine.low %v20119_v18, %v20119_v18 }
 0x421   :  { %14602 = vmatprep.subr.bf16.mxu1 %v19978_v60  ;;  %14618 = vmatprep.subr.bf16.mxu0 %v12467_v49 }
 0x424   :  { %14603 = vmatpush3.bf16.msra.mxu1 %v19866_v17  ;;  %14619 = vmatpush3.bf16.msra.mxu0 %v20090_v2  ;;  %v14369_v17 = vcombine.high %v20174_v11, %v20174_v11 }
 0x425   :  { %14604 = vmatprep.subr.bf16.mxu1 %v20011_v36  ;;  %14620 = vmatprep.subr.bf16.mxu0 %v12461_v55 }
 0x428   :  { %14605 = vmatpush3.bf16.msra.mxu1 %v19904_v61  ;;  %14621 = vmatpush3.bf16.msra.mxu0 %v20059_v6 }
 0x429   :  { %14622 = vmatprep.subr.bf16.mxu0 %v12468_v62 }
 0x42b   :  { %13414 = vmatmul.mubr.bf16.vlgmr.msra.gmra.mrb[56].mxu1 %v14364_v1 }
 0x42c   :  { %14623 = vmatpush3.bf16.msra.mxu0 %v20095_v33  ;;  %13493 = vmatprep.mubr.bf16.mxu1 %v14369_v17 }
 0x42d   :  { %14624 = vmatprep.subr.bf16.mxu0 %v12462_v53 }
 0x42e   :  { %v12363_v12 = vpop.f32.mrb[12].mxu1 }
 0x42f   :  { %v12364_v60 = vadd.f32 %v12363_v12, %v19318_v16  ;;  %v12365_v50 = vpop.f32.mrb[13].mxu1 }
 0x430   :  { %v12366_v36 = vadd.f32 %v12365_v50, %v19318_v16  ;;  %v12367_v40 = vpop.f32.mrb[14].mxu1  ;;  %14625 = vmatpush3.bf16.msra.mxu0 %v20074_v51 }
 0x431   :  { %v12435_v61 = vmax.f32 %v12364_v60, 0.0  ;;  %v12368_v23 = vadd.f32 %v12367_v40, %v19333_v27  ;;  %v12369_v6 = vpop.f32.mrb[15].mxu1  ;;  %14626 = vmatprep.subr.bf16.mxu0 %v12469_v8 }
 0x432   :  { %v12370_v2 = vadd.f32 %v12369_v6, %v19333_v27  ;;  %v12416_v18 = vpop.f32.mrb[12].mxu0  ;;  %v12436_v3 = vmax.f32 %v12366_v36, 0.0 }
 0x433   :  { %v12442_v33 = vmax.f32 %v12368_v23, 0.0  ;;  %v12417_v13 = vadd.f32 %v12416_v18, %v19318_v16  ;;  %v12418_v29 = vpop.f32.mrb[13].mxu0 }
 0x434   :  { %v12443_v32 = vmax.f32 %v12370_v2, 0.0  ;;  %14627 = vmatpush3.bf16.msra.mxu0 %v20100_v30  ;;  %v12419_v51 = vpop.f32.mrb[14].mxu0 }
 0x435   :  { %v20192_v54 = vpack.c.bf16 %v12442_v33, %v12435_v61  ;;  %v12437_v42 = vmax.f32 %v12417_v13, 0.0  ;;  %v12420_v4 = vadd.f32 %v12419_v51, %v19333_v27  ;;  %v12421_v26 = vpop.f32.mrb[15].mxu0  ;;  %v20220_v61 = vld [vmem:[%s20330_s5 + $0x28] sm:$0xff] }
 0x436   :  { %v20195_v45 = vpack.c.bf16 %v12443_v32, %v12436_v3  ;;  %v12373_v56 = vpop.f32.mrb[16].mxu1  ;;  %v14371_v3 = vcombine.high %v20220_v61, %v20220_v61 }
 0x437   :  { %v12374_v57 = vadd.f32 %v12373_v56, %v19350_v41  ;;  %v12375_v52 = vpop.f32.mrb[17].mxu1  ;;  %13454 = vmatmul.mubr.bf16.vlgmr.msra.gmra.mrb[56].mxu0 %v14366_v22  ;;  %v12444_v0 = vmax.f32 %v12420_v4, 0.0 }
 0x438   :  { %v12376_v21 = vadd.f32 %v12375_v52, %v19350_v41  ;;  %v12377_v46 = vpop.f32.mrb[18].mxu1  ;;  %13533 = vmatprep.mubr.bf16.mxu0 %v14371_v3 }
 0x439   :  { %v12378_v30 = vadd.f32 %v12377_v46, %v19359_v10  ;;  %v20200_v38 = vpack.c.bf16 %v12444_v0, %v12437_v42  ;;  %v12379_v44 = vpop.f32.mrb[19].mxu1  ;;  %v12449_v35 = vmax.f32 %v12374_v57, 0.0 }
 0x43a   :  { %v12380_v47 = vadd.f32 %v12379_v44, %v19359_v10  ;;  %v12424_v55 = vpop.f32.mrb[16].mxu0  ;;  %v12450_v63 = vmax.f32 %v12376_v21, 0.0 }
 0x43b   :  { %v12456_v28 = vmax.f32 %v12378_v30, 0.0  ;;  %v12425_v53 = vadd.f32 %v12424_v55, %v19350_v41  ;;  %v12426_v14 = vpop.f32.mrb[17].mxu0 }
 0x43c   :  { %v12457_v19 = vmax.f32 %v12380_v47, 0.0  ;;  %v12427_v25 = vpop.f32.mrb[18].mxu0 }
 0x43d   :  { %v20204_v48 = vpack.c.bf16 %v12456_v28, %v12449_v35  ;;  %v12428_v15 = vadd.f32 %v12427_v25, %v19359_v10  ;;  %v12429_v39 = vpop.f32.mrb[19].mxu0  ;;  %v12451_v34 = vmax.f32 %v12425_v53, 0.0 }
 0x43e   :  { %v20207_v7 = vpack.c.bf16 %v12457_v19, %v12450_v63 }
 0x43f   :  { %v12458_v58 = vmax.f32 %v12428_v15, 0.0 }
 0x441   :  { %v20209_v37 = vpack.c.bf16 %v12458_v58, %v12451_v34 }
 0x452   :  { %v12584_v5 = vpop.f32.mrb[20].mxu1 }
 0x453   :  { %v12585_v43 = vadd.f32 %v12584_v5, %v19318_v16  ;;  %v12586_v49 = vpop.f32.mrb[21].mxu1 }
 0x454   :  { %v12587_v31 = vadd.f32 %v12586_v49, %v19318_v16  ;;  %v12588_v20 = vpop.f32.mrb[22].mxu1 }
 0x455   :  { %v12758_v24 = vmax.f32 %v12585_v43, 0.0  ;;  %v12589_v59 = vadd.f32 %v12588_v20, %v19333_v27  ;;  %v12590_v9 = vpop.f32.mrb[23].mxu1 }
 0x456   :  { %v12591_v62 = vadd.f32 %v12590_v9, %v19333_v27  ;;  %v12637_v8 = vpop.f32.mrb[20].mxu0  ;;  %v12759_v60 = vmax.f32 %v12587_v31, 0.0 }
 0x457   :  { %v12765_v1 = vmax.f32 %v12589_v59, 0.0  ;;  %v12638_v17 = vadd.f32 %v12637_v8, %v19318_v16  ;;  %v12639_v12 = vpop.f32.mrb[21].mxu0 }
 0x458   :  { %v12766_v50 = vmax.f32 %v12591_v62, 0.0  ;;  %v12640_v36 = vadd.f32 %v12639_v12, %v19318_v16  ;;  %v12641_v40 = vpop.f32.mrb[22].mxu0 }
 0x459   :  { %v20222_v23 = vpack.c.bf16 %v12765_v1, %v12758_v24  ;;  %v12760_v6 = vmax.f32 %v12638_v17, 0.0  ;;  %v12642_v2 = vadd.f32 %v12641_v40, %v19333_v27  ;;  %v12643_v18 = vpop.f32.mrb[23].mxu0 }
 0x45a   :  { %v12787_v33 = vpack.c.bf16 %v12766_v50, %v12759_v60  ;;  %v12594_v13 = vpop.f32.mrb[24].mxu1  ;;  %v12761_v22 = vmax.f32 %v12640_v36, 0.0  ;;  %v12644_v29 = vadd.f32 %v12643_v18, %v19333_v27 }
 0x45b   :  { %v12595_v32 = vadd.f32 %v12594_v13, %v19350_v41  ;;  %v12596_v51 = vpop.f32.mrb[25].mxu1  ;;  %v12767_v42 = vmax.f32 %v12642_v2, 0.0 }
 0x45c   :  { %v12597_v4 = vadd.f32 %v12596_v51, %v19350_v41  ;;  %v12598_v26 = vpop.f32.mrb[26].mxu1  ;;  %14634 = vmatprep.subr.bf16.mxu1 %v12787_v33  ;;  %v12768_v56 = vmax.f32 %v12644_v29, 0.0 }
 0x45d   :  { %v12599_v57 = vadd.f32 %v12598_v26, %v19359_v10  ;;  %v12788_v52 = vpack.c.bf16 %v12767_v42, %v12760_v6  ;;  %v12600_v0 = vpop.f32.mrb[27].mxu1  ;;  %14635 = vmatpush3.bf16.msra.mxu1 %v20192_v54  ;;  %v12772_v44 = vmax.f32 %v12595_v32, 0.0 }
 0x45e   :  { %v12601_v21 = vadd.f32 %v12600_v0, %v19359_v10  ;;  %v12789_v46 = vpack.c.bf16 %v12768_v56, %v12761_v22  ;;  %v12647_v30 = vpop.f32.mrb[24].mxu0  ;;  %v12773_v28 = vmax.f32 %v12597_v4, 0.0 }
 0x45f   :  { %v12779_v47 = vmax.f32 %v12599_v57, 0.0  ;;  %v12648_v55 = vadd.f32 %v12647_v30, %v19350_v41  ;;  %v12649_v35 = vpop.f32.mrb[25].mxu0 }
 0x460   :  { %v12780_v53 = vmax.f32 %v12601_v21, 0.0  ;;  %v12650_v14 = vadd.f32 %v12649_v35, %v19350_v41  ;;  %v12651_v63 = vpop.f32.mrb[26].mxu0 }
 0x461   :  { %v20235_v19 = vpack.c.bf16 %v12779_v47, %v12772_v44  ;;  %v12652_v25 = vadd.f32 %v12651_v63, %v19359_v10  ;;  %v12653_v15 = vpop.f32.mrb[27].mxu0  ;;  %v12774_v34 = vmax.f32 %v12648_v55, 0.0 }
 0x462   :  { %v12794_v54 = vpack.c.bf16 %v12780_v53, %v12773_v28  ;;  %v12654_v39 = vadd.f32 %v12653_v15, %v19359_v10  ;;  %v12775_v5 = vmax.f32 %v12650_v14, 0.0  ;;  %v14368_v14 = vcombine.low %v20174_v11, %v20174_v11 }
 0x463   :  { %v12781_v58 = vmax.f32 %v12652_v25, 0.0  ;;  %v20731_v25 = vmov 0.0  }
 0x464   :  { %v12782_v43 = vmax.f32 %v12654_v39, 0.0  ;;  %14636 = vmatprep.subr.bf16.mxu1 %v12794_v54 }
 0x465   :  { %v12795_v49 = vpack.c.bf16 %v12781_v58, %v12774_v34  ;;  %14637 = vmatpush3.bf16.msra.mxu1 %v20204_v48 }
 0x466   :  { %v12796_v31 = vpack.c.bf16 %v12782_v43, %v12775_v5  ;;  %14638 = vmatprep.subr.bf16.mxu1 %v12788_v52 }
 0x469   :  { %14639 = vmatpush3.bf16.msra.mxu1 %v20195_v45 }
 0x46a   :  { %14640 = vmatprep.subr.bf16.mxu1 %v12795_v49 }
 0x46d   :  { %14641 = vmatpush3.bf16.msra.mxu1 %v20207_v7 }
 0x46e   :  { %14642 = vmatprep.subr.bf16.mxu1 %v12789_v46 }
 0x471   :  { %14643 = vmatpush3.bf16.msra.mxu1 %v20200_v38 }
 0x472   :  { %14644 = vmatprep.subr.bf16.mxu1 %v12796_v31 }
 0x475   :  { %14645 = vmatpush3.bf16.msra.mxu1 %v20209_v37 }
 0x476   :  { %v12690_v20 = vpop.f32.mrb[28].mxu1 }
 0x477   :  { %v12691_v24 = vadd.f32 %v12690_v20, %v19318_v16  ;;  %v12692_v59 = vpop.f32.mrb[29].mxu1 }
 0x478   :  { %v12693_v9 = vadd.f32 %v12692_v59, %v19318_v16  ;;  %v12694_v48 = vpop.f32.mrb[30].mxu1 }
 0x479   :  { %v12695_v62 = vadd.f32 %v12694_v48, %v19333_v27  ;;  %v12696_v8 = vpop.f32.mrb[31].mxu1  ;;  %v12762_v7 = vmax.f32 %v12691_v24, 0.0 }
 0x47a   :  { %v12697_v45 = vadd.f32 %v12696_v8, %v19333_v27  ;;  %v12743_v1 = vpop.f32.mrb[28].mxu0  ;;  %v12763_v60 = vmax.f32 %v12693_v9, 0.0 }
 0x47b   :  { %v12769_v17 = vmax.f32 %v12695_v62, 0.0  ;;  %v12744_v38 = vadd.f32 %v12743_v1, %v19318_v16  ;;  %v12745_v12 = vpop.f32.mrb[29].mxu0 }
 0x47c   :  { %v12770_v37 = vmax.f32 %v12697_v45, 0.0  ;;  %v12746_v50 = vpop.f32.mrb[30].mxu0 }
 0x47d   :  { %v12790_v36 = vpack.c.bf16 %v12769_v17, %v12762_v7  ;;  %v12747_v40 = vadd.f32 %v12746_v50, %v19333_v27  ;;  %v12748_v6 = vpop.f32.mrb[31].mxu0  ;;  %v12764_v33 = vmax.f32 %v12744_v38, 0.0 }
 0x47e   :  { %v20250_v2 = vpack.c.bf16 %v12770_v37, %v12763_v60  ;;  %v12700_v18 = vpop.f32.mrb[32].mxu1 }
 0x47f   :  { %v12771_v13 = vmax.f32 %v12747_v40, 0.0  ;;  %v12701_v22 = vadd.f32 %v12700_v18, %v19350_v41  ;;  %v12702_v29 = vpop.f32.mrb[33].mxu1  ;;  %14646 = vmatprep.subr.bf16.mxu1 %v12790_v36 }
 0x480   :  { %v12703_v3 = vadd.f32 %v12702_v29, %v19350_v41  ;;  %v12704_v32 = vpop.f32.mrb[34].mxu1  ;;  %14647 = vmatpush3.bf16.msra.mxu1 %v20222_v23 }
 0x481   :  { %v20255_v51 = vpack.c.bf16 %v12771_v13, %v12764_v33  ;;  %v12705_v42 = vadd.f32 %v12704_v32, %v19359_v10  ;;  %v12706_v4 = vpop.f32.mrb[35].mxu1  ;;  %v12776_v57 = vmax.f32 %v12701_v22, 0.0 }
 0x482   :  { %v12707_v26 = vadd.f32 %v12706_v4, %v19359_v10  ;;  %v12751_v56 = vpop.f32.mrb[32].mxu0  ;;  %v12777_v46 = vmax.f32 %v12703_v3, 0.0 }
 0x483   :  { %v12783_v52 = vmax.f32 %v12705_v42, 0.0  ;;  %v12752_v0 = vadd.f32 %v12751_v56, %v19350_v41  ;;  %v12753_v21 = vpop.f32.mrb[33].mxu0 }
 0x484   :  { %v12784_v30 = vmax.f32 %v12707_v26, 0.0  ;;  %v12754_v44 = vpop.f32.mrb[34].mxu0 }
 0x485   :  { %v12797_v47 = vpack.c.bf16 %v12783_v52, %v12776_v57  ;;  %v12755_v55 = vadd.f32 %v12754_v44, %v19359_v10  ;;  %v12756_v23 = vpop.f32.mrb[35].mxu0  ;;  %v12778_v28 = vmax.f32 %v12752_v0, 0.0 }
 0x486   :  { %v20261_v35 = vpack.c.bf16 %v12784_v30, %v12777_v46 }
 0x487   :  { %v12785_v53 = vmax.f32 %v12755_v55, 0.0  ;;  %14648 = vmatprep.subr.bf16.mxu1 %v12797_v47 }
 0x488   :  { %14649 = vmatpush3.bf16.msra.mxu1 %v20235_v19 }
 0x489   :  { %v20266_v63 = vpack.c.bf16 %v12785_v53, %v12778_v28  ;;  %14877 = vmatprep.subr.bf16.mxu1 %v20731_v25 }
 0x48b   :  { %13494 = vmatmul.mubr.bf16.vlgmr.msra.gmra.mrb[60].mxu1 %v14368_v14 }
 0x48c   :  { %14881 = vmatprep.mubr.msk.bf16.mxu1 %vm15600_vm8, %v20731_v25 }
 0x49a   :  { %v12911_v15 = vpop.f32.mrb[36].mxu1 }
 0x49b   :  { %v12912_v54 = vadd.f32 %v12911_v15, %v19318_v16  ;;  %v12913_v39 = vpop.f32.mrb[37].mxu1 }
 0x49c   :  { %v12914_v34 = vadd.f32 %v12913_v39, %v19318_v16  ;;  %v12915_v58 = vpop.f32.mrb[38].mxu1 }
 0x49d   :  { %v12916_v5 = vadd.f32 %v12915_v58, %v19333_v27  ;;  %v12917_v11 = vpop.f32.mrb[39].mxu1  ;;  %v13085_v49 = vmax.f32 %v12912_v54, 0.0 }
 0x49e   :  { %v12918_v19 = vadd.f32 %v12917_v11, %v19333_v27  ;;  %v12964_v43 = vpop.f32.mrb[36].mxu0  ;;  %v13086_v59 = vmax.f32 %v12914_v34, 0.0 }
 0x49f   :  { %v13092_v31 = vmax.f32 %v12916_v5, 0.0  ;;  %v12965_v20 = vadd.f32 %v12964_v43, %v19318_v16  ;;  %v12966_v24 = vpop.f32.mrb[37].mxu0 }
 0x4a0   :  { %v13093_v9 = vmax.f32 %v12918_v19, 0.0  ;;  %v12967_v48 = vadd.f32 %v12966_v24, %v19318_v16  ;;  %v12968_v62 = vpop.f32.mrb[38].mxu0 }
 0x4a1   :  { %v20277_v8 = vpack.c.bf16 %v13092_v31, %v13085_v49  ;;  %v12969_v45 = vadd.f32 %v12968_v62, %v19333_v27  ;;  %v12970_v1 = vpop.f32.mrb[39].mxu0  ;;  %v13087_v12 = vmax.f32 %v12965_v20, 0.0 }
 0x4a2   :  { %v20280_v7 = vpack.c.bf16 %v13093_v9, %v13086_v59  ;;  %v12971_v17 = vadd.f32 %v12970_v1, %v19333_v27  ;;  %v12921_v38 = vpop.f32.mrb[40].mxu1  ;;  %v13088_v36 = vmax.f32 %v12967_v48, 0.0 }
 0x4a3   :  { %v13094_v60 = vmax.f32 %v12969_v45, 0.0  ;;  %v12922_v37 = vadd.f32 %v12921_v38, %v19350_v41  ;;  %v12923_v50 = vpop.f32.mrb[41].mxu1 }
 0x4a4   :  { %v13095_v40 = vmax.f32 %v12971_v17, 0.0  ;;  %v12924_v6 = vadd.f32 %v12923_v50, %v19350_v41  ;;  %v12925_v18 = vpop.f32.mrb[42].mxu1 }
 0x4a5   :  { %v13115_v33 = vpack.c.bf16 %v13094_v60, %v13087_v12  ;;  %v12926_v13 = vadd.f32 %v12925_v18, %v19359_v10  ;;  %v12927_v22 = vpop.f32.mrb[43].mxu1  ;;  %v13099_v42 = vmax.f32 %v12922_v37, 0.0 }
 0x4a6   :  { %v13116_v29 = vpack.c.bf16 %v13095_v40, %v13088_v36  ;;  %v12928_v3 = vadd.f32 %v12927_v22, %v19359_v10  ;;  %v12974_v32 = vpop.f32.mrb[40].mxu0  ;;  %v13100_v57 = vmax.f32 %v12924_v6, 0.0 }
 0x4a7   :  { %v13106_v4 = vmax.f32 %v12926_v13, 0.0  ;;  %v12975_v26 = vadd.f32 %v12974_v32, %v19350_v41  ;;  %v12976_v56 = vpop.f32.mrb[41].mxu0  ;;  %14656 = vmatprep.subr.bf16.mxu0 %v13115_v33 }
 0x4a8   :  { %v13107_v52 = vmax.f32 %v12928_v3, 0.0  ;;  %v12977_v0 = vadd.f32 %v12976_v56, %v19350_v41  ;;  %v12978_v21 = vpop.f32.mrb[42].mxu0  ;;  %14657 = vmatpush3.bf16.msra.mxu0 %v20250_v2 }
 0x4a9   :  { %v20290_v46 = vpack.c.bf16 %v13106_v4, %v13099_v42  ;;  %v12979_v30 = vadd.f32 %v12978_v21, %v19359_v10  ;;  %v12980_v44 = vpop.f32.mrb[43].mxu0  ;;  %v13101_v23 = vmax.f32 %v12975_v26, 0.0 }
 0x4aa   :  { %v20293_v47 = vpack.c.bf16 %v13107_v52, %v13100_v57  ;;  %v12981_v55 = vadd.f32 %v12980_v44, %v19359_v10  ;;  %v13102_v53 = vmax.f32 %v12977_v0, 0.0 }
 0x4ab   :  { %v13108_v28 = vmax.f32 %v12979_v30, 0.0 }
 0x4ac   :  { %v13109_v14 = vmax.f32 %v12981_v55, 0.0  ;;  %v13250_v55 = vpop.permute.xlu0 %13249 }
 0x4ad   :  { %v13122_v15 = vpack.c.bf16 %v13108_v28, %v13101_v23 }
 0x4ae   :  { %v13123_v54 = vpack.c.bf16 %v13109_v14, %v13102_v53 }
 0x4af   :  { %14658 = vmatprep.subr.bf16.mxu0 %v13122_v15 }
 0x4b0   :  { %14659 = vmatpush3.bf16.msra.mxu0 %v20261_v35 }
 0x4b1   :  { %14660 = vmatprep.subr.bf16.mxu0 %v13116_v29 }
 0x4b4   :  { %14661 = vmatpush3.bf16.msra.mxu0 %v20255_v51 }
 0x4b5   :  { %14662 = vmatprep.subr.bf16.mxu0 %v13123_v54 }
 0x4b8   :  { %14663 = vmatpush3.bf16.msra.mxu0 %v20266_v63 }
 0x4be   :  { %v13017_v2 = vpop.f32.mrb[44].mxu1 }
 0x4bf   :  { %v13018_v39 = vadd.f32 %v13017_v2, %v19318_v16  ;;  %v13019_v34 = vpop.f32.mrb[45].mxu1 }
 0x4c0   :  { %v13020_v58 = vadd.f32 %v13019_v34, %v19318_v16  ;;  %v13021_v5 = vpop.f32.mrb[46].mxu1 }
 0x4c1   :  { %v13022_v11 = vadd.f32 %v13021_v5, %v19333_v27  ;;  %v13023_v19 = vpop.f32.mrb[47].mxu1  ;;  %v13089_v35 = vmax.f32 %v13018_v39, 0.0 }
 0x4c2   :  { %v13024_v43 = vadd.f32 %v13023_v19, %v19333_v27  ;;  %v13070_v49 = vpop.f32.mrb[44].mxu0  ;;  %v13090_v24 = vmax.f32 %v13020_v58, 0.0 }
 0x4c3   :  { %v13096_v31 = vmax.f32 %v13022_v11, 0.0  ;;  %v13071_v51 = vadd.f32 %v13070_v49, %v19318_v16  ;;  %v13072_v20 = vpop.f32.mrb[45].mxu0 }
 0x4c4   :  { %v13097_v63 = vmax.f32 %v13024_v43, 0.0  ;;  %v13073_v59 = vpop.f32.mrb[46].mxu0 }
 0x4c5   :  { %v13117_v9 = vpack.c.bf16 %v13096_v31, %v13089_v35  ;;  %v13074_v48 = vadd.f32 %v13073_v59, %v19333_v27  ;;  %v13075_v62 = vpop.f32.mrb[47].mxu0  ;;  %v13091_v17 = vmax.f32 %v13071_v51, 0.0 }
 0x4c6   :  { %v13118_v45 = vpack.c.bf16 %v13097_v63, %v13090_v24  ;;  %v13027_v1 = vpop.f32.mrb[48].mxu1 }
 0x4c7   :  { %v13098_v38 = vmax.f32 %v13074_v48, 0.0  ;;  %v13028_v12 = vadd.f32 %v13027_v1, %v19350_v41  ;;  %v13029_v60 = vpop.f32.mrb[49].mxu1  ;;  %14664 = vmatprep.subr.bf16.mxu0 %v13117_v9 }
 0x4c8   :  { %v13030_v37 = vadd.f32 %v13029_v60, %v19350_v41  ;;  %v13031_v50 = vpop.f32.mrb[50].mxu1  ;;  %14665 = vmatpush3.bf16.msra.mxu0 %v20277_v8 }
 0x4c9   :  { %v13119_v16 = vpack.c.bf16 %v13098_v38, %v13091_v17  ;;  %v13032_v36 = vadd.f32 %v13031_v50, %v19359_v10  ;;  %v13033_v40 = vpop.f32.mrb[51].mxu1  ;;  %v13103_v18 = vmax.f32 %v13028_v12, 0.0 }
 0x4ca   :  { %v13034_v27 = vadd.f32 %v13033_v40, %v19359_v10  ;;  %v13078_v6 = vpop.f32.mrb[48].mxu0  ;;  %v13104_v29 = vmax.f32 %v13030_v37, 0.0 }
 0x4cb   :  { %v13110_v33 = vmax.f32 %v13032_v36, 0.0  ;;  %v13079_v13 = vadd.f32 %v13078_v6, %v19350_v41  ;;  %v13080_v22 = vpop.f32.mrb[49].mxu0  ;;  %14878 = vmatpush3.bf16.msra.mxu1 %v13119_v16  ;;  %v15571_v41 = vld [vmem:[%s20330_s5 + $0x30] ss:$0 sps:$4 sm:$0xff]  }
 0x4cc   :  { %v13111_v3 = vmax.f32 %v13034_v27, 0.0  ;;  %v13081_v32 = vpop.f32.mrb[50].mxu0  ;;  %14879 = vmatprep.subr.bf16.mxu1 %v20731_v25 }
 0x4cd   :  { %v13124_v42 = vpack.c.bf16 %v13110_v33, %v13103_v18  ;;  %v13082_v8 = vadd.f32 %v13081_v32, %v19359_v10  ;;  %v13083_v4 = vpop.f32.mrb[51].mxu0  ;;  %v13105_v56 = vmax.f32 %v13079_v13, 0.0  ;;  %v14370_v10 = vcombine.low %v20220_v61, %v20220_v61 }
 0x4ce   :  { %v13125_v26 = vpack.c.bf16 %v13111_v3, %v13104_v29 }
 0x4cf   :  { %v13112_v57 = vmax.f32 %v13082_v8, 0.0  ;;  %14666 = vmatprep.subr.bf16.mxu0 %v13124_v42 }
 0x4d0   :  { %14667 = vmatpush3.bf16.msra.mxu0 %v20290_v46 }
 0x4d1   :  { %v13126_v52 = vpack.c.bf16 %v13112_v57, %v13105_v56  ;;  %14668 = vmatprep.subr.bf16.mxu0 %v13118_v45 }
 0x4d3   :  { %14880 = vmatpush3.bf16.msra.mxu1 %v13126_v52 }
 0x4d4   :  { %14669 = vmatpush3.bf16.msra.mxu0 %v20280_v7 }
 0x4d5   :  { %14670 = vmatprep.subr.bf16.mxu0 %v13125_v26 }
 0x4d6   :  { %14882 = vmatmul.mubr.msk.bf16.vlgmr.msra.gmra.mrb[64].mxu1 %vm13297_vm11, %v15571_v41 }
 0x4d8   :  { %14671 = vmatpush3.bf16.msra.mxu0 %v20293_v47 }
 0x4db   :  { %13534 = vmatmul.mubr.bf16.vlgmr.msra.gmra.mrb[60].mxu0 %v14370_v10 }
 0x4de   :  { %v14562_v25 = vpop.f32.mrb[52].mxu1 }
 0x4df   :  { %v14563_v0 = vpop.f32.mrb[53].mxu1 }
 0x4e0   :  { %v14564_v21 = vadd.f32 %v14563_v0, %v14562_v25  ;;  %v14565_v46 = vpop.f32.mrb[54].mxu1 }
 0x4e1   :  { %v14566_v30 = vpop.f32.mrb[55].mxu1 }
 0x4e2   :  { %v14584_v44 = vpop.f32.mrb[52].mxu0  ;;  %v13336_v28 = vadd.f32 %v14564_v21, %v13250_v55 }
 0x4e3   :  { %v14585_v23 = vpop.f32.mrb[53].mxu0 }
 0x4e4   :  { %v14586_v53 = vadd.f32 %v14585_v23, %v14584_v44  ;;  %v14587_v14 = vpop.f32.mrb[54].mxu0 }
 0x4e5   :  { %v14588_v7 = vpop.f32.mrb[55].mxu0 }
 0x4e6   :  { %v13376_v15 = vadd.f32 %v14586_v53, %v13336_v28 }
 0x4fe   :  { %v14606_v54 = vpop.f32.mrb[56].mxu1 }
 0x4ff   :  { %v14607_v2 = vpop.f32.mrb[57].mxu1 }
 0x500   :  { %v14608_v39 = vadd.f32 %v14607_v2, %v14606_v54  ;;  %v14609_v61 = vpop.f32.mrb[58].mxu1 }
 0x501   :  { %v14610_v34 = vpop.f32.mrb[59].mxu1 }
 0x502   :  { %v13416_v47 = vadd.f32 %v14608_v39, %v13376_v15 }
 0x50a   :  { %v14628_v58 = vpop.f32.mrb[56].mxu0 }
 0x50b   :  { %v14629_v5 = vpop.f32.mrb[57].mxu0 }
 0x50c   :  { %v14630_v11 = vadd.f32 %v14629_v5, %v14628_v58  ;;  %v14631_v19 = vpop.f32.mrb[58].mxu0 }
 0x50d   :  { %v14632_v43 = vpop.f32.mrb[59].mxu0 }
 0x50e   :  { %v13456_v49 = vadd.f32 %v14630_v11, %v13416_v47 }
 0x55e   :  { %v14650_v35 = vpop.f32.mrb[60].mxu1 }
 0x55f   :  { %v14651_v31 = vpop.f32.mrb[61].mxu1 }
 0x560   :  { %v14652_v51 = vadd.f32 %v14651_v31, %v14650_v35  ;;  %v14653_v20 = vpop.f32.mrb[62].mxu1 }
 0x561   :  { %v14654_v24 = vpop.f32.mrb[63].mxu1 }
 0x562   :  { %v13496_v63 = vadd.f32 %v14652_v51, %v13456_v49 }
 0x5a9   :  { %v13575_v59 = vpop.f32.mrb[64].mxu1 }
 0x5aa   :  { %v14883_v9 = vpop.f32.mrb[65].mxu1 }
 0x5ab   :  { %v13578_v48 = vpop.f32.mrb[66].mxu1 }
 0x5ac   :  { %v14884_v62 = vpop.f32.mrb[67].mxu1 }
 0x5ae   :  { %v14672_v45 = vpop.f32.mrb[60].mxu0 }
 0x5af   :  { %v14673_v1 = vpop.f32.mrb[61].mxu0 }
 0x5b0   :  { %v14674_v17 = vadd.f32 %v14673_v1, %v14672_v45  ;;  %v14675_v38 = vpop.f32.mrb[62].mxu0 }
 0x5b1   :  { %v14676_v12 = vpop.f32.mrb[63].mxu0 }
 0x5b2   :  { %v13536_v60 = vadd.f32 %v14674_v17, %v13496_v63 }
 0x5b4   :  { %v13576_v37 = vadd.f32 %v13575_v59, %v13536_v60 }
 0x5b6   :  { %13581 = vst [vmem:[%s20331_s7] sm:$0xff] %v13576_v37 }

</bundles_post_ra>
